<compile_context>
chip_gen: v7x
topology: tpu7x:2x2x1
jax: 0.10.0
libtpu: 0.0.40
codegen_flags: <defaults>
</compile_context>

<pallas_src>
import functools

import jax
import jax.numpy as jnp
import numpy as np
from jax.experimental import pallas as pl
from jax.experimental.pallas import tpu as pltpu

_C1, _C2, _C3 = 64, 128, 256      # channel widths fixed by the module
_LANE = 128


def _round_up(v, m):
    return -(-v // m) * m


def _pad_rows(w):
    # zero rows added above/below the flattened (H*W, C) image so every 3x3 tap is a
    # static row-shifted slice of a single padded VMEM buffer (needs >= W+1, 8-aligned).
    return _round_up(w + 1, 8)


def _pool_matrix(h, w):
    """Exact AdaptiveAvgPool2d((4, 4)) expressed as a (16, H*W) matrix."""
    p = np.zeros((16, h * w), np.float32)
    for oh in range(4):
        h0, h1 = (oh * h) // 4, -((-(oh + 1) * h) // 4)
        for ow in range(4):
            w0, w1 = (ow * w) // 4, -((-(ow + 1) * w) // 4)
            val = 1.0 / float((h1 - h0) * (w1 - w0))
            for i in range(h0, h1):
                p[oh * 4 + ow, i * w + w0:i * w + w1] = val
    return p


# -----------------------------------------------------------------------------
# Kernel 1: conv1 -> conv2 -> conv3 -> adaptive avg-pool(4x4), one image / step
# -----------------------------------------------------------------------------
def _fused_conv_pool_kernel(x_ref, w1_ref, b1_ref, w2_ref, b2_ref, w3_ref,
                            b3_ref, p_ref, ml_ref, mr_ref, out_ref,
                            buf1, buf2, acc1, acc2, acc3, *, W, HW, PADT):
    mask_l = ml_ref[...]     # (HW, 1): zero where the dx=0 tap crosses the left edge
    mask_r = mr_ref[...]     # (HW, 1): zero where the dx=2 tap crosses the right edge

    def conv3x3(load_patch, w_ref, acc_ref):
        # 9 shifted (HW, Cin) x (Cin, Cout) bf16 MXU matmuls, f32 accumulation in VMEM.
        t = 0
        for dy in range(3):
            for dx in range(3):
                off = (dy - 1) * W + (dx - 1)
                patch = load_patch(off)                    # (HW, Cin) f32
                if dx == 0:
                    patch = patch * mask_l
                elif dx == 2:
                    patch = patch * mask_r
                contrib = jnp.dot(patch.astype(jnp.bfloat16), w_ref[t],
                                  preferred_element_type=jnp.float32)
                if t == 0:
                    acc_ref[...] = contrib
                else:
                    acc_ref[...] += contrib
                t += 1

    def bias_relu(acc_ref, b_ref):
        return jnp.maximum(acc_ref[...] + b_ref[...], 0.0)

    def store_padded(buf_ref, y):
        rows, c = buf_ref.shape
        buf_ref[0:PADT, :] = jnp.zeros((PADT, c), jnp.float32)
        buf_ref[PADT + HW:rows, :] = jnp.zeros((rows - PADT - HW, c), jnp.float32)
        buf_ref[PADT:PADT + HW, :] = y

    conv3x3(lambda off: x_ref[0, PADT + off:PADT + off + HW, :], w1_ref, acc1)
    store_padded(buf1, bias_relu(acc1, b1_ref))
    conv3x3(lambda off: buf1[PADT + off:PADT + off + HW, :], w2_ref, acc2)
    store_padded(buf2, bias_relu(acc2, b2_ref))
    conv3x3(lambda off: buf2[PADT + off:PADT + off + HW, :], w3_ref, acc3)

    # Adaptive 4x4 average pool == pooling-matrix matmul over the resident conv3
    # accumulator, done in 128-lane chunks so the (1, 16, 256) output block gets
    # lane-dense (unmasked) stores.
    for c0 in range(0, _C3, _LANE):
        y3c = jnp.maximum(acc3[:, c0:c0 + _LANE] + b3_ref[:, c0:c0 + _LANE], 0.0)
        out_ref[0, :, c0:c0 + _LANE] = jnp.dot(
            p_ref[...], y3c.astype(jnp.bfloat16),
            preferred_element_type=jnp.float32)


def _fused_conv_pool(x_pad, kp, H, W):
    N, ROWS, cin_p = x_pad.shape
    HW = H * W
    PADT = _pad_rows(W)

    pool = jnp.asarray(_pool_matrix(H, W), jnp.bfloat16)
    col = np.arange(HW, dtype=np.int64) % W
    mask_l = jnp.asarray((col > 0).astype(np.float32).reshape(HW, 1))
    mask_r = jnp.asarray((col < W - 1).astype(np.float32).reshape(HW, 1))

    kernel = functools.partial(_fused_conv_pool_kernel, W=W, HW=HW, PADT=PADT)
    return pl.pallas_call(
        kernel,
        out_shape=jax.ShapeDtypeStruct((N, 16, _C3), jnp.float32),
        grid_spec=pltpu.PrefetchScalarGridSpec(
            num_scalar_prefetch=0,
            grid=(N,),
            in_specs=[
                pl.BlockSpec((1, ROWS, cin_p), lambda n: (n, 0, 0)),  # x (row-padded)
                pl.BlockSpec((9, cin_p, _C1), lambda n: (0, 0, 0)),   # w1 taps
                pl.BlockSpec((1, _C1), lambda n: (0, 0)),             # b1
                pl.BlockSpec((9, _C1, _C2), lambda n: (0, 0, 0)),     # w2 taps
                pl.BlockSpec((1, _C2), lambda n: (0, 0)),             # b2
                pl.BlockSpec((9, _C2, _C3), lambda n: (0, 0, 0)),     # w3 taps
                pl.BlockSpec((1, _C3), lambda n: (0, 0)),             # b3
                pl.BlockSpec((16, HW), lambda n: (0, 0)),             # pooling matrix
                pl.BlockSpec((HW, 1), lambda n: (0, 0)),              # left-edge mask
                pl.BlockSpec((HW, 1), lambda n: (0, 0)),              # right-edge mask
            ],
            out_specs=pl.BlockSpec((1, 16, _C3), lambda n: (n, 0, 0)),
            scratch_shapes=[
                pltpu.VMEM((ROWS, _C1), jnp.float32),   # padded conv1 activations
                pltpu.VMEM((ROWS, _C2), jnp.float32),   # padded conv2 activations
                pltpu.VMEM((HW, _C1), jnp.float32),     # conv1 f32 accumulator
                pltpu.VMEM((HW, _C2), jnp.float32),     # conv2 f32 accumulator
                pltpu.VMEM((HW, _C3), jnp.float32),     # conv3 f32 accumulator
            ],
        ),
        compiler_params=pltpu.CompilerParams(
            dimension_semantics=("parallel",),            # batch axis -> megacore (v7x)
            vmem_limit_bytes=32 * 1024 * 1024),
    )(x_pad, kp["w1"], kp["b1"], kp["w2"], kp["b2"], kp["w3"], kp["b3"],
      pool, mask_l, mask_r)


# -----------------------------------------------------------------------------
# Kernel 2: Linear layer as a K-tiled bf16 GEMM accumulating into the output
# -----------------------------------------------------------------------------
def _linear_kernel(x_ref, w_ref, b_ref, o_ref):
    @pl.when(pl.program_id(0) == 0)
    def _init():
        o_ref[...] = jnp.zeros_like(o_ref)

    o_ref[...] += jnp.dot(x_ref[...], w_ref[...],
                          preferred_element_type=jnp.float32)

    @pl.when(pl.program_id(0) == pl.num_programs(0) - 1)
    def _finish():
        o_ref[...] += b_ref[...]


def _linear(x, w, b):
    """(M, K) @ (K, Np) + b.  w/b are pre-padded so Np is a multiple of 128."""
    M, K = x.shape
    Kw, Np = w.shape
    assert K == Kw and Np % _LANE == 0
    Mp = _round_up(max(M, 1), 8)
    xp = jnp.pad(x, ((0, Mp - M), (0, 0))).astype(jnp.bfloat16)

    if K % 128 == 0:                      # pick the largest K tile <= 512 dividing K
        tk = next(t for t in (512, 384, 256, 128) if K % t == 0)
    else:                                 # small/odd K: single step, no over-padding
        tk = K

    out = pl.pallas_call(
        _linear_kernel,
        out_shape=jax.ShapeDtypeStruct((Mp, Np), jnp.float32),
        grid_spec=pltpu.PrefetchScalarGridSpec(
            num_scalar_prefetch=0,
            grid=(K // tk,),
            in_specs=[
                pl.BlockSpec((Mp, tk), lambda k: (0, k)),
                pl.BlockSpec((tk, Np), lambda k: (k, 0)),
                pl.BlockSpec((1, Np), lambda k: (0, 0)),
            ],
            out_specs=pl.BlockSpec((Mp, Np), lambda k: (0, 0)),
        ),
        compiler_params=pltpu.CompilerParams(
            dimension_semantics=("arbitrary",),
            vmem_limit_bytes=32 * 1024 * 1024),
    )(xp, w, b)
    return out[:M]


# -----------------------------------------------------------------------------
# One-time parameter preprocessing (hoisted weight transposes / padding / bf16)
# -----------------------------------------------------------------------------
def prepare_params(params, in_channels, embedding_dim):
    cin_p = _round_up(in_channels, 8)

    def conv_w(w_oihw, cin_pad):
        cout, cin = int(w_oihw.shape[0]), int(w_oihw.shape[1])
        wk = jnp.transpose(w_oihw, (2, 3, 1, 0)).reshape(9, cin, cout)  # [tap, ci, co]
        if cin_pad > cin:
            wk = jnp.pad(wk, ((0, 0), (0, cin_pad - cin), (0, 0)))
        return wk.astype(jnp.bfloat16)

    emb = embedding_dim
    np_ = _round_up(emb, _LANE)
    # PyTorch Flatten order is (c, oh, ow); our pooled flatten order is (q=oh*4+ow, c).
    wl = params["wl"]                                                     # (emb, 256*16)
    wl_perm = wl.reshape(emb, _C3, 16).transpose(2, 1, 0).reshape(16 * _C3, emb)
    wl_perm = jnp.pad(wl_perm, ((0, 0), (0, np_ - emb))).astype(jnp.bfloat16)
    bl = jnp.pad(params["bl"], (0, np_ - emb)).reshape(1, np_).astype(jnp.float32)

    return dict(
        w1=conv_w(params["w1"], cin_p),
        b1=params["b1"].reshape(1, _C1).astype(jnp.float32),
        w2=conv_w(params["w2"], _C1),
        b2=params["b2"].reshape(1, _C2).astype(jnp.float32),
        w3=conv_w(params["w3"], _C2),
        b3=params["b3"].reshape(1, _C3).astype(jnp.float32),
        wl=wl_perm, bl=bl, emb=emb)


def generic_cnn_encoder(x_nchw, kp):
    """Forward pass matching GenericCNNEncoder(in_channels, embedding_dim)."""
    N, Cin, H, W = x_nchw.shape
    cin_p = kp["w1"].shape[1]
    PADT = _pad_rows(W)

    # NCHW -> flattened NHWC rows with zero halo rows above/below (tiny XLA glue).
    x = jnp.transpose(x_nchw, (0, 2, 3, 1)).astype(jnp.float32)
    x = jnp.pad(x, ((0, 0), (0, 0), (0, 0), (0, cin_p - Cin)))
    x = x.reshape(N, H * W, cin_p)
    x = jnp.pad(x, ((0, 0), (PADT, PADT), (0, 0)))

    pooled = _fused_conv_pool(x, kp, H, W)          # (N, 16, 256) f32
    flat = pooled.reshape(N, 16 * _C3)              # row index = q*256 + c
    out = _linear(flat, kp["wl"], kp["bl"])         # (N, emb padded to 128)
    return out[:, :kp["emb"]]


# -----------------------------------------------------------------------------
# Deterministic parameter init (PyTorch-default-style uniform bounds)
# -----------------------------------------------------------------------------
def init_params(key, in_channels, embedding_dim):
    def conv_init(k, cout, cin):
        k1, k2 = jax.random.split(k)
        bound = 1.0 / np.sqrt(cin * 9)
        w = jax.random.uniform(k1, (cout, cin, 3, 3), jnp.float32, -bound, bound)
        b = jax.random.uniform(k2, (cout,), jnp.float32, -bound, bound)
        return w, b

    keys = jax.random.split(key, 4)
    w1, b1 = conv_init(keys[0], _C1, in_channels)
    w2, b2 = conv_init(keys[1], _C2, _C1)
    w3, b3 = conv_init(keys[2], _C3, _C2)
    fan_in = _C3 * 4 * 4
    bound = 1.0 / np.sqrt(fan_in)
    kl1, kl2 = jax.random.split(keys[3])
    wl = jax.random.uniform(kl1, (embedding_dim, fan_in), jnp.float32, -bound, bound)
    bl = jax.random.uniform(kl2, (embedding_dim,), jnp.float32, -bound, bound)
    return dict(w1=w1, b1=b1, w2=w2, b2=b2, w3=w3, b3=b3, wl=wl, bl=bl)


# -----------------------------------------------------------------------------
# Pure-JAX reference (f32, highest precision) for verification
# -----------------------------------------------------------------------------
def reference_forward(x_nchw, params):
    def conv(x, w, b):
        y = jax.lax.conv_general_dilated(
            x, w, (1, 1), "SAME", dimension_numbers=("NCHW", "OIHW", "NCHW"),
            precision=jax.lax.Precision.HIGHEST)
        return jax.nn.relu(y + b[None, :, None, None])

    x = conv(x_nchw, params["w1"], params["b1"])
    x = conv(x, params["w2"], params["b2"])
    x = conv(x, params["w3"], params["b3"])
    N, C, H, W = x.shape
    pooled = x.reshape(N, C, 4, H // 4, 4, W // 4).mean(axis=(3, 5))
    flat = pooled.reshape(N, C * 16)
    return (jnp.dot(flat, params["wl"].T, precision=jax.lax.Precision.HIGHEST)
            + params["bl"])


if __name__ == "__main__":
    key = jax.random.PRNGKey(0)
    kx, kparam = jax.random.split(key)
    batch, in_channels, hw, embedding_dim = 2, 4, 16, 32

    x = jax.random.normal(kx, (batch, in_channels, hw, hw), jnp.float32)
    params = init_params(kparam, in_channels, embedding_dim)
    kp = prepare_params(params, in_channels, embedding_dim)   # one-time layout prep

    fwd = jax.jit(lambda xx: generic_cnn_encoder(xx, kp))
    out = jax.block_until_ready(fwd(x))
    ref = jax.block_until_ready(reference_forward(x, params))

    assert out.shape == (batch, embedding_dim)
    # bf16 MXU inputs with f32 accumulation -> slightly relaxed tolerance vs f32 ref.
    np.testing.assert_allclose(np.asarray(out), np.asarray(ref), rtol=2e-2, atol=5e-3)
    print("KERNEL_OK")
</pallas_src>

<mosaic_0001>
module attributes {stable_mosaic.version = 11 : i64} {
  func.func @_linear_kernel(%arg0: i32, %arg1: memref<8x512xbf16, #tpu.memory_space<vmem>>, %arg2: memref<512x128xbf16, #tpu.memory_space<vmem>>, %arg3: memref<1x128xf32, #tpu.memory_space<vmem>>, %arg4: memref<8x128xf32, #tpu.memory_space<vmem>>) attributes {dimension_semantics = [#tpu.dimension_semantics<arbitrary>], iteration_bounds = array<i64: 8>, scalar_prefetch = 0 : i64, scratch_operands = 0 : i64, tpu.core_type = #tpu.core_type<tc>, window_params = [{transform_indices = @transform_0, window_bounds = array<i64: 8, 512>}, {transform_indices = @transform_1, window_bounds = array<i64: 512, 128>}, {pipeline_mode = #tpu.pipeline_mode<synchronous>, transform_indices = @transform_2, window_bounds = array<i64: 1, 128>}, {pipeline_mode = #tpu.pipeline_mode<synchronous>, transform_indices = @transform_3, window_bounds = array<i64: 8, 128>}]} {
    %c0_i32 = arith.constant 0 : i32
    %0 = arith.cmpi eq, %arg0, %c0_i32 : i32
    %1 = arith.extui %0 : i1 to i32
    %c0_i32_0 = arith.constant 0 : i32
    %2 = arith.cmpi ne, %1, %c0_i32_0 : i32
    scf.if %2 {
      %cst_9 = arith.constant 0.000000e+00 : f32
      %12 = vector.broadcast %cst_9 : f32 to vector<8x128xf32>
      %c0_10 = arith.constant 0 : index
      %c0_11 = arith.constant 0 : index
      %13 = vector.load %arg4[%c0_10, %c0_11] : memref<8x128xf32, #tpu.memory_space<vmem>>, vector<8x128xf32>
      tpu.vector_store %arg4[%c0_10, %c0_11], %12 {strides = array<i32>} : memref<8x128xf32, #tpu.memory_space<vmem>>, vector<8x128xf32>,
    } else {
    }
    %c0 = arith.constant 0 : index
    %c0_1 = arith.constant 0 : index
    %3 = vector.load %arg4[%c0, %c0_1] : memref<8x128xf32, #tpu.memory_space<vmem>>, vector<8x128xf32>
    %c0_2 = arith.constant 0 : index
    %c0_3 = arith.constant 0 : index
    %4 = vector.load %arg1[%c0_2, %c0_3] : memref<8x512xbf16, #tpu.memory_space<vmem>>, vector<8x512xbf16>
    %c0_4 = arith.constant 0 : index
    %c0_5 = arith.constant 0 : index
    %5 = vector.load %arg2[%c0_4, %c0_5] : memref<512x128xbf16, #tpu.memory_space<vmem>>, vector<512x128xbf16>
    %cst = arith.constant dense<0.000000e+00> : vector<8x128xf32>
    %6 = tpu.matmul %4, %5, %cst {dimension_numbers = #tpu.dot_dimension_numbers<[1], [0], [0], [1], [0, 0, 1, 1], [], []>} : vector<8x512xbf16>, vector<512x128xbf16>, vector<8x128xf32> -> vector<8x128xf32>
    %7 = arith.addf %3, %6 : vector<8x128xf32>
    %c0_6 = arith.constant 0 : index
    %c0_7 = arith.constant 0 : index
    %8 = vector.load %arg4[%c0_6, %c0_7] : memref<8x128xf32, #tpu.memory_space<vmem>>, vector<8x128xf32>
    tpu.vector_store %arg4[%c0_6, %c0_7], %7 {strides = array<i32>} : memref<8x128xf32, #tpu.memory_space<vmem>>, vector<8x128xf32>,
    %c7_i32 = arith.constant 7 : i32
    %9 = arith.cmpi eq, %arg0, %c7_i32 : i32
    %10 = arith.extui %9 : i1 to i32
    %c0_i32_8 = arith.constant 0 : i32
    %11 = arith.cmpi ne, %10, %c0_i32_8 : i32
    scf.if %11 {
      %c0_9 = arith.constant 0 : index
      %c0_10 = arith.constant 0 : index
      %12 = vector.load %arg4[%c0_9, %c0_10] : memref<8x128xf32, #tpu.memory_space<vmem>>, vector<8x128xf32>
      %c0_11 = arith.constant 0 : index
      %c0_12 = arith.constant 0 : index
      %13 = vector.load %arg3[%c0_11, %c0_12] : memref<1x128xf32, #tpu.memory_space<vmem>>, vector<1x128xf32>
      %14 = vector.broadcast %13 : vector<1x128xf32> to vector<8x128xf32>
      %15 = arith.addf %12, %14 : vector<8x128xf32>
      %c0_13 = arith.constant 0 : index
      %c0_14 = arith.constant 0 : index
      %16 = vector.load %arg4[%c0_13, %c0_14] : memref<8x128xf32, #tpu.memory_space<vmem>>, vector<8x128xf32>
      tpu.vector_store %arg4[%c0_13, %c0_14], %15 {strides = array<i32>} : memref<8x128xf32, #tpu.memory_space<vmem>>, vector<8x128xf32>,
    } else {
    }
    return
  }
  func.func @transform_0(%arg0: i32) -> (i32, i32) {
    %c0_i32 = arith.constant 0 : i32
    %c0_i32_0 = arith.constant 0 : i32
    return %c0_i32, %arg0 : i32, i32
  }
  func.func @transform_1(%arg0: i32) -> (i32, i32) {
    %c0_i32 = arith.constant 0 : i32
    %c0_i32_0 = arith.constant 0 : i32
    return %arg0, %c0_i32 : i32, i32
  }
  func.func @transform_2(%arg0: i32) -> (i32, i32) {
    %c0_i32 = arith.constant 0 : i32
    %c0_i32_0 = arith.constant 0 : i32
    %c0_i32_1 = arith.constant 0 : i32
    return %c0_i32, %c0_i32_0 : i32, i32
  }
  func.func @transform_3(%arg0: i32) -> (i32, i32) {
    %c0_i32 = arith.constant 0 : i32
    %c0_i32_0 = arith.constant 0 : i32
    %c0_i32_1 = arith.constant 0 : i32
    return %c0_i32, %c0_i32_0 : i32, i32
  }
}

module attributes {stable_mosaic.version = 11 : i64} {
  func.func @_fused_conv_pool_kernel(%arg0: i32, %arg1: memref<1x304x8xf32, #tpu.memory_space<vmem>>, %arg2: memref<9x8x64xbf16, #tpu.memory_space<vmem>>, %arg3: memref<1x64xf32, #tpu.memory_space<vmem>>, %arg4: memref<9x64x128xbf16, #tpu.memory_space<vmem>>, %arg5: memref<1x128xf32, #tpu.memory_space<vmem>>, %arg6: memref<9x128x256xbf16, #tpu.memory_space<vmem>>, %arg7: memref<1x256xf32, #tpu.memory_space<vmem>>, %arg8: memref<16x256xbf16, #tpu.memory_space<vmem>>, %arg9: memref<256x1xf32, #tpu.memory_space<vmem>>, %arg10: memref<256x1xf32, #tpu.memory_space<vmem>>, %arg11: memref<1x16x256xf32, #tpu.memory_space<vmem>>, %arg12: memref<304x64xf32, #tpu.memory_space<vmem>>, %arg13: memref<304x128xf32, #tpu.memory_space<vmem>>, %arg14: memref<256x64xf32, #tpu.memory_space<vmem>>, %arg15: memref<256x128xf32, #tpu.memory_space<vmem>>, %arg16: memref<256x256xf32, #tpu.memory_space<vmem>>) attributes {dimension_semantics = [#tpu.dimension_semantics<parallel>], iteration_bounds = array<i64: 2>, scalar_prefetch = 0 : i64, scratch_operands = 5 : i64, tpu.core_type = #tpu.core_type<tc>, window_params = [{transform_indices = @transform_0, window_bounds = array<i64: 1, 304, 8>}, {pipeline_mode = #tpu.pipeline_mode<synchronous>, transform_indices = @transform_1, window_bounds = array<i64: 9, 8, 64>}, {pipeline_mode = #tpu.pipeline_mode<synchronous>, transform_indices = @transform_2, window_bounds = array<i64: 1, 64>}, {pipeline_mode = #tpu.pipeline_mode<synchronous>, transform_indices = @transform_3, window_bounds = array<i64: 9, 64, 128>}, {pipeline_mode = #tpu.pipeline_mode<synchronous>, transform_indices = @transform_4, window_bounds = array<i64: 1, 128>}, {pipeline_mode = #tpu.pipeline_mode<synchronous>, transform_indices = @transform_5, window_bounds = array<i64: 9, 128, 256>}, {pipeline_mode = #tpu.pipeline_mode<synchronous>, transform_indices = @transform_6, window_bounds = array<i64: 1, 256>}, {pipeline_mode = #tpu.pipeline_mode<synchronous>, transform_indices = @transform_7, window_bounds = array<i64: 16, 256>}, {pipeline_mode = #tpu.pipeline_mode<synchronous>, transform_indices = @transform_8, window_bounds = array<i64: 256, 1>}, {pipeline_mode = #tpu.pipeline_mode<synchronous>, transform_indices = @transform_9, window_bounds = array<i64: 256, 1>}, {transform_indices = @transform_10, window_bounds = array<i64: 1, 16, 256>}]} {
    %c0 = arith.constant 0 : index
    %c0_0 = arith.constant 0 : index
    %0 = vector.load %arg9[%c0, %c0_0] : memref<256x1xf32, #tpu.memory_space<vmem>>, vector<256x1xf32>
    %c0_1 = arith.constant 0 : index
    %c0_2 = arith.constant 0 : index
    %1 = vector.load %arg10[%c0_1, %c0_2] : memref<256x1xf32, #tpu.memory_space<vmem>>, vector<256x1xf32>
    %c0_3 = arith.constant 0 : index
    %c7 = arith.constant 7 : index
    %c0_4 = arith.constant 0 : index
    %2 = vector.load %arg1[%c0_3, %c7, %c0_4] : memref<1x304x8xf32, #tpu.memory_space<vmem>>, vector<1x256x8xf32>
    %3 = vector.shape_cast %2 : vector<1x256x8xf32> to vector<256x8xf32>
    %4 = vector.broadcast %0 : vector<256x1xf32> to vector<256x8xf32>
    %5 = arith.mulf %3, %4 : vector<256x8xf32>
    %6 = arith.truncf %5 : vector<256x8xf32> to vector<256x8xbf16>
    %c0_5 = arith.constant 0 : index
    %c0_6 = arith.constant 0 : index
    %c0_7 = arith.constant 0 : index
    %7 = vector.load %arg2[%c0_5, %c0_6, %c0_7] : memref<9x8x64xbf16, #tpu.memory_space<vmem>>, vector<1x8x64xbf16>
    %8 = vector.shape_cast %7 : vector<1x8x64xbf16> to vector<8x64xbf16>
    %cst = arith.constant dense<0.000000e+00> : vector<256x64xf32>
    %9 = tpu.matmul %6, %8, %cst {dimension_numbers = #tpu.dot_dimension_numbers<[1], [0], [0], [1], [0, 0, 1, 1], [], []>} : vector<256x8xbf16>, vector<8x64xbf16>, vector<256x64xf32> -> vector<256x64xf32>
    %c0_8 = arith.constant 0 : index
    %c0_9 = arith.constant 0 : index
    %10 = vector.load %arg14[%c0_8, %c0_9] : memref<256x64xf32, #tpu.memory_space<vmem>>, vector<256x64xf32>
    tpu.vector_store %arg14[%c0_8, %c0_9], %9 {strides = array<i32>} : memref<256x64xf32, #tpu.memory_space<vmem>>, vector<256x64xf32>,
    %c0_10 = arith.constant 0 : index
    %c8 = arith.constant 8 : index
    %c0_11 = arith.constant 0 : index
    %11 = vector.load %arg1[%c0_10, %c8, %c0_11] : memref<1x304x8xf32, #tpu.memory_space<vmem>>, vector<1x256x8xf32>
    %12 = vector.shape_cast %11 : vector<1x256x8xf32> to vector<256x8xf32>
    %13 = arith.truncf %12 : vector<256x8xf32> to vector<256x8xbf16>
    %c1 = arith.constant 1 : index
    %c0_12 = arith.constant 0 : index
    %c0_13 = arith.constant 0 : index
    %14 = vector.load %arg2[%c1, %c0_12, %c0_13] : memref<9x8x64xbf16, #tpu.memory_space<vmem>>, vector<1x8x64xbf16>
    %15 = vector.shape_cast %14 : vector<1x8x64xbf16> to vector<8x64xbf16>
    %cst_14 = arith.constant dense<0.000000e+00> : vector<256x64xf32>
    %16 = tpu.matmul %13, %15, %cst_14 {dimension_numbers = #tpu.dot_dimension_numbers<[1], [0], [0], [1], [0, 0, 1, 1], [], []>} : vector<256x8xbf16>, vector<8x64xbf16>, vector<256x64xf32> -> vector<256x64xf32>
    %c0_15 = arith.constant 0 : index
    %c0_16 = arith.constant 0 : index
    %17 = vector.load %arg14[%c0_15, %c0_16] : memref<256x64xf32, #tpu.memory_space<vmem>>, vector<256x64xf32>
    %18 = arith.addf %17, %16 : vector<256x64xf32>
    %c0_17 = arith.constant 0 : index
    %c0_18 = arith.constant 0 : index
    %19 = vector.load %arg14[%c0_17, %c0_18] : memref<256x64xf32, #tpu.memory_space<vmem>>, vector<256x64xf32>
    tpu.vector_store %arg14[%c0_17, %c0_18], %18 {strides = array<i32>} : memref<256x64xf32, #tpu.memory_space<vmem>>, vector<256x64xf32>,
    %c0_19 = arith.constant 0 : index
    %c9 = arith.constant 9 : index
    %c0_20 = arith.constant 0 : index
    %20 = vector.load %arg1[%c0_19, %c9, %c0_20] : memref<1x304x8xf32, #tpu.memory_space<vmem>>, vector<1x256x8xf32>
    %21 = vector.shape_cast %20 : vector<1x256x8xf32> to vector<256x8xf32>
    %22 = vector.broadcast %1 : vector<256x1xf32> to vector<256x8xf32>
    %23 = arith.mulf %21, %22 : vector<256x8xf32>
    %24 = arith.truncf %23 : vector<256x8xf32> to vector<256x8xbf16>
    %c2 = arith.constant 2 : index
    %c0_21 = arith.constant 0 : index
    %c0_22 = arith.constant 0 : index
    %25 = vector.load %arg2[%c2, %c0_21, %c0_22] : memref<9x8x64xbf16, #tpu.memory_space<vmem>>, vector<1x8x64xbf16>
    %26 = vector.shape_cast %25 : vector<1x8x64xbf16> to vector<8x64xbf16>
    %cst_23 = arith.constant dense<0.000000e+00> : vector<256x64xf32>
    %27 = tpu.matmul %24, %26, %cst_23 {dimension_numbers = #tpu.dot_dimension_numbers<[1], [0], [0], [1], [0, 0, 1, 1], [], []>} : vector<256x8xbf16>, vector<8x64xbf16>, vector<256x64xf32> -> vector<256x64xf32>
    %c0_24 = arith.constant 0 : index
    %c0_25 = arith.constant 0 : index
    %28 = vector.load %arg14[%c0_24, %c0_25] : memref<256x64xf32, #tpu.memory_space<vmem>>, vector<256x64xf32>
    %29 = arith.addf %28, %27 : vector<256x64xf32>
    %c0_26 = arith.constant 0 : index
    %c0_27 = arith.constant 0 : index
    %30 = vector.load %arg14[%c0_26, %c0_27] : memref<256x64xf32, #tpu.memory_space<vmem>>, vector<256x64xf32>
    tpu.vector_store %arg14[%c0_26, %c0_27], %29 {strides = array<i32>} : memref<256x64xf32, #tpu.memory_space<vmem>>, vector<256x64xf32>,
    %c0_28 = arith.constant 0 : index
    %c23 = arith.constant 23 : index
    %c0_29 = arith.constant 0 : index
    %31 = vector.load %arg1[%c0_28, %c23, %c0_29] : memref<1x304x8xf32, #tpu.memory_space<vmem>>, vector<1x256x8xf32>
    %32 = vector.shape_cast %31 : vector<1x256x8xf32> to vector<256x8xf32>
    %33 = vector.broadcast %0 : vector<256x1xf32> to vector<256x8xf32>
    %34 = arith.mulf %32, %33 : vector<256x8xf32>
    %35 = arith.truncf %34 : vector<256x8xf32> to vector<256x8xbf16>
    %c3 = arith.constant 3 : index
    %c0_30 = arith.constant 0 : index
    %c0_31 = arith.constant 0 : index
    %36 = vector.load %arg2[%c3, %c0_30, %c0_31] : memref<9x8x64xbf16, #tpu.memory_space<vmem>>, vector<1x8x64xbf16>
    %37 = vector.shape_cast %36 : vector<1x8x64xbf16> to vector<8x64xbf16>
    %cst_32 = arith.constant dense<0.000000e+00> : vector<256x64xf32>
    %38 = tpu.matmul %35, %37, %cst_32 {dimension_numbers = #tpu.dot_dimension_numbers<[1], [0], [0], [1], [0, 0, 1, 1], [], []>} : vector<256x8xbf16>, vector<8x64xbf16>, vector<256x64xf32> -> vector<256x64xf32>
    %c0_33 = arith.constant 0 : index
    %c0_34 = arith.constant 0 : index
    %39 = vector.load %arg14[%c0_33, %c0_34] : memref<256x64xf32, #tpu.memory_space<vmem>>, vector<256x64xf32>
    %40 = arith.addf %39, %38 : vector<256x64xf32>
    %c0_35 = arith.constant 0 : index
    %c0_36 = arith.constant 0 : index
    %41 = vector.load %arg14[%c0_35, %c0_36] : memref<256x64xf32, #tpu.memory_space<vmem>>, vector<256x64xf32>
    tpu.vector_store %arg14[%c0_35, %c0_36], %40 {strides = array<i32>} : memref<256x64xf32, #tpu.memory_space<vmem>>, vector<256x64xf32>,
    %c0_37 = arith.constant 0 : index
    %c24 = arith.constant 24 : index
    %c0_38 = arith.constant 0 : index
    %42 = vector.load %arg1[%c0_37, %c24, %c0_38] : memref<1x304x8xf32, #tpu.memory_space<vmem>>, vector<1x256x8xf32>
    %43 = vector.shape_cast %42 : vector<1x256x8xf32> to vector<256x8xf32>
    %44 = arith.truncf %43 : vector<256x8xf32> to vector<256x8xbf16>
    %c4 = arith.constant 4 : index
    %c0_39 = arith.constant 0 : index
    %c0_40 = arith.constant 0 : index
    %45 = vector.load %arg2[%c4, %c0_39, %c0_40] : memref<9x8x64xbf16, #tpu.memory_space<vmem>>, vector<1x8x64xbf16>
    %46 = vector.shape_cast %45 : vector<1x8x64xbf16> to vector<8x64xbf16>
    %cst_41 = arith.constant dense<0.000000e+00> : vector<256x64xf32>
    %47 = tpu.matmul %44, %46, %cst_41 {dimension_numbers = #tpu.dot_dimension_numbers<[1], [0], [0], [1], [0, 0, 1, 1], [], []>} : vector<256x8xbf16>, vector<8x64xbf16>, vector<256x64xf32> -> vector<256x64xf32>
    %c0_42 = arith.constant 0 : index
    %c0_43 = arith.constant 0 : index
    %48 = vector.load %arg14[%c0_42, %c0_43] : memref<256x64xf32, #tpu.memory_space<vmem>>, vector<256x64xf32>
    %49 = arith.addf %48, %47 : vector<256x64xf32>
    %c0_44 = arith.constant 0 : index
    %c0_45 = arith.constant 0 : index
    %50 = vector.load %arg14[%c0_44, %c0_45] : memref<256x64xf32, #tpu.memory_space<vmem>>, vector<256x64xf32>
    tpu.vector_store %arg14[%c0_44, %c0_45], %49 {strides = array<i32>} : memref<256x64xf32, #tpu.memory_space<vmem>>, vector<256x64xf32>,
    %c0_46 = arith.constant 0 : index
    %c25 = arith.constant 25 : index
    %c0_47 = arith.constant 0 : index
    %51 = vector.load %arg1[%c0_46, %c25, %c0_47] : memref<1x304x8xf32, #tpu.memory_space<vmem>>, vector<1x256x8xf32>
    %52 = vector.shape_cast %51 : vector<1x256x8xf32> to vector<256x8xf32>
    %53 = vector.broadcast %1 : vector<256x1xf32> to vector<256x8xf32>
    %54 = arith.mulf %52, %53 : vector<256x8xf32>
    %55 = arith.truncf %54 : vector<256x8xf32> to vector<256x8xbf16>
    %c5 = arith.constant 5 : index
    %c0_48 = arith.constant 0 : index
    %c0_49 = arith.constant 0 : index
    %56 = vector.load %arg2[%c5, %c0_48, %c0_49] : memref<9x8x64xbf16, #tpu.memory_space<vmem>>, vector<1x8x64xbf16>
    %57 = vector.shape_cast %56 : vector<1x8x64xbf16> to vector<8x64xbf16>
    %cst_50 = arith.constant dense<0.000000e+00> : vector<256x64xf32>
    %58 = tpu.matmul %55, %57, %cst_50 {dimension_numbers = #tpu.dot_dimension_numbers<[1], [0], [0], [1], [0, 0, 1, 1], [], []>} : vector<256x8xbf16>, vector<8x64xbf16>, vector<256x64xf32> -> vector<256x64xf32>
    %c0_51 = arith.constant 0 : index
    %c0_52 = arith.constant 0 : index
    %59 = vector.load %arg14[%c0_51, %c0_52] : memref<256x64xf32, #tpu.memory_space<vmem>>, vector<256x64xf32>
    %60 = arith.addf %59, %58 : vector<256x64xf32>
    %c0_53 = arith.constant 0 : index
    %c0_54 = arith.constant 0 : index
    %61 = vector.load %arg14[%c0_53, %c0_54] : memref<256x64xf32, #tpu.memory_space<vmem>>, vector<256x64xf32>
    tpu.vector_store %arg14[%c0_53, %c0_54], %60 {strides = array<i32>} : memref<256x64xf32, #tpu.memory_space<vmem>>, vector<256x64xf32>,
    %c0_55 = arith.constant 0 : index
    %c39 = arith.constant 39 : index
    %c0_56 = arith.constant 0 : index
    %62 = vector.load %arg1[%c0_55, %c39, %c0_56] : memref<1x304x8xf32, #tpu.memory_space<vmem>>, vector<1x256x8xf32>
    %63 = vector.shape_cast %62 : vector<1x256x8xf32> to vector<256x8xf32>
    %64 = vector.broadcast %0 : vector<256x1xf32> to vector<256x8xf32>
    %65 = arith.mulf %63, %64 : vector<256x8xf32>
    %66 = arith.truncf %65 : vector<256x8xf32> to vector<256x8xbf16>
    %c6 = arith.constant 6 : index
    %c0_57 = arith.constant 0 : index
    %c0_58 = arith.constant 0 : index
    %67 = vector.load %arg2[%c6, %c0_57, %c0_58] : memref<9x8x64xbf16, #tpu.memory_space<vmem>>, vector<1x8x64xbf16>
    %68 = vector.shape_cast %67 : vector<1x8x64xbf16> to vector<8x64xbf16>
    %cst_59 = arith.constant dense<0.000000e+00> : vector<256x64xf32>
    %69 = tpu.matmul %66, %68, %cst_59 {dimension_numbers = #tpu.dot_dimension_numbers<[1], [0], [0], [1], [0, 0, 1, 1], [], []>} : vector<256x8xbf16>, vector<8x64xbf16>, vector<256x64xf32> -> vector<256x64xf32>
    %c0_60 = arith.constant 0 : index
    %c0_61 = arith.constant 0 : index
    %70 = vector.load %arg14[%c0_60, %c0_61] : memref<256x64xf32, #tpu.memory_space<vmem>>, vector<256x64xf32>
    %71 = arith.addf %70, %69 : vector<256x64xf32>
    %c0_62 = arith.constant 0 : index
    %c0_63 = arith.constant 0 : index
    %72 = vector.load %arg14[%c0_62, %c0_63] : memref<256x64xf32, #tpu.memory_space<vmem>>, vector<256x64xf32>
    tpu.vector_store %arg14[%c0_62, %c0_63], %71 {strides = array<i32>} : memref<256x64xf32, #tpu.memory_space<vmem>>, vector<256x64xf32>,
    %c0_64 = arith.constant 0 : index
    %c40 = arith.constant 40 : index
    %c0_65 = arith.constant 0 : index
    %73 = vector.load %arg1[%c0_64, %c40, %c0_65] : memref<1x304x8xf32, #tpu.memory_space<vmem>>, vector<1x256x8xf32>
    %74 = vector.shape_cast %73 : vector<1x256x8xf32> to vector<256x8xf32>
    %75 = arith.truncf %74 : vector<256x8xf32> to vector<256x8xbf16>
    %c7_66 = arith.constant 7 : index
    %c0_67 = arith.constant 0 : index
    %c0_68 = arith.constant 0 : index
    %76 = vector.load %arg2[%c7_66, %c0_67, %c0_68] : memref<9x8x64xbf16, #tpu.memory_space<vmem>>, vector<1x8x64xbf16>
    %77 = vector.shape_cast %76 : vector<1x8x64xbf16> to vector<8x64xbf16>
    %cst_69 = arith.constant dense<0.000000e+00> : vector<256x64xf32>
    %78 = tpu.matmul %75, %77, %cst_69 {dimension_numbers = #tpu.dot_dimension_numbers<[1], [0], [0], [1], [0, 0, 1, 1], [], []>} : vector<256x8xbf16>, vector<8x64xbf16>, vector<256x64xf32> -> vector<256x64xf32>
    %c0_70 = arith.constant 0 : index
    %c0_71 = arith.constant 0 : index
    %79 = vector.load %arg14[%c0_70, %c0_71] : memref<256x64xf32, #tpu.memory_space<vmem>>, vector<256x64xf32>
    %80 = arith.addf %79, %78 : vector<256x64xf32>
    %c0_72 = arith.constant 0 : index
    %c0_73 = arith.constant 0 : index
    %81 = vector.load %arg14[%c0_72, %c0_73] : memref<256x64xf32, #tpu.memory_space<vmem>>, vector<256x64xf32>
    tpu.vector_store %arg14[%c0_72, %c0_73], %80 {strides = array<i32>} : memref<256x64xf32, #tpu.memory_space<vmem>>, vector<256x64xf32>,
    %c0_74 = arith.constant 0 : index
    %c41 = arith.constant 41 : index
    %c0_75 = arith.constant 0 : index
    %82 = vector.load %arg1[%c0_74, %c41, %c0_75] : memref<1x304x8xf32, #tpu.memory_space<vmem>>, vector<1x256x8xf32>
    %83 = vector.shape_cast %82 : vector<1x256x8xf32> to vector<256x8xf32>
    %84 = vector.broadcast %1 : vector<256x1xf32> to vector<256x8xf32>
    %85 = arith.mulf %83, %84 : vector<256x8xf32>
    %86 = arith.truncf %85 : vector<256x8xf32> to vector<256x8xbf16>
    %c8_76 = arith.constant 8 : index
    %c0_77 = arith.constant 0 : index
    %c0_78 = arith.constant 0 : index
    %87 = vector.load %arg2[%c8_76, %c0_77, %c0_78] : memref<9x8x64xbf16, #tpu.memory_space<vmem>>, vector<1x8x64xbf16>
    %88 = vector.shape_cast %87 : vector<1x8x64xbf16> to vector<8x64xbf16>
    %cst_79 = arith.constant dense<0.000000e+00> : vector<256x64xf32>
    %89 = tpu.matmul %86, %88, %cst_79 {dimension_numbers = #tpu.dot_dimension_numbers<[1], [0], [0], [1], [0, 0, 1, 1], [], []>} : vector<256x8xbf16>, vector<8x64xbf16>, vector<256x64xf32> -> vector<256x64xf32>
    %c0_80 = arith.constant 0 : index
    %c0_81 = arith.constant 0 : index
    %90 = vector.load %arg14[%c0_80, %c0_81] : memref<256x64xf32, #tpu.memory_space<vmem>>, vector<256x64xf32>
    %91 = arith.addf %90, %89 : vector<256x64xf32>
    %c0_82 = arith.constant 0 : index
    %c0_83 = arith.constant 0 : index
    %92 = vector.load %arg14[%c0_82, %c0_83] : memref<256x64xf32, #tpu.memory_space<vmem>>, vector<256x64xf32>
    tpu.vector_store %arg14[%c0_82, %c0_83], %91 {strides = array<i32>} : memref<256x64xf32, #tpu.memory_space<vmem>>, vector<256x64xf32>,
    %c0_84 = arith.constant 0 : index
    %c0_85 = arith.constant 0 : index
    %93 = vector.load %arg14[%c0_84, %c0_85] : memref<256x64xf32, #tpu.memory_space<vmem>>, vector<256x64xf32>
    %c0_86 = arith.constant 0 : index
    %c0_87 = arith.constant 0 : index
    %94 = vector.load %arg3[%c0_86, %c0_87] : memref<1x64xf32, #tpu.memory_space<vmem>>, vector<1x64xf32>
    %95 = vector.broadcast %94 : vector<1x64xf32> to vector<256x64xf32>
    %96 = arith.addf %93, %95 : vector<256x64xf32>
    %cst_88 = arith.constant 0.000000e+00 : f32
    %97 = vector.broadcast %cst_88 : f32 to vector<256x64xf32>
    %98 = arith.maximumf %96, %97 : vector<256x64xf32>
    %cst_89 = arith.constant 0.000000e+00 : f32
    %99 = vector.broadcast %cst_89 : f32 to vector<24x64xf32>
    %c0_90 = arith.constant 0 : index
    %c0_91 = arith.constant 0 : index
    %100 = vector.load %arg12[%c0_90, %c0_91] : memref<304x64xf32, #tpu.memory_space<vmem>>, vector<24x64xf32>
    tpu.vector_store %arg12[%c0_90, %c0_91], %99 {strides = array<i32>} : memref<304x64xf32, #tpu.memory_space<vmem>>, vector<24x64xf32>,
    %cst_92 = arith.constant 0.000000e+00 : f32
    %101 = vector.broadcast %cst_92 : f32 to vector<24x64xf32>
    %c280 = arith.constant 280 : index
    %c0_93 = arith.constant 0 : index
    %102 = vector.load %arg12[%c280, %c0_93] : memref<304x64xf32, #tpu.memory_space<vmem>>, vector<24x64xf32>
    tpu.vector_store %arg12[%c280, %c0_93], %101 {strides = array<i32>} : memref<304x64xf32, #tpu.memory_space<vmem>>, vector<24x64xf32>,
    %c24_94 = arith.constant 24 : index
    %c0_95 = arith.constant 0 : index
    %103 = vector.load %arg12[%c24_94, %c0_95] : memref<304x64xf32, #tpu.memory_space<vmem>>, vector<256x64xf32>
    tpu.vector_store %arg12[%c24_94, %c0_95], %98 {strides = array<i32>} : memref<304x64xf32, #tpu.memory_space<vmem>>, vector<256x64xf32>,
    %c7_96 = arith.constant 7 : index
    %c0_97 = arith.constant 0 : index
    %104 = vector.load %arg12[%c7_96, %c0_97] : memref<304x64xf32, #tpu.memory_space<vmem>>, vector<256x64xf32>
    %105 = vector.broadcast %0 : vector<256x1xf32> to vector<256x64xf32>
    %106 = arith.mulf %104, %105 : vector<256x64xf32>
    %107 = arith.truncf %106 : vector<256x64xf32> to vector<256x64xbf16>
    %c0_98 = arith.constant 0 : index
    %c0_99 = arith.constant 0 : index
    %c0_100 = arith.constant 0 : index
    %108 = vector.load %arg4[%c0_98, %c0_99, %c0_100] : memref<9x64x128xbf16, #tpu.memory_space<vmem>>, vector<1x64x128xbf16>
    %109 = vector.shape_cast %108 : vector<1x64x128xbf16> to vector<64x128xbf16>
    %cst_101 = arith.constant dense<0.000000e+00> : vector<256x128xf32>
    %110 = tpu.matmul %107, %109, %cst_101 {dimension_numbers = #tpu.dot_dimension_numbers<[1], [0], [0], [1], [0, 0, 1, 1], [], []>} : vector<256x64xbf16>, vector<64x128xbf16>, vector<256x128xf32> -> vector<256x128xf32>
    %c0_102 = arith.constant 0 : index
    %c0_103 = arith.constant 0 : index
    %111 = vector.load %arg15[%c0_102, %c0_103] : memref<256x128xf32, #tpu.memory_space<vmem>>, vector<256x128xf32>
    tpu.vector_store %arg15[%c0_102, %c0_103], %110 {strides = array<i32>} : memref<256x128xf32, #tpu.memory_space<vmem>>, vector<256x128xf32>,
    %c8_104 = arith.constant 8 : index
    %c0_105 = arith.constant 0 : index
    %112 = vector.load %arg12[%c8_104, %c0_105] : memref<304x64xf32, #tpu.memory_space<vmem>>, vector<256x64xf32>
    %113 = arith.truncf %112 : vector<256x64xf32> to vector<256x64xbf16>
    %c1_106 = arith.constant 1 : index
    %c0_107 = arith.constant 0 : index
    %c0_108 = arith.constant 0 : index
    %114 = vector.load %arg4[%c1_106, %c0_107, %c0_108] : memref<9x64x128xbf16, #tpu.memory_space<vmem>>, vector<1x64x128xbf16>
    %115 = vector.shape_cast %114 : vector<1x64x128xbf16> to vector<64x128xbf16>
    %cst_109 = arith.constant dense<0.000000e+00> : vector<256x128xf32>
    %116 = tpu.matmul %113, %115, %cst_109 {dimension_numbers = #tpu.dot_dimension_numbers<[1], [0], [0], [1], [0, 0, 1, 1], [], []>} : vector<256x64xbf16>, vector<64x128xbf16>, vector<256x128xf32> -> vector<256x128xf32>
    %c0_110 = arith.constant 0 : index
    %c0_111 = arith.constant 0 : index
    %117 = vector.load %arg15[%c0_110, %c0_111] : memref<256x128xf32, #tpu.memory_space<vmem>>, vector<256x128xf32>
    %118 = arith.addf %117, %116 : vector<256x128xf32>
    %c0_112 = arith.constant 0 : index
    %c0_113 = arith.constant 0 : index
    %119 = vector.load %arg15[%c0_112, %c0_113] : memref<256x128xf32, #tpu.memory_space<vmem>>, vector<256x128xf32>
    tpu.vector_store %arg15[%c0_112, %c0_113], %118 {strides = array<i32>} : memref<256x128xf32, #tpu.memory_space<vmem>>, vector<256x128xf32>,
    %c9_114 = arith.constant 9 : index
    %c0_115 = arith.constant 0 : index
    %120 = vector.load %arg12[%c9_114, %c0_115] : memref<304x64xf32, #tpu.memory_space<vmem>>, vector<256x64xf32>
    %121 = vector.broadcast %1 : vector<256x1xf32> to vector<256x64xf32>
    %122 = arith.mulf %120, %121 : vector<256x64xf32>
    %123 = arith.truncf %122 : vector<256x64xf32> to vector<256x64xbf16>
    %c2_116 = arith.constant 2 : index
    %c0_117 = arith.constant 0 : index
    %c0_118 = arith.constant 0 : index
    %124 = vector.load %arg4[%c2_116, %c0_117, %c0_118] : memref<9x64x128xbf16, #tpu.memory_space<vmem>>, vector<1x64x128xbf16>
    %125 = vector.shape_cast %124 : vector<1x64x128xbf16> to vector<64x128xbf16>
    %cst_119 = arith.constant dense<0.000000e+00> : vector<256x128xf32>
    %126 = tpu.matmul %123, %125, %cst_119 {dimension_numbers = #tpu.dot_dimension_numbers<[1], [0], [0], [1], [0, 0, 1, 1], [], []>} : vector<256x64xbf16>, vector<64x128xbf16>, vector<256x128xf32> -> vector<256x128xf32>
    %c0_120 = arith.constant 0 : index
    %c0_121 = arith.constant 0 : index
    %127 = vector.load %arg15[%c0_120, %c0_121] : memref<256x128xf32, #tpu.memory_space<vmem>>, vector<256x128xf32>
    %128 = arith.addf %127, %126 : vector<256x128xf32>
    %c0_122 = arith.constant 0 : index
    %c0_123 = arith.constant 0 : index
    %129 = vector.load %arg15[%c0_122, %c0_123] : memref<256x128xf32, #tpu.memory_space<vmem>>, vector<256x128xf32>
    tpu.vector_store %arg15[%c0_122, %c0_123], %128 {strides = array<i32>} : memref<256x128xf32, #tpu.memory_space<vmem>>, vector<256x128xf32>,
    %c23_124 = arith.constant 23 : index
    %c0_125 = arith.constant 0 : index
    %130 = vector.load %arg12[%c23_124, %c0_125] : memref<304x64xf32, #tpu.memory_space<vmem>>, vector<256x64xf32>
    %131 = vector.broadcast %0 : vector<256x1xf32> to vector<256x64xf32>
    %132 = arith.mulf %130, %131 : vector<256x64xf32>
    %133 = arith.truncf %132 : vector<256x64xf32> to vector<256x64xbf16>
    %c3_126 = arith.constant 3 : index
    %c0_127 = arith.constant 0 : index
    %c0_128 = arith.constant 0 : index
    %134 = vector.load %arg4[%c3_126, %c0_127, %c0_128] : memref<9x64x128xbf16, #tpu.memory_space<vmem>>, vector<1x64x128xbf16>
    %135 = vector.shape_cast %134 : vector<1x64x128xbf16> to vector<64x128xbf16>
    %cst_129 = arith.constant dense<0.000000e+00> : vector<256x128xf32>
    %136 = tpu.matmul %133, %135, %cst_129 {dimension_numbers = #tpu.dot_dimension_numbers<[1], [0], [0], [1], [0, 0, 1, 1], [], []>} : vector<256x64xbf16>, vector<64x128xbf16>, vector<256x128xf32> -> vector<256x128xf32>
    %c0_130 = arith.constant 0 : index
    %c0_131 = arith.constant 0 : index
    %137 = vector.load %arg15[%c0_130, %c0_131] : memref<256x128xf32, #tpu.memory_space<vmem>>, vector<256x128xf32>
    %138 = arith.addf %137, %136 : vector<256x128xf32>
    %c0_132 = arith.constant 0 : index
    %c0_133 = arith.constant 0 : index
    %139 = vector.load %arg15[%c0_132, %c0_133] : memref<256x128xf32, #tpu.memory_space<vmem>>, vector<256x128xf32>
    tpu.vector_store %arg15[%c0_132, %c0_133], %138 {strides = array<i32>} : memref<256x128xf32, #tpu.memory_space<vmem>>, vector<256x128xf32>,
    %c24_134 = arith.constant 24 : index
    %c0_135 = arith.constant 0 : index
    %140 = vector.load %arg12[%c24_134, %c0_135] : memref<304x64xf32, #tpu.memory_space<vmem>>, vector<256x64xf32>
    %141 = arith.truncf %140 : vector<256x64xf32> to vector<256x64xbf16>
    %c4_136 = arith.constant 4 : index
    %c0_137 = arith.constant 0 : index
    %c0_138 = arith.constant 0 : index
    %142 = vector.load %arg4[%c4_136, %c0_137, %c0_138] : memref<9x64x128xbf16, #tpu.memory_space<vmem>>, vector<1x64x128xbf16>
    %143 = vector.shape_cast %142 : vector<1x64x128xbf16> to vector<64x128xbf16>
    %cst_139 = arith.constant dense<0.000000e+00> : vector<256x128xf32>
    %144 = tpu.matmul %141, %143, %cst_139 {dimension_numbers = #tpu.dot_dimension_numbers<[1], [0], [0], [1], [0, 0, 1, 1], [], []>} : vector<256x64xbf16>, vector<64x128xbf16>, vector<256x128xf32> -> vector<256x128xf32>
    %c0_140 = arith.constant 0 : index
    %c0_141 = arith.constant 0 : index
    %145 = vector.load %arg15[%c0_140, %c0_141] : memref<256x128xf32, #tpu.memory_space<vmem>>, vector<256x128xf32>
    %146 = arith.addf %145, %144 : vector<256x128xf32>
    %c0_142 = arith.constant 0 : index
    %c0_143 = arith.constant 0 : index
    %147 = vector.load %arg15[%c0_142, %c0_143] : memref<256x128xf32, #tpu.memory_space<vmem>>, vector<256x128xf32>
    tpu.vector_store %arg15[%c0_142, %c0_143], %146 {strides = array<i32>} : memref<256x128xf32, #tpu.memory_space<vmem>>, vector<256x128xf32>,
    %c25_144 = arith.constant 25 : index
    %c0_145 = arith.constant 0 : index
    %148 = vector.load %arg12[%c25_144, %c0_145] : memref<304x64xf32, #tpu.memory_space<vmem>>, vector<256x64xf32>
    %149 = vector.broadcast %1 : vector<256x1xf32> to vector<256x64xf32>
    %150 = arith.mulf %148, %149 : vector<256x64xf32>
    %151 = arith.truncf %150 : vector<256x64xf32> to vector<256x64xbf16>
    %c5_146 = arith.constant 5 : index
    %c0_147 = arith.constant 0 : index
    %c0_148 = arith.constant 0 : index
    %152 = vector.load %arg4[%c5_146, %c0_147, %c0_148] : memref<9x64x128xbf16, #tpu.memory_space<vmem>>, vector<1x64x128xbf16>
    %153 = vector.shape_cast %152 : vector<1x64x128xbf16> to vector<64x128xbf16>
    %cst_149 = arith.constant dense<0.000000e+00> : vector<256x128xf32>
    %154 = tpu.matmul %151, %153, %cst_149 {dimension_numbers = #tpu.dot_dimension_numbers<[1], [0], [0], [1], [0, 0, 1, 1], [], []>} : vector<256x64xbf16>, vector<64x128xbf16>, vector<256x128xf32> -> vector<256x128xf32>
    %c0_150 = arith.constant 0 : index
    %c0_151 = arith.constant 0 : index
    %155 = vector.load %arg15[%c0_150, %c0_151] : memref<256x128xf32, #tpu.memory_space<vmem>>, vector<256x128xf32>
    %156 = arith.addf %155, %154 : vector<256x128xf32>
    %c0_152 = arith.constant 0 : index
    %c0_153 = arith.constant 0 : index
    %157 = vector.load %arg15[%c0_152, %c0_153] : memref<256x128xf32, #tpu.memory_space<vmem>>, vector<256x128xf32>
    tpu.vector_store %arg15[%c0_152, %c0_153], %156 {strides = array<i32>} : memref<256x128xf32, #tpu.memory_space<vmem>>, vector<256x128xf32>,
    %c39_154 = arith.constant 39 : index
    %c0_155 = arith.constant 0 : index
    %158 = vector.load %arg12[%c39_154, %c0_155] : memref<304x64xf32, #tpu.memory_space<vmem>>, vector<256x64xf32>
    %159 = vector.broadcast %0 : vector<256x1xf32> to vector<256x64xf32>
    %160 = arith.mulf %158, %159 : vector<256x64xf32>
    %161 = arith.truncf %160 : vector<256x64xf32> to vector<256x64xbf16>
    %c6_156 = arith.constant 6 : index
    %c0_157 = arith.constant 0 : index
    %c0_158 = arith.constant 0 : index
    %162 = vector.load %arg4[%c6_156, %c0_157, %c0_158] : memref<9x64x128xbf16, #tpu.memory_space<vmem>>, vector<1x64x128xbf16>
    %163 = vector.shape_cast %162 : vector<1x64x128xbf16> to vector<64x128xbf16>
    %cst_159 = arith.constant dense<0.000000e+00> : vector<256x128xf32>
    %164 = tpu.matmul %161, %163, %cst_159 {dimension_numbers = #tpu.dot_dimension_numbers<[1], [0], [0], [1], [0, 0, 1, 1], [], []>} : vector<256x64xbf16>, vector<64x128xbf16>, vector<256x128xf32> -> vector<256x128xf32>
    %c0_160 = arith.constant 0 : index
    %c0_161 = arith.constant 0 : index
    %165 = vector.load %arg15[%c0_160, %c0_161] : memref<256x128xf32, #tpu.memory_space<vmem>>, vector<256x128xf32>
    %166 = arith.addf %165, %164 : vector<256x128xf32>
    %c0_162 = arith.constant 0 : index
    %c0_163 = arith.constant 0 : index
    %167 = vector.load %arg15[%c0_162, %c0_163] : memref<256x128xf32, #tpu.memory_space<vmem>>, vector<256x128xf32>
    tpu.vector_store %arg15[%c0_162, %c0_163], %166 {strides = array<i32>} : memref<256x128xf32, #tpu.memory_space<vmem>>, vector<256x128xf32>,
    %c40_164 = arith.constant 40 : index
    %c0_165 = arith.constant 0 : index
    %168 = vector.load %arg12[%c40_164, %c0_165] : memref<304x64xf32, #tpu.memory_space<vmem>>, vector<256x64xf32>
    %169 = arith.truncf %168 : vector<256x64xf32> to vector<256x64xbf16>
    %c7_166 = arith.constant 7 : index
    %c0_167 = arith.constant 0 : index
    %c0_168 = arith.constant 0 : index
    %170 = vector.load %arg4[%c7_166, %c0_167, %c0_168] : memref<9x64x128xbf16, #tpu.memory_space<vmem>>, vector<1x64x128xbf16>
    %171 = vector.shape_cast %170 : vector<1x64x128xbf16> to vector<64x128xbf16>
    %cst_169 = arith.constant dense<0.000000e+00> : vector<256x128xf32>
    %172 = tpu.matmul %169, %171, %cst_169 {dimension_numbers = #tpu.dot_dimension_numbers<[1], [0], [0], [1], [0, 0, 1, 1], [], []>} : vector<256x64xbf16>, vector<64x128xbf16>, vector<256x128xf32> -> vector<256x128xf32>
    %c0_170 = arith.constant 0 : index
    %c0_171 = arith.constant 0 : index
    %173 = vector.load %arg15[%c0_170, %c0_171] : memref<256x128xf32, #tpu.memory_space<vmem>>, vector<256x128xf32>
    %174 = arith.addf %173, %172 : vector<256x128xf32>
    %c0_172 = arith.constant 0 : index
    %c0_173 = arith.constant 0 : index
    %175 = vector.load %arg15[%c0_172, %c0_173] : memref<256x128xf32, #tpu.memory_space<vmem>>, vector<256x128xf32>
    tpu.vector_store %arg15[%c0_172, %c0_173], %174 {strides = array<i32>} : memref<256x128xf32, #tpu.memory_space<vmem>>, vector<256x128xf32>,
    %c41_174 = arith.constant 41 : index
    %c0_175 = arith.constant 0 : index
    %176 = vector.load %arg12[%c41_174, %c0_175] : memref<304x64xf32, #tpu.memory_space<vmem>>, vector<256x64xf32>
    %177 = vector.broadcast %1 : vector<256x1xf32> to vector<256x64xf32>
    %178 = arith.mulf %176, %177 : vector<256x64xf32>
    %179 = arith.truncf %178 : vector<256x64xf32> to vector<256x64xbf16>
    %c8_176 = arith.constant 8 : index
    %c0_177 = arith.constant 0 : index
    %c0_178 = arith.constant 0 : index
    %180 = vector.load %arg4[%c8_176, %c0_177, %c0_178] : memref<9x64x128xbf16, #tpu.memory_space<vmem>>, vector<1x64x128xbf16>
    %181 = vector.shape_cast %180 : vector<1x64x128xbf16> to vector<64x128xbf16>
    %cst_179 = arith.constant dense<0.000000e+00> : vector<256x128xf32>
    %182 = tpu.matmul %179, %181, %cst_179 {dimension_numbers = #tpu.dot_dimension_numbers<[1], [0], [0], [1], [0, 0, 1, 1], [], []>} : vector<256x64xbf16>, vector<64x128xbf16>, vector<256x128xf32> -> vector<256x128xf32>
    %c0_180 = arith.constant 0 : index
    %c0_181 = arith.constant 0 : index
    %183 = vector.load %arg15[%c0_180, %c0_181] : memref<256x128xf32, #tpu.memory_space<vmem>>, vector<256x128xf32>
    %184 = arith.addf %183, %182 : vector<256x128xf32>
    %c0_182 = arith.constant 0 : index
    %c0_183 = arith.constant 0 : index
    %185 = vector.load %arg15[%c0_182, %c0_183] : memref<256x128xf32, #tpu.memory_space<vmem>>, vector<256x128xf32>
    tpu.vector_store %arg15[%c0_182, %c0_183], %184 {strides = array<i32>} : memref<256x128xf32, #tpu.memory_space<vmem>>, vector<256x128xf32>,
    %c0_184 = arith.constant 0 : index
    %c0_185 = arith.constant 0 : index
    %186 = vector.load %arg15[%c0_184, %c0_185] : memref<256x128xf32, #tpu.memory_space<vmem>>, vector<256x128xf32>
    %c0_186 = arith.constant 0 : index
    %c0_187 = arith.constant 0 : index
    %187 = vector.load %arg5[%c0_186, %c0_187] : memref<1x128xf32, #tpu.memory_space<vmem>>, vector<1x128xf32>
    %188 = vector.broadcast %187 : vector<1x128xf32> to vector<256x128xf32>
    %189 = arith.addf %186, %188 : vector<256x128xf32>
    %cst_188 = arith.constant 0.000000e+00 : f32
    %190 = vector.broadcast %cst_188 : f32 to vector<256x128xf32>
    %191 = arith.maximumf %189, %190 : vector<256x128xf32>
    %cst_189 = arith.constant 0.000000e+00 : f32
    %192 = vector.broadcast %cst_189 : f32 to vector<24x128xf32>
    %c0_190 = arith.constant 0 : index
    %c0_191 = arith.constant 0 : index
    %193 = vector.load %arg13[%c0_190, %c0_191] : memref<304x128xf32, #tpu.memory_space<vmem>>, vector<24x128xf32>
    tpu.vector_store %arg13[%c0_190, %c0_191], %192 {strides = array<i32>} : memref<304x128xf32, #tpu.memory_space<vmem>>, vector<24x128xf32>,
    %cst_192 = arith.constant 0.000000e+00 : f32
    %194 = vector.broadcast %cst_192 : f32 to vector<24x128xf32>
    %c280_193 = arith.constant 280 : index
    %c0_194 = arith.constant 0 : index
    %195 = vector.load %arg13[%c280_193, %c0_194] : memref<304x128xf32, #tpu.memory_space<vmem>>, vector<24x128xf32>
    tpu.vector_store %arg13[%c280_193, %c0_194], %194 {strides = array<i32>} : memref<304x128xf32, #tpu.memory_space<vmem>>, vector<24x128xf32>,
    %c24_195 = arith.constant 24 : index
    %c0_196 = arith.constant 0 : index
    %196 = vector.load %arg13[%c24_195, %c0_196] : memref<304x128xf32, #tpu.memory_space<vmem>>, vector<256x128xf32>
    tpu.vector_store %arg13[%c24_195, %c0_196], %191 {strides = array<i32>} : memref<304x128xf32, #tpu.memory_space<vmem>>, vector<256x128xf32>,
    %c7_197 = arith.constant 7 : index
    %c0_198 = arith.constant 0 : index
    %197 = vector.load %arg13[%c7_197, %c0_198] : memref<304x128xf32, #tpu.memory_space<vmem>>, vector<256x128xf32>
    %198 = vector.broadcast %0 : vector<256x1xf32> to vector<256x128xf32>
    %199 = arith.mulf %197, %198 : vector<256x128xf32>
    %200 = arith.truncf %199 : vector<256x128xf32> to vector<256x128xbf16>
    %c0_199 = arith.constant 0 : index
    %c0_200 = arith.constant 0 : index
    %c0_201 = arith.constant 0 : index
    %201 = vector.load %arg6[%c0_199, %c0_200, %c0_201] : memref<9x128x256xbf16, #tpu.memory_space<vmem>>, vector<1x128x256xbf16>
    %202 = vector.shape_cast %201 : vector<1x128x256xbf16> to vector<128x256xbf16>
    %cst_202 = arith.constant dense<0.000000e+00> : vector<256x256xf32>
    %203 = tpu.matmul %200, %202, %cst_202 {dimension_numbers = #tpu.dot_dimension_numbers<[1], [0], [0], [1], [0, 0, 1, 1], [], []>} : vector<256x128xbf16>, vector<128x256xbf16>, vector<256x256xf32> -> vector<256x256xf32>
    %c0_203 = arith.constant 0 : index
    %c0_204 = arith.constant 0 : index
    %204 = vector.load %arg16[%c0_203, %c0_204] : memref<256x256xf32, #tpu.memory_space<vmem>>, vector<256x256xf32>
    tpu.vector_store %arg16[%c0_203, %c0_204], %203 {strides = array<i32>} : memref<256x256xf32, #tpu.memory_space<vmem>>, vector<256x256xf32>,
    %c8_205 = arith.constant 8 : index
    %c0_206 = arith.constant 0 : index
    %205 = vector.load %arg13[%c8_205, %c0_206] : memref<304x128xf32, #tpu.memory_space<vmem>>, vector<256x128xf32>
    %206 = arith.truncf %205 : vector<256x128xf32> to vector<256x128xbf16>
    %c1_207 = arith.constant 1 : index
    %c0_208 = arith.constant 0 : index
    %c0_209 = arith.constant 0 : index
    %207 = vector.load %arg6[%c1_207, %c0_208, %c0_209] : memref<9x128x256xbf16, #tpu.memory_space<vmem>>, vector<1x128x256xbf16>
    %208 = vector.shape_cast %207 : vector<1x128x256xbf16> to vector<128x256xbf16>
    %cst_210 = arith.constant dense<0.000000e+00> : vector<256x256xf32>
    %209 = tpu.matmul %206, %208, %cst_210 {dimension_numbers = #tpu.dot_dimension_numbers<[1], [0], [0], [1], [0, 0, 1, 1], [], []>} : vector<256x128xbf16>, vector<128x256xbf16>, vector<256x256xf32> -> vector<256x256xf32>
    %c0_211 = arith.constant 0 : index
    %c0_212 = arith.constant 0 : index
    %210 = vector.load %arg16[%c0_211, %c0_212] : memref<256x256xf32, #tpu.memory_space<vmem>>, vector<256x256xf32>
    %211 = arith.addf %210, %209 : vector<256x256xf32>
    %c0_213 = arith.constant 0 : index
    %c0_214 = arith.constant 0 : index
    %212 = vector.load %arg16[%c0_213, %c0_214] : memref<256x256xf32, #tpu.memory_space<vmem>>, vector<256x256xf32>
    tpu.vector_store %arg16[%c0_213, %c0_214], %211 {strides = array<i32>} : memref<256x256xf32, #tpu.memory_space<vmem>>, vector<256x256xf32>,
    %c9_215 = arith.constant 9 : index
    %c0_216 = arith.constant 0 : index
    %213 = vector.load %arg13[%c9_215, %c0_216] : memref<304x128xf32, #tpu.memory_space<vmem>>, vector<256x128xf32>
    %214 = vector.broadcast %1 : vector<256x1xf32> to vector<256x128xf32>
    %215 = arith.mulf %213, %214 : vector<256x128xf32>
    %216 = arith.truncf %215 : vector<256x128xf32> to vector<256x128xbf16>
    %c2_217 = arith.constant 2 : index
    %c0_218 = arith.constant 0 : index
    %c0_219 = arith.constant 0 : index
    %217 = vector.load %arg6[%c2_217, %c0_218, %c0_219] : memref<9x128x256xbf16, #tpu.memory_space<vmem>>, vector<1x128x256xbf16>
    %218 = vector.shape_cast %217 : vector<1x128x256xbf16> to vector<128x256xbf16>
    %cst_220 = arith.constant dense<0.000000e+00> : vector<256x256xf32>
    %219 = tpu.matmul %216, %218, %cst_220 {dimension_numbers = #tpu.dot_dimension_numbers<[1], [0], [0], [1], [0, 0, 1, 1], [], []>} : vector<256x128xbf16>, vector<128x256xbf16>, vector<256x256xf32> -> vector<256x256xf32>
    %c0_221 = arith.constant 0 : index
    %c0_222 = arith.constant 0 : index
    %220 = vector.load %arg16[%c0_221, %c0_222] : memref<256x256xf32, #tpu.memory_space<vmem>>, vector<256x256xf32>
    %221 = arith.addf %220, %219 : vector<256x256xf32>
    %c0_223 = arith.constant 0 : index
    %c0_224 = arith.constant 0 : index
    %222 = vector.load %arg16[%c0_223, %c0_224] : memref<256x256xf32, #tpu.memory_space<vmem>>, vector<256x256xf32>
    tpu.vector_store %arg16[%c0_223, %c0_224], %221 {strides = array<i32>} : memref<256x256xf32, #tpu.memory_space<vmem>>, vector<256x256xf32>,
    %c23_225 = arith.constant 23 : index
    %c0_226 = arith.constant 0 : index
    %223 = vector.load %arg13[%c23_225, %c0_226] : memref<304x128xf32, #tpu.memory_space<vmem>>, vector<256x128xf32>
    %224 = vector.broadcast %0 : vector<256x1xf32> to vector<256x128xf32>
    %225 = arith.mulf %223, %224 : vector<256x128xf32>
    %226 = arith.truncf %225 : vector<256x128xf32> to vector<256x128xbf16>
    %c3_227 = arith.constant 3 : index
    %c0_228 = arith.constant 0 : index
    %c0_229 = arith.constant 0 : index
    %227 = vector.load %arg6[%c3_227, %c0_228, %c0_229] : memref<9x128x256xbf16, #tpu.memory_space<vmem>>, vector<1x128x256xbf16>
    %228 = vector.shape_cast %227 : vector<1x128x256xbf16> to vector<128x256xbf16>
    %cst_230 = arith.constant dense<0.000000e+00> : vector<256x256xf32>
    %229 = tpu.matmul %226, %228, %cst_230 {dimension_numbers = #tpu.dot_dimension_numbers<[1], [0], [0], [1], [0, 0, 1, 1], [], []>} : vector<256x128xbf16>, vector<128x256xbf16>, vector<256x256xf32> -> vector<256x256xf32>
    %c0_231 = arith.constant 0 : index
    %c0_232 = arith.constant 0 : index
    %230 = vector.load %arg16[%c0_231, %c0_232] : memref<256x256xf32, #tpu.memory_space<vmem>>, vector<256x256xf32>
    %231 = arith.addf %230, %229 : vector<256x256xf32>
    %c0_233 = arith.constant 0 : index
    %c0_234 = arith.constant 0 : index
    %232 = vector.load %arg16[%c0_233, %c0_234] : memref<256x256xf32, #tpu.memory_space<vmem>>, vector<256x256xf32>
    tpu.vector_store %arg16[%c0_233, %c0_234], %231 {strides = array<i32>} : memref<256x256xf32, #tpu.memory_space<vmem>>, vector<256x256xf32>,
    %c24_235 = arith.constant 24 : index
    %c0_236 = arith.constant 0 : index
    %233 = vector.load %arg13[%c24_235, %c0_236] : memref<304x128xf32, #tpu.memory_space<vmem>>, vector<256x128xf32>
    %234 = arith.truncf %233 : vector<256x128xf32> to vector<256x128xbf16>
    %c4_237 = arith.constant 4 : index
    %c0_238 = arith.constant 0 : index
    %c0_239 = arith.constant 0 : index
    %235 = vector.load %arg6[%c4_237, %c0_238, %c0_239] : memref<9x128x256xbf16, #tpu.memory_space<vmem>>, vector<1x128x256xbf16>
    %236 = vector.shape_cast %235 : vector<1x128x256xbf16> to vector<128x256xbf16>
    %cst_240 = arith.constant dense<0.000000e+00> : vector<256x256xf32>
    %237 = tpu.matmul %234, %236, %cst_240 {dimension_numbers = #tpu.dot_dimension_numbers<[1], [0], [0], [1], [0, 0, 1, 1], [], []>} : vector<256x128xbf16>, vector<128x256xbf16>, vector<256x256xf32> -> vector<256x256xf32>
    %c0_241 = arith.constant 0 : index
    %c0_242 = arith.constant 0 : index
    %238 = vector.load %arg16[%c0_241, %c0_242] : memref<256x256xf32, #tpu.memory_space<vmem>>, vector<256x256xf32>
    %239 = arith.addf %238, %237 : vector<256x256xf32>
    %c0_243 = arith.constant 0 : index
    %c0_244 = arith.constant 0 : index
    %240 = vector.load %arg16[%c0_243, %c0_244] : memref<256x256xf32, #tpu.memory_space<vmem>>, vector<256x256xf32>
    tpu.vector_store %arg16[%c0_243, %c0_244], %239 {strides = array<i32>} : memref<256x256xf32, #tpu.memory_space<vmem>>, vector<256x256xf32>,
    %c25_245 = arith.constant 25 : index
    %c0_246 = arith.constant 0 : index
    %241 = vector.load %arg13[%c25_245, %c0_246] : memref<304x128xf32, #tpu.memory_space<vmem>>, vector<256x128xf32>
    %242 = vector.broadcast %1 : vector<256x1xf32> to vector<256x128xf32>
    %243 = arith.mulf %241, %242 : vector<256x128xf32>
    %244 = arith.truncf %243 : vector<256x128xf32> to vector<256x128xbf16>
    %c5_247 = arith.constant 5 : index
    %c0_248 = arith.constant 0 : index
    %c0_249 = arith.constant 0 : index
    %245 = vector.load %arg6[%c5_247, %c0_248, %c0_249] : memref<9x128x256xbf16, #tpu.memory_space<vmem>>, vector<1x128x256xbf16>
    %246 = vector.shape_cast %245 : vector<1x128x256xbf16> to vector<128x256xbf16>
    %cst_250 = arith.constant dense<0.000000e+00> : vector<256x256xf32>
    %247 = tpu.matmul %244, %246, %cst_250 {dimension_numbers = #tpu.dot_dimension_numbers<[1], [0], [0], [1], [0, 0, 1, 1], [], []>} : vector<256x128xbf16>, vector<128x256xbf16>, vector<256x256xf32> -> vector<256x256xf32>
    %c0_251 = arith.constant 0 : index
    %c0_252 = arith.constant 0 : index
    %248 = vector.load %arg16[%c0_251, %c0_252] : memref<256x256xf32, #tpu.memory_space<vmem>>, vector<256x256xf32>
    %249 = arith.addf %248, %247 : vector<256x256xf32>
    %c0_253 = arith.constant 0 : index
    %c0_254 = arith.constant 0 : index
    %250 = vector.load %arg16[%c0_253, %c0_254] : memref<256x256xf32, #tpu.memory_space<vmem>>, vector<256x256xf32>
    tpu.vector_store %arg16[%c0_253, %c0_254], %249 {strides = array<i32>} : memref<256x256xf32, #tpu.memory_space<vmem>>, vector<256x256xf32>,
    %c39_255 = arith.constant 39 : index
    %c0_256 = arith.constant 0 : index
    %251 = vector.load %arg13[%c39_255, %c0_256] : memref<304x128xf32, #tpu.memory_space<vmem>>, vector<256x128xf32>
    %252 = vector.broadcast %0 : vector<256x1xf32> to vector<256x128xf32>
    %253 = arith.mulf %251, %252 : vector<256x128xf32>
    %254 = arith.truncf %253 : vector<256x128xf32> to vector<256x128xbf16>
    %c6_257 = arith.constant 6 : index
    %c0_258 = arith.constant 0 : index
    %c0_259 = arith.constant 0 : index
    %255 = vector.load %arg6[%c6_257, %c0_258, %c0_259] : memref<9x128x256xbf16, #tpu.memory_space<vmem>>, vector<1x128x256xbf16>
    %256 = vector.shape_cast %255 : vector<1x128x256xbf16> to vector<128x256xbf16>
    %cst_260 = arith.constant dense<0.000000e+00> : vector<256x256xf32>
    %257 = tpu.matmul %254, %256, %cst_260 {dimension_numbers = #tpu.dot_dimension_numbers<[1], [0], [0], [1], [0, 0, 1, 1], [], []>} : vector<256x128xbf16>, vector<128x256xbf16>, vector<256x256xf32> -> vector<256x256xf32>
    %c0_261 = arith.constant 0 : index
    %c0_262 = arith.constant 0 : index
    %258 = vector.load %arg16[%c0_261, %c0_262] : memref<256x256xf32, #tpu.memory_space<vmem>>, vector<256x256xf32>
    %259 = arith.addf %258, %257 : vector<256x256xf32>
    %c0_263 = arith.constant 0 : index
    %c0_264 = arith.constant 0 : index
    %260 = vector.load %arg16[%c0_263, %c0_264] : memref<256x256xf32, #tpu.memory_space<vmem>>, vector<256x256xf32>
    tpu.vector_store %arg16[%c0_263, %c0_264], %259 {strides = array<i32>} : memref<256x256xf32, #tpu.memory_space<vmem>>, vector<256x256xf32>,
    %c40_265 = arith.constant 40 : index
    %c0_266 = arith.constant 0 : index
    %261 = vector.load %arg13[%c40_265, %c0_266] : memref<304x128xf32, #tpu.memory_space<vmem>>, vector<256x128xf32>
    %262 = arith.truncf %261 : vector<256x128xf32> to vector<256x128xbf16>
    %c7_267 = arith.constant 7 : index
    %c0_268 = arith.constant 0 : index
    %c0_269 = arith.constant 0 : index
    %263 = vector.load %arg6[%c7_267, %c0_268, %c0_269] : memref<9x128x256xbf16, #tpu.memory_space<vmem>>, vector<1x128x256xbf16>
    %264 = vector.shape_cast %263 : vector<1x128x256xbf16> to vector<128x256xbf16>
    %cst_270 = arith.constant dense<0.000000e+00> : vector<256x256xf32>
    %265 = tpu.matmul %262, %264, %cst_270 {dimension_numbers = #tpu.dot_dimension_numbers<[1], [0], [0], [1], [0, 0, 1, 1], [], []>} : vector<256x128xbf16>, vector<128x256xbf16>, vector<256x256xf32> -> vector<256x256xf32>
    %c0_271 = arith.constant 0 : index
    %c0_272 = arith.constant 0 : index
    %266 = vector.load %arg16[%c0_271, %c0_272] : memref<256x256xf32, #tpu.memory_space<vmem>>, vector<256x256xf32>
    %267 = arith.addf %266, %265 : vector<256x256xf32>
    %c0_273 = arith.constant 0 : index
    %c0_274 = arith.constant 0 : index
    %268 = vector.load %arg16[%c0_273, %c0_274] : memref<256x256xf32, #tpu.memory_space<vmem>>, vector<256x256xf32>
    tpu.vector_store %arg16[%c0_273, %c0_274], %267 {strides = array<i32>} : memref<256x256xf32, #tpu.memory_space<vmem>>, vector<256x256xf32>,
    %c41_275 = arith.constant 41 : index
    %c0_276 = arith.constant 0 : index
    %269 = vector.load %arg13[%c41_275, %c0_276] : memref<304x128xf32, #tpu.memory_space<vmem>>, vector<256x128xf32>
    %270 = vector.broadcast %1 : vector<256x1xf32> to vector<256x128xf32>
    %271 = arith.mulf %269, %270 : vector<256x128xf32>
    %272 = arith.truncf %271 : vector<256x128xf32> to vector<256x128xbf16>
    %c8_277 = arith.constant 8 : index
    %c0_278 = arith.constant 0 : index
    %c0_279 = arith.constant 0 : index
    %273 = vector.load %arg6[%c8_277, %c0_278, %c0_279] : memref<9x128x256xbf16, #tpu.memory_space<vmem>>, vector<1x128x256xbf16>
    %274 = vector.shape_cast %273 : vector<1x128x256xbf16> to vector<128x256xbf16>
    %cst_280 = arith.constant dense<0.000000e+00> : vector<256x256xf32>
    %275 = tpu.matmul %272, %274, %cst_280 {dimension_numbers = #tpu.dot_dimension_numbers<[1], [0], [0], [1], [0, 0, 1, 1], [], []>} : vector<256x128xbf16>, vector<128x256xbf16>, vector<256x256xf32> -> vector<256x256xf32>
    %c0_281 = arith.constant 0 : index
    %c0_282 = arith.constant 0 : index
    %276 = vector.load %arg16[%c0_281, %c0_282] : memref<256x256xf32, #tpu.memory_space<vmem>>, vector<256x256xf32>
    %277 = arith.addf %276, %275 : vector<256x256xf32>
    %c0_283 = arith.constant 0 : index
    %c0_284 = arith.constant 0 : index
    %278 = vector.load %arg16[%c0_283, %c0_284] : memref<256x256xf32, #tpu.memory_space<vmem>>, vector<256x256xf32>
    tpu.vector_store %arg16[%c0_283, %c0_284], %277 {strides = array<i32>} : memref<256x256xf32, #tpu.memory_space<vmem>>, vector<256x256xf32>,
    %c0_285 = arith.constant 0 : index
    %c0_286 = arith.constant 0 : index
    %279 = vector.load %arg16[%c0_285, %c0_286] : memref<256x256xf32, #tpu.memory_space<vmem>>, vector<256x128xf32>
    %c0_287 = arith.constant 0 : index
    %c0_288 = arith.constant 0 : index
    %280 = vector.load %arg7[%c0_287, %c0_288] : memref<1x256xf32, #tpu.memory_space<vmem>>, vector<1x128xf32>
    %281 = vector.broadcast %280 : vector<1x128xf32> to vector<256x128xf32>
    %282 = arith.addf %279, %281 : vector<256x128xf32>
    %cst_289 = arith.constant 0.000000e+00 : f32
    %283 = vector.broadcast %cst_289 : f32 to vector<256x128xf32>
    %284 = arith.maximumf %282, %283 : vector<256x128xf32>
    %c0_290 = arith.constant 0 : index
    %c0_291 = arith.constant 0 : index
    %285 = vector.load %arg8[%c0_290, %c0_291] : memref<16x256xbf16, #tpu.memory_space<vmem>>, vector<16x256xbf16>
    %286 = arith.truncf %284 : vector<256x128xf32> to vector<256x128xbf16>
    %cst_292 = arith.constant dense<0.000000e+00> : vector<16x128xf32>
    %287 = tpu.matmul %285, %286, %cst_292 {dimension_numbers = #tpu.dot_dimension_numbers<[1], [0], [0], [1], [0, 0, 1, 1], [], []>} : vector<16x256xbf16>, vector<256x128xbf16>, vector<16x128xf32> -> vector<16x128xf32>
    %c0_293 = arith.constant 0 : index
    %c0_294 = arith.constant 0 : index
    %c0_295 = arith.constant 0 : index
    %288 = vector.load %arg11[%c0_293, %c0_294, %c0_295] : memref<1x16x256xf32, #tpu.memory_space<vmem>>, vector<1x16x128xf32>
    %289 = vector.shape_cast %288 : vector<1x16x128xf32> to vector<16x128xf32>
    %290 = vector.shape_cast %287 : vector<16x128xf32> to vector<1x16x128xf32>
    tpu.vector_store %arg11[%c0_293, %c0_294, %c0_295], %290 {strides = array<i32>} : memref<1x16x256xf32, #tpu.memory_space<vmem>>, vector<1x16x128xf32>,
    %c0_296 = arith.constant 0 : index
    %c128 = arith.constant 128 : index
    %291 = vector.load %arg16[%c0_296, %c128] : memref<256x256xf32, #tpu.memory_space<vmem>>, vector<256x128xf32>
    %c0_297 = arith.constant 0 : index
    %c128_298 = arith.constant 128 : index
    %292 = vector.load %arg7[%c0_297, %c128_298] : memref<1x256xf32, #tpu.memory_space<vmem>>, vector<1x128xf32>
    %293 = vector.broadcast %292 : vector<1x128xf32> to vector<256x128xf32>
    %294 = arith.addf %291, %293 : vector<256x128xf32>
    %cst_299 = arith.constant 0.000000e+00 : f32
    %295 = vector.broadcast %cst_299 : f32 to vector<256x128xf32>
    %296 = arith.maximumf %294, %295 : vector<256x128xf32>
    %c0_300 = arith.constant 0 : index
    %c0_301 = arith.constant 0 : index
    %297 = vector.load %arg8[%c0_300, %c0_301] : memref<16x256xbf16, #tpu.memory_space<vmem>>, vector<16x256xbf16>
    %298 = arith.truncf %296 : vector<256x128xf32> to vector<256x128xbf16>
    %cst_302 = arith.constant dense<0.000000e+00> : vector<16x128xf32>
    %299 = tpu.matmul %297, %298, %cst_302 {dimension_numbers = #tpu.dot_dimension_numbers<[1], [0], [0], [1], [0, 0, 1, 1], [], []>} : vector<16x256xbf16>, vector<256x128xbf16>, vector<16x128xf32> -> vector<16x128xf32>
    %c0_303 = arith.constant 0 : index
    %c0_304 = arith.constant 0 : index
    %c128_305 = arith.constant 128 : index
    %300 = vector.load %arg11[%c0_303, %c0_304, %c128_305] : memref<1x16x256xf32, #tpu.memory_space<vmem>>, vector<1x16x128xf32>
    %301 = vector.shape_cast %300 : vector<1x16x128xf32> to vector<16x128xf32>
    %302 = vector.shape_cast %299 : vector<16x128xf32> to vector<1x16x128xf32>
    tpu.vector_store %arg11[%c0_303, %c0_304, %c128_305], %302 {strides = array<i32>} : memref<1x16x256xf32, #tpu.memory_space<vmem>>, vector<1x16x128xf32>,
    return
  }
  func.func @transform_0(%arg0: i32) -> (i32, i32, i32) {
    %c0_i32 = arith.constant 0 : i32
    %c0_i32_0 = arith.constant 0 : i32
    %c0_i32_1 = arith.constant 0 : i32
    return %arg0, %c0_i32, %c0_i32_0 : i32, i32, i32
  }
  func.func @transform_1(%arg0: i32) -> (i32, i32, i32) {
    %c0_i32 = arith.constant 0 : i32
    %c0_i32_0 = arith.constant 0 : i32
    %c0_i32_1 = arith.constant 0 : i32
    %c0_i32_2 = arith.constant 0 : i32
    return %c0_i32, %c0_i32_0, %c0_i32_1 : i32, i32, i32
  }
  func.func @transform_2(%arg0: i32) -> (i32, i32) {
    %c0_i32 = arith.constant 0 : i32
    %c0_i32_0 = arith.constant 0 : i32
    %c0_i32_1 = arith.constant 0 : i32
    return %c0_i32, %c0_i32_0 : i32, i32
  }
  func.func @transform_3(%arg0: i32) -> (i32, i32, i32) {
    %c0_i32 = arith.constant 0 : i32
    %c0_i32_0 = arith.constant 0 : i32
    %c0_i32_1 = arith.constant 0 : i32
    %c0_i32_2 = arith.constant 0 : i32
    return %c0_i32, %c0_i32_0, %c0_i32_1 : i32, i32, i32
  }
  func.func @transform_4(%arg0: i32) -> (i32, i32) {
    %c0_i32 = arith.constant 0 : i32
    %c0_i32_0 = arith.constant 0 : i32
    %c0_i32_1 = arith.constant 0 : i32
    return %c0_i32, %c0_i32_0 : i32, i32
  }
  func.func @transform_5(%arg0: i32) -> (i32, i32, i32) {
    %c0_i32 = arith.constant 0 : i32
    %c0_i32_0 = arith.constant 0 : i32
    %c0_i32_1 = arith.constant 0 : i32
    %c0_i32_2 = arith.constant 0 : i32
    return %c0_i32, %c0_i32_0, %c0_i32_1 : i32, i32, i32
  }
  func.func @transform_6(%arg0: i32) -> (i32, i32) {
    %c0_i32 = arith.constant 0 : i32
    %c0_i32_0 = arith.constant 0 : i32
    %c0_i32_1 = arith.constant 0 : i32
    return %c0_i32, %c0_i32_0 : i32, i32
  }
  func.func @transform_7(%arg0: i32) -> (i32, i32) {
    %c0_i32 = arith.constant 0 : i32
    %c0_i32_0 = arith.constant 0 : i32
    %c0_i32_1 = arith.constant 0 : i32
    return %c0_i32, %c0_i32_0 : i32, i32
  }
  func.func @transform_8(%arg0: i32) -> (i32, i32) {
    %c0_i32 = arith.constant 0 : i32
    %c0_i32_0 = arith.constant 0 : i32
    %c0_i32_1 = arith.constant 0 : i32
    return %c0_i32, %c0_i32_0 : i32, i32
  }
  func.func @transform_9(%arg0: i32) -> (i32, i32) {
    %c0_i32 = arith.constant 0 : i32
    %c0_i32_0 = arith.constant 0 : i32
    %c0_i32_1 = arith.constant 0 : i32
    return %c0_i32, %c0_i32_0 : i32, i32
  }
  func.func @transform_10(%arg0: i32) -> (i32, i32, i32) {
    %c0_i32 = arith.constant 0 : i32
    %c0_i32_0 = arith.constant 0 : i32
    %c0_i32_1 = arith.constant 0 : i32
    return %arg0, %c0_i32, %c0_i32_0 : i32, i32, i32
  }
}

</mosaic_0001>

<bundles_post_ra>
// kernel: _lambda_.3
= control target key start
LH: loop header
LB: loop body
LE: loop exit
PB: predicated region body
PF: predicated region fallthrough
CT: control target
= control target key end

     0   :  { %s762_s12 = smov 0   ;;  %s841_s0 = inlined_call_operand.vmem [shape: bf16[8,4096], index: 0, kind: input, shape index: {}]   ;;  %s842_s1 = inlined_call_operand.vmem [shape: bf16[4096,128], index: 1, kind: input, shape index: {}]   ;;  %s843_s2 = inlined_call_operand.vmem [shape: f32[1,128], index: 2, kind: input, shape index: {}]   ;;  %s844_s3 = inlined_call_operand.vmem [shape: f32[8,128], index: 3, kind: output, shape index: {}]  }
   0x1 LB: > { %s768_s13 = sadd.s32 4294967295, %s739_s12   ;;  %p598_p0 = scmp.ge.s32.totalorder %s739_s12, 1  ;;  %s739_s12 = sphi %s762_s12, %s13_s12  }
   0x2   : > { %p144_p1 = scmp.lt.s32.totalorder %s739_s12, 9 }
   0x4   : > { %p145_p2 = pnand %p598_p0, %p144_p1 }
   0x5   : > { %s599_s14 = sshll.u32 (!%p145_p2), %s768_s13, 2  ;;  %s601_s15 = sshll.u32 (!%p145_p2), %s768_s13, 6 }
   0x6   : > { %148 = sbr.rel (%p145_p2) target bundleno = 288 (0x120), region = 32  ;;  %p169_p3 = scmp.lt.s32.totalorder (!%p145_p2), %s599_s14, 31 }
   0x7   : > { %p175_p4 = scmp.lt.s32.totalorder (!%p145_p2), %s601_s15, 511  ;;  %p603_p5 = scmp.ne.s32.totalorder (!%p145_p2), %s768_s13, 0 }
   0xd   : > { %s846_s14 = smov (!%p169_p3, %s599_s14), 31  ;;  %s848_s15 = smov (!%p175_p4, %s601_s15), 511 }
   0xe   : > { %s600_s16 = sshll.u32 %s846_s14, 2  ;;  %s602_s20 = sshll.u32 %s848_s15, 2  ;;  %v741_v0 = vmov (!%p603_p5), 0.0  }
   0xf   : > { %s777_s19 = scalar_lea.vmem %s841_s0, %s600_s16  ;;  %s782_s23 = scalar_lea.vmem %s842_s1, %s602_s20  ;;  %185 = vst [vmem:[%s844_s3] sm:$0xff] (!%p603_p5), %v741_v0 }
  0x10   : > { %184 = sbr.rel (%p603_p5) target bundleno = 23 (0x17), region = 36 }
  0x17 PF: > { %v697_v1 = vld [vmem:[%s782_s23 + $0x40] sm:$0xff]   ;;  %v701_v5 = vld [vmem:[%s782_s23 + $0x48] sm:$0xff]   ;;  %v705_v9 = vld [vmem:[%s782_s23 + $0x50] sm:$0xff]   ;;  %p640_p6 = scmp.ne.s32.totalorder %s768_s13, 7 }
  0x18   : > { %v698_v2 = vld [vmem:[%s782_s23 + $0xc0] sm:$0xff]   ;;  %644 = vmatprep.subr.bf16.mxu0 %v697_v1  ;;  %v702_v6 = vld [vmem:[%s782_s23 + $0xc8] sm:$0xff]   ;;  %v706_v10 = vld [vmem:[%s782_s23 + $0xd0] sm:$0xff]  }
  0x19   : > { %v699_v3 = vld [vmem:[%s782_s23] sm:$0xff]   ;;  %666 = vmatprep.subr.bf16.mxu1 %v698_v2  ;;  %v703_v7 = vld [vmem:[%s782_s23 + $0x8] sm:$0xff]   ;;  %v707_v11 = vld [vmem:[%s782_s23 + $0x10] sm:$0xff]  }
  0x1a   : > { %v700_v4 = vld [vmem:[%s782_s23 + $0x80] sm:$0xff]   ;;  %645 = vmatpush3.bf16.msra.mxu0 %v699_v3  ;;  %v704_v8 = vld [vmem:[%s782_s23 + $0x88] sm:$0xff]   ;;  %v708_v12 = vld [vmem:[%s782_s23 + $0x90] sm:$0xff]  }
  0x1b   : > { %667 = vmatpush3.bf16.msra.mxu1 %v700_v4  ;;  %646 = vmatprep.subr.bf16.mxu0 %v701_v5  ;;  %v709_v13 = vld [vmem:[%s782_s23 + $0x58] sm:$0xff]   ;;  %v713_v17 = vld [vmem:[%s782_s23 + $0x60] sm:$0xff]   ;;  %v717_v21 = vld [vmem:[%s782_s23 + $0x68] sm:$0xff]  }
  0x1c   : > { %668 = vmatprep.subr.bf16.mxu1 %v702_v6  ;;  %v710_v14 = vld [vmem:[%s782_s23 + $0xd8] sm:$0xff]   ;;  %v714_v18 = vld [vmem:[%s782_s23 + $0xe0] sm:$0xff]   ;;  %v718_v22 = vld [vmem:[%s782_s23 + $0xe8] sm:$0xff]  }
  0x1d   : > { %v711_v15 = vld [vmem:[%s782_s23 + $0x18] sm:$0xff]   ;;  %v715_v19 = vld [vmem:[%s782_s23 + $0x20] sm:$0xff]   ;;  %v719_v23 = vld [vmem:[%s782_s23 + $0x28] sm:$0xff]  }
  0x1e   : > { %647 = vmatpush3.bf16.msra.mxu0 %v703_v7  ;;  %v712_v16 = vld [vmem:[%s782_s23 + $0x98] sm:$0xff]   ;;  %v716_v20 = vld [vmem:[%s782_s23 + $0xa0] sm:$0xff]   ;;  %v720_v24 = vld [vmem:[%s782_s23 + $0xa8] sm:$0xff]  }
  0x1f   : > { %669 = vmatpush3.bf16.msra.mxu1 %v704_v8  ;;  %648 = vmatprep.subr.bf16.mxu0 %v705_v9  ;;  %v721_v25 = vld [vmem:[%s782_s23 + $0x70] sm:$0xff]   ;;  %v725_v29 = vld [vmem:[%s782_s23 + $0x78] sm:$0xff]   ;;  %v187_v33 = vld [vmem:[%s777_s19] sm:$0xff] }
  0x20   : > { %670 = vmatprep.subr.bf16.mxu1 %v706_v10  ;;  %v722_v26 = vld [vmem:[%s782_s23 + $0xf0] sm:$0xff]   ;;  %v726_v30 = vld [vmem:[%s782_s23 + $0xf8] sm:$0xff]   ;;  %v188_v34 = vld [vmem:[%s777_s19 + $0x8] sm:$0xff]  ;;  %v604_v35 = vcombine.low %v187_v33, %v187_v33  ;;  %v605_v36 = vcombine.high %v187_v33, %v187_v33 }
  0x21   : > { %v723_v27 = vld [vmem:[%s782_s23 + $0x30] sm:$0xff]   ;;  %v727_v31 = vld [vmem:[%s782_s23 + $0x38] sm:$0xff]   ;;  %v606_v37 = vcombine.low %v188_v34, %v188_v34  ;;  %v607_v38 = vcombine.high %v188_v34, %v188_v34  ;;  %v186_v47 = vld [vmem:[%s844_s3] sm:$0xff] }
  0x22   : > { %649 = vmatpush3.bf16.msra.mxu0 %v707_v11  ;;  %v724_v28 = vld [vmem:[%s782_s23 + $0xb0] sm:$0xff]   ;;  %v728_v32 = vld [vmem:[%s782_s23 + $0xb8] sm:$0xff]   ;;  %491 = vmatprep.mubr.bf16.mxu0 %v605_v36  ;;  %v641_v53 = vld [vmem:[%s843_s2] ss:$0 sm:$0xff] (!%p640_p6) }
  0x23   : > { %671 = vmatpush3.bf16.msra.mxu1 %v708_v12  ;;  %650 = vmatprep.subr.bf16.mxu0 %v709_v13 }
  0x24   : > { %672 = vmatprep.subr.bf16.mxu1 %v710_v14  ;;  %531 = vmatprep.mubr.bf16.mxu1 %v607_v38 }
  0x26   : > { %651 = vmatpush3.bf16.msra.mxu0 %v711_v15 }
  0x27   : > { %673 = vmatpush3.bf16.msra.mxu1 %v712_v16  ;;  %652 = vmatprep.subr.bf16.mxu0 %v713_v17 }
  0x28   : > { %674 = vmatprep.subr.bf16.mxu1 %v714_v18 }
  0x2a   : > { %653 = vmatpush3.bf16.msra.mxu0 %v715_v19 }
  0x2b   : > { %675 = vmatpush3.bf16.msra.mxu1 %v716_v20  ;;  %654 = vmatprep.subr.bf16.mxu0 %v717_v21 }
  0x2c   : > { %676 = vmatprep.subr.bf16.mxu1 %v718_v22 }
  0x2e   : > { %655 = vmatpush3.bf16.msra.mxu0 %v719_v23 }
  0x2f   : > { %677 = vmatpush3.bf16.msra.mxu1 %v720_v24  ;;  %656 = vmatprep.subr.bf16.mxu0 %v721_v25 }
  0x30   : > { %678 = vmatprep.subr.bf16.mxu1 %v722_v26 }
  0x32   : > { %657 = vmatpush3.bf16.msra.mxu0 %v723_v27 }
  0x33   : > { %679 = vmatpush3.bf16.msra.mxu1 %v724_v28  ;;  %658 = vmatprep.subr.bf16.mxu0 %v725_v29 }
  0x34   : > { %680 = vmatprep.subr.bf16.mxu1 %v726_v30 }
  0x36   : > { %659 = vmatpush3.bf16.msra.mxu0 %v727_v31 }
  0x37   : > { %681 = vmatpush3.bf16.msra.mxu1 %v728_v32 }
  0x39   : > { %492 = vmatmul.mubr.bf16.vlgmr.msra.gmra.mrb[0].mxu0 %v604_v35 }
  0x3a   : > { %532 = vmatmul.mubr.bf16.vlgmr.msra.gmra.mrb[0].mxu1 %v606_v37 }
 0x10c   : > { %v660_v39 = vpop.f32.mrb[0].mxu0 }
 0x10d   : > { %v682_v40 = vpop.f32.mrb[0].mxu1  ;;  %v661_v41 = vpop.f32.mrb[1].mxu0 }
 0x10e   : > { %v683_v42 = vpop.f32.mrb[1].mxu1  ;;  %v662_v43 = vadd.f32 %v661_v41, %v660_v39  ;;  %v663_v45 = vpop.f32.mrb[2].mxu0 }
 0x10f   : > { %v684_v44 = vadd.f32 %v683_v42, %v682_v40  ;;  %v685_v46 = vpop.f32.mrb[2].mxu1  ;;  %v664_v48 = vpop.f32.mrb[3].mxu0  ;;  %544 = sbr.rel (%p640_p6) target bundleno = 288 (0x120), region = 40 }
 0x110   : > { %v686_v49 = vpop.f32.mrb[3].mxu1 }
 0x111   : > { %v534_v50 = vadd.f32 %v684_v44, %v662_v43 }
 0x113   : > { %v539_v51 = vadd.f32 %v534_v50, %v186_v47 }
 0x115   : > { %540 = vst [vmem:[%s844_s3] sm:$0xff] %v539_v51 }
 0x11c   : > { %v545_v52 = vld [vmem:[%s844_s3] sm:$0xff] }
 0x11d   : > { %v553_v54 = vadd.f32 %v641_v53, %v545_v52 }
 0x11f   : > { %554 = vst [vmem:[%s844_s3] sm:$0xff] %v553_v54 }
 0x120 PF: > { %s13_s12 = sadd.s32 1, %s739_s12  }
 0x121   : > { %p10_p7 = scmp.ge.s32.totalorder %s13_s12, 10  }
 0x123   :  { %12 = sbr.rel (!%p10_p7) target bundleno = 1 (0x1), region = 69 }

// kernel: _lambda_.2
= control target key start
LH: loop header
LB: loop body
LE: loop exit
PB: predicated region body
PF: predicated region fallthrough
CT: control target
= control target key end

     0   :  { %s16061_s13 = smov 0   ;;  %s20597_s0 = inlined_call_operand.vmem [shape: f32[2,304,8], index: 0, kind: input, shape index: {}]   ;;  %s20598_s1 = inlined_call_operand.vmem [shape: bf16[9,8,64], index: 1, kind: input, shape index: {}]   ;;  %s20599_s2 = inlined_call_operand.vmem [shape: f32[1,64], index: 2, kind: input, shape index: {}]   ;;  %s20600_s3 = inlined_call_operand.vmem [shape: bf16[9,64,128], index: 3, kind: input, shape index: {}]   ;;  %s20601_s4 = inlined_call_operand.vmem [shape: f32[1,128], index: 4, kind: input, shape index: {}]   ;;  %s20602_s5 = inlined_call_operand.vmem [shape: bf16[9,128,256], index: 5, kind: input, shape index: {}]   ;;  %s20603_s6 = inlined_call_operand.vmem [shape: f32[1,256], index: 6, kind: input, shape index: {}]   ;;  %s20604_s7 = inlined_call_operand.vmem [shape: bf16[16,256], index: 7, kind: input, shape index: {}]   ;;  %s20605_s8 = inlined_call_operand.vmem [shape: f32[256,1], index: 8, kind: input, shape index: {}]   ;;  %s20606_s9 = inlined_call_operand.vmem [shape: f32[256,1], index: 9, kind: input, shape index: {}]   ;;  %s20607_s10 = inlined_call_operand.vmem [shape: f32[2,16,256], index: 10, kind: output, shape index: {}]  }
   0x1 LB: > { %s13216_s14 = sadd.s32 4294967295, %s16002_s13   ;;  %p13220_p0 = scmp.ge.s32.totalorder %s16002_s13, 1  ;;  %s16002_s13 = sphi %s16061_s13, %s20_s13  }
   0x2   : > { %p312_p1 = scmp.lt.s32.totalorder %s16002_s13, 3 }
   0x4   : > { %p313_p2 = pnand %p13220_p0, %p312_p1 }
   0x6   : > { %316 = sbr.rel (%p313_p2) target bundleno = 2756 (0xac4), region = 60 }
   0xd   : > { %v375_v0 = vld [vmem:[%s20605_s8 + $0x70] sm:$0xff]  ;;  %v373_v1 = vld [vmem:[%s20605_s8 + $0x60] sm:$0xff]  ;;  %v20608_v2 = vmov 0   ;;  %v376_v3 = vld [vmem:[%s20605_s8 + $0x78] sm:$0xff]  ;;  %vm715_vm0 = vcmask 1043456   ;;  %vm880_vm1 = vcmask 523264  }
   0xe   : > { %15738 = vset.pattern.permute.xlu1 %v20608_v2  ;;  %15737 = vset.pattern.permute.xlu0 %v20608_v2  ;;  %v374_v4 = vld [vmem:[%s20605_s8 + $0x68] sm:$0xff]  ;;  %v377_v6 = vld [vmem:[%s20605_s8 + $0x80] sm:$0xff]  ;;  %v380_v7 = vld [vmem:[%s20605_s8 + $0x98] sm:$0xff]  ;;  %v16005_v19 = vmov 0.0   ;;  %p350_p3 = scmp.lt.s32.totalorder %s13216_s14, 1  ;;  %vm666_vm2 = vcmask 64512  }
   0xf   : > { %529 = vperm.xlu1 %15738, %v375_v0   ;;  %519 = vperm.xlu0 %15737, %v373_v1   ;;  %v378_v5 = vld [vmem:[%s20605_s8 + $0x88] sm:$0xff]  ;;  %v379_v8 = vld [vmem:[%s20605_s8 + $0x90] sm:$0xff]  ;;  %v381_v10 = vld [vmem:[%s20605_s8 + $0xa0] sm:$0xff]  ;;  %4200 = vst.msk [vmem:[#allocation2] sm:$0xff] %vm880_vm1, %v16005_v19 }
  0x10   : > { %v382_v9 = vld [vmem:[%s20605_s8 + $0xa8] sm:$0xff]  ;;  %v384_v11 = vld [vmem:[%s20605_s8 + $0xb8] sm:$0xff]  ;;  %v383_v12 = vld [vmem:[%s20605_s8 + $0xb0] sm:$0xff]  ;;  %4201 = vst.msk [vmem:[#allocation2 + $0x8] sm:$0xff] %vm880_vm1, %v16005_v19  ;;  %s21908_s14 = smov (!%p350_p3, %s13216_s14), 1 }
  0x11   : > { %v665_v13 = vld [vmem:[%s20598_s1] sm:$0xf]  ;;  %v386_v15 = vld [vmem:[%s20605_s8 + $0xc8] sm:$0xff]  ;;  %v388_v17 = vld [vmem:[%s20605_s8 + $0xd8] sm:$0xff]  ;;  %4202 = vst.msk [vmem:[#allocation2 + $0x10] sm:$0xff] %vm880_vm1, %v16005_v19  ;;  %s15726_s19 = smul.u32 304, %s21908_s14 }
  0x12   : > { %v717_v14 = vsel %vm715_vm0, %v665_v13, 0  ;;  %v385_v16 = vld [vmem:[%s20605_s8 + $0xc0] sm:$0xff]  ;;  %15717 = vmatprep.subr.msk.bf16.mxu1 %vm715_vm0, %v665_v13  ;;  %15716 = vmatprep.subr.msk.bf16.mxu0 %vm715_vm0, %v665_v13  ;;  %v387_v18 = vld [vmem:[%s20605_s8 + $0xd0] sm:$0xff]  ;;  %4203 = vst.msk [vmem:[#allocation2 + $0x118] sm:$0xff] %vm880_vm1, %v16005_v19  ;;  %4204 = vst.msk [vmem:[#allocation2 + $0x120] sm:$0xff] %vm880_vm1, %v16005_v19  ;;  %s13902_s15 = sshll.u32 %s21908_s14, 5 }
  0x13   : > { %534 = vperm.xlu1 %15738, %v376_v3   ;;  %524 = vperm.xlu0 %15737, %v374_v4   ;;  %4205 = vst.msk [vmem:[#allocation2 + $0x128] sm:$0xff] %vm880_vm1, %v16005_v19  ;;  %7942 = vst [vmem:[#allocation3] sm:$0xff] %v16005_v19  ;;  %v362_v20 = vld [vmem:[%s20605_s8 + $0x8] sm:$0xff]  ;;  %v361_v21 = vld [vmem:[%s20605_s8] sm:$0xff]  ;;  %s16299_s26 = scalar_lea.vmem %s20597_s0, %s15726_s19  ;;  %s359_s18 = scalar_lea.vmem %s20607_s10, %s13902_s15 }
  0x14   : > { %14947 = vmatpush3.bf16.msra.mxu1 %v717_v14  ;;  %14281 = vmatpush3.bf16.msra.mxu0 %v717_v14  ;;  %7943 = vst [vmem:[#allocation3 + $0x8] sm:$0xff] %v16005_v19  ;;  %7944 = vst [vmem:[#allocation3 + $0x10] sm:$0xff] %v16005_v19  ;;  %v364_v22 = vld [vmem:[%s20605_s8 + $0x18] sm:$0xff]  ;;  %v363_v23 = vld [vmem:[%s20605_s8 + $0x10] sm:$0xff] }
  0x15   : > { %7945 = vst [vmem:[#allocation3 + $0x118] sm:$0xff] %v16005_v19  ;;  %7946 = vst [vmem:[#allocation3 + $0x120] sm:$0xff] %v16005_v19  ;;  %v390_v24 = vld [vmem:[%s20605_s8 + $0xe8] sm:$0xff]  ;;  %v389_v25 = vld [vmem:[%s20605_s8 + $0xe0] sm:$0xff] }
  0x16   : > { %7947 = vst [vmem:[#allocation3 + $0x128] sm:$0xff] %v16005_v19  ;;  %v392_v26 = vld [vmem:[%s20605_s8 + $0xf8] sm:$0xff]  ;;  %v391_v27 = vld [vmem:[%s20605_s8 + $0xf0] sm:$0xff]  ;;  %v366_v28 = vld [vmem:[%s20605_s8 + $0x28] sm:$0xff] }
  0x17   : > { %544 = vperm.xlu1 %15738, %v378_v5   ;;  %539 = vperm.xlu0 %15737, %v377_v6   ;;  %v365_v29 = vld [vmem:[%s20605_s8 + $0x20] sm:$0xff]  ;;  %v368_v30 = vld [vmem:[%s20605_s8 + $0x38] sm:$0xff]  ;;  %v367_v31 = vld [vmem:[%s20605_s8 + $0x30] sm:$0xff] }
  0x18   : > { %v16170_v32 = vld [vmem:[%s20598_s1 + $0x4] sm:$0xf]  ;;  %v370_v33 = vld [vmem:[%s20605_s8 + $0x48] sm:$0xff]  ;;  %v372_v35 = vld [vmem:[%s20605_s8 + $0x58] sm:$0xff] }
  0x19   : > { %v369_v34 = vld [vmem:[%s20605_s8 + $0x40] sm:$0xff]  ;;  %15718 = vmatprep.subr.msk.bf16.mxu1 %vm715_vm0, %v16170_v32  ;;  %v371_v36 = vld [vmem:[%s20605_s8 + $0x50] sm:$0xff]  ;;  %v394_v37 = vld [vmem:[%s20606_s9 + $0x8] sm:$0xff] }
  0x1a   : > { %v393_v38 = vld [vmem:[%s20606_s9] sm:$0xff]  ;;  %v396_v39 = vld [vmem:[%s20606_s9 + $0x18] sm:$0xff]  ;;  %v395_v40 = vld [vmem:[%s20606_s9 + $0x10] sm:$0xff] }
  0x1b   : > { %554 = vperm.xlu1 %15738, %v380_v7   ;;  %549 = vperm.xlu0 %15737, %v379_v8   ;;  %v16201_v41 = vld [vmem:[%s20598_s1 + $0x8] sm:$0xf]  ;;  %v397_v43 = vld [vmem:[%s20606_s9 + $0x20] sm:$0xff]  ;;  %v400_v44 = vld [vmem:[%s20606_s9 + $0x38] sm:$0xff] }
  0x1c   : > { %v398_v42 = vld [vmem:[%s20606_s9 + $0x28] sm:$0xff]  ;;  %15719 = vmatprep.subr.msk.bf16.mxu0 %vm715_vm0, %v16201_v41  ;;  %v399_v45 = vld [vmem:[%s20606_s9 + $0x30] sm:$0xff]  ;;  %v401_v47 = vld [vmem:[%s20606_s9 + $0x40] sm:$0xff] }
  0x1d   : > { %v402_v46 = vld [vmem:[%s20606_s9 + $0x48] sm:$0xff]  ;;  %v404_v48 = vld [vmem:[%s20606_s9 + $0x58] sm:$0xff]  ;;  %v403_v49 = vld [vmem:[%s20606_s9 + $0x50] sm:$0xff] }
  0x1e   : > { %v406_v50 = vld [vmem:[%s20606_s9 + $0x68] sm:$0xff]  ;;  %v405_v51 = vld [vmem:[%s20606_s9 + $0x60] sm:$0xff]  ;;  %v408_v52 = vld [vmem:[%s20606_s9 + $0x78] sm:$0xff] }
  0x1f   : > { %564 = vperm.xlu1 %15738, %v382_v9   ;;  %559 = vperm.xlu0 %15737, %v381_v10   ;;  %v407_v53 = vld [vmem:[%s20606_s9 + $0x70] sm:$0xff]  ;;  %v410_v54 = vld [vmem:[%s20606_s9 + $0x88] sm:$0xff]  ;;  %v409_v55 = vld [vmem:[%s20606_s9 + $0x80] sm:$0xff] }
  0x20   : > { %v412_v56 = vld [vmem:[%s20606_s9 + $0x98] sm:$0xff]  ;;  %v411_v57 = vld [vmem:[%s20606_s9 + $0x90] sm:$0xff]  ;;  %v414_v58 = vld [vmem:[%s20606_s9 + $0xa8] sm:$0xff] }
  0x21   : > { %v413_v59 = vld [vmem:[%s20606_s9 + $0xa0] sm:$0xff]  ;;  %v416_v60 = vld [vmem:[%s20606_s9 + $0xb8] sm:$0xff]  ;;  %v415_v61 = vld [vmem:[%s20606_s9 + $0xb0] sm:$0xff] }
  0x22   : > { %v418_v62 = vld [vmem:[%s20606_s9 + $0xc8] sm:$0xff]  ;;  %v417_v63 = vld [vmem:[%s20606_s9 + $0xc0] sm:$0xff]  ;;  %v420_v0 = vld [vmem:[%s20606_s9 + $0xd8] sm:$0xff] }
  0x23   : > { %574 = vperm.xlu1 %15738, %v384_v11   ;;  %569 = vperm.xlu0 %15737, %v383_v12   ;;  %v419_v1 = vld [vmem:[%s20606_s9 + $0xd0] sm:$0xff]  ;;  %v422_v3 = vld [vmem:[%s20606_s9 + $0xe8] sm:$0xff]  ;;  %v421_v4 = vld [vmem:[%s20606_s9 + $0xe0] sm:$0xff] }
  0x24   : > { %v424_v5 = vld [vmem:[%s20606_s9 + $0xf8] sm:$0xff]  ;;  %v423_v6 = vld [vmem:[%s20606_s9 + $0xf0] sm:$0xff]  ;;  %v16302_v7 = vld [vmem:[%s16299_s26 + $0x67] sm:$0xff] }
  0x25   : > { %v439_v8 = vld [vmem:[%s16299_s26 + $0x77] sm:$0xff]  ;;  %v441_v9 = vld [vmem:[%s16299_s26 + $0x87] sm:$0xff]  ;;  %v16311_v12 = vld [vmem:[%s16299_s26 + $0x6f] sm:$0xff] }
  0x26   : > { %v440_v13 = vld [vmem:[%s16299_s26 + $0x7f] sm:$0xff]  ;;  %v442_v14 = vld [vmem:[%s16299_s26 + $0x8f] sm:$0xff]  ;;  %v443_v19 = vld [vmem:[%s16299_s26 + $0x97] sm:$0xff] }
  0x27   : > { %584 = vperm.xlu1 %15738, %v386_v15   ;;  %579 = vperm.xlu0 %15737, %v385_v16  }
  0x2b   : > { %594 = vperm.xlu1 %15738, %v388_v17   ;;  %589 = vperm.xlu0 %15737, %v387_v18  }
  0x2f   : > { %464 = vperm.xlu1 %15738, %v362_v20   ;;  %459 = vperm.xlu0 %15737, %v361_v21   ;;  %v444_v20 = vld [vmem:[%s16299_s26 + $0x9f] sm:$0xff] }
  0x33   : > { %474 = vperm.xlu1 %15738, %v364_v22   ;;  %469 = vperm.xlu0 %15737, %v363_v23  }
  0x37   : > { %604 = vperm.xlu1 %15738, %v390_v24   ;;  %599 = vperm.xlu0 %15737, %v389_v25  }
  0x3b   : > { %614 = vperm.xlu1 %15738, %v392_v26   ;;  %609 = vperm.xlu0 %15737, %v391_v27  }
  0x3f   : > { %484 = vperm.xlu1 %15738, %v366_v28   ;;  %479 = vperm.xlu0 %15737, %v365_v29   ;;  %v16342_v29 = vld [vmem:[%s20598_s1 + $0xc] sm:$0xf] }
  0x43   : > { %494 = vperm.xlu1 %15738, %v368_v30   ;;  %489 = vperm.xlu0 %15737, %v367_v31   ;;  %v16524_v31 = vld [vmem:[%s16299_s26 + $0x107] sm:$0xff]  ;;  %v16527_v30 = vld [vmem:[%s16299_s26 + $0x10f] sm:$0xff] }
  0x44   : > { %21044 = vst [vmem:[#allocation31_spill] sm:$0xff] %v16527_v30 }
  0x47   : > { %504 = vperm.xlu1 %15738, %v370_v33   ;;  %499 = vperm.xlu0 %15737, %v369_v34  }
  0x4b   : > { %514 = vperm.xlu1 %15738, %v372_v35   ;;  %509 = vperm.xlu0 %15737, %v371_v36   ;;  %v445_v35 = vld [vmem:[%s16299_s26 + $0xa7] sm:$0xff]  ;;  %v446_v36 = vld [vmem:[%s16299_s26 + $0xaf] sm:$0xff] }
  0x4f   : > { %1310 = vperm.xlu1 %15738, %v394_v37   ;;  %1305 = vperm.xlu0 %15737, %v393_v38   ;;  %v1012_v37 = vsel %vm715_vm0, %v16170_v32, 0 }
  0x53   : > { %1320 = vperm.xlu1 %15738, %v396_v39   ;;  %1315 = vperm.xlu0 %15737, %v395_v40  }
  0x57   : > { %1330 = vperm.xlu1 %15738, %v398_v42   ;;  %1325 = vperm.xlu0 %15737, %v397_v43  }
  0x5b   : > { %1340 = vperm.xlu1 %15738, %v400_v44   ;;  %1335 = vperm.xlu0 %15737, %v399_v45  }
  0x5f   : > { %1350 = vperm.xlu1 %15738, %v402_v46   ;;  %1345 = vperm.xlu0 %15737, %v401_v47   ;;  %v447_v46 = vld [vmem:[%s16299_s26 + $0xb7] sm:$0xff]  ;;  %v448_v47 = vld [vmem:[%s16299_s26 + $0xbf] sm:$0xff] }
  0x63   : > { %1360 = vperm.xlu1 %15738, %v404_v48   ;;  %1355 = vperm.xlu0 %15737, %v403_v49  }
  0x67   : > { %1370 = vperm.xlu1 %15738, %v406_v50   ;;  %1365 = vperm.xlu0 %15737, %v405_v51  }
  0x6b   : > { %1380 = vperm.xlu1 %15738, %v408_v52   ;;  %1375 = vperm.xlu0 %15737, %v407_v53   ;;  %v456_v53 = vld [vmem:[%s16299_s26 + $0xff] sm:$0xff] }
  0x6f   : > { %1390 = vperm.xlu1 %15738, %v410_v54   ;;  %1385 = vperm.xlu0 %15737, %v409_v55  }
  0x73   : > { %1400 = vperm.xlu1 %15738, %v412_v56   ;;  %1395 = vperm.xlu0 %15737, %v411_v57   ;;  %v449_v56 = vld [vmem:[%s16299_s26 + $0xc7] sm:$0xff]  ;;  %v450_v57 = vld [vmem:[%s16299_s26 + $0xcf] sm:$0xff] }
  0x77   : > { %1410 = vperm.xlu1 %15738, %v414_v58   ;;  %1405 = vperm.xlu0 %15737, %v413_v59  }
  0x7b   : > { %1420 = vperm.xlu1 %15738, %v416_v60   ;;  %1415 = vperm.xlu0 %15737, %v415_v61  }
  0x7f   : > { %1430 = vperm.xlu1 %15738, %v418_v62   ;;  %1425 = vperm.xlu0 %15737, %v417_v63   ;;  %v455_v63 = vld [vmem:[%s16299_s26 + $0xf7] sm:$0xff] }
  0x83   : > { %1440 = vperm.xlu1 %15738, %v420_v0   ;;  %1435 = vperm.xlu0 %15737, %v419_v1  }
  0x87   : > { %1450 = vperm.xlu1 %15738, %v422_v3   ;;  %1445 = vperm.xlu0 %15737, %v421_v4  }
  0x8b   : > { %1460 = vperm.xlu1 %15738, %v424_v5   ;;  %1455 = vperm.xlu0 %15737, %v423_v6  }
  0x8e   : > { %v16306_v10 = vpop.permute.xlu1 %529  ;;  %v16308_v11 = vpop.permute.xlu0 %519 }
  0x8f   : > { %21020 = vst [vmem:[#allocation7_spill] sm:$0xff] %v16306_v10  ;;  %21021 = vst [vmem:[#allocation8_spill] sm:$0xff] %v16308_v11  ;;  %v629_v17 = vmul.f32 %v16308_v11, %v16302_v7  ;;  %v631_v18 = vmul.f32 %v16306_v10, %v439_v8  ;;  %v16325_v21 = vmul.f32 %v16308_v11, %v439_v8  ;;  %v451_v8 = vld [vmem:[%s16299_s26 + $0xd7] sm:$0xff] }
  0x90   : > { %v16328_v22 = vmul.f32 %v16306_v10, %v441_v9 }
  0x92   : > { %v16315_v15 = vpop.permute.xlu1 %534  ;;  %v16317_v16 = vpop.permute.xlu0 %524 }
  0x93   : > { %21022 = vst [vmem:[#allocation9_spill] sm:$0xff] %v16315_v15  ;;  %21023 = vst [vmem:[#allocation10_spill] sm:$0xff] %v16317_v16  ;;  %v630_v23 = vmul.f32 %v16317_v16, %v16311_v12  ;;  %v632_v24 = vmul.f32 %v16315_v15, %v440_v13  ;;  %v16334_v25 = vmul.f32 %v16317_v16, %v440_v13  ;;  %v1274_v16 = vld [vmem:[%s16299_s26 + $0x21] sm:$0xff] }
  0x94   : > { %v16337_v26 = vmul.f32 %v16315_v15, %v442_v14 }
  0x95   : > { %v655_v27 = vpack.c.bf16 %v630_v23, %v629_v17  ;;  %v656_v28 = vpack.c.bf16 %v632_v24, %v631_v18 }
  0x96   : > { %v16348_v33 = vpop.permute.xlu1 %544  ;;  %v16350_v34 = vpop.permute.xlu0 %539 }
  0x97   : > { %21024 = vst [vmem:[#allocation11_spill] sm:$0xff] %v16348_v33  ;;  %21025 = vst [vmem:[#allocation12_spill] sm:$0xff] %v16350_v34  ;;  %14294 = vmatprep.mubr.msk.bf16.mxu1 %vm666_vm2, %v655_v27  ;;  %v633_v38 = vmul.f32 %v16350_v34, %v441_v9  ;;  %v634_v39 = vmul.f32 %v16348_v33, %v442_v14  ;;  %v16360_v40 = vmul.f32 %v16350_v34, %v443_v19  ;;  %v452_v9 = vld [vmem:[%s16299_s26 + $0xdf] sm:$0xff]  ;;  %v453_v27 = vld [vmem:[%s16299_s26 + $0xe7] sm:$0xff] }
  0x98   : > { %v16363_v42 = vmul.f32 %v16348_v33, %v444_v20  ;;  %14295 = vmatmul.mubr.msk.bf16.vlgmr.msra.gmra.mrb[0].mxu1 %vm666_vm2, %v656_v28  ;;  %v454_v28 = vld [vmem:[%s16299_s26 + $0xef] sm:$0xff] }
  0x99   : > { %v657_v43 = vpack.c.bf16 %v634_v39, %v633_v38  ;;  %14315 = vmatpush3.bf16.msra.mxu1 %v1012_v37 }
  0x9a   : > { %v16368_v44 = vpop.permute.xlu1 %554  ;;  %v16370_v45 = vpop.permute.xlu0 %549  ;;  %15720 = vmatprep.subr.msk.bf16.mxu1 %vm715_vm0, %v16342_v29 }
  0x9b   : > { %21026 = vst [vmem:[#allocation13_spill] sm:$0xff] %v16368_v44  ;;  %21027 = vst [vmem:[#allocation14_spill] sm:$0xff] %v16370_v45  ;;  %14298 = vmatprep.mubr.msk.bf16.mxu1 %vm666_vm2, %v657_v43  ;;  %v635_v48 = vmul.f32 %v16370_v45, %v443_v19  ;;  %v636_v49 = vmul.f32 %v16368_v44, %v444_v20  ;;  %v16380_v50 = vmul.f32 %v16370_v45, %v445_v35 }
  0x9c   : > { %v16383_v51 = vmul.f32 %v16368_v44, %v446_v36 }
  0x9d   : > { %v658_v52 = vpack.c.bf16 %v636_v49, %v635_v48  ;;  %v426_v49 = vld [vmem:[%s16299_s26 + $0xf] sm:$0xff] }
  0x9e   : > { %v16387_v54 = vpop.permute.xlu1 %564  ;;  %v16389_v55 = vpop.permute.xlu0 %559 }
  0x9f   : > { %21028 = vst [vmem:[#allocation15_spill] sm:$0xff] %v16387_v54  ;;  %21029 = vst [vmem:[#allocation16_spill] sm:$0xff] %v16389_v55  ;;  %v637_v58 = vmul.f32 %v16389_v55, %v445_v35  ;;  %v638_v59 = vmul.f32 %v16387_v54, %v446_v36  ;;  %v16396_v60 = vmul.f32 %v16389_v55, %v447_v46 }
  0xa0   : > { %v16399_v61 = vmul.f32 %v16387_v54, %v448_v47  ;;  %14299 = vmatmul.mubr.msk.bf16.gmra.mrb[4].mxu1 %vm666_vm2, %v658_v52  ;;  %v427_v52 = vld [vmem:[%s16299_s26 + $0x17] sm:$0xff] }
  0xa1   : > { %v659_v62 = vpack.c.bf16 %v638_v59, %v637_v58  ;;  %v16456_v58 = vld [vmem:[%s16299_s26 + $0x27] sm:$0xff]  ;;  %v16459_v59 = vld [vmem:[%s16299_s26 + $0x2f] sm:$0xff] }
  0xa2   : > { %v16404_v0 = vpop.permute.xlu1 %574  ;;  %v16406_v1 = vpop.permute.xlu0 %569 }
  0xa3   : > { %21030 = vst [vmem:[#allocation17_spill] sm:$0xff] %v16404_v0  ;;  %21031 = vst [vmem:[#allocation18_spill] sm:$0xff] %v16406_v1  ;;  %14302 = vmatprep.mubr.msk.bf16.mxu1 %vm666_vm2, %v659_v62  ;;  %v639_v3 = vmul.f32 %v16406_v1, %v447_v46  ;;  %v640_v4 = vmul.f32 %v16404_v0, %v448_v47  ;;  %v16412_v5 = vmul.f32 %v16406_v1, %v449_v56  ;;  %v425_v46 = vld [vmem:[%s16299_s26 + $0x7] sm:$0xff] }
  0xa4   : > { %v16415_v6 = vmul.f32 %v16404_v0, %v450_v57 }
  0xa5   : > { %v660_v13 = vpack.c.bf16 %v640_v4, %v639_v3 }
  0xa6   : > { %v16421_v17 = vpop.permute.xlu1 %584  ;;  %v16423_v18 = vpop.permute.xlu0 %579 }
  0xa7   : > { %21032 = vst [vmem:[#allocation19_spill] sm:$0xff] %v16421_v17  ;;  %21033 = vst [vmem:[#allocation20_spill] sm:$0xff] %v16423_v18  ;;  %v641_v19 = vmul.f32 %v16423_v18, %v449_v56  ;;  %v642_v20 = vmul.f32 %v16421_v17, %v450_v57  ;;  %v16428_v23 = vmul.f32 %v16423_v18, %v451_v8  ;;  %v428_v56 = vld [vmem:[%s16299_s26 + $0x1f] sm:$0xff]  ;;  %v433_v18 = vld [vmem:[%s16299_s26 + $0x47] sm:$0xff] }
  0xa8   : > { %v16431_v24 = vmul.f32 %v16421_v17, %v452_v9  ;;  %14303 = vmatmul.mubr.msk.bf16.gmra.mrb[8].mxu1 %vm666_vm2, %v660_v13 }
  0xa9   : > { %v661_v35 = vpack.c.bf16 %v642_v20, %v641_v19 }
  0xaa   : > { %v16438_v37 = vpop.permute.xlu1 %594  ;;  %v16440_v38 = vpop.permute.xlu0 %589 }
  0xab   : > { %21034 = vst [vmem:[#allocation21_spill] sm:$0xff] %v16438_v37  ;;  %21035 = vst [vmem:[#allocation22_spill] sm:$0xff] %v16440_v38  ;;  %14306 = vmatprep.mubr.msk.bf16.mxu1 %vm666_vm2, %v661_v35  ;;  %v643_v39 = vmul.f32 %v16440_v38, %v451_v8  ;;  %v644_v43 = vmul.f32 %v16438_v37, %v452_v9  ;;  %v16447_v47 = vmul.f32 %v16440_v38, %v453_v27  ;;  %v917_v38 = vld [vmem:[%s16299_s26 + $0x28] sm:$0xff] }
  0xac   : > { %v16450_v48 = vmul.f32 %v16438_v37, %v454_v28  ;;  %v434_v37 = vld [vmem:[%s16299_s26 + $0x4f] sm:$0xff] }
  0xad   : > { %v662_v57 = vpack.c.bf16 %v644_v43, %v643_v39  ;;  %v16485_v43 = vld [vmem:[%s16299_s26 + $0x37] sm:$0xff] }
  0xae   : > { %v16463_v3 = vpop.permute.xlu1 %464  ;;  %v16465_v4 = vpop.permute.xlu0 %459 }
  0xaf   : > { %21036 = vst [vmem:[#allocation23_spill] sm:$0xff] %v16463_v3  ;;  %21037 = vst [vmem:[#allocation24_spill] sm:$0xff] %v16465_v4  ;;  %v617_v8 = vmul.f32 %v16465_v4, %v425_v46  ;;  %v618_v9 = vmul.f32 %v16463_v3, %v426_v49  ;;  %v16470_v13 = vmul.f32 %v16465_v4, %v427_v52  ;;  %v16488_v46 = vld [vmem:[%s16299_s26 + $0x3f] sm:$0xff] }
  0xb0   : > { %v16473_v19 = vmul.f32 %v16463_v3, %v428_v56  ;;  %14307 = vmatmul.mubr.msk.bf16.gmra.mrb[12].mxu1 %vm666_vm2, %v662_v57  ;;  %v16478_v20 = vmul.f32 %v16465_v4, %v16456_v58  ;;  %v16482_v35 = vmul.f32 %v16463_v3, %v16459_v59 }
  0xb1   : > { %v649_v39 = vpack.c.bf16 %v618_v9, %v617_v8 }
  0xb2   : > { %21038 = vst [vmem:[#allocation25_spill] sm:$0xff] %v16478_v20  ;;  %21039 = vst [vmem:[#allocation26_spill] sm:$0xff] %v16482_v35  ;;  %v16492_v2 = vpop.permute.xlu1 %474  ;;  %v16494_v57 = vpop.permute.xlu0 %469  ;;  %v930_v20 = vld [vmem:[%s16299_s26 + $0x90] sm:$0xff] }
  0xb3   : > { %21040 = vst [vmem:[#allocation27_spill] sm:$0xff] %v16492_v2  ;;  %21041 = vst [vmem:[#allocation28_spill] sm:$0xff] %v16494_v57  ;;  %14282 = vmatprep.mubr.msk.bf16.mxu0 %vm666_vm2, %v649_v39  ;;  %v619_v8 = vmul.f32 %v16494_v57, %v427_v52  ;;  %v620_v9 = vmul.f32 %v16492_v2, %v428_v56  ;;  %v16503_v36 = vmul.f32 %v16494_v57, %v16456_v58 }
  0xb4   : > { %v16507_v14 = vmul.f32 %v16492_v2, %v16459_v59  ;;  %v16513_v32 = vmul.f32 %v16494_v57, %v16485_v43  ;;  %v16517_v39 = vmul.f32 %v16492_v2, %v16488_v46  ;;  %v1562_v56 = vsel %vm715_vm0, %v16201_v41, 0  ;;  %v913_v41 = vld [vmem:[%s16299_s26 + $0x8] sm:$0xff] }
  0xb5   : > { %v650_v52 = vpack.c.bf16 %v620_v9, %v619_v8  ;;  %v16536_v8 = vld [vmem:[%s20598_s1 + $0x10] sm:$0xf] }
  0xb6   : > { %21042 = vst [vmem:[#allocation29_spill] sm:$0xff] %v16513_v32  ;;  %21043 = vst [vmem:[#allocation30_spill] sm:$0xff] %v16517_v39  ;;  %v16529_v49 = vpop.permute.xlu1 %604  ;;  %v16531_v57 = vpop.permute.xlu0 %599  ;;  %v1280_v32 = vld [vmem:[%s16299_s26 + $0x51] sm:$0xff] }
  0xb7   : > { %21045 = vst [vmem:[#allocation32_spill] sm:$0xff] %v16529_v49  ;;  %21046 = vst [vmem:[#allocation33_spill] sm:$0xff] %v16531_v57  ;;  %14283 = vmatmul.mubr.msk.bf16.vlgmr.msra.gmra.mrb[0].mxu0 %vm666_vm2, %v650_v52  ;;  %v645_v9 = vmul.f32 %v16531_v57, %v453_v27  ;;  %v646_v62 = vmul.f32 %v16529_v49, %v454_v28  ;;  %v16544_v2 = vmul.f32 %v16531_v57, %v455_v63  ;;  %v914_v28 = vld [vmem:[%s16299_s26 + $0x10] sm:$0xff] }
  0xb8   : > { %v16547_v3 = vmul.f32 %v16529_v49, %v456_v53  ;;  %14349 = vmatpush3.bf16.msra.mxu0 %v1562_v56  ;;  %v16551_v4 = vmul.f32 %v16524_v31, %v16531_v57  ;;  %v16555_v52 = vmul.f32 %v16527_v30, %v16529_v49  ;;  %v945_v49 = vpack.c.bf16 %v914_v28, %v913_v41  ;;  %v916_v41 = vld [vmem:[%s16299_s26 + $0x20] sm:$0xff] }
  0xb9   : > { %v663_v27 = vpack.c.bf16 %v646_v62, %v645_v9  ;;  %15721 = vmatprep.subr.msk.bf16.mxu0 %vm715_vm0, %v16536_v8 }
  0xba   : > { %21047 = vst [vmem:[#allocation34_spill] sm:$0xff] %v16551_v4  ;;  %21048 = vst [vmem:[#allocation35_spill] sm:$0xff] %v16555_v52  ;;  %v16563_v56 = vpop.permute.xlu1 %614  ;;  %v16565_v57 = vpop.permute.xlu0 %609  ;;  %v918_v4 = vld [vmem:[%s16299_s26 + $0x30] sm:$0xff]  ;;  %v436_v52 = vld [vmem:[%s16299_s26 + $0x5f] sm:$0xff] }
  0xbb   : > { %21049 = vst [vmem:[#allocation36_spill] sm:$0xff] %v16563_v56  ;;  %21050 = vst [vmem:[#allocation37_spill] sm:$0xff] %v16565_v57  ;;  %14310 = vmatprep.mubr.msk.bf16.mxu1 %vm666_vm2, %v663_v27  ;;  %v647_v62 = vmul.f32 %v16565_v57, %v455_v63  ;;  %v648_v9 = vmul.f32 %v16563_v56, %v456_v53  ;;  %v915_v53 = vld [vmem:[%s16299_s26 + $0x18] sm:$0xff] }
  0xbc   : > { %v16610_v45 = vpack.c.bf16 %v916_v41, %v915_v53  ;;  %v16625_v53 = vpack.c.bf16 %v918_v4, %v917_v38  ;;  %v16644_v38 = vld [vmem:[%s20598_s1 + $0x14] sm:$0xf] }
  0xbd   : > { %v664_v17 = vpack.c.bf16 %v648_v9, %v647_v62  ;;  %v435_v9 = vld [vmem:[%s16299_s26 + $0x57] sm:$0xff] }
  0xbe   : > { %v16574_v0 = vpop.permute.xlu1 %484  ;;  %v16576_v1 = vpop.permute.xlu0 %479 }
  0xbf   : > { %21051 = vst [vmem:[#allocation38_spill] sm:$0xff] %v16574_v0  ;;  %21052 = vst [vmem:[#allocation39_spill] sm:$0xff] %v16576_v1  ;;  %14311 = vmatmul.mubr.msk.bf16.gmra.mrb[16].mxu1 %vm666_vm2, %v664_v17  ;;  %v621_v27 = vmul.f32 %v16576_v1, %v16456_v58  ;;  %v622_v63 = vmul.f32 %v16574_v0, %v16459_v59  ;;  %v16587_v28 = vmul.f32 %v16576_v1, %v16485_v43 }
  0xc0   : > { %v16591_v62 = vmul.f32 %v16574_v0, %v16488_v46  ;;  %14316 = vmatprep.mubr.msk.bf16.mxu1 %vm666_vm2, %v945_v49  ;;  %v16596_v17 = vmul.f32 %v16576_v1, %v433_v18  ;;  %v16599_v58 = vmul.f32 %v16574_v0, %v434_v37  ;;  %v920_v49 = vld [vmem:[%s16299_s26 + $0x40] sm:$0xff] }
  0xc1   : > { %v651_v59 = vpack.c.bf16 %v622_v63, %v621_v27 }
  0xc2   : > { %21053 = vst [vmem:[#allocation40_spill] sm:$0xff] %v16596_v17  ;;  %21054 = vst [vmem:[#allocation41_spill] sm:$0xff] %v16599_v58  ;;  %v16606_v55 = vpop.permute.xlu1 %494  ;;  %v16608_v44 = vpop.permute.xlu0 %489 }
  0xc3   : > { %21055 = vst [vmem:[#allocation42_spill] sm:$0xff] %v16606_v55  ;;  %21056 = vst [vmem:[#allocation43_spill] sm:$0xff] %v16608_v44  ;;  %14286 = vmatprep.mubr.msk.bf16.mxu0 %vm666_vm2, %v651_v59  ;;  %v623_v27 = vmul.f32 %v16608_v44, %v16485_v43  ;;  %v624_v63 = vmul.f32 %v16606_v55, %v16488_v46  ;;  %v16620_v1 = vmul.f32 %v16608_v44, %v433_v18 }
  0xc4   : > { %v16623_v54 = vmul.f32 %v16606_v55, %v434_v37  ;;  %v16628_v41 = vmul.f32 %v16608_v44, %v435_v9  ;;  %v16631_v59 = vmul.f32 %v16606_v55, %v436_v52  ;;  %v1952_v46 = vsel %vm715_vm0, %v16342_v29, 0  ;;  %v921_v44 = vld [vmem:[%s16299_s26 + $0x48] sm:$0xff] }
  0xc5   : > { %v652_v43 = vpack.c.bf16 %v624_v63, %v623_v27  ;;  %v919_v63 = vld [vmem:[%s16299_s26 + $0x38] sm:$0xff] }
  0xc6   : > { %21057 = vst [vmem:[#allocation44_spill] sm:$0xff] %v16628_v41  ;;  %21058 = vst [vmem:[#allocation45_spill] sm:$0xff] %v16631_v59  ;;  %v16637_v0 = vpop.permute.xlu1 %504  ;;  %v16639_v10 = vpop.permute.xlu0 %499  ;;  %v16671_v34 = vpack.c.bf16 %v920_v49, %v919_v63  ;;  %v1271_v49 = vld [vmem:[%s16299_s26 + $0x9] sm:$0xff]  ;;  %v1272_v63 = vld [vmem:[%s16299_s26 + $0x11] sm:$0xff] }
  0xc7   : > { %21059 = vst [vmem:[#allocation46_spill] sm:$0xff] %v16637_v0  ;;  %21060 = vst [vmem:[#allocation47_spill] sm:$0xff] %v16639_v10  ;;  %14287 = vmatmul.mubr.msk.bf16.gmra.mrb[4].mxu0 %vm666_vm2, %v652_v43  ;;  %14317 = vmatmul.mubr.msk.bf16.vlgmr.msra.gmra.mrb[20].mxu1 %vm666_vm2, %v16610_v45  ;;  %v625_v29 = vmul.f32 %v16639_v10, %v433_v18  ;;  %v626_v27 = vmul.f32 %v16637_v0, %v434_v37  ;;  %v922_v18 = vld [vmem:[%s16299_s26 + $0x50] sm:$0xff]  ;;  %v925_v59 = vld [vmem:[%s16299_s26 + $0x68] sm:$0xff] }
  0xc8   : > { %v16656_v55 = vmul.f32 %v16639_v10, %v435_v9  ;;  %14320 = vmatprep.mubr.msk.bf16.mxu1 %vm666_vm2, %v16625_v53  ;;  %14383 = vmatpush3.bf16.msra.mxu1 %v1952_v46  ;;  %v16661_v43 = vmul.f32 %v16637_v0, %v436_v52  ;;  %v16688_v46 = vpack.c.bf16 %v922_v18, %v921_v44  ;;  %v923_v18 = vld [vmem:[%s16299_s26 + $0x58] sm:$0xff] }
  0xc9   : > { %v653_v4 = vpack.c.bf16 %v626_v27, %v625_v29  ;;  %15722 = vmatprep.subr.msk.bf16.mxu1 %vm715_vm0, %v16644_v38 }
  0xca   : > { %v16667_v37 = vpop.permute.xlu1 %514  ;;  %v16669_v33 = vpop.permute.xlu0 %509 }
  0xcb   : > { %21061 = vst [vmem:[#allocation48_spill] sm:$0xff] %v16667_v37  ;;  %21062 = vst [vmem:[#allocation49_spill] sm:$0xff] %v16669_v33  ;;  %14290 = vmatprep.mubr.msk.bf16.mxu0 %vm666_vm2, %v653_v4  ;;  %v627_v29 = vmul.f32 %v16669_v33, %v435_v9  ;;  %v628_v27 = vmul.f32 %v16667_v37, %v436_v52  ;;  %v16680_v15 = vmul.f32 %v16669_v33, %v16302_v7  ;;  %v1273_v4 = vld [vmem:[%s16299_s26 + $0x19] sm:$0xff]  ;;  %v1275_v52 = vld [vmem:[%s16299_s26 + $0x29] sm:$0xff] }
  0xcc   : > { %v16684_v11 = vmul.f32 %v16667_v37, %v16311_v12  ;;  %v1276_v37 = vld [vmem:[%s16299_s26 + $0x31] sm:$0xff] }
  0xcd   : > { %v654_v9 = vpack.c.bf16 %v628_v27, %v627_v29  ;;  %v924_v29 = vld [vmem:[%s16299_s26 + $0x60] sm:$0xff] }
  0xce   : > { %v16694_v7 = vpop.permute.xlu1 %1310  ;;  %v16696_v33 = vpop.permute.xlu0 %1305  ;;  %v16721_v10 = vpack.c.bf16 %v924_v29, %v923_v18  ;;  %v1277_v18 = vld [vmem:[%s16299_s26 + $0x39] sm:$0xff] }
  0xcf   : > { %21063 = vst [vmem:[#allocation50_spill] sm:$0xff] %v16694_v7  ;;  %21064 = vst [vmem:[#allocation51_spill] sm:$0xff] %v16696_v33  ;;  %14291 = vmatmul.mubr.msk.bf16.gmra.mrb[8].mxu0 %vm666_vm2, %v654_v9  ;;  %14321 = vmatmul.mubr.msk.bf16.gmra.mrb[24].mxu1 %vm666_vm2, %v16671_v34  ;;  %v1463_v12 = vmul.f32 %v16696_v33, %v1271_v49  ;;  %v1464_v44 = vmul.f32 %v16694_v7, %v1272_v63  ;;  %v926_v49 = vld [vmem:[%s16299_s26 + $0x70] sm:$0xff] }
  0xd0   : > { %v16706_v27 = vmul.f32 %v16696_v33, %v1273_v4  ;;  %14324 = vmatprep.mubr.msk.bf16.mxu1 %vm666_vm2, %v16688_v46  ;;  %v16713_v9 = vmul.f32 %v16694_v7, %v1274_v16  ;;  %v16734_v58 = vpack.c.bf16 %v926_v49, %v925_v59  ;;  %v1278_v33 = vld [vmem:[%s16299_s26 + $0x41] sm:$0xff]  ;;  %v16749_v59 = vld [vmem:[%s20598_s1 + $0x18] sm:$0xf] }
  0xd1   : > { %v1495_v41 = vpack.c.bf16 %v1464_v44, %v1463_v12  ;;  %v928_v49 = vld [vmem:[%s16299_s26 + $0x80] sm:$0xff] }
  0xd2   : > { %21065 = vst [vmem:[#allocation52_spill] sm:$0xff] %v16706_v27  ;;  %21066 = vst [vmem:[#allocation53_spill] sm:$0xff] %v16713_v9  ;;  %v16717_v0 = vpop.permute.xlu1 %1320  ;;  %v16719_v63 = vpop.permute.xlu0 %1315 }
  0xd3   : > { %21067 = vst [vmem:[#allocation54_spill] sm:$0xff] %v16717_v0  ;;  %21068 = vst [vmem:[#allocation55_spill] sm:$0xff] %v16719_v63  ;;  %14350 = vmatprep.mubr.msk.bf16.mxu0 %vm666_vm2, %v1495_v41  ;;  %v1465_v17 = vmul.f32 %v16719_v63, %v1273_v4  ;;  %v1466_v7 = vmul.f32 %v16717_v0, %v1274_v16  ;;  %v16729_v12 = vmul.f32 %v16719_v63, %v1275_v52 }
  0xd4   : > { %v16732_v44 = vmul.f32 %v16717_v0, %v1276_v37  ;;  %v2310_v41 = vsel %vm715_vm0, %v16536_v8, 0  ;;  %v1279_v0 = vld [vmem:[%s16299_s26 + $0x49] sm:$0xff] }
  0xd5   : > { %21069 = vst [vmem:[#allocation56_spill] sm:$0xff] %v16729_v12  ;;  %v1496_v29 = vpack.c.bf16 %v1466_v7, %v1465_v17  ;;  %v927_v7 = vld [vmem:[%s16299_s26 + $0x78] sm:$0xff] }
  0xd6   : > { %21070 = vst [vmem:[#allocation57_spill] sm:$0xff] %v16732_v44  ;;  %v16742_v4 = vpop.permute.xlu1 %1330  ;;  %v16744_v63 = vpop.permute.xlu0 %1325  ;;  %v16776_v35 = vpack.c.bf16 %v928_v49, %v927_v7  ;;  %v1281_v49 = vld [vmem:[%s16299_s26 + $0x59] sm:$0xff] }
  0xd7   : > { %21071 = vst [vmem:[#allocation58_spill] sm:$0xff] %v16742_v4  ;;  %21072 = vst [vmem:[#allocation59_spill] sm:$0xff] %v16744_v63  ;;  %14325 = vmatmul.mubr.msk.bf16.gmra.mrb[28].mxu1 %vm666_vm2, %v16721_v10  ;;  %14351 = vmatmul.mubr.msk.bf16.vlgmr.msra.gmra.mrb[12].mxu0 %vm666_vm2, %v1496_v29  ;;  %v1467_v8 = vmul.f32 %v16744_v63, %v1275_v52  ;;  %v1468_v17 = vmul.f32 %v16742_v4, %v1276_v37  ;;  %v929_v52 = vld [vmem:[%s16299_s26 + $0x88] sm:$0xff] }
  0xd8   : > { %v16759_v16 = vmul.f32 %v16744_v63, %v1277_v18  ;;  %14328 = vmatprep.mubr.msk.bf16.mxu1 %vm666_vm2, %v16734_v58  ;;  %14417 = vmatpush3.bf16.msra.mxu0 %v2310_v41  ;;  %v16766_v39 = vmul.f32 %v16742_v4, %v1278_v33  ;;  %v16789_v7 = vpack.c.bf16 %v930_v20, %v929_v52 }
  0xd9   : > { %v1497_v29 = vpack.c.bf16 %v1468_v17, %v1467_v8  ;;  %15723 = vmatprep.subr.msk.bf16.mxu0 %vm715_vm0, %v16749_v59 }
  0xda   : > { %21073 = vst [vmem:[#allocation60_spill] sm:$0xff] %v16759_v16  ;;  %21074 = vst [vmem:[#allocation61_spill] sm:$0xff] %v16766_v39  ;;  %v16772_v37 = vpop.permute.xlu1 %1340  ;;  %v16774_v63 = vpop.permute.xlu0 %1335  ;;  %v1282_v16 = vld [vmem:[%s16299_s26 + $0x61] sm:$0xff] }
  0xdb   : > { %21075 = vst [vmem:[#allocation62_spill] sm:$0xff] %v16772_v37  ;;  %21076 = vst [vmem:[#allocation63_spill] sm:$0xff] %v16774_v63  ;;  %14354 = vmatprep.mubr.msk.bf16.mxu0 %vm666_vm2, %v1497_v29  ;;  %v1469_v8 = vmul.f32 %v16774_v63, %v1277_v18  ;;  %v1470_v17 = vmul.f32 %v16772_v37, %v1278_v33  ;;  %v16784_v4 = vmul.f32 %v16774_v63, %v1279_v0  ;;  %v1283_v18 = vld [vmem:[%s16299_s26 + $0x69] sm:$0xff]  ;;  %v1284_v63 = vld [vmem:[%s16299_s26 + $0x71] sm:$0xff] }
  0xdc   : > { %v16787_v12 = vmul.f32 %v16772_v37, %v1280_v32 }
  0xdd   : > { %21077 = vst [vmem:[#allocation64_spill] sm:$0xff] %v16784_v4  ;;  %v1498_v41 = vpack.c.bf16 %v1470_v17, %v1469_v8  ;;  %v931_v8 = vld [vmem:[%s16299_s26 + $0x98] sm:$0xff]  ;;  %v932_v17 = vld [vmem:[%s16299_s26 + $0xa0] sm:$0xff] }
  0xde   : > { %21078 = vst [vmem:[#allocation65_spill] sm:$0xff] %v16787_v12  ;;  %v16795_v29 = vpop.permute.xlu1 %1350  ;;  %v16797_v33 = vpop.permute.xlu0 %1345  ;;  %v933_v12 = vld [vmem:[%s16299_s26 + $0xa8] sm:$0xff]  ;;  %v16822_v44 = vpack.c.bf16 %v932_v17, %v931_v8  ;;  %v1285_v17 = vld [vmem:[%s16299_s26 + $0x79] sm:$0xff] }
  0xdf   : > { %21079 = vst [vmem:[#allocation66_spill] sm:$0xff] %v16795_v29  ;;  %21080 = vst [vmem:[#allocation67_spill] sm:$0xff] %v16797_v33  ;;  %14329 = vmatmul.mubr.msk.bf16.gmra.mrb[32].mxu1 %vm666_vm2, %v16776_v35  ;;  %14355 = vmatmul.mubr.msk.bf16.gmra.mrb[16].mxu0 %vm666_vm2, %v1498_v41  ;;  %v1471_v20 = vmul.f32 %v16797_v33, %v1279_v0  ;;  %v1472_v52 = vmul.f32 %v16795_v29, %v1280_v32  ;;  %v934_v0 = vld [vmem:[%s16299_s26 + $0xb0] sm:$0xff] }
  0xe0   : > { %v16807_v37 = vmul.f32 %v16797_v33, %v1281_v49  ;;  %14332 = vmatprep.mubr.msk.bf16.mxu1 %vm666_vm2, %v16789_v7  ;;  %v16814_v4 = vmul.f32 %v16795_v29, %v1282_v16  ;;  %v16835_v8 = vpack.c.bf16 %v934_v0, %v933_v12 }
  0xe1   : > { %v1499_v41 = vpack.c.bf16 %v1472_v52, %v1471_v20 }
  0xe2   : > { %21081 = vst [vmem:[#allocation68_spill] sm:$0xff] %v16807_v37  ;;  %21082 = vst [vmem:[#allocation69_spill] sm:$0xff] %v16814_v4  ;;  %v16818_v39 = vpop.permute.xlu1 %1360  ;;  %v16820_v32 = vpop.permute.xlu0 %1355  ;;  %v1286_v37 = vld [vmem:[%s16299_s26 + $0x81] sm:$0xff] }
  0xe3   : > { %21083 = vst [vmem:[#allocation70_spill] sm:$0xff] %v16818_v39  ;;  %21084 = vst [vmem:[#allocation71_spill] sm:$0xff] %v16820_v32  ;;  %14358 = vmatprep.mubr.msk.bf16.mxu0 %vm666_vm2, %v1499_v41  ;;  %v1473_v27 = vmul.f32 %v16820_v32, %v1281_v49  ;;  %v1474_v29 = vmul.f32 %v16818_v39, %v1282_v16  ;;  %v16830_v20 = vmul.f32 %v16820_v32, %v1283_v18  ;;  %v1287_v49 = vld [vmem:[%s16299_s26 + $0x89] sm:$0xff]  ;;  %v1288_v32 = vld [vmem:[%s16299_s26 + $0x91] sm:$0xff] }
  0xe4   : > { %v16833_v52 = vmul.f32 %v16818_v39, %v1284_v63 }
  0xe5   : > { %21085 = vst [vmem:[#allocation72_spill] sm:$0xff] %v16830_v20  ;;  %v1500_v33 = vpack.c.bf16 %v1474_v29, %v1473_v27  ;;  %v935_v27 = vld [vmem:[%s16299_s26 + $0xb8] sm:$0xff]  ;;  %v936_v29 = vld [vmem:[%s16299_s26 + $0xc0] sm:$0xff] }
  0xe6   : > { %21086 = vst [vmem:[#allocation73_spill] sm:$0xff] %v16833_v52  ;;  %v16841_v41 = vpop.permute.xlu1 %1370  ;;  %v16843_v16 = vpop.permute.xlu0 %1365  ;;  %v937_v52 = vld [vmem:[%s16299_s26 + $0xc8] sm:$0xff]  ;;  %v16868_v9 = vpack.c.bf16 %v936_v29, %v935_v27  ;;  %v1289_v29 = vld [vmem:[%s16299_s26 + $0x99] sm:$0xff] }
  0xe7   : > { %21087 = vst [vmem:[#allocation74_spill] sm:$0xff] %v16841_v41  ;;  %21088 = vst [vmem:[#allocation75_spill] sm:$0xff] %v16843_v16  ;;  %14333 = vmatmul.mubr.msk.bf16.gmra.mrb[36].mxu1 %vm666_vm2, %v16822_v44  ;;  %14359 = vmatmul.mubr.msk.bf16.gmra.mrb[20].mxu0 %vm666_vm2, %v1500_v33  ;;  %v1475_v12 = vmul.f32 %v16843_v16, %v1283_v18  ;;  %v1476_v0 = vmul.f32 %v16841_v41, %v1284_v63  ;;  %v938_v18 = vld [vmem:[%s16299_s26 + $0xd0] sm:$0xff] }
  0xe8   : > { %v16853_v39 = vmul.f32 %v16843_v16, %v1285_v17  ;;  %14336 = vmatprep.mubr.msk.bf16.mxu1 %vm666_vm2, %v16835_v8  ;;  %v16860_v20 = vmul.f32 %v16841_v41, %v1286_v37  ;;  %v16881_v27 = vpack.c.bf16 %v938_v18, %v937_v52 }
  0xe9   : > { %v1501_v33 = vpack.c.bf16 %v1476_v0, %v1475_v12 }
  0xea   : > { %21089 = vst [vmem:[#allocation76_spill] sm:$0xff] %v16853_v39  ;;  %21090 = vst [vmem:[#allocation77_spill] sm:$0xff] %v16860_v20  ;;  %v16864_v4 = vpop.permute.xlu1 %1380  ;;  %v16866_v63 = vpop.permute.xlu0 %1375  ;;  %v1290_v39 = vld [vmem:[%s16299_s26 + $0xa1] sm:$0xff] }
  0xeb   : > { %21091 = vst [vmem:[#allocation78_spill] sm:$0xff] %v16864_v4  ;;  %21092 = vst [vmem:[#allocation79_spill] sm:$0xff] %v16866_v63  ;;  %14362 = vmatprep.mubr.msk.bf16.mxu0 %vm666_vm2, %v1501_v33  ;;  %v1477_v30 = vmul.f32 %v16866_v63, %v1285_v17  ;;  %v1478_v41 = vmul.f32 %v16864_v4, %v1286_v37  ;;  %v16876_v12 = vmul.f32 %v16866_v63, %v1287_v49  ;;  %v1291_v17 = vld [vmem:[%s16299_s26 + $0xa9] sm:$0xff]  ;;  %v1292_v63 = vld [vmem:[%s16299_s26 + $0xb1] sm:$0xff] }
  0xec   : > { %v16879_v0 = vmul.f32 %v16864_v4, %v1288_v32  ;;  %21095 = vst [vmem:[#allocation82_spill] sm:$0xff] %v16881_v27 }
  0xed   : > { %21093 = vst [vmem:[#allocation80_spill] sm:$0xff] %v16876_v12  ;;  %v1502_v16 = vpack.c.bf16 %v1478_v41, %v1477_v30  ;;  %v939_v30 = vld [vmem:[%s16299_s26 + $0xd8] sm:$0xff]  ;;  %v940_v41 = vld [vmem:[%s16299_s26 + $0xe0] sm:$0xff] }
  0xee   : > { %21094 = vst [vmem:[#allocation81_spill] sm:$0xff] %v16879_v0  ;;  %v16887_v33 = vpop.permute.xlu1 %1390  ;;  %v16889_v37 = vpop.permute.xlu0 %1385  ;;  %v941_v0 = vld [vmem:[%s16299_s26 + $0xe8] sm:$0xff]  ;;  %v16914_v56 = vpack.c.bf16 %v940_v41, %v939_v30  ;;  %v1293_v41 = vld [vmem:[%s16299_s26 + $0xb9] sm:$0xff] }
  0xef   : > { %21096 = vst [vmem:[#allocation83_spill] sm:$0xff] %v16887_v33  ;;  %21097 = vst [vmem:[#allocation84_spill] sm:$0xff] %v16889_v37  ;;  %14337 = vmatmul.mubr.msk.bf16.gmra.mrb[40].mxu1 %vm666_vm2, %v16868_v9  ;;  %14363 = vmatmul.mubr.msk.bf16.gmra.mrb[24].mxu0 %vm666_vm2, %v1502_v16  ;;  %v1479_v52 = vmul.f32 %v16889_v37, %v1287_v49  ;;  %v1480_v18 = vmul.f32 %v16887_v33, %v1288_v32  ;;  %v942_v49 = vld [vmem:[%s16299_s26 + $0xf0] sm:$0xff] }
  0xf0   : > { %v16899_v4 = vmul.f32 %v16889_v37, %v1289_v29  ;;  %14340 = vmatprep.mubr.msk.bf16.mxu1 %vm666_vm2, %v16881_v27  ;;  %v16906_v12 = vmul.f32 %v16887_v33, %v1290_v39  ;;  %v16927_v30 = vpack.c.bf16 %v942_v49, %v941_v0  ;;  %v943_v49 = vld [vmem:[%s16299_s26 + $0xf8] sm:$0xff] }
  0xf1   : > { %v1503_v16 = vpack.c.bf16 %v1480_v18, %v1479_v52 }
  0xf2   : > { %21098 = vst [vmem:[#allocation85_spill] sm:$0xff] %v16899_v4  ;;  %21099 = vst [vmem:[#allocation86_spill] sm:$0xff] %v16906_v12  ;;  %v16910_v20 = vpop.permute.xlu1 %1400  ;;  %v16912_v32 = vpop.permute.xlu0 %1395  ;;  %v1294_v4 = vld [vmem:[%s16299_s26 + $0xc1] sm:$0xff] }
  0xf3   : > { %21100 = vst [vmem:[#allocation87_spill] sm:$0xff] %v16910_v20  ;;  %21101 = vst [vmem:[#allocation88_spill] sm:$0xff] %v16912_v32  ;;  %14366 = vmatprep.mubr.msk.bf16.mxu0 %vm666_vm2, %v1503_v16  ;;  %v1481_v27 = vmul.f32 %v16912_v32, %v1289_v29  ;;  %v1482_v33 = vmul.f32 %v16910_v20, %v1290_v39  ;;  %v16922_v52 = vmul.f32 %v16912_v32, %v1291_v17  ;;  %v1296_v16 = vld [vmem:[%s16299_s26 + $0xd1] sm:$0xff] }
  0xf4   : > { %v16925_v18 = vmul.f32 %v16910_v20, %v1292_v63  ;;  %21104 = vst [vmem:[#allocation91_spill] sm:$0xff] %v16927_v30  ;;  %v944_v20 = vld [vmem:[%s16299_s26 + $0x100] sm:$0xff] }
  0xf5   : > { %21102 = vst [vmem:[#allocation89_spill] sm:$0xff] %v16922_v52  ;;  %v1504_v37 = vpack.c.bf16 %v1482_v33, %v1481_v27  ;;  %v1295_v33 = vld [vmem:[%s16299_s26 + $0xc9] sm:$0xff] }
  0xf6   : > { %21103 = vst [vmem:[#allocation90_spill] sm:$0xff] %v16925_v18  ;;  %v16933_v29 = vpop.permute.xlu1 %1410  ;;  %v16935_v12 = vpop.permute.xlu0 %1405 }
  0xf7   : > { %21105 = vst [vmem:[#allocation92_spill] sm:$0xff] %v16933_v29  ;;  %21106 = vst [vmem:[#allocation93_spill] sm:$0xff] %v16935_v12  ;;  %14341 = vmatmul.mubr.msk.bf16.gmra.mrb[44].mxu1 %vm666_vm2, %v16914_v56  ;;  %14367 = vmatmul.mubr.msk.bf16.gmra.mrb[28].mxu0 %vm666_vm2, %v1504_v37  ;;  %v1483_v39 = vmul.f32 %v16935_v12, %v1291_v17  ;;  %v1484_v0 = vmul.f32 %v16933_v29, %v1292_v63 }
  0xf8   : > { %v16945_v27 = vmul.f32 %v16935_v12, %v1293_v41  ;;  %14344 = vmatprep.mubr.msk.bf16.mxu1 %vm666_vm2, %v16927_v30  ;;  %v16952_v32 = vmul.f32 %v16933_v29, %v1294_v4  ;;  %v16958_v63 = vpack.c.bf16 %v944_v20, %v943_v49  ;;  %v1298_v49 = vld [vmem:[%s16299_s26 + $0xe1] sm:$0xff]  ;;  %v1299_v12 = vld [vmem:[%s16299_s26 + $0xe9] sm:$0xff] }
  0xf9   : > { %v1505_v37 = vpack.c.bf16 %v1484_v0, %v1483_v39  ;;  %v1297_v0 = vld [vmem:[%s16299_s26 + $0xd9] sm:$0xff] }
  0xfa   : > { %21107 = vst [vmem:[#allocation94_spill] sm:$0xff] %v16945_v27  ;;  %v16954_v52 = vpop.permute.xlu1 %1420  ;;  %v16956_v17 = vpop.permute.xlu0 %1415 }
  0xfb   : > { %21108 = vst [vmem:[#allocation95_spill] sm:$0xff] %v16954_v52  ;;  %21109 = vst [vmem:[#allocation96_spill] sm:$0xff] %v16956_v17  ;;  %14370 = vmatprep.mubr.msk.bf16.mxu0 %vm666_vm2, %v1505_v37  ;;  %v1485_v18 = vmul.f32 %v16956_v17, %v1293_v41  ;;  %v1486_v30 = vmul.f32 %v16954_v52, %v1294_v4  ;;  %v16966_v29 = vmul.f32 %v16956_v17, %v1295_v33 }
  0xfc   : > { %v16969_v39 = vmul.f32 %v16954_v52, %v1296_v16  ;;  %v1300_v52 = vld [vmem:[%s16299_s26 + $0xf1] sm:$0xff] }
  0xfd   : > { %21110 = vst [vmem:[#allocation97_spill] sm:$0xff] %v16966_v29  ;;  %v1506_v20 = vpack.c.bf16 %v1486_v30, %v1485_v18  ;;  %v21114_v30 = vpack.c.bf16 %v16473_v19, %v16470_v13  ;;  %v1302_v29 = vld [vmem:[%s16299_s26 + $0x101] sm:$0xff] }
  0xfe   : > { %21111 = vst [vmem:[#allocation98_spill] sm:$0xff] %v16969_v39  ;;  %v16975_v27 = vpop.permute.xlu1 %1430  ;;  %v16977_v37 = vpop.permute.xlu0 %1425  ;;  %v2700_v39 = vsel %vm715_vm0, %v16644_v38, 0  ;;  %v21120_v38 = vpack.c.bf16 %v16507_v14, %v16503_v36 }
  0xff   : > { %21112 = vst [vmem:[#allocation99_spill] sm:$0xff] %v16975_v27  ;;  %21113 = vst [vmem:[#allocation100_spill] sm:$0xff] %v16977_v37  ;;  %14345 = vmatmul.mubr.msk.bf16.gmra.mrb[48].mxu1 %vm666_vm2, %v16958_v63  ;;  %14371 = vmatmul.mubr.msk.bf16.gmra.mrb[32].mxu0 %vm666_vm2, %v1506_v20  ;;  %v1487_v4 = vmul.f32 %v16977_v37, %v1295_v33  ;;  %v1488_v41 = vmul.f32 %v16975_v27, %v1296_v16 }
 0x100   : > { %v16985_v18 = vmul.f32 %v16977_v37, %v1297_v0  ;;  %14384 = vmatprep.mubr.msk.bf16.mxu1 %vm666_vm2, %v21114_v30  ;;  %v16994_v17 = vmul.f32 %v16975_v27, %v1298_v49 }
 0x101   : > { %v1507_v33 = vpack.c.bf16 %v1488_v41, %v1487_v4  ;;  %v1301_v4 = vld [vmem:[%s16299_s26 + $0xf9] sm:$0xff] }
 0x102   : > { %v16996_v20 = vpop.permute.xlu1 %1440  ;;  %v16998_v16 = vpop.permute.xlu0 %1435 }
 0x103   : > { %21115 = vst [vmem:[#allocation101_spill] sm:$0xff] %v16996_v20  ;;  %21116 = vst [vmem:[#allocation102_spill] sm:$0xff] %v16998_v16  ;;  %14374 = vmatprep.mubr.msk.bf16.mxu0 %vm666_vm2, %v1507_v33  ;;  %v1489_v13 = vmul.f32 %v16998_v16, %v1297_v0  ;;  %v1490_v19 = vmul.f32 %v16996_v20, %v1298_v49  ;;  %v17006_v30 = vmul.f32 %v16998_v16, %v1299_v12  ;;  %v17018_v33 = vld [vmem:[%s16299_s26 + $0x109] sm:$0xff]  ;;  %v17021_v0 = vld [vmem:[%s16299_s26 + $0x111] sm:$0xff] }
 0x104   : > { %v17009_v27 = vmul.f32 %v16996_v20, %v1300_v52  ;;  %v13342_v20 = vld [vmem:[%s20598_s1 + $0x1c] sm:$0xf] }
 0x105   : > { %21117 = vst [vmem:[#allocation103_spill] sm:$0xff] %v17006_v30  ;;  %v1508_v41 = vpack.c.bf16 %v1490_v19, %v1489_v13  ;;  %v21121_v30 = vpack.c.bf16 %v16591_v62, %v16587_v28 }
 0x106   : > { %v17023_v49 = vpop.permute.xlu1 %1450  ;;  %v17025_v16 = vpop.permute.xlu0 %1445 }
 0x107   : > { %21118 = vst [vmem:[#allocation104_spill] sm:$0xff] %v17023_v49  ;;  %21119 = vst [vmem:[#allocation105_spill] sm:$0xff] %v17025_v16  ;;  %14375 = vmatmul.mubr.msk.bf16.gmra.mrb[36].mxu0 %vm666_vm2, %v1508_v41  ;;  %14385 = vmatmul.mubr.msk.bf16.vlgmr.msra.gmra.mrb[52].mxu1 %vm666_vm2, %v21120_v38  ;;  %v1491_v13 = vmul.f32 %v17025_v16, %v1299_v12  ;;  %v1492_v19 = vmul.f32 %v17023_v49, %v1300_v52 }
 0x108   : > { %v17038_v37 = vmul.f32 %v17025_v16, %v1301_v4  ;;  %14388 = vmatprep.mubr.msk.bf16.mxu1 %vm666_vm2, %v21121_v30  ;;  %14451 = vmatpush3.bf16.msra.mxu1 %v2700_v39  ;;  %v17045_v41 = vmul.f32 %v17023_v49, %v1302_v29  ;;  %v17049_v14 = vmul.f32 %v17018_v33, %v17025_v16 }
 0x109   : > { %v17053_v36 = vmul.f32 %v17021_v0, %v17023_v49  ;;  %v1509_v12 = vpack.c.bf16 %v1492_v19, %v1491_v13  ;;  %15724 = vmatprep.subr.msk.bf16.mxu1 %vm715_vm0, %v13342_v20  ;;  %v21124_v13 = vpack.c.bf16 %v16623_v54, %v16620_v1  ;;  %v21125_v19 = vpack.c.bf16 %v16661_v43, %v16656_v55  ;;  %v13359_v54 = vld [vmem:[%s20598_s1 + $0x20] sm:$0xf]  ;;  %v21150_v43 = vld [vmem:[#allocation64_spill] sm:$0xff] }
 0x10a   : > { %v17056_v52 = vpop.permute.xlu1 %1460  ;;  %v17058_v28 = vpop.permute.xlu0 %1455  ;;  %v2647_v62 = vpack.c.bf16 %v17045_v41, %v17038_v37  ;;  %v21127_v55 = vpack.c.bf16 %v16334_v25, %v16325_v21  ;;  %v21130_v21 = vpack.c.bf16 %v16383_v51, %v16380_v50  ;;  %v21132_v25 = vpack.c.bf16 %v16415_v6, %v16412_v5  ;;  %v21143_v6 = vld [vmem:[#allocation57_spill] sm:$0xff]  ;;  %v21207_v41 = vld [vmem:[#allocation19_spill] sm:$0xff] }
 0x10b   : > { %21122 = vst [vmem:[#allocation106_spill] sm:$0xff] %v17056_v52  ;;  %21123 = vst [vmem:[#allocation107_spill] sm:$0xff] %v17058_v28  ;;  %14378 = vmatprep.mubr.msk.bf16.mxu0 %vm666_vm2, %v1509_v12  ;;  %v1493_v30 = vmul.f32 %v17058_v28, %v1301_v4  ;;  %v1494_v38 = vmul.f32 %v17056_v52, %v1302_v29  ;;  %v3090_v4 = vsel %vm715_vm0, %v16749_v59, 0  ;;  %v3448_v5 = vsel %vm715_vm0, %v13342_v20, 0  ;;  %v21159_v12 = vld [vmem:[#allocation72_spill] sm:$0xff] }
 0x10c   : > { %v21126_v29 = vpack.c.bf16 %v16684_v11, %v16680_v15  ;;  %v21128_v11 = vpack.c.bf16 %v16337_v26, %v16328_v22  ;;  %v21129_v15 = vpack.c.bf16 %v16363_v42, %v16360_v40  ;;  %v21131_v22 = vpack.c.bf16 %v16399_v61, %v16396_v60  ;;  %v21136_v42 = vld [vmem:[#allocation36_spill] sm:$0xff]  ;;  %v21138_v60 = vld [vmem:[#allocation82_spill] sm:$0xff]  ;;  %v21139_v61 = vld [vmem:[#allocation53_spill] sm:$0xff] }
 0x10d   : > { %v1510_v49 = vpack.c.bf16 %v1494_v38, %v1493_v30  ;;  %v21134_v26 = vpack.c.bf16 %v16450_v48, %v16447_v47  ;;  %v1883_v40 = vmul.f32 %v16524_v31, %v16565_v57  ;;  %v21142_v31 = vld [vmem:[#allocation91_spill] sm:$0xff]  ;;  %v21146_v47 = vld [vmem:[#allocation61_spill] sm:$0xff]  ;;  %v21147_v48 = vld [vmem:[#allocation60_spill] sm:$0xff]  ;;  %v3838_v20 = vsel %vm715_vm0, %v13359_v54, 0 }
 0x10e   : > { %v21161_v38 = vld [vmem:[#allocation30_spill] sm:$0xff] }
 0x10f   : > { %14379 = vmatmul.mubr.msk.bf16.gmra.mrb[40].mxu0 %vm666_vm2, %v1510_v49  ;;  %14389 = vmatmul.mubr.msk.bf16.gmra.mrb[56].mxu1 %vm666_vm2, %v21124_v13  ;;  %v21158_v49 = vld [vmem:[#allocation73_spill] sm:$0xff] }
 0x110   : > { %14392 = vmatprep.mubr.msk.bf16.mxu1 %vm666_vm2, %v21125_v19  ;;  %14418 = vmatprep.mubr.msk.bf16.mxu0 %vm666_vm2, %v16610_v45  ;;  %v21137_v45 = vld [vmem:[#allocation31_spill] sm:$0xff]  ;;  %v21160_v30 = vpack.c.bf16 %v21158_v49, %v21159_v12  ;;  %v21162_v13 = vld [vmem:[#allocation29_spill] sm:$0xff] }
 0x111   : > { %v1884_v50 = vmul.f32 %v21137_v45, %v21136_v42  ;;  %v21163_v19 = vpack.c.bf16 %v21161_v38, %v21162_v13  ;;  %v2969_v45 = vld [vmem:[%s16299_s26 + $0x77] sm:$0xff]  ;;  %v2975_v49 = vld [vmem:[%s16299_s26 + $0xa7] sm:$0xff]  ;;  %v2976_v12 = vld [vmem:[%s16299_s26 + $0xaf] sm:$0xff] }
 0x112   : > { %v2973_v13 = vld [vmem:[%s16299_s26 + $0x97] sm:$0xff] }
 0x113   : > { %v1900_v51 = vpack.c.bf16 %v1884_v50, %v1883_v40  ;;  %v2970_v50 = vld [vmem:[%s16299_s26 + $0x7f] sm:$0xff] }
 0x117   : > { %14393 = vmatmul.mubr.msk.bf16.gmra.mrb[60].mxu1 %vm666_vm2, %v21126_v29  ;;  %14419 = vmatmul.mubr.msk.bf16.vlgmr.msra.gmra.mrb[44].mxu0 %vm666_vm2, %v16625_v53  ;;  %v21149_v53 = vld [vmem:[#allocation65_spill] sm:$0xff] }
 0x118   : > { %14396 = vmatprep.mubr.msk.bf16.mxu1 %vm666_vm2, %v21127_v55  ;;  %14422 = vmatprep.mubr.msk.bf16.mxu0 %vm666_vm2, %v16671_v34  ;;  %v21135_v34 = vpack.c.bf16 %v16547_v3, %v16544_v2  ;;  %v21140_v2 = vld [vmem:[#allocation52_spill] sm:$0xff]  ;;  %v21148_v3 = vpack.c.bf16 %v21146_v47, %v21147_v48  ;;  %v21164_v55 = vld [vmem:[#allocation77_spill] sm:$0xff] }
 0x119   : > { %14485 = vmatpush3.bf16.msra.mxu0 %v3090_v4  ;;  %v21141_v1 = vpack.c.bf16 %v21139_v61, %v21140_v2  ;;  %v2967_v4 = vld [vmem:[%s16299_s26 + $0x67] sm:$0xff]  ;;  %v2968_v29 = vld [vmem:[%s16299_s26 + $0x6f] sm:$0xff] }
 0x11a   : > { %15725 = vmatprep.subr.msk.bf16.mxu0 %vm715_vm0, %v13359_v54  ;;  %v21168_v54 = vld [vmem:[#allocation40_spill] sm:$0xff]  ;;  %v21175_v2 = vld [vmem:[#allocation45_spill] sm:$0xff] }
 0x11b   : > { %v21181_v47 = vld [vmem:[#allocation49_spill] sm:$0xff] }
 0x11c   : > { %v3001_v48 = vmul.f32 %v2969_v45, %v21181_v47 }
 0x11f   : > { %14397 = vmatmul.mubr.msk.bf16.gmra.mrb[64].mxu1 %vm666_vm2, %v21128_v11  ;;  %14423 = vmatmul.mubr.msk.bf16.gmra.mrb[48].mxu0 %vm666_vm2, %v16688_v46  ;;  %v21151_v46 = vpack.c.bf16 %v21149_v53, %v21150_v43  ;;  %v21165_v11 = vld [vmem:[#allocation76_spill] sm:$0xff]  ;;  %v21183_v53 = vld [vmem:[#allocation10_spill] sm:$0xff] }
 0x120   : > { %14400 = vmatprep.mubr.msk.bf16.mxu1 %vm666_vm2, %v21129_v15  ;;  %14426 = vmatprep.mubr.msk.bf16.mxu0 %vm666_vm2, %v16721_v10  ;;  %v21133_v10 = vpack.c.bf16 %v16431_v24, %v16428_v23  ;;  %v21144_v23 = vld [vmem:[#allocation56_spill] sm:$0xff]  ;;  %v21166_v15 = vpack.c.bf16 %v21164_v55, %v21165_v11  ;;  %v21192_v11 = vld [vmem:[#allocation11_spill] sm:$0xff] }
 0x121   : > { %v21145_v24 = vpack.c.bf16 %v21143_v6, %v21144_v23  ;;  %v21178_v6 = vld [vmem:[#allocation86_spill] sm:$0xff]  ;;  %v21179_v23 = vld [vmem:[#allocation85_spill] sm:$0xff] }
 0x127   : > { %14401 = vmatmul.mubr.msk.bf16.gmra.mrb[68].mxu1 %vm666_vm2, %v21130_v21  ;;  %14427 = vmatmul.mubr.msk.bf16.gmra.mrb[52].mxu0 %vm666_vm2, %v16734_v58  ;;  %v21167_v21 = vld [vmem:[#allocation41_spill] sm:$0xff] }
 0x128   : > { %14404 = vmatprep.mubr.msk.bf16.mxu1 %vm666_vm2, %v21131_v22  ;;  %14430 = vmatprep.mubr.msk.bf16.mxu0 %vm666_vm2, %v16776_v35  ;;  %v2241_v35 = vld [vmem:[%s16299_s26 + $0x108] sm:$0xff]  ;;  %v21169_v22 = vpack.c.bf16 %v21167_v21, %v21168_v54  ;;  %v21193_v54 = vld [vmem:[#allocation7_spill] sm:$0xff] }
 0x12f   : > { %14405 = vmatmul.mubr.msk.bf16.gmra.mrb[72].mxu1 %vm666_vm2, %v21132_v25  ;;  %14431 = vmatmul.mubr.msk.bf16.gmra.mrb[56].mxu0 %vm666_vm2, %v16789_v7  ;;  %v21155_v7 = vld [vmem:[#allocation26_spill] sm:$0xff]  ;;  %v21170_v25 = vld [vmem:[#allocation47_spill] sm:$0xff] }
 0x130   : > { %14408 = vmatprep.mubr.msk.bf16.mxu1 %vm666_vm2, %v21133_v10  ;;  %14434 = vmatprep.mubr.msk.bf16.mxu0 %vm666_vm2, %v16822_v44  ;;  %v21153_v44 = vld [vmem:[#allocation68_spill] sm:$0xff]  ;;  %v2999_v10 = vmul.f32 %v2967_v4, %v21170_v25 }
 0x137   : > { %14409 = vmatmul.mubr.msk.bf16.gmra.mrb[76].mxu1 %vm666_vm2, %v21134_v26  ;;  %14435 = vmatmul.mubr.msk.bf16.gmra.mrb[60].mxu0 %vm666_vm2, %v16835_v8  ;;  %v21156_v8 = vld [vmem:[#allocation25_spill] sm:$0xff]  ;;  %v21171_v26 = vld [vmem:[#allocation46_spill] sm:$0xff] }
 0x138   : > { %14412 = vmatprep.mubr.msk.bf16.mxu1 %vm666_vm2, %v21135_v34  ;;  %14438 = vmatprep.mubr.msk.bf16.mxu0 %vm666_vm2, %v16868_v9  ;;  %v21152_v9 = vld [vmem:[#allocation69_spill] sm:$0xff]  ;;  %v3000_v34 = vmul.f32 %v2968_v29, %v21171_v26  ;;  %v21191_v29 = vld [vmem:[#allocation12_spill] sm:$0xff] }
 0x139   : > { %v21154_v59 = vpack.c.bf16 %v21152_v9, %v21153_v44  ;;  %v3007_v55 = vmul.f32 %v2975_v49, %v21191_v29  ;;  %v21202_v49 = vld [vmem:[#allocation103_spill] sm:$0xff] }
 0x13a   : > { %v3027_v40 = vpack.c.bf16 %v3000_v34, %v2999_v10 }
 0x13f   : > { %14413 = vmatmul.mubr.msk.bf16.gmra.mrb[80].mxu1 %vm666_vm2, %v1900_v51  ;;  %14439 = vmatmul.mubr.msk.bf16.gmra.mrb[64].mxu0 %vm666_vm2, %v21138_v60  ;;  %v21172_v51 = vld [vmem:[#allocation81_spill] sm:$0xff]  ;;  %v21173_v60 = vld [vmem:[#allocation80_spill] sm:$0xff] }
 0x140   : > { %14452 = vmatprep.mubr.msk.bf16.mxu1 %vm666_vm2, %v21141_v1  ;;  %14442 = vmatprep.mubr.msk.bf16.mxu0 %vm666_vm2, %v16914_v56  ;;  %v2242_v56 = vld [vmem:[%s16299_s26 + $0x110] sm:$0xff]  ;;  %v21174_v61 = vpack.c.bf16 %v21172_v51, %v21173_v60  ;;  %v21176_v1 = vld [vmem:[#allocation44_spill] sm:$0xff]  ;;  %v2978_v51 = vld [vmem:[%s16299_s26 + $0xbf] sm:$0xff] }
 0x141   : > { %v17172_v58 = vpack.c.bf16 %v2242_v56, %v2241_v35  ;;  %v2971_v56 = vld [vmem:[%s16299_s26 + $0x87] sm:$0xff]  ;;  %v21194_v60 = vld [vmem:[#allocation98_spill] sm:$0xff] }
 0x147   : > { %14443 = vmatmul.mubr.msk.bf16.gmra.mrb[68].mxu0 %vm666_vm2, %v21142_v31  ;;  %14453 = vmatmul.mubr.msk.bf16.vlgmr.msra.gmra.mrb[84].mxu1 %vm666_vm2, %v21145_v24  ;;  %v2972_v31 = vld [vmem:[%s16299_s26 + $0x8f] sm:$0xff]  ;;  %v21180_v24 = vpack.c.bf16 %v21178_v6, %v21179_v23  ;;  %v21198_v6 = vld [vmem:[#allocation14_spill] sm:$0xff] }
 0x148   : > { %14456 = vmatprep.mubr.msk.bf16.mxu1 %vm666_vm2, %v21148_v3  ;;  %14446 = vmatprep.mubr.msk.bf16.mxu0 %vm666_vm2, %v16958_v63  ;;  %v21157_v63 = vpack.c.bf16 %v21155_v7, %v21156_v8  ;;  %v21182_v3 = vld [vmem:[#allocation48_spill] sm:$0xff]  ;;  %v3004_v43 = vmul.f32 %v2972_v31, %v21183_v53  ;;  %v2974_v7 = vld [vmem:[%s16299_s26 + $0x9f] sm:$0xff]  ;;  %v21197_v31 = vpack.c.bf16 %v16994_v17, %v16985_v18 }
 0x149   : > { %14519 = vmatpush3.bf16.msra.mxu1 %v3448_v5  ;;  %v21177_v5 = vpack.c.bf16 %v21175_v2, %v21176_v1  ;;  %v3002_v35 = vmul.f32 %v2970_v50, %v21182_v3  ;;  %v21185_v8 = vld [vmem:[#allocation90_spill] sm:$0xff]  ;;  %v2979_v1 = vld [vmem:[%s16299_s26 + $0xc7] sm:$0xff] }
 0x14a   : > { %v2977_v50 = vld [vmem:[%s16299_s26 + $0xb7] sm:$0xff] }
 0x14b   : > { %v3028_v44 = vpack.c.bf16 %v3002_v35, %v3001_v48  ;;  %v3009_v23 = vmul.f32 %v2977_v50, %v21198_v6  ;;  %v21200_v35 = vld [vmem:[#allocation16_spill] sm:$0xff] }
 0x14f   : > { %14447 = vmatmul.mubr.msk.bf16.gmra.mrb[72].mxu0 %vm666_vm2, %v17172_v58  ;;  %14457 = vmatmul.mubr.msk.bf16.gmra.mrb[88].mxu1 %vm666_vm2, %v21151_v46  ;;  %v21184_v46 = vld [vmem:[#allocation8_spill] sm:$0xff] }
 0x150   : > { %14460 = vmatprep.mubr.msk.bf16.mxu1 %vm666_vm2, %v21154_v59  ;;  %14486 = vmatprep.mubr.msk.bf16.mxu0 %vm666_vm2, %v21157_v63  ;;  %v3003_v9 = vmul.f32 %v2971_v56, %v21184_v46  ;;  %v21186_v63 = vld [vmem:[#allocation89_spill] sm:$0xff]  ;;  %v3011_v56 = vmul.f32 %v2979_v1, %v21200_v35  ;;  %v3351_v1 = vld [vmem:[%s16299_s26 + $0x38] sm:$0xff] }
 0x152   : > { %v3029_v59 = vpack.c.bf16 %v3004_v43, %v3003_v9  ;;  %v21201_v43 = vld [vmem:[#allocation15_spill] sm:$0xff] }
 0x157   : > { %14461 = vmatmul.mubr.msk.bf16.gmra.mrb[92].mxu1 %vm666_vm2, %v21160_v30  ;;  %14487 = vmatmul.mubr.msk.bf16.vlgmr.msra.gmra.mrb[76].mxu0 %vm666_vm2, %v21163_v19  ;;  %v21188_v30 = vld [vmem:[#allocation94_spill] sm:$0xff]  ;;  %v21190_v19 = vld [vmem:[#allocation9_spill] sm:$0xff] }
 0x158   : > { %14464 = vmatprep.mubr.msk.bf16.mxu1 %vm666_vm2, %v21166_v15  ;;  %14490 = vmatprep.mubr.msk.bf16.mxu0 %vm666_vm2, %v21169_v22  ;;  %v21189_v38 = vpack.c.bf16 %v16952_v32, %v21188_v30  ;;  %v3006_v4 = vmul.f32 %v2974_v7, %v21190_v19  ;;  %v3008_v15 = vmul.f32 %v2976_v12, %v21192_v11  ;;  %v2983_v30 = vld [vmem:[%s16299_s26 + $0xe7] sm:$0xff] }
 0x159   : > { %14553 = vmatpush3.bf16.msra.mxu0 %v3838_v20  ;;  %v21187_v20 = vpack.c.bf16 %v21185_v8, %v21186_v63  ;;  %v3005_v22 = vmul.f32 %v2973_v13, %v21193_v54  ;;  %v2981_v63 = vld [vmem:[%s16299_s26 + $0xd7] sm:$0xff]  ;;  %v21203_v12 = vpack.c.bf16 %v17009_v27, %v21202_v49  ;;  %v2631_v13 = vmul.f32 %v17018_v33, %v17058_v28 }
 0x15a   : > { %v3031_v45 = vpack.c.bf16 %v3008_v15, %v3007_v55  ;;  %v21204_v27 = vld [vmem:[#allocation18_spill] sm:$0xff]  ;;  %v21205_v15 = vld [vmem:[#allocation17_spill] sm:$0xff] }
 0x15b   : > { %v3030_v34 = vpack.c.bf16 %v3006_v4, %v3005_v22  ;;  %v2632_v4 = vmul.f32 %v17021_v0, %v17056_v52  ;;  %v3013_v55 = vmul.f32 %v2981_v63, %v21204_v27  ;;  %v3349_v22 = vld [vmem:[%s16299_s26 + $0x28] sm:$0xff]  ;;  %v2989_v49 = vld [vmem:[%s16299_s26 + $0x117] sm:$0xff] }
 0x15f   : > { %14465 = vmatmul.mubr.msk.bf16.gmra.mrb[96].mxu1 %vm666_vm2, %v21174_v61  ;;  %14491 = vmatmul.mubr.msk.bf16.gmra.mrb[80].mxu0 %vm666_vm2, %v21177_v5  ;;  %v21195_v61 = vld [vmem:[#allocation97_spill] sm:$0xff] }
 0x160   : > { %14468 = vmatprep.mubr.msk.bf16.mxu1 %vm666_vm2, %v21180_v24  ;;  %14494 = vmatprep.mubr.msk.bf16.mxu0 %vm666_vm2, %v3027_v40  ;;  %v21196_v2 = vpack.c.bf16 %v21194_v60, %v21195_v61  ;;  %v2980_v5 = vld [vmem:[%s16299_s26 + $0xcf] sm:$0xff]  ;;  %v2985_v61 = vld [vmem:[%s16299_s26 + $0xf7] sm:$0xff] }
 0x161   : > { %v21199_v24 = vld [vmem:[#allocation13_spill] sm:$0xff]  ;;  %v3012_v9 = vmul.f32 %v2980_v5, %v21201_v43  ;;  %v3352_v5 = vld [vmem:[%s16299_s26 + $0x40] sm:$0xff] }
 0x162   : > { %v3010_v48 = vmul.f32 %v2978_v51, %v21199_v24 }
 0x163   : > { %v3033_v8 = vpack.c.bf16 %v3012_v9, %v3011_v56  ;;  %v3353_v9 = vld [vmem:[%s16299_s26 + $0x48] sm:$0xff] }
 0x167   : > { %14469 = vmatmul.mubr.msk.bf16.gmra.mrb[100].mxu1 %vm666_vm2, %v21187_v20  ;;  %14495 = vmatmul.mubr.msk.bf16.gmra.mrb[84].mxu0 %vm666_vm2, %v3028_v44  ;;  %v2982_v20 = vld [vmem:[%s16299_s26 + $0xdf] sm:$0xff] }
 0x168   : > { %14472 = vmatprep.mubr.msk.bf16.mxu1 %vm666_vm2, %v21189_v38  ;;  %14498 = vmatprep.mubr.msk.bf16.mxu0 %vm666_vm2, %v3029_v59  ;;  %v3032_v59 = vpack.c.bf16 %v3010_v48, %v3009_v23  ;;  %v2984_v38 = vld [vmem:[%s16299_s26 + $0xef] sm:$0xff] }
 0x169   : > { %v21209_v48 = vld [vmem:[#allocation21_spill] sm:$0xff] }
 0x16b   : > { %v14296_v21 = vpop.f32.mrb[0].mxu1 }
 0x16c   : > { %895 = vst.msk [vmem:[#allocation4 + $0x70] sm:$0xff] %vm880_vm1, %v14296_v21  ;;  %v801_v32 = vpop.f32.mrb[1].mxu1  ;;  %v3014_v21 = vmul.f32 %v2982_v20, %v21205_v15 }
 0x16d   : > { %893 = vst.msk [vmem:[#allocation4 + $0x60] sm:$0xff] %vm880_vm1, %v801_v32  ;;  %v14297_v10 = vpop.f32.mrb[2].mxu1  ;;  %v3350_v32 = vld [vmem:[%s16299_s26 + $0x30] sm:$0xff] }
 0x16e   : > { %896 = vst.msk [vmem:[#allocation4 + $0x78] sm:$0xff] %vm880_vm1, %v14297_v10  ;;  %v804_v40 = vpop.f32.mrb[3].mxu1  ;;  %v21206_v10 = vld [vmem:[#allocation20_spill] sm:$0xff]  ;;  %v3381_v33 = vpack.c.bf16 %v3350_v32, %v3349_v22  ;;  %v3034_v50 = vpack.c.bf16 %v3014_v21, %v3013_v55  ;;  %v3355_v21 = vld [vmem:[%s16299_s26 + $0x58] sm:$0xff]  ;;  %v3356_v22 = vld [vmem:[%s16299_s26 + $0x60] sm:$0xff]  ;;  %v3021_v32 = vmul.f32 %v2989_v49, %v16565_v57 }
 0x16f   : > { %894 = vst.msk [vmem:[#allocation4 + $0x68] sm:$0xff] %vm880_vm1, %v804_v40  ;;  %14473 = vmatmul.mubr.msk.bf16.gmra.mrb[104].mxu1 %vm666_vm2, %v21196_v2  ;;  %14499 = vmatmul.mubr.msk.bf16.gmra.mrb[88].mxu0 %vm666_vm2, %v3030_v34  ;;  %v3015_v37 = vmul.f32 %v2983_v30, %v21206_v10  ;;  %v2986_v2 = vld [vmem:[%s16299_s26 + $0xff] sm:$0xff]  ;;  %v3707_v30 = vld [vmem:[%s16299_s26 + $0x29] sm:$0xff] }
 0x170   : > { %14476 = vmatprep.mubr.msk.bf16.mxu1 %vm666_vm2, %v21197_v31  ;;  %14502 = vmatprep.mubr.msk.bf16.mxu0 %vm666_vm2, %v3031_v45  ;;  %v2648_v45 = vpack.c.bf16 %v2632_v4, %v2631_v13  ;;  %v21208_v31 = vld [vmem:[#allocation22_spill] sm:$0xff]  ;;  %v3018_v56 = vmul.f32 %v2986_v2, %v21209_v48  ;;  %v21210_v13 = vld [vmem:[#allocation35_spill] sm:$0xff]  ;;  %v3361_v49 = vld [vmem:[%s16299_s26 + $0x88] sm:$0xff] }
 0x171   : > { %v3017_v23 = vmul.f32 %v2985_v61, %v21208_v31  ;;  %v21211_v4 = vld [vmem:[#allocation34_spill] sm:$0xff] }
 0x172   : > { %v21212_v55 = vpack.c.bf16 %v21210_v13, %v21211_v4  ;;  %v21218_v4 = vld [vmem:[#allocation58_spill] sm:$0xff] }
 0x173   : > { %v14300_v44 = vpop.f32.mrb[4].mxu1  ;;  %v3036_v63 = vpack.c.bf16 %v3018_v56, %v3017_v23  ;;  %v3709_v56 = vld [vmem:[%s16299_s26 + $0x39] sm:$0xff] }
 0x174   : > { %899 = vst.msk [vmem:[#allocation4 + $0x90] sm:$0xff] %vm880_vm1, %v14300_v44  ;;  %v817_v17 = vpop.f32.mrb[5].mxu1  ;;  %v3354_v44 = vld [vmem:[%s16299_s26 + $0x50] sm:$0xff] }
 0x175   : > { %897 = vst.msk [vmem:[#allocation4 + $0x80] sm:$0xff] %vm880_vm1, %v817_v17  ;;  %v14301_v18 = vpop.f32.mrb[6].mxu1 }
 0x176   : > { %900 = vst.msk [vmem:[#allocation4 + $0x98] sm:$0xff] %vm880_vm1, %v14301_v18  ;;  %v820_v7 = vpop.f32.mrb[7].mxu1  ;;  %v3382_v18 = vpack.c.bf16 %v3352_v5, %v3351_v1 }
 0x177   : > { %898 = vst.msk [vmem:[#allocation4 + $0x88] sm:$0xff] %vm880_vm1, %v820_v7  ;;  %14477 = vmatmul.mubr.msk.bf16.gmra.mrb[108].mxu1 %vm666_vm2, %v21203_v12  ;;  %14503 = vmatmul.mubr.msk.bf16.gmra.mrb[92].mxu0 %vm666_vm2, %v3032_v59  ;;  %v3383_v7 = vpack.c.bf16 %v3354_v44, %v3353_v9  ;;  %v2990_v12 = vld [vmem:[%s16299_s26 + $0x11f] sm:$0xff]  ;;  %v3711_v44 = vld [vmem:[%s16299_s26 + $0x49] sm:$0xff] }
 0x178   : > { %14480 = vmatprep.mubr.msk.bf16.mxu1 %vm666_vm2, %v2647_v62  ;;  %14506 = vmatprep.mubr.msk.bf16.mxu0 %vm666_vm2, %v3033_v8  ;;  %v3016_v62 = vmul.f32 %v2984_v38, %v21207_v41  ;;  %v3708_v38 = vld [vmem:[%s16299_s26 + $0x31] sm:$0xff]  ;;  %v3710_v9 = vld [vmem:[%s16299_s26 + $0x41] sm:$0xff] }
 0x17a   : > { %v3035_v60 = vpack.c.bf16 %v3016_v62, %v3015_v37  ;;  %v3022_v37 = vmul.f32 %v2990_v12, %v21136_v42  ;;  %v3357_v62 = vld [vmem:[%s16299_s26 + $0x68] sm:$0xff]  ;;  %v3362_v12 = vld [vmem:[%s16299_s26 + $0x90] sm:$0xff] }
 0x17b   : > { %v14304_v34 = vpop.f32.mrb[8].mxu1 }
 0x17c   : > { %903 = vst.msk [vmem:[#allocation4 + $0xb0] sm:$0xff] %vm880_vm1, %v14304_v34  ;;  %v833_v40 = vpop.f32.mrb[9].mxu1  ;;  %v3358_v34 = vld [vmem:[%s16299_s26 + $0x70] sm:$0xff]  ;;  %v3038_v5 = vpack.c.bf16 %v3022_v37, %v3021_v32  ;;  %v3387_v37 = vpack.c.bf16 %v3362_v12, %v3361_v49  ;;  %v21222_v49 = vld [vmem:[#allocation66_spill] sm:$0xff] }
 0x17d   : > { %901 = vst.msk [vmem:[#allocation4 + $0xa0] sm:$0xff] %vm880_vm1, %v833_v40  ;;  %v14305_v0 = vpop.f32.mrb[10].mxu1  ;;  %v3385_v2 = vpack.c.bf16 %v3358_v34, %v3357_v62 }
 0x17e   : > { %904 = vst.msk [vmem:[#allocation4 + $0xb8] sm:$0xff] %vm880_vm1, %v14305_v0  ;;  %v836_v51 = vpop.f32.mrb[11].mxu1 }
 0x17f   : > { %902 = vst.msk [vmem:[#allocation4 + $0xa8] sm:$0xff] %vm880_vm1, %v836_v51  ;;  %14481 = vmatmul.mubr.msk.bf16.gmra.mrb[112].mxu1 %vm666_vm2, %v2648_v45  ;;  %14507 = vmatmul.mubr.msk.bf16.gmra.mrb[96].mxu0 %vm666_vm2, %v3034_v50  ;;  %v21214_v45 = vld [vmem:[#allocation50_spill] sm:$0xff] }
 0x180   : > { %14510 = vmatprep.mubr.msk.bf16.mxu0 %vm666_vm2, %v3035_v60  ;;  %14520 = vmatprep.mubr.msk.bf16.mxu1 %vm666_vm2, %v3381_v33  ;;  %v21213_v33 = vld [vmem:[#allocation51_spill] sm:$0xff]  ;;  %v3740_v50 = vmul.f32 %v3708_v38, %v21214_v45  ;;  %v3384_v60 = vpack.c.bf16 %v3356_v22, %v3355_v21 }
 0x181   : > { %v3739_v0 = vmul.f32 %v3707_v30, %v21213_v33  ;;  %v21217_v38 = vld [vmem:[#allocation59_spill] sm:$0xff] }
 0x182   : > { %v3743_v13 = vmul.f32 %v3711_v44, %v21217_v38  ;;  %v3366_v44 = vld [vmem:[%s16299_s26 + $0xb0] sm:$0xff] }
 0x183   : > { %v14308_v17 = vpop.f32.mrb[12].mxu1  ;;  %v3771_v23 = vpack.c.bf16 %v3740_v50, %v3739_v0  ;;  %v3713_v0 = vld [vmem:[%s16299_s26 + $0x59] sm:$0xff]  ;;  %v3714_v50 = vld [vmem:[%s16299_s26 + $0x61] sm:$0xff] }
 0x184   : > { %907 = vst.msk [vmem:[#allocation4 + $0xd0] sm:$0xff] %vm880_vm1, %v14308_v17  ;;  %v849_v59 = vpop.f32.mrb[13].mxu1  ;;  %v3712_v17 = vld [vmem:[%s16299_s26 + $0x51] sm:$0xff] }
 0x185   : > { %905 = vst.msk [vmem:[#allocation4 + $0xc0] sm:$0xff] %vm880_vm1, %v849_v59  ;;  %v14309_v8 = vpop.f32.mrb[14].mxu1  ;;  %v3360_v59 = vld [vmem:[%s16299_s26 + $0x80] sm:$0xff] }
 0x186   : > { %908 = vst.msk [vmem:[#allocation4 + $0xd8] sm:$0xff] %vm880_vm1, %v14309_v8  ;;  %v852_v20 = vpop.f32.mrb[15].mxu1 }
 0x187   : > { %906 = vst.msk [vmem:[#allocation4 + $0xc8] sm:$0xff] %vm880_vm1, %v852_v20  ;;  %14511 = vmatmul.mubr.msk.bf16.gmra.mrb[100].mxu0 %vm666_vm2, %v3036_v63  ;;  %14521 = vmatmul.mubr.msk.bf16.vlgmr.msra.gmra.mrb[116].mxu1 %vm666_vm2, %v3382_v18  ;;  %v3359_v18 = vld [vmem:[%s16299_s26 + $0x78] sm:$0xff] }
 0x188   : > { %14514 = vmatprep.mubr.msk.bf16.mxu0 %vm666_vm2, %v21212_v55  ;;  %14524 = vmatprep.mubr.msk.bf16.mxu1 %vm666_vm2, %v3383_v7  ;;  %v21215_v7 = vld [vmem:[#allocation55_spill] sm:$0xff]  ;;  %v21216_v63 = vld [vmem:[#allocation54_spill] sm:$0xff]  ;;  %v3744_v55 = vmul.f32 %v3712_v17, %v21218_v4  ;;  %v3386_v22 = vpack.c.bf16 %v3360_v59, %v3359_v18 }
 0x189   : > { %v3741_v8 = vmul.f32 %v3709_v56, %v21215_v7  ;;  %v3742_v20 = vmul.f32 %v3710_v9, %v21216_v63  ;;  %v3365_v9 = vld [vmem:[%s16299_s26 + $0xa8] sm:$0xff] }
 0x18a   : > { %v14284_v40 = vpop.f32.mrb[0].mxu0 }
 0x18b   : > { %883 = vst.msk [vmem:[#allocation4 + $0x10] sm:$0xff] %vm880_vm1, %v14284_v40  ;;  %v753_v51 = vpop.f32.mrb[1].mxu0  ;;  %v3772_v34 = vpack.c.bf16 %v3742_v20, %v3741_v8  ;;  %v3773_v40 = vpack.c.bf16 %v3744_v55, %v3743_v13  ;;  %v21221_v8 = vld [vmem:[#allocation67_spill] sm:$0xff] }
 0x18c   : > { %881 = vst.msk [vmem:[#allocation4] sm:$0xff] %vm880_vm1, %v753_v51  ;;  %v14285_v61 = vpop.f32.mrb[2].mxu0  ;;  %v3715_v51 = vld [vmem:[%s16299_s26 + $0x69] sm:$0xff] }
 0x18d   : > { %884 = vst.msk [vmem:[#allocation4 + $0x18] sm:$0xff] %vm880_vm1, %v14285_v61  ;;  %v756_v1 = vpop.f32.mrb[3].mxu0  ;;  %v3363_v61 = vld [vmem:[%s16299_s26 + $0x98] sm:$0xff]  ;;  %v3747_v20 = vmul.f32 %v3715_v51, %v21221_v8 }
 0x18e   : > { %882 = vst.msk [vmem:[#allocation4 + $0x8] sm:$0xff] %vm880_vm1, %v756_v1  ;;  %v21219_v1 = vld [vmem:[#allocation63_spill] sm:$0xff] }
 0x18f   : > { %14515 = vmatmul.mubr.msk.bf16.gmra.mrb[104].mxu0 %vm666_vm2, %v3038_v5  ;;  %14525 = vmatmul.mubr.msk.bf16.gmra.mrb[120].mxu1 %vm666_vm2, %v3384_v60  ;;  %v3716_v60 = vld [vmem:[%s16299_s26 + $0x71] sm:$0xff]  ;;  %v3745_v5 = vmul.f32 %v3713_v0, %v21219_v1 }
 0x190   : > { %14554 = vmatprep.mubr.msk.bf16.mxu0 %vm666_vm2, %v3771_v23  ;;  %14528 = vmatprep.mubr.msk.bf16.mxu1 %vm666_vm2, %v3385_v2  ;;  %v3364_v2 = vld [vmem:[%s16299_s26 + $0xa0] sm:$0xff]  ;;  %v21220_v23 = vld [vmem:[#allocation62_spill] sm:$0xff]  ;;  %v3748_v12 = vmul.f32 %v3716_v60, %v21222_v49 }
 0x191   : > { %v3746_v56 = vmul.f32 %v3714_v50, %v21220_v23 }
 0x192   : > { %v14312_v30 = vpop.f32.mrb[16].mxu1  ;;  %v1177_v59 = vld [vmem:[#allocation4 + $0x10] sm:$0xff] }
 0x193   : > { %911 = vst.msk [vmem:[#allocation4 + $0xf0] sm:$0xff] %vm880_vm1, %v14312_v30  ;;  %v865_v21 = vpop.f32.mrb[17].mxu1 }
 0x194   : > { %909 = vst.msk [vmem:[#allocation4 + $0xe0] sm:$0xff] %vm880_vm1, %v865_v21  ;;  %v14313_v32 = vpop.f32.mrb[18].mxu1  ;;  %v1175_v21 = vld [vmem:[#allocation4] sm:$0xff] }
 0x195   : > { %912 = vst.msk [vmem:[#allocation4 + $0xf8] sm:$0xff] %vm880_vm1, %v14313_v32  ;;  %v868_v62 = vpop.f32.mrb[19].mxu1  ;;  %v1176_v60 = vld [vmem:[#allocation4 + $0x8] sm:$0xff] }
 0x196   : > { %910 = vst.msk [vmem:[#allocation4 + $0xe8] sm:$0xff] %vm880_vm1, %v868_v62 }
 0x197   : > { %14529 = vmatmul.mubr.msk.bf16.gmra.mrb[124].mxu1 %vm666_vm2, %v3386_v22  ;;  %14555 = vmatmul.mubr.msk.bf16.vlgmr.msra.gmra.mrb[108].mxu0 %vm666_vm2, %v3772_v34  ;;  %v3388_v22 = vpack.c.bf16 %v3364_v2, %v3363_v61  ;;  %v1178_v34 = vld [vmem:[#allocation4 + $0x18] sm:$0xff]  ;;  %v3774_v61 = vpack.c.bf16 %v3746_v56, %v3745_v5  ;;  %v3368_v56 = vld [vmem:[%s16299_s26 + $0xc0] sm:$0xff] }
 0x198   : > { %14558 = vmatprep.mubr.msk.bf16.mxu0 %vm666_vm2, %v3773_v40  ;;  %14532 = vmatprep.mubr.msk.bf16.mxu1 %vm666_vm2, %v3387_v37  ;;  %v3389_v40 = vpack.c.bf16 %v3366_v44, %v3365_v9  ;;  %v3775_v9 = vpack.c.bf16 %v3748_v12, %v3747_v20  ;;  %v3717_v44 = vld [vmem:[%s16299_s26 + $0x79] sm:$0xff] }
 0x199   : > { %v3367_v5 = vld [vmem:[%s16299_s26 + $0xb8] sm:$0xff]  ;;  %v21223_v20 = vld [vmem:[#allocation71_spill] sm:$0xff] }
 0x19a   : > { %v14288_v17 = vpop.f32.mrb[4].mxu0  ;;  %v14318_v18 = vpop.f32.mrb[20].mxu1  ;;  %v3749_v12 = vmul.f32 %v3717_v44, %v21223_v20 }
 0x19b   : > { %887 = vst.msk [vmem:[#allocation4 + $0x30] sm:$0xff] %vm880_vm1, %v14288_v17  ;;  %v1209_v30 = vadd.f32 %v14318_v18, %v1177_v59  ;;  %v769_v13 = vpop.f32.mrb[5].mxu0  ;;  %v1048_v55 = vpop.f32.mrb[21].mxu1  ;;  %v3718_v17 = vld [vmem:[%s16299_s26 + $0x81] sm:$0xff]  ;;  %v3719_v18 = vld [vmem:[%s16299_s26 + $0x89] sm:$0xff]  ;;  %v3720_v59 = vld [vmem:[%s16299_s26 + $0x91] sm:$0xff] }
 0x19c   : > { %885 = vst.msk [vmem:[#allocation4 + $0x20] sm:$0xff] %vm880_vm1, %v769_v13  ;;  %v1207_v32 = vadd.f32 %v1175_v21, %v1048_v55  ;;  %v14289_v37 = vpop.f32.mrb[6].mxu0  ;;  %v14319_v62 = vpop.f32.mrb[22].mxu1  ;;  %v3369_v55 = vld [vmem:[%s16299_s26 + $0xc8] sm:$0xff]  ;;  %v3370_v21 = vld [vmem:[%s16299_s26 + $0xd0] sm:$0xff] }
 0x19d   : > { %1241 = vst.msk [vmem:[#allocation4 + $0x10] sm:$0xff] %vm880_vm1, %v1209_v30  ;;  %888 = vst.msk [vmem:[#allocation4 + $0x38] sm:$0xff] %vm880_vm1, %v14289_v37  ;;  %v1210_v0 = vadd.f32 %v14319_v62, %v1178_v34  ;;  %v772_v50 = vpop.f32.mrb[7].mxu0  ;;  %v1051_v51 = vpop.f32.mrb[23].mxu1  ;;  %v21224_v30 = vld [vmem:[#allocation70_spill] sm:$0xff]  ;;  %v21225_v62 = vld [vmem:[#allocation75_spill] sm:$0xff]  ;;  %v3391_v16 = vpack.c.bf16 %v3370_v21, %v3369_v55 }
 0x19e   : > { %1239 = vst.msk [vmem:[#allocation4] sm:$0xff] %vm880_vm1, %v1207_v32  ;;  %886 = vst.msk [vmem:[#allocation4 + $0x28] sm:$0xff] %vm880_vm1, %v772_v50  ;;  %v1208_v2 = vadd.f32 %v1176_v60, %v1051_v51  ;;  %v3750_v13 = vmul.f32 %v3718_v17, %v21224_v30  ;;  %v3751_v34 = vmul.f32 %v3719_v18, %v21225_v62  ;;  %v3721_v21 = vld [vmem:[%s16299_s26 + $0x99] sm:$0xff] }
 0x19f   : > { %1242 = vst.msk [vmem:[#allocation4 + $0x18] sm:$0xff] %vm880_vm1, %v1210_v0  ;;  %14533 = vmatmul.mubr.msk.bf16.gmra.mrb[128].mxu1 %vm666_vm2, %v3388_v22  ;;  %14559 = vmatmul.mubr.msk.bf16.gmra.mrb[112].mxu0 %vm666_vm2, %v3774_v61  ;;  %v21226_v0 = vld [vmem:[#allocation74_spill] sm:$0xff] }
 0x1a0   : > { %1240 = vst.msk [vmem:[#allocation4 + $0x8] sm:$0xff] %vm880_vm1, %v1208_v2  ;;  %14562 = vmatprep.mubr.msk.bf16.mxu0 %vm666_vm2, %v3775_v9  ;;  %14536 = vmatprep.mubr.msk.bf16.mxu1 %vm666_vm2, %v3389_v40  ;;  %v3752_v50 = vmul.f32 %v3720_v59, %v21226_v0  ;;  %v3390_v2 = vpack.c.bf16 %v3368_v56, %v3367_v5 }
 0x1a1   : > { %v3776_v5 = vpack.c.bf16 %v3750_v13, %v3749_v12  ;;  %v3371_v12 = vld [vmem:[%s16299_s26 + $0xd8] sm:$0xff]  ;;  %v3372_v13 = vld [vmem:[%s16299_s26 + $0xe0] sm:$0xff] }
 0x1a2   : > { %v14292_v32 = vpop.f32.mrb[8].mxu0  ;;  %v14322_v22 = vpop.f32.mrb[24].mxu1  ;;  %v1181_v37 = vld [vmem:[#allocation4 + $0x30] sm:$0xff]  ;;  %v3777_v55 = vpack.c.bf16 %v3752_v50, %v3751_v34  ;;  %v21227_v34 = vld [vmem:[#allocation79_spill] sm:$0xff]  ;;  %v3392_v20 = vpack.c.bf16 %v3372_v13, %v3371_v12 }
 0x1a3   : > { %891 = vst.msk [vmem:[#allocation4 + $0x50] sm:$0xff] %vm880_vm1, %v14292_v32  ;;  %v1213_v51 = vadd.f32 %v14322_v22, %v1181_v37  ;;  %v785_v60 = vpop.f32.mrb[9].mxu0  ;;  %v1064_v40 = vpop.f32.mrb[25].mxu1  ;;  %v1179_v61 = vld [vmem:[#allocation4 + $0x20] sm:$0xff]  ;;  %v3753_v50 = vmul.f32 %v3721_v21, %v21227_v34 }
 0x1a4   : > { %889 = vst.msk [vmem:[#allocation4 + $0x40] sm:$0xff] %vm880_vm1, %v785_v60  ;;  %v1211_v9 = vadd.f32 %v1179_v61, %v1064_v40  ;;  %v14293_v44 = vpop.f32.mrb[10].mxu0  ;;  %v14323_v17 = vpop.f32.mrb[26].mxu1  ;;  %v1182_v39 = vld [vmem:[#allocation4 + $0x38] sm:$0xff]  ;;  %v3722_v37 = vld [vmem:[%s16299_s26 + $0xa1] sm:$0xff] }
 0x1a5   : > { %1245 = vst.msk [vmem:[#allocation4 + $0x30] sm:$0xff] %vm880_vm1, %v1213_v51  ;;  %892 = vst.msk [vmem:[#allocation4 + $0x58] sm:$0xff] %vm880_vm1, %v14293_v44  ;;  %v1214_v18 = vadd.f32 %v14323_v17, %v1182_v39  ;;  %v788_v59 = vpop.f32.mrb[11].mxu0  ;;  %v1067_v32 = vpop.f32.mrb[27].mxu1  ;;  %v1180_v22 = vld [vmem:[#allocation4 + $0x28] sm:$0xff]  ;;  %v3724_v51 = vld [vmem:[%s16299_s26 + $0xb1] sm:$0xff] }
 0x1a6   : > { %1243 = vst.msk [vmem:[#allocation4 + $0x20] sm:$0xff] %vm880_vm1, %v1211_v9  ;;  %890 = vst.msk [vmem:[#allocation4 + $0x48] sm:$0xff] %vm880_vm1, %v788_v59  ;;  %v1212_v56 = vadd.f32 %v1180_v22, %v1067_v32  ;;  %v3723_v39 = vld [vmem:[%s16299_s26 + $0xa9] sm:$0xff]  ;;  %v21228_v60 = vld [vmem:[#allocation78_spill] sm:$0xff] }
 0x1a7   : > { %1246 = vst.msk [vmem:[#allocation4 + $0x38] sm:$0xff] %vm880_vm1, %v1214_v18  ;;  %14537 = vmatmul.mubr.msk.bf16.gmra.mrb[132].mxu1 %vm666_vm2, %v3390_v2  ;;  %14563 = vmatmul.mubr.msk.bf16.gmra.mrb[116].mxu0 %vm666_vm2, %v3776_v5  ;;  %v3754_v40 = vmul.f32 %v3722_v37, %v21228_v60  ;;  %v3373_v61 = vld [vmem:[%s16299_s26 + $0xe8] sm:$0xff]  ;;  %v3374_v9 = vld [vmem:[%s16299_s26 + $0xf0] sm:$0xff]  ;;  %v21230_v22 = vld [vmem:[#allocation83_spill] sm:$0xff] }
 0x1a8   : > { %1244 = vst.msk [vmem:[#allocation4 + $0x28] sm:$0xff] %vm880_vm1, %v1212_v56  ;;  %14566 = vmatprep.mubr.msk.bf16.mxu0 %vm666_vm2, %v3777_v55  ;;  %14540 = vmatprep.mubr.msk.bf16.mxu1 %vm666_vm2, %v3391_v16  ;;  %v1727_v18 = vld [vmem:[#allocation4 + $0x10] sm:$0xff]  ;;  %v21229_v59 = vld [vmem:[#allocation84_spill] sm:$0xff]  ;;  %v3756_v5 = vmul.f32 %v3724_v51, %v21230_v22  ;;  %v1725_v30 = vld [vmem:[#allocation4] sm:$0xff]  ;;  %v3393_v23 = vpack.c.bf16 %v3374_v9, %v3373_v61 }
 0x1a9   : > { %v3755_v32 = vmul.f32 %v3723_v39, %v21229_v59  ;;  %v1728_v8 = vld [vmem:[#allocation4 + $0x18] sm:$0xff] }
 0x1aa   : > { %v14326_v44 = vpop.f32.mrb[28].mxu1  ;;  %v1185_v2 = vld [vmem:[#allocation4 + $0x50] sm:$0xff]  ;;  %v14352_v17 = vpop.f32.mrb[12].mxu0  ;;  %v3725_v9 = vld [vmem:[%s16299_s26 + $0xb9] sm:$0xff] }
 0x1ab   : > { %v1217_v56 = vadd.f32 %v14326_v44, %v1185_v2  ;;  %v1759_v55 = vadd.f32 %v14352_v17, %v1727_v18  ;;  %v1080_v0 = vpop.f32.mrb[29].mxu1  ;;  %v1183_v16 = vld [vmem:[#allocation4 + $0x40] sm:$0xff]  ;;  %v1598_v62 = vpop.f32.mrb[13].mxu0  ;;  %v3779_v61 = vpack.c.bf16 %v3756_v5, %v3755_v32  ;;  %v1194_v59 = vld [vmem:[#allocation4 + $0x98] sm:$0xff] }
 0x1ac   : > { %v1215_v21 = vadd.f32 %v1183_v16, %v1080_v0  ;;  %v1757_v34 = vadd.f32 %v1725_v30, %v1598_v62  ;;  %v14327_v37 = vpop.f32.mrb[30].mxu1  ;;  %v1186_v60 = vld [vmem:[#allocation4 + $0x58] sm:$0xff]  ;;  %v14353_v49 = vpop.f32.mrb[14].mxu0  ;;  %v1726_v0 = vld [vmem:[#allocation4 + $0x8] sm:$0xff]  ;;  %v3778_v30 = vpack.c.bf16 %v3754_v40, %v3753_v50  ;;  %v3376_v50 = vld [vmem:[%s16299_s26 + $0x100] sm:$0xff] }
 0x1ad   : > { %1249 = vst.msk [vmem:[#allocation4 + $0x50] sm:$0xff] %vm880_vm1, %v1217_v56  ;;  %1791 = vst.msk [vmem:[#allocation4 + $0x10] sm:$0xff] %vm880_vm1, %v1759_v55  ;;  %v1218_v39 = vadd.f32 %v14327_v37, %v1186_v60  ;;  %v1760_v51 = vadd.f32 %v14353_v49, %v1728_v8  ;;  %v1083_v44 = vpop.f32.mrb[31].mxu1  ;;  %v1184_v2 = vld [vmem:[#allocation4 + $0x48] sm:$0xff]  ;;  %v1601_v12 = vpop.f32.mrb[15].mxu0  ;;  %v3728_v49 = vld [vmem:[%s16299_s26 + $0xd1] sm:$0xff] }
 0x1ae   : > { %1247 = vst.msk [vmem:[#allocation4 + $0x40] sm:$0xff] %vm880_vm1, %v1215_v21  ;;  %1789 = vst.msk [vmem:[#allocation4] sm:$0xff] %vm880_vm1, %v1757_v34  ;;  %v1216_v62 = vadd.f32 %v1184_v2, %v1083_v44  ;;  %v1758_v13 = vadd.f32 %v1726_v0, %v1601_v12  ;;  %v3726_v17 = vld [vmem:[%s16299_s26 + $0xc1] sm:$0xff]  ;;  %v3727_v8 = vld [vmem:[%s16299_s26 + $0xc9] sm:$0xff] }
 0x1af   : > { %1250 = vst.msk [vmem:[#allocation4 + $0x58] sm:$0xff] %vm880_vm1, %v1218_v39  ;;  %1792 = vst.msk [vmem:[#allocation4 + $0x18] sm:$0xff] %vm880_vm1, %v1760_v51  ;;  %14541 = vmatmul.mubr.msk.bf16.gmra.mrb[136].mxu1 %vm666_vm2, %v3392_v20  ;;  %14567 = vmatmul.mubr.msk.bf16.gmra.mrb[120].mxu0 %vm666_vm2, %v3778_v30  ;;  %v3375_v34 = vld [vmem:[%s16299_s26 + $0xf8] sm:$0xff]  ;;  %v21231_v60 = vld [vmem:[#allocation88_spill] sm:$0xff] }
 0x1b0   : > { %1248 = vst.msk [vmem:[#allocation4 + $0x48] sm:$0xff] %vm880_vm1, %v1216_v62  ;;  %1790 = vst.msk [vmem:[#allocation4 + $0x8] sm:$0xff] %vm880_vm1, %v1758_v13  ;;  %14570 = vmatprep.mubr.msk.bf16.mxu0 %vm666_vm2, %v3779_v61  ;;  %14544 = vmatprep.mubr.msk.bf16.mxu1 %vm666_vm2, %v3393_v23  ;;  %v3757_v40 = vmul.f32 %v3725_v9, %v21231_v60  ;;  %v21232_v18 = vld [vmem:[#allocation87_spill] sm:$0xff]  ;;  %v1189_v20 = vld [vmem:[#allocation4 + $0x70] sm:$0xff]  ;;  %v3394_v30 = vpack.c.bf16 %v3376_v50, %v3375_v34 }
 0x1b1   : > { %v3758_v32 = vmul.f32 %v3726_v17, %v21232_v18  ;;  %v1731_v55 = vld [vmem:[#allocation4 + $0x30] sm:$0xff]  ;;  %v21234_v37 = vld [vmem:[#allocation92_spill] sm:$0xff]  ;;  %v1187_v12 = vld [vmem:[#allocation4 + $0x60] sm:$0xff] }
 0x1b2   : > { %v14330_v5 = vpop.f32.mrb[32].mxu1  ;;  %v14356_v56 = vpop.f32.mrb[16].mxu0  ;;  %v21233_v16 = vld [vmem:[#allocation93_spill] sm:$0xff]  ;;  %v3760_v39 = vmul.f32 %v3728_v49, %v21234_v37  ;;  %v1729_v23 = vld [vmem:[#allocation4 + $0x20] sm:$0xff]  ;;  %v1190_v9 = vld [vmem:[#allocation4 + $0x78] sm:$0xff] }
 0x1b3   : > { %v3759_v21 = vmul.f32 %v3727_v8, %v21233_v16  ;;  %v1221_v51 = vadd.f32 %v14330_v5, %v1189_v20  ;;  %v1763_v44 = vadd.f32 %v14356_v56, %v1731_v55  ;;  %v1096_v2 = vpop.f32.mrb[33].mxu1  ;;  %v1614_v0 = vpop.f32.mrb[17].mxu0  ;;  %v1732_v18 = vld [vmem:[#allocation4 + $0x38] sm:$0xff]  ;;  %v1188_v20 = vld [vmem:[#allocation4 + $0x68] sm:$0xff]  ;;  %v3780_v50 = vpack.c.bf16 %v3758_v32, %v3757_v40  ;;  %v1191_v16 = vld [vmem:[#allocation4 + $0x80] sm:$0xff] }
 0x1b4   : > { %v1219_v62 = vadd.f32 %v1187_v12, %v1096_v2  ;;  %v1761_v13 = vadd.f32 %v1729_v23, %v1614_v0  ;;  %v14331_v61 = vpop.f32.mrb[34].mxu1  ;;  %v14357_v17 = vpop.f32.mrb[18].mxu0  ;;  %v1730_v34 = vld [vmem:[#allocation4 + $0x28] sm:$0xff] }
 0x1b5   : > { %1253 = vst.msk [vmem:[#allocation4 + $0x70] sm:$0xff] %vm880_vm1, %v1221_v51  ;;  %1795 = vst.msk [vmem:[#allocation4 + $0x30] sm:$0xff] %vm880_vm1, %v1763_v44  ;;  %v1222_v8 = vadd.f32 %v14331_v61, %v1190_v9  ;;  %v1764_v49 = vadd.f32 %v14357_v17, %v1732_v18  ;;  %v1099_v5 = vpop.f32.mrb[35].mxu1  ;;  %v1617_v56 = vpop.f32.mrb[19].mxu0  ;;  %v3781_v12 = vpack.c.bf16 %v3760_v39, %v3759_v21  ;;  %v3729_v51 = vld [vmem:[%s16299_s26 + $0xd9] sm:$0xff]  ;;  %v3730_v44 = vld [vmem:[%s16299_s26 + $0xe1] sm:$0xff] }
 0x1b6   : > { %1251 = vst.msk [vmem:[#allocation4 + $0x60] sm:$0xff] %vm880_vm1, %v1219_v62  ;;  %1793 = vst.msk [vmem:[#allocation4 + $0x20] sm:$0xff] %vm880_vm1, %v1761_v13  ;;  %v1220_v55 = vadd.f32 %v1188_v20, %v1099_v5  ;;  %v1762_v2 = vadd.f32 %v1730_v34, %v1617_v56  ;;  %v4238_v0 = vld [vmem:[#allocation2 + $0x7] sm:$0xff]  ;;  %v3732_v18 = vld [vmem:[%s16299_s26 + $0xf1] sm:$0xff] }
 0x1b7   : > { %1254 = vst.msk [vmem:[#allocation4 + $0x78] sm:$0xff] %vm880_vm1, %v1222_v8  ;;  %1796 = vst.msk [vmem:[#allocation4 + $0x38] sm:$0xff] %vm880_vm1, %v1764_v49  ;;  %14545 = vmatmul.mubr.msk.bf16.gmra.mrb[140].mxu1 %vm666_vm2, %v3394_v30  ;;  %14571 = vmatmul.mubr.msk.bf16.gmra.mrb[124].mxu0 %vm666_vm2, %v3780_v50  ;;  %v3731_v40 = vld [vmem:[%s16299_s26 + $0xe9] sm:$0xff]  ;;  %v3379_v21 = vld [vmem:[%s16299_s26 + $0x118] sm:$0xff] }
 0x1b8   : > { %v4239_v32 = vld [vmem:[#allocation2 + $0xf] sm:$0xff]  ;;  %1252 = vst.msk [vmem:[#allocation4 + $0x68] sm:$0xff] %vm880_vm1, %v1220_v55  ;;  %1794 = vst.msk [vmem:[#allocation4 + $0x28] sm:$0xff] %vm880_vm1, %v1762_v2  ;;  %14574 = vmatprep.mubr.msk.bf16.mxu0 %vm666_vm2, %v3781_v12  ;;  %14548 = vmatprep.mubr.msk.bf16.mxu1 %vm666_vm2, %v17172_v58  ;;  %v3380_v39 = vld [vmem:[%s16299_s26 + $0x120] sm:$0xff] }
 0x1b9   : > { %v21235_v23 = vld [vmem:[#allocation96_spill] sm:$0xff]  ;;  %v21236_v13 = vld [vmem:[#allocation95_spill] sm:$0xff]  ;;  %v1193_v9 = vld [vmem:[#allocation4 + $0x90] sm:$0xff] }
 0x1ba   : > { %v3761_v62 = vmul.f32 %v3729_v51, %v21235_v23  ;;  %v3762_v30 = vmul.f32 %v3730_v44, %v21236_v13  ;;  %v14334_v61 = vpop.f32.mrb[36].mxu1  ;;  %v14360_v17 = vpop.f32.mrb[20].mxu0  ;;  %v1735_v8 = vld [vmem:[#allocation4 + $0x50] sm:$0xff]  ;;  %v21237_v49 = vld [vmem:[#allocation100_spill] sm:$0xff]  ;;  %v21238_v20 = vld [vmem:[#allocation99_spill] sm:$0xff]  ;;  %v3396_v23 = vpack.c.bf16 %v3380_v39, %v3379_v21 }
 0x1bb   : > { %v3763_v5 = vmul.f32 %v3731_v40, %v21237_v49  ;;  %v3764_v56 = vmul.f32 %v3732_v18, %v21238_v20  ;;  %v21239_v34 = vld [vmem:[#allocation24_spill] sm:$0xff]  ;;  %v21240_v55 = vld [vmem:[#allocation23_spill] sm:$0xff]  ;;  %v1225_v12 = vadd.f32 %v14334_v61, %v1193_v9  ;;  %v1767_v58 = vadd.f32 %v14360_v17, %v1735_v8  ;;  %v1112_v37 = vpop.f32.mrb[37].mxu1  ;;  %v1630_v60 = vpop.f32.mrb[21].mxu0  ;;  %v1736_v4 = vld [vmem:[#allocation4 + $0x58] sm:$0xff] }
 0x1bc   : > { %v4270_v50 = vmul.f32 %v4238_v0, %v21239_v34  ;;  %v4271_v2 = vmul.f32 %v4239_v32, %v21240_v55  ;;  %v1733_v51 = vld [vmem:[#allocation4 + $0x40] sm:$0xff]  ;;  %v1223_v44 = vadd.f32 %v1191_v16, %v1112_v37  ;;  %v14335_v22 = vpop.f32.mrb[38].mxu1  ;;  %v14361_v1 = vpop.f32.mrb[22].mxu0  ;;  %v1192_v32 = vld [vmem:[#allocation4 + $0x88] sm:$0xff]  ;;  %v3782_v17 = vpack.c.bf16 %v3762_v30, %v3761_v62 }
 0x1bd   : > { %v1765_v13 = vadd.f32 %v1733_v51, %v1630_v60  ;;  %1257 = vst.msk [vmem:[#allocation4 + $0x90] sm:$0xff] %vm880_vm1, %v1225_v12  ;;  %1799 = vst.msk [vmem:[#allocation4 + $0x50] sm:$0xff] %vm880_vm1, %v1767_v58  ;;  %v1226_v0 = vadd.f32 %v14335_v22, %v1194_v59  ;;  %v1768_v40 = vadd.f32 %v14361_v1, %v1736_v4  ;;  %v1115_v18 = vpop.f32.mrb[39].mxu1  ;;  %v1633_v61 = vpop.f32.mrb[23].mxu0  ;;  %v1734_v9 = vld [vmem:[#allocation4 + $0x48] sm:$0xff]  ;;  %v3733_v39 = vld [vmem:[%s16299_s26 + $0xf9] sm:$0xff] }
 0x1be   : > { %1255 = vst.msk [vmem:[#allocation4 + $0x80] sm:$0xff] %vm880_vm1, %v1223_v44  ;;  %v1224_v60 = vadd.f32 %v1192_v32, %v1115_v18  ;;  %v1766_v16 = vadd.f32 %v1734_v9, %v1633_v61  ;;  %v3783_v37 = vpack.c.bf16 %v3764_v56, %v3763_v5  ;;  %v4302_v21 = vpack.c.bf16 %v4271_v2, %v4270_v50  ;;  %v3734_v8 = vld [vmem:[%s16299_s26 + $0x101] sm:$0xff]  ;;  %v21241_v4 = vld [vmem:[#allocation102_spill] sm:$0xff]  ;;  %v21242_v59 = vld [vmem:[#allocation101_spill] sm:$0xff] }
 0x1bf   : > { %1797 = vst.msk [vmem:[#allocation4 + $0x40] sm:$0xff] %vm880_vm1, %v1765_v13  ;;  %1258 = vst.msk [vmem:[#allocation4 + $0x98] sm:$0xff] %vm880_vm1, %v1226_v0  ;;  %14549 = vmatmul.mubr.msk.bf16.gmra.mrb[144].mxu1 %vm666_vm2, %v3396_v23  ;;  %14575 = vmatmul.mubr.msk.bf16.gmra.mrb[128].mxu0 %vm666_vm2, %v3782_v17  ;;  %v3765_v1 = vmul.f32 %v3733_v39, %v21241_v4  ;;  %v3766_v22 = vmul.f32 %v3734_v8, %v21242_v59  ;;  %v1197_v13 = vld [vmem:[#allocation4 + $0xb0] sm:$0xff]  ;;  %v1195_v2 = vld [vmem:[#allocation4 + $0xa0] sm:$0xff] }
 0x1c0   : > { %1800 = vst.msk [vmem:[#allocation4 + $0x58] sm:$0xff] %vm880_vm1, %v1768_v40  ;;  %1256 = vst.msk [vmem:[#allocation4 + $0x88] sm:$0xff] %vm880_vm1, %v1224_v60  ;;  %14578 = vmatprep.mubr.msk.bf16.mxu0 %vm666_vm2, %v3783_v37  ;;  %14594 = vmatprep.mubr.msk.bf16.mxu1 %vm880_vm1, %v4302_v21  ;;  %v1739_v5 = vld [vmem:[#allocation4 + $0x70] sm:$0xff]  ;;  %v1737_v58 = vld [vmem:[#allocation4 + $0x60] sm:$0xff] }
 0x1c1   : > { %1798 = vst.msk [vmem:[#allocation4 + $0x48] sm:$0xff] %vm880_vm1, %v1766_v16  ;;  %v1198_v40 = vld [vmem:[#allocation4 + $0xb8] sm:$0xff]  ;;  %v1196_v60 = vld [vmem:[#allocation4 + $0xa8] sm:$0xff]  ;;  %v3784_v21 = vpack.c.bf16 %v3766_v22, %v3765_v1  ;;  %v21243_v1 = vpack.c.bf16 %v17053_v36, %v17049_v14 }
 0x1c2   : > { %v14338_v62 = vpop.f32.mrb[40].mxu1  ;;  %v14364_v30 = vpop.f32.mrb[24].mxu0  ;;  %v1740_v32 = vld [vmem:[#allocation4 + $0x78] sm:$0xff]  ;;  %v1738_v37 = vld [vmem:[#allocation4 + $0x68] sm:$0xff] }
 0x1c3   : > { %v1229_v56 = vadd.f32 %v14338_v62, %v1197_v13  ;;  %v1771_v23 = vadd.f32 %v14364_v30, %v1739_v5  ;;  %v1128_v50 = vpop.f32.mrb[41].mxu1  ;;  %v1646_v12 = vpop.f32.mrb[25].mxu0  ;;  %v3737_v62 = vld [vmem:[%s16299_s26 + $0x119] sm:$0xff]  ;;  %v3738_v13 = vld [vmem:[%s16299_s26 + $0x121] sm:$0xff] }
 0x1c4   : > { %v1227_v51 = vadd.f32 %v1195_v2, %v1128_v50  ;;  %v1769_v44 = vadd.f32 %v1737_v58, %v1646_v12  ;;  %v14339_v0 = vpop.f32.mrb[42].mxu1  ;;  %v14365_v18 = vpop.f32.mrb[26].mxu0  ;;  %v3769_v22 = vmul.f32 %v3737_v62, %v17058_v28  ;;  %v3770_v30 = vmul.f32 %v3738_v13, %v17056_v52  ;;  %v1743_v50 = vld [vmem:[#allocation4 + $0x90] sm:$0xff]  ;;  %v1202_v14 = vld [vmem:[#allocation4 + $0xd8] sm:$0xff] }
 0x1c5   : > { %1261 = vst.msk [vmem:[#allocation4 + $0xb0] sm:$0xff] %vm880_vm1, %v1229_v56  ;;  %1803 = vst.msk [vmem:[#allocation4 + $0x70] sm:$0xff] %vm880_vm1, %v1771_v23  ;;  %v1230_v61 = vadd.f32 %v14339_v0, %v1198_v40  ;;  %v1772_v9 = vadd.f32 %v14365_v18, %v1740_v32  ;;  %v1131_v17 = vpop.f32.mrb[43].mxu1  ;;  %v1649_v16 = vpop.f32.mrb[27].mxu0  ;;  %v1201_v56 = vld [vmem:[#allocation4 + $0xd0] sm:$0xff]  ;;  %v1741_v0 = vld [vmem:[#allocation4 + $0x80] sm:$0xff] }
 0x1c6   : > { %1259 = vst.msk [vmem:[#allocation4 + $0xa0] sm:$0xff] %vm880_vm1, %v1227_v51  ;;  %1801 = vst.msk [vmem:[#allocation4 + $0x60] sm:$0xff] %vm880_vm1, %v1769_v44  ;;  %v1228_v39 = vadd.f32 %v1196_v60, %v1131_v17  ;;  %v1770_v8 = vadd.f32 %v1738_v37, %v1649_v16  ;;  %v1199_v51 = vld [vmem:[#allocation4 + $0xc0] sm:$0xff]  ;;  %v1200_v16 = vld [vmem:[#allocation4 + $0xc8] sm:$0xff]  ;;  %v21244_v13 = vmov 0  }
 0x1c7   : > { %1262 = vst.msk [vmem:[#allocation4 + $0xb8] sm:$0xff] %vm880_vm1, %v1230_v61  ;;  %1804 = vst.msk [vmem:[#allocation4 + $0x78] sm:$0xff] %vm880_vm1, %v1772_v9  ;;  %14579 = vmatmul.mubr.msk.bf16.gmra.mrb[132].mxu0 %vm666_vm2, %v3784_v21  ;;  %v1744_v61 = vld [vmem:[#allocation4 + $0x98] sm:$0xff]  ;;  %v1742_v21 = vld [vmem:[#allocation4 + $0x88] sm:$0xff] }
 0x1c8   : > { %1260 = vst.msk [vmem:[#allocation4 + $0xa8] sm:$0xff] %vm880_vm1, %v1228_v39  ;;  %1802 = vst.msk [vmem:[#allocation4 + $0x68] sm:$0xff] %vm880_vm1, %v1770_v8  ;;  %14582 = vmatprep.mubr.msk.bf16.mxu0 %vm666_vm2, %v21243_v1  ;;  %v3786_v39 = vpack.c.bf16 %v3770_v30, %v3769_v22  ;;  %v1205_v22 = vld [vmem:[#allocation4 + $0xf0] sm:$0xff] }
 0x1ca   : > { %v14342_v5 = vpop.f32.mrb[44].mxu1  ;;  %v14368_v23 = vpop.f32.mrb[28].mxu0 }
 0x1cb   : > { %v1233_v2 = vadd.f32 %v14342_v5, %v1201_v56  ;;  %v1775_v12 = vadd.f32 %v14368_v23, %v1743_v50  ;;  %v1144_v58 = vpop.f32.mrb[45].mxu1  ;;  %v1662_v44 = vpop.f32.mrb[29].mxu0 }
 0x1cc   : > { %v1231_v40 = vadd.f32 %v1199_v51, %v1144_v58  ;;  %v1773_v18 = vadd.f32 %v1741_v0, %v1662_v44  ;;  %v14343_v32 = vpop.f32.mrb[46].mxu1  ;;  %v14369_v36 = vpop.f32.mrb[30].mxu0  ;;  %v1747_v5 = vld [vmem:[#allocation4 + $0xb0] sm:$0xff] }
 0x1cd   : > { %1265 = vst.msk [vmem:[#allocation4 + $0xd0] sm:$0xff] %vm880_vm1, %v1233_v2  ;;  %1807 = vst.msk [vmem:[#allocation4 + $0x90] sm:$0xff] %vm880_vm1, %v1775_v12  ;;  %v1234_v9 = vadd.f32 %v14343_v32, %v1202_v14  ;;  %v1776_v17 = vadd.f32 %v14369_v36, %v1744_v61  ;;  %v1147_v60 = vpop.f32.mrb[47].mxu1  ;;  %v1665_v37 = vpop.f32.mrb[31].mxu0  ;;  %v1203_v2 = vld [vmem:[#allocation4 + $0xe0] sm:$0xff] }
 0x1ce   : > { %1263 = vst.msk [vmem:[#allocation4 + $0xc0] sm:$0xff] %vm880_vm1, %v1231_v40  ;;  %1805 = vst.msk [vmem:[#allocation4 + $0x80] sm:$0xff] %vm880_vm1, %v1773_v18  ;;  %v1232_v8 = vadd.f32 %v1200_v16, %v1147_v60  ;;  %v1774_v62 = vadd.f32 %v1742_v21, %v1665_v37  ;;  %v1745_v58 = vld [vmem:[#allocation4 + $0xa0] sm:$0xff]  ;;  %v1206_v40 = vld [vmem:[#allocation4 + $0xf8] sm:$0xff] }
 0x1cf   : > { %1266 = vst.msk [vmem:[#allocation4 + $0xd8] sm:$0xff] %vm880_vm1, %v1234_v9  ;;  %1808 = vst.msk [vmem:[#allocation4 + $0x98] sm:$0xff] %vm880_vm1, %v1776_v17  ;;  %14583 = vmatmul.mubr.msk.bf16.gmra.mrb[136].mxu0 %vm666_vm2, %v3786_v39  ;;  %v1748_v32 = vld [vmem:[#allocation4 + $0xb8] sm:$0xff]  ;;  %v1204_v9 = vld [vmem:[#allocation4 + $0xe8] sm:$0xff] }
 0x1d0   : > { %1264 = vst.msk [vmem:[#allocation4 + $0xc8] sm:$0xff] %vm880_vm1, %v1232_v8  ;;  %1806 = vst.msk [vmem:[#allocation4 + $0x88] sm:$0xff] %vm880_vm1, %v1774_v62  ;;  %9152 = vmatprep.mubr.bf16.mxu0 %v21244_v13  ;;  %v1746_v60 = vld [vmem:[#allocation4 + $0xa8] sm:$0xff]  ;;  %v2117_v62 = vld [vmem:[#allocation4 + $0x10] sm:$0xff] }
 0x1d2   : > { %v14346_v1 = vpop.f32.mrb[48].mxu1  ;;  %v14372_v30 = vpop.f32.mrb[32].mxu0 }
 0x1d3   : > { %v1237_v56 = vadd.f32 %v14346_v1, %v1205_v22  ;;  %v1779_v23 = vadd.f32 %v14372_v30, %v1747_v5  ;;  %v1160_v50 = vpop.f32.mrb[49].mxu1  ;;  %v1678_v12 = vpop.f32.mrb[33].mxu0 }
 0x1d4   : > { %v1235_v51 = vadd.f32 %v1203_v2, %v1160_v50  ;;  %v1777_v44 = vadd.f32 %v1745_v58, %v1678_v12  ;;  %v14347_v0 = vpop.f32.mrb[50].mxu1  ;;  %v14373_v18 = vpop.f32.mrb[34].mxu0  ;;  %v1751_v39 = vld [vmem:[#allocation4 + $0xd0] sm:$0xff] }
 0x1d5   : > { %1269 = vst.msk [vmem:[#allocation4 + $0xf0] sm:$0xff] %vm880_vm1, %v1237_v56  ;;  %1811 = vst.msk [vmem:[#allocation4 + $0xb0] sm:$0xff] %vm880_vm1, %v1779_v23  ;;  %v1238_v14 = vadd.f32 %v14347_v0, %v1206_v40  ;;  %v1780_v36 = vadd.f32 %v14373_v18, %v1748_v32  ;;  %v1163_v61 = vpop.f32.mrb[51].mxu1  ;;  %v1681_v17 = vpop.f32.mrb[35].mxu0  ;;  %v1749_v5 = vld [vmem:[#allocation4 + $0xc0] sm:$0xff] }
 0x1d6   : > { %1267 = vst.msk [vmem:[#allocation4 + $0xe0] sm:$0xff] %vm880_vm1, %v1235_v51  ;;  %1809 = vst.msk [vmem:[#allocation4 + $0xa0] sm:$0xff] %vm880_vm1, %v1777_v44  ;;  %v1236_v16 = vadd.f32 %v1204_v9, %v1163_v61  ;;  %v1778_v37 = vadd.f32 %v1746_v60, %v1681_v17  ;;  %v2115_v23 = vld [vmem:[#allocation4] sm:$0xff]  ;;  %v1752_v58 = vld [vmem:[#allocation4 + $0xd8] sm:$0xff] }
 0x1d7   : > { %1270 = vst.msk [vmem:[#allocation4 + $0xf8] sm:$0xff] %vm880_vm1, %v1238_v14  ;;  %1812 = vst.msk [vmem:[#allocation4 + $0xb8] sm:$0xff] %vm880_vm1, %v1780_v36  ;;  %v2118_v44 = vld [vmem:[#allocation4 + $0x18] sm:$0xff]  ;;  %v1750_v32 = vld [vmem:[#allocation4 + $0xc8] sm:$0xff] }
 0x1d8   : > { %1268 = vst.msk [vmem:[#allocation4 + $0xe8] sm:$0xff] %vm880_vm1, %v1236_v16  ;;  %1810 = vst.msk [vmem:[#allocation4 + $0xa8] sm:$0xff] %vm880_vm1, %v1778_v37  ;;  %v2116_v36 = vld [vmem:[#allocation4 + $0x8] sm:$0xff]  ;;  %v2121_v37 = vld [vmem:[#allocation4 + $0x30] sm:$0xff] }
 0x1da   : > { %v14376_v21 = vpop.f32.mrb[36].mxu0  ;;  %v14386_v8 = vpop.f32.mrb[52].mxu1 }
 0x1db   : > { %v1783_v1 = vadd.f32 %v14376_v21, %v1751_v39  ;;  %v2149_v22 = vadd.f32 %v14386_v8, %v2117_v62  ;;  %v1694_v30 = vpop.f32.mrb[37].mxu0  ;;  %v1988_v56 = vpop.f32.mrb[53].mxu1 }
 0x1dc   : > { %v1781_v50 = vadd.f32 %v1749_v5, %v1694_v30  ;;  %v2147_v2 = vadd.f32 %v2115_v23, %v1988_v56  ;;  %v14377_v12 = vpop.f32.mrb[38].mxu0  ;;  %v14387_v51 = vpop.f32.mrb[54].mxu1  ;;  %v1755_v60 = vld [vmem:[#allocation4 + $0xf0] sm:$0xff] }
 0x1dd   : > { %1815 = vst.msk [vmem:[#allocation4 + $0xd0] sm:$0xff] %vm880_vm1, %v1783_v1  ;;  %2181 = vst.msk [vmem:[#allocation4 + $0x10] sm:$0xff] %vm880_vm1, %v2149_v22  ;;  %v1784_v0 = vadd.f32 %v14377_v12, %v1752_v58  ;;  %v2150_v40 = vadd.f32 %v14387_v51, %v2118_v44  ;;  %v1697_v18 = vpop.f32.mrb[39].mxu0  ;;  %v1991_v14 = vpop.f32.mrb[55].mxu1  ;;  %v1753_v62 = vld [vmem:[#allocation4 + $0xe0] sm:$0xff] }
 0x1de   : > { %1813 = vst.msk [vmem:[#allocation4 + $0xc0] sm:$0xff] %vm880_vm1, %v1781_v50  ;;  %2179 = vst.msk [vmem:[#allocation4] sm:$0xff] %vm880_vm1, %v2147_v2  ;;  %v1782_v61 = vadd.f32 %v1750_v32, %v1697_v18  ;;  %v2148_v9 = vadd.f32 %v2116_v36, %v1991_v14  ;;  %v2119_v22 = vld [vmem:[#allocation4 + $0x20] sm:$0xff]  ;;  %v1756_v23 = vld [vmem:[#allocation4 + $0xf8] sm:$0xff] }
 0x1df   : > { %1816 = vst.msk [vmem:[#allocation4 + $0xd8] sm:$0xff] %vm880_vm1, %v1784_v0  ;;  %2182 = vst.msk [vmem:[#allocation4 + $0x18] sm:$0xff] %vm880_vm1, %v2150_v40  ;;  %v2122_v2 = vld [vmem:[#allocation4 + $0x38] sm:$0xff]  ;;  %v1754_v44 = vld [vmem:[#allocation4 + $0xe8] sm:$0xff] }
 0x1e0   : > { %1814 = vst.msk [vmem:[#allocation4 + $0xc8] sm:$0xff] %vm880_vm1, %v1782_v61  ;;  %2180 = vst.msk [vmem:[#allocation4 + $0x8] sm:$0xff] %vm880_vm1, %v2148_v9  ;;  %v2120_v40 = vld [vmem:[#allocation4 + $0x28] sm:$0xff]  ;;  %v2125_v36 = vld [vmem:[#allocation4 + $0x50] sm:$0xff] }
 0x1e2   : > { %v14380_v17 = vpop.f32.mrb[40].mxu0  ;;  %v14390_v16 = vpop.f32.mrb[56].mxu1 }
 0x1e3   : > { %v1787_v21 = vadd.f32 %v14380_v17, %v1755_v60  ;;  %v2153_v39 = vadd.f32 %v14390_v16, %v2121_v37  ;;  %v1710_v8 = vpop.f32.mrb[41].mxu0  ;;  %v2004_v1 = vpop.f32.mrb[57].mxu1  ;;  %v2123_v37 = vld [vmem:[#allocation4 + $0x40] sm:$0xff] }
 0x1e4   : > { %v1785_v30 = vadd.f32 %v1753_v62, %v1710_v8  ;;  %v2151_v5 = vadd.f32 %v2119_v22, %v2004_v1  ;;  %v14381_v56 = vpop.f32.mrb[42].mxu0  ;;  %v14391_v50 = vpop.f32.mrb[58].mxu1  ;;  %v2475_v9 = vld [vmem:[#allocation4 + $0x10] sm:$0xff]  ;;  %v2126_v22 = vld [vmem:[#allocation4 + $0x58] sm:$0xff] }
 0x1e5   : > { %1819 = vst.msk [vmem:[#allocation4 + $0xf0] sm:$0xff] %vm880_vm1, %v1787_v21  ;;  %2185 = vst.msk [vmem:[#allocation4 + $0x30] sm:$0xff] %vm880_vm1, %v2153_v39  ;;  %v1788_v12 = vadd.f32 %v14381_v56, %v1756_v23  ;;  %v2154_v58 = vadd.f32 %v14391_v50, %v2122_v2  ;;  %v1713_v51 = vpop.f32.mrb[43].mxu0  ;;  %v2007_v0 = vpop.f32.mrb[59].mxu1  ;;  %v2473_v39 = vld [vmem:[#allocation4] sm:$0xff]  ;;  %v2124_v2 = vld [vmem:[#allocation4 + $0x48] sm:$0xff] }
 0x1e6   : > { %1817 = vst.msk [vmem:[#allocation4 + $0xe0] sm:$0xff] %vm880_vm1, %v1785_v30  ;;  %2183 = vst.msk [vmem:[#allocation4 + $0x20] sm:$0xff] %vm880_vm1, %v2151_v5  ;;  %v1786_v18 = vadd.f32 %v1754_v44, %v1713_v51  ;;  %v2152_v32 = vadd.f32 %v2120_v40, %v2007_v0  ;;  %v2476_v5 = vld [vmem:[#allocation4 + $0x18] sm:$0xff]  ;;  %v2129_v40 = vld [vmem:[#allocation4 + $0x70] sm:$0xff] }
 0x1e7   : > { %1820 = vst.msk [vmem:[#allocation4 + $0xf8] sm:$0xff] %vm880_vm1, %v1788_v12  ;;  %2186 = vst.msk [vmem:[#allocation4 + $0x38] sm:$0xff] %vm880_vm1, %v2154_v58  ;;  %v2474_v58 = vld [vmem:[#allocation4 + $0x8] sm:$0xff] }
 0x1e8   : > { %1818 = vst.msk [vmem:[#allocation4 + $0xe8] sm:$0xff] %vm880_vm1, %v1786_v18  ;;  %2184 = vst.msk [vmem:[#allocation4 + $0x28] sm:$0xff] %vm880_vm1, %v2152_v32 }
 0x1ea   : > { %v14394_v14 = vpop.f32.mrb[60].mxu1  ;;  %v14420_v61 = vpop.f32.mrb[44].mxu0 }
 0x1eb   : > { %v2157_v17 = vadd.f32 %v14394_v14, %v2125_v36  ;;  %v2507_v60 = vadd.f32 %v14420_v61, %v2475_v9  ;;  %v2020_v16 = vpop.f32.mrb[61].mxu1  ;;  %v2346_v21 = vpop.f32.mrb[45].mxu0  ;;  %v2127_v9 = vld [vmem:[#allocation4 + $0x60] sm:$0xff] }
 0x1ec   : > { %v2155_v8 = vadd.f32 %v2123_v37, %v2020_v16  ;;  %v2505_v62 = vadd.f32 %v2473_v39, %v2346_v21  ;;  %v14395_v1 = vpop.f32.mrb[62].mxu1  ;;  %v14421_v30 = vpop.f32.mrb[46].mxu0  ;;  %v2479_v32 = vld [vmem:[#allocation4 + $0x30] sm:$0xff]  ;;  %v2130_v39 = vld [vmem:[#allocation4 + $0x78] sm:$0xff] }
 0x1ed   : > { %2189 = vst.msk [vmem:[#allocation4 + $0x50] sm:$0xff] %vm880_vm1, %v2157_v17  ;;  %2539 = vst.msk [vmem:[#allocation4 + $0x10] sm:$0xff] %vm880_vm1, %v2507_v60  ;;  %v2158_v56 = vadd.f32 %v14395_v1, %v2126_v22  ;;  %v2508_v23 = vadd.f32 %v14421_v30, %v2476_v5  ;;  %v2023_v50 = vpop.f32.mrb[63].mxu1  ;;  %v2349_v12 = vpop.f32.mrb[47].mxu0  ;;  %v2477_v60 = vld [vmem:[#allocation4 + $0x20] sm:$0xff]  ;;  %v2128_v5 = vld [vmem:[#allocation4 + $0x68] sm:$0xff] }
 0x1ee   : > { %2187 = vst.msk [vmem:[#allocation4 + $0x40] sm:$0xff] %vm880_vm1, %v2155_v8  ;;  %2537 = vst.msk [vmem:[#allocation4] sm:$0xff] %vm880_vm1, %v2505_v62  ;;  %v2156_v51 = vadd.f32 %v2124_v2, %v2023_v50  ;;  %v2506_v44 = vadd.f32 %v2474_v58, %v2349_v12  ;;  %v2480_v62 = vld [vmem:[#allocation4 + $0x38] sm:$0xff]  ;;  %v15739_v12 = vld [vmem:[%s20600_s3] sm:$0xff]  }
 0x1ef   : > { %2190 = vst.msk [vmem:[#allocation4 + $0x58] sm:$0xff] %vm880_vm1, %v2158_v56  ;;  %2540 = vst.msk [vmem:[#allocation4 + $0x18] sm:$0xff] %vm880_vm1, %v2508_v23  ;;  %v2478_v23 = vld [vmem:[#allocation4 + $0x28] sm:$0xff]  ;;  %14586 = vmatprep.subr.bf16.mxu1 %v15739_v12 }
 0x1f0   : > { %2188 = vst.msk [vmem:[#allocation4 + $0x48] sm:$0xff] %vm880_vm1, %v2156_v51  ;;  %2538 = vst.msk [vmem:[#allocation4 + $0x8] sm:$0xff] %vm880_vm1, %v2506_v44  ;;  %v2133_v51 = vld [vmem:[#allocation4 + $0x90] sm:$0xff]  ;;  %14587 = vmatpush3.bf16.msra.mxu1 %v15739_v12 }
 0x1f1   : > { %v2137_v12 = vld [vmem:[#allocation4 + $0xb0] sm:$0xff] }
 0x1f2   : > { %v14398_v0 = vpop.f32.mrb[64].mxu1  ;;  %v14424_v18 = vpop.f32.mrb[48].mxu0 }
 0x1f3   : > { %v2161_v14 = vadd.f32 %v14398_v0, %v2129_v40  ;;  %v2511_v36 = vadd.f32 %v14424_v18, %v2479_v32  ;;  %v2036_v61 = vpop.f32.mrb[65].mxu1  ;;  %v2362_v17 = vpop.f32.mrb[49].mxu0 }
 0x1f4   : > { %v2159_v16 = vadd.f32 %v2127_v9, %v2036_v61  ;;  %v2509_v37 = vadd.f32 %v2477_v60, %v2362_v17  ;;  %v14399_v21 = vpop.f32.mrb[66].mxu1  ;;  %v14425_v8 = vpop.f32.mrb[50].mxu0  ;;  %v2483_v0 = vld [vmem:[#allocation4 + $0x50] sm:$0xff]  ;;  %v15740_v9 = vld [vmem:[%s20600_s3 + $0x8] sm:$0xff]  }
 0x1f5   : > { %2193 = vst.msk [vmem:[#allocation4 + $0x70] sm:$0xff] %vm880_vm1, %v2161_v14  ;;  %2543 = vst.msk [vmem:[#allocation4 + $0x30] sm:$0xff] %vm880_vm1, %v2511_v36  ;;  %v2162_v1 = vadd.f32 %v14399_v21, %v2130_v39  ;;  %v2512_v22 = vadd.f32 %v14425_v8, %v2480_v62  ;;  %v2039_v30 = vpop.f32.mrb[67].mxu1  ;;  %v2365_v56 = vpop.f32.mrb[51].mxu0  ;;  %v2131_v14 = vld [vmem:[#allocation4 + $0x80] sm:$0xff]  ;;  %14588 = vmatprep.subr.bf16.mxu1 %v15740_v9 }
 0x1f6   : > { %2191 = vst.msk [vmem:[#allocation4 + $0x60] sm:$0xff] %vm880_vm1, %v2159_v16  ;;  %2541 = vst.msk [vmem:[#allocation4 + $0x20] sm:$0xff] %vm880_vm1, %v2509_v37  ;;  %v2160_v50 = vadd.f32 %v2128_v5, %v2039_v30  ;;  %v2510_v2 = vadd.f32 %v2478_v23, %v2365_v56  ;;  %v2481_v61 = vld [vmem:[#allocation4 + $0x40] sm:$0xff]  ;;  %v2134_v37 = vld [vmem:[#allocation4 + $0x98] sm:$0xff]  ;;  %14589 = vmatpush3.bf16.msra.mxu1 %v15740_v9 }
 0x1f7   : > { %2194 = vst.msk [vmem:[#allocation4 + $0x78] sm:$0xff] %vm880_vm1, %v2162_v1  ;;  %2544 = vst.msk [vmem:[#allocation4 + $0x38] sm:$0xff] %vm880_vm1, %v2512_v22  ;;  %v2484_v39 = vld [vmem:[#allocation4 + $0x58] sm:$0xff]  ;;  %v2132_v22 = vld [vmem:[#allocation4 + $0x88] sm:$0xff] }
 0x1f8   : > { %2192 = vst.msk [vmem:[#allocation4 + $0x68] sm:$0xff] %vm880_vm1, %v2160_v50  ;;  %2542 = vst.msk [vmem:[#allocation4 + $0x28] sm:$0xff] %vm880_vm1, %v2510_v2  ;;  %v2482_v5 = vld [vmem:[#allocation4 + $0x48] sm:$0xff]  ;;  %v15741_v50 = vld [vmem:[%s20600_s3 + $0x10] sm:$0xff]  }
 0x1f9   : > { %14590 = vmatprep.subr.bf16.mxu1 %v15741_v50 }
 0x1fa   : > { %v14402_v58 = vpop.f32.mrb[68].mxu1  ;;  %v14428_v44 = vpop.f32.mrb[52].mxu0  ;;  %14591 = vmatpush3.bf16.msra.mxu1 %v15741_v50 }
 0x1fb   : > { %v2165_v40 = vadd.f32 %v14402_v58, %v2133_v51  ;;  %v2515_v18 = vadd.f32 %v14428_v44, %v2483_v0  ;;  %v2052_v32 = vpop.f32.mrb[69].mxu1  ;;  %v2378_v36 = vpop.f32.mrb[53].mxu0 }
 0x1fc   : > { %v2163_v17 = vadd.f32 %v2131_v14, %v2052_v32  ;;  %v2513_v60 = vadd.f32 %v2481_v61, %v2378_v36  ;;  %v14403_v16 = vpop.f32.mrb[70].mxu1  ;;  %v14429_v21 = vpop.f32.mrb[54].mxu0  ;;  %v2487_v51 = vld [vmem:[#allocation4 + $0x70] sm:$0xff]  ;;  %v15742_v36 = vld [vmem:[%s20600_s3 + $0x18] sm:$0xff]  }
 0x1fd   : > { %2197 = vst.msk [vmem:[#allocation4 + $0x90] sm:$0xff] %vm880_vm1, %v2165_v40  ;;  %2547 = vst.msk [vmem:[#allocation4 + $0x50] sm:$0xff] %vm880_vm1, %v2515_v18  ;;  %v2166_v8 = vadd.f32 %v14403_v16, %v2134_v37  ;;  %v2516_v62 = vadd.f32 %v14429_v21, %v2484_v39  ;;  %v2055_v1 = vpop.f32.mrb[71].mxu1  ;;  %v2381_v30 = vpop.f32.mrb[55].mxu0  ;;  %v2135_v18 = vld [vmem:[#allocation4 + $0xa0] sm:$0xff]  ;;  %14592 = vmatprep.subr.bf16.mxu1 %v15742_v36 }
 0x1fe   : > { %2195 = vst.msk [vmem:[#allocation4 + $0x80] sm:$0xff] %vm880_vm1, %v2163_v17  ;;  %2545 = vst.msk [vmem:[#allocation4 + $0x40] sm:$0xff] %vm880_vm1, %v2513_v60  ;;  %v2164_v56 = vadd.f32 %v2132_v22, %v2055_v1  ;;  %v2514_v23 = vadd.f32 %v2482_v5, %v2381_v30  ;;  %v2485_v14 = vld [vmem:[#allocation4 + $0x60] sm:$0xff]  ;;  %v2138_v60 = vld [vmem:[#allocation4 + $0xb8] sm:$0xff]  ;;  %14593 = vmatpush3.bf16.msra.mxu1 %v15742_v36 }
 0x1ff   : > { %2198 = vst.msk [vmem:[#allocation4 + $0x98] sm:$0xff] %vm880_vm1, %v2166_v8  ;;  %2548 = vst.msk [vmem:[#allocation4 + $0x58] sm:$0xff] %vm880_vm1, %v2516_v62  ;;  %v2488_v37 = vld [vmem:[#allocation4 + $0x78] sm:$0xff]  ;;  %v2136_v62 = vld [vmem:[#allocation4 + $0xa8] sm:$0xff] }
 0x200   : > { %2196 = vst.msk [vmem:[#allocation4 + $0x88] sm:$0xff] %vm880_vm1, %v2164_v56  ;;  %2546 = vst.msk [vmem:[#allocation4 + $0x48] sm:$0xff] %vm880_vm1, %v2514_v23  ;;  %v2486_v22 = vld [vmem:[#allocation4 + $0x68] sm:$0xff]  ;;  %v2141_v23 = vld [vmem:[#allocation4 + $0xd0] sm:$0xff] }
 0x201   : > { %v2142_v36 = vld [vmem:[#allocation4 + $0xd8] sm:$0xff] }
 0x202   : > { %v14406_v2 = vpop.f32.mrb[72].mxu1  ;;  %v14432_v58 = vpop.f32.mrb[56].mxu0 }
 0x203   : > { %v2169_v44 = vadd.f32 %v14406_v2, %v2137_v12  ;;  %v2519_v0 = vadd.f32 %v14432_v58, %v2487_v51  ;;  %v2068_v40 = vpop.f32.mrb[73].mxu1  ;;  %v2394_v32 = vpop.f32.mrb[57].mxu0 }
 0x204   : > { %v2167_v61 = vadd.f32 %v2135_v18, %v2068_v40  ;;  %v2517_v9 = vadd.f32 %v2485_v14, %v2394_v32  ;;  %v14407_v17 = vpop.f32.mrb[74].mxu1  ;;  %v14433_v16 = vpop.f32.mrb[58].mxu0  ;;  %v2491_v2 = vld [vmem:[#allocation4 + $0x90] sm:$0xff] }
 0x205   : > { %2201 = vst.msk [vmem:[#allocation4 + $0xb0] sm:$0xff] %vm880_vm1, %v2169_v44  ;;  %2551 = vst.msk [vmem:[#allocation4 + $0x70] sm:$0xff] %vm880_vm1, %v2519_v0  ;;  %v2170_v21 = vadd.f32 %v14407_v17, %v2138_v60  ;;  %v2520_v39 = vadd.f32 %v14433_v16, %v2488_v37  ;;  %v2071_v8 = vpop.f32.mrb[75].mxu1  ;;  %v2397_v1 = vpop.f32.mrb[59].mxu0  ;;  %v2139_v44 = vld [vmem:[#allocation4 + $0xc0] sm:$0xff]  ;;  %v2140_v37 = vld [vmem:[#allocation4 + $0xc8] sm:$0xff] }
 0x206   : > { %2199 = vst.msk [vmem:[#allocation4 + $0xa0] sm:$0xff] %vm880_vm1, %v2167_v61  ;;  %2549 = vst.msk [vmem:[#allocation4 + $0x60] sm:$0xff] %vm880_vm1, %v2517_v9  ;;  %v2168_v30 = vadd.f32 %v2136_v62, %v2071_v8  ;;  %v2518_v5 = vadd.f32 %v2486_v22, %v2397_v1  ;;  %v2489_v40 = vld [vmem:[#allocation4 + $0x80] sm:$0xff]  ;;  %v2492_v9 = vld [vmem:[#allocation4 + $0x98] sm:$0xff] }
 0x207   : > { %2202 = vst.msk [vmem:[#allocation4 + $0xb8] sm:$0xff] %vm880_vm1, %v2170_v21  ;;  %2552 = vst.msk [vmem:[#allocation4 + $0x78] sm:$0xff] %vm880_vm1, %v2520_v39  ;;  %v2490_v39 = vld [vmem:[#allocation4 + $0x88] sm:$0xff]  ;;  %v2145_v22 = vld [vmem:[#allocation4 + $0xf0] sm:$0xff] }
 0x208   : > { %2200 = vst.msk [vmem:[#allocation4 + $0xa8] sm:$0xff] %vm880_vm1, %v2168_v30  ;;  %2550 = vst.msk [vmem:[#allocation4 + $0x68] sm:$0xff] %vm880_vm1, %v2518_v5 }
 0x20a   : > { %v14410_v56 = vpop.f32.mrb[76].mxu1  ;;  %v14436_v50 = vpop.f32.mrb[60].mxu0 }
 0x20b   : > { %v2173_v12 = vadd.f32 %v14410_v56, %v2141_v23  ;;  %v2523_v58 = vadd.f32 %v14436_v50, %v2491_v2  ;;  %v2084_v51 = vpop.f32.mrb[77].mxu1  ;;  %v2410_v0 = vpop.f32.mrb[61].mxu0  ;;  %v2143_v2 = vld [vmem:[#allocation4 + $0xe0] sm:$0xff] }
 0x20c   : > { %v2171_v18 = vadd.f32 %v2139_v44, %v2084_v51  ;;  %v2521_v32 = vadd.f32 %v2489_v40, %v2410_v0  ;;  %v14411_v14 = vpop.f32.mrb[78].mxu1  ;;  %v14437_v61 = vpop.f32.mrb[62].mxu0  ;;  %v2495_v5 = vld [vmem:[#allocation4 + $0xb0] sm:$0xff]  ;;  %v2146_v40 = vld [vmem:[#allocation4 + $0xf8] sm:$0xff] }
 0x20d   : > { %2205 = vst.msk [vmem:[#allocation4 + $0xd0] sm:$0xff] %vm880_vm1, %v2173_v12  ;;  %2555 = vst.msk [vmem:[#allocation4 + $0x90] sm:$0xff] %vm880_vm1, %v2523_v58  ;;  %v2174_v17 = vadd.f32 %v14411_v14, %v2142_v36  ;;  %v2524_v60 = vadd.f32 %v14437_v61, %v2492_v9  ;;  %v2087_v16 = vpop.f32.mrb[79].mxu1  ;;  %v2413_v21 = vpop.f32.mrb[63].mxu0  ;;  %v2493_v58 = vld [vmem:[#allocation4 + $0xa0] sm:$0xff]  ;;  %v2144_v9 = vld [vmem:[#allocation4 + $0xe8] sm:$0xff] }
 0x20e   : > { %2203 = vst.msk [vmem:[#allocation4 + $0xc0] sm:$0xff] %vm880_vm1, %v2171_v18  ;;  %2553 = vst.msk [vmem:[#allocation4 + $0x80] sm:$0xff] %vm880_vm1, %v2521_v32  ;;  %v2172_v8 = vadd.f32 %v2140_v37, %v2087_v16  ;;  %v2522_v62 = vadd.f32 %v2490_v39, %v2413_v21  ;;  %v2496_v32 = vld [vmem:[#allocation4 + $0xb8] sm:$0xff] }
 0x20f   : > { %2206 = vst.msk [vmem:[#allocation4 + $0xd8] sm:$0xff] %vm880_vm1, %v2174_v17  ;;  %2556 = vst.msk [vmem:[#allocation4 + $0x98] sm:$0xff] %vm880_vm1, %v2524_v60  ;;  %v2494_v60 = vld [vmem:[#allocation4 + $0xa8] sm:$0xff] }
 0x210   : > { %2204 = vst.msk [vmem:[#allocation4 + $0xc8] sm:$0xff] %vm880_vm1, %v2172_v8  ;;  %2554 = vst.msk [vmem:[#allocation4 + $0x88] sm:$0xff] %vm880_vm1, %v2522_v62  ;;  %v2865_v62 = vld [vmem:[#allocation4 + $0x10] sm:$0xff] }
 0x212   : > { %v14414_v1 = vpop.f32.mrb[80].mxu1  ;;  %v14440_v30 = vpop.f32.mrb[64].mxu0 }
 0x213   : > { %v2177_v56 = vadd.f32 %v14414_v1, %v2145_v22  ;;  %v2527_v23 = vadd.f32 %v14440_v30, %v2495_v5  ;;  %v2100_v50 = vpop.f32.mrb[81].mxu1  ;;  %v2426_v12 = vpop.f32.mrb[65].mxu0 }
 0x214   : > { %v2175_v51 = vadd.f32 %v2143_v2, %v2100_v50  ;;  %v2525_v44 = vadd.f32 %v2493_v58, %v2426_v12  ;;  %v14415_v0 = vpop.f32.mrb[82].mxu1  ;;  %v14441_v18 = vpop.f32.mrb[66].mxu0  ;;  %v2499_v39 = vld [vmem:[#allocation4 + $0xd0] sm:$0xff] }
 0x215   : > { %2209 = vst.msk [vmem:[#allocation4 + $0xf0] sm:$0xff] %vm880_vm1, %v2177_v56  ;;  %2559 = vst.msk [vmem:[#allocation4 + $0xb0] sm:$0xff] %vm880_vm1, %v2527_v23  ;;  %v2178_v14 = vadd.f32 %v14415_v0, %v2146_v40  ;;  %v2528_v36 = vadd.f32 %v14441_v18, %v2496_v32  ;;  %v2103_v61 = vpop.f32.mrb[83].mxu1  ;;  %v2429_v17 = vpop.f32.mrb[67].mxu0  ;;  %v2497_v5 = vld [vmem:[#allocation4 + $0xc0] sm:$0xff] }
 0x216   : > { %2207 = vst.msk [vmem:[#allocation4 + $0xe0] sm:$0xff] %vm880_vm1, %v2175_v51  ;;  %2557 = vst.msk [vmem:[#allocation4 + $0xa0] sm:$0xff] %vm880_vm1, %v2525_v44  ;;  %v2176_v16 = vadd.f32 %v2144_v9, %v2103_v61  ;;  %v2526_v37 = vadd.f32 %v2494_v60, %v2429_v17  ;;  %v2863_v23 = vld [vmem:[#allocation4] sm:$0xff]  ;;  %v2500_v58 = vld [vmem:[#allocation4 + $0xd8] sm:$0xff] }
 0x217   : > { %2210 = vst.msk [vmem:[#allocation4 + $0xf8] sm:$0xff] %vm880_vm1, %v2178_v14  ;;  %2560 = vst.msk [vmem:[#allocation4 + $0xb8] sm:$0xff] %vm880_vm1, %v2528_v36  ;;  %v2866_v44 = vld [vmem:[#allocation4 + $0x18] sm:$0xff]  ;;  %v2498_v32 = vld [vmem:[#allocation4 + $0xc8] sm:$0xff] }
 0x218   : > { %2208 = vst.msk [vmem:[#allocation4 + $0xe8] sm:$0xff] %vm880_vm1, %v2176_v16  ;;  %2558 = vst.msk [vmem:[#allocation4 + $0xa8] sm:$0xff] %vm880_vm1, %v2526_v37  ;;  %v2864_v36 = vld [vmem:[#allocation4 + $0x8] sm:$0xff]  ;;  %v2869_v37 = vld [vmem:[#allocation4 + $0x30] sm:$0xff] }
 0x21a   : > { %v14444_v21 = vpop.f32.mrb[68].mxu0  ;;  %v14454_v8 = vpop.f32.mrb[84].mxu1 }
 0x21b   : > { %v2531_v1 = vadd.f32 %v14444_v21, %v2499_v39  ;;  %v2897_v22 = vadd.f32 %v14454_v8, %v2865_v62  ;;  %v2442_v30 = vpop.f32.mrb[69].mxu0  ;;  %v2736_v56 = vpop.f32.mrb[85].mxu1 }
 0x21c   : > { %v2529_v50 = vadd.f32 %v2497_v5, %v2442_v30  ;;  %v2895_v2 = vadd.f32 %v2863_v23, %v2736_v56  ;;  %v14445_v12 = vpop.f32.mrb[70].mxu0  ;;  %v14455_v51 = vpop.f32.mrb[86].mxu1  ;;  %v2503_v60 = vld [vmem:[#allocation4 + $0xf0] sm:$0xff] }
 0x21d   : > { %2563 = vst.msk [vmem:[#allocation4 + $0xd0] sm:$0xff] %vm880_vm1, %v2531_v1  ;;  %2929 = vst.msk [vmem:[#allocation4 + $0x10] sm:$0xff] %vm880_vm1, %v2897_v22  ;;  %v2532_v0 = vadd.f32 %v14445_v12, %v2500_v58  ;;  %v2898_v40 = vadd.f32 %v14455_v51, %v2866_v44  ;;  %v2445_v18 = vpop.f32.mrb[71].mxu0  ;;  %v2739_v14 = vpop.f32.mrb[87].mxu1  ;;  %v2501_v62 = vld [vmem:[#allocation4 + $0xe0] sm:$0xff] }
 0x21e   : > { %2561 = vst.msk [vmem:[#allocation4 + $0xc0] sm:$0xff] %vm880_vm1, %v2529_v50  ;;  %2927 = vst.msk [vmem:[#allocation4] sm:$0xff] %vm880_vm1, %v2895_v2  ;;  %v2530_v61 = vadd.f32 %v2498_v32, %v2445_v18  ;;  %v2896_v9 = vadd.f32 %v2864_v36, %v2739_v14  ;;  %v2867_v22 = vld [vmem:[#allocation4 + $0x20] sm:$0xff]  ;;  %v2504_v23 = vld [vmem:[#allocation4 + $0xf8] sm:$0xff] }
 0x21f   : > { %2564 = vst.msk [vmem:[#allocation4 + $0xd8] sm:$0xff] %vm880_vm1, %v2532_v0  ;;  %2930 = vst.msk [vmem:[#allocation4 + $0x18] sm:$0xff] %vm880_vm1, %v2898_v40  ;;  %v2870_v2 = vld [vmem:[#allocation4 + $0x38] sm:$0xff]  ;;  %v2502_v44 = vld [vmem:[#allocation4 + $0xe8] sm:$0xff] }
 0x220   : > { %2562 = vst.msk [vmem:[#allocation4 + $0xc8] sm:$0xff] %vm880_vm1, %v2530_v61  ;;  %2928 = vst.msk [vmem:[#allocation4 + $0x8] sm:$0xff] %vm880_vm1, %v2896_v9  ;;  %v2868_v40 = vld [vmem:[#allocation4 + $0x28] sm:$0xff]  ;;  %v2873_v36 = vld [vmem:[#allocation4 + $0x50] sm:$0xff] }
 0x222   : > { %v14448_v17 = vpop.f32.mrb[72].mxu0  ;;  %v14458_v16 = vpop.f32.mrb[88].mxu1 }
 0x223   : > { %v2535_v21 = vadd.f32 %v14448_v17, %v2503_v60  ;;  %v2901_v39 = vadd.f32 %v14458_v16, %v2869_v37  ;;  %v2458_v8 = vpop.f32.mrb[73].mxu0  ;;  %v2752_v1 = vpop.f32.mrb[89].mxu1  ;;  %v2871_v37 = vld [vmem:[#allocation4 + $0x40] sm:$0xff] }
 0x224   : > { %v2533_v30 = vadd.f32 %v2501_v62, %v2458_v8  ;;  %v2899_v5 = vadd.f32 %v2867_v22, %v2752_v1  ;;  %v14449_v56 = vpop.f32.mrb[74].mxu0  ;;  %v14459_v50 = vpop.f32.mrb[90].mxu1  ;;  %v3255_v9 = vld [vmem:[#allocation4 + $0x10] sm:$0xff]  ;;  %v2874_v22 = vld [vmem:[#allocation4 + $0x58] sm:$0xff] }
 0x225   : > { %2567 = vst.msk [vmem:[#allocation4 + $0xf0] sm:$0xff] %vm880_vm1, %v2535_v21  ;;  %2933 = vst.msk [vmem:[#allocation4 + $0x30] sm:$0xff] %vm880_vm1, %v2901_v39  ;;  %v2536_v12 = vadd.f32 %v14449_v56, %v2504_v23  ;;  %v2902_v58 = vadd.f32 %v14459_v50, %v2870_v2  ;;  %v2461_v51 = vpop.f32.mrb[75].mxu0  ;;  %v2755_v0 = vpop.f32.mrb[91].mxu1  ;;  %v3253_v39 = vld [vmem:[#allocation4] sm:$0xff]  ;;  %v2872_v2 = vld [vmem:[#allocation4 + $0x48] sm:$0xff] }
 0x226   : > { %2565 = vst.msk [vmem:[#allocation4 + $0xe0] sm:$0xff] %vm880_vm1, %v2533_v30  ;;  %2931 = vst.msk [vmem:[#allocation4 + $0x20] sm:$0xff] %vm880_vm1, %v2899_v5  ;;  %v2534_v18 = vadd.f32 %v2502_v44, %v2461_v51  ;;  %v2900_v32 = vadd.f32 %v2868_v40, %v2755_v0  ;;  %v3256_v5 = vld [vmem:[#allocation4 + $0x18] sm:$0xff]  ;;  %v2877_v40 = vld [vmem:[#allocation4 + $0x70] sm:$0xff] }
 0x227   : > { %2568 = vst.msk [vmem:[#allocation4 + $0xf8] sm:$0xff] %vm880_vm1, %v2536_v12  ;;  %2934 = vst.msk [vmem:[#allocation4 + $0x38] sm:$0xff] %vm880_vm1, %v2902_v58  ;;  %v3254_v58 = vld [vmem:[#allocation4 + $0x8] sm:$0xff] }
 0x228   : > { %2566 = vst.msk [vmem:[#allocation4 + $0xe8] sm:$0xff] %vm880_vm1, %v2534_v18  ;;  %2932 = vst.msk [vmem:[#allocation4 + $0x28] sm:$0xff] %vm880_vm1, %v2900_v32 }
 0x22a   : > { %v14462_v14 = vpop.f32.mrb[92].mxu1  ;;  %v14488_v61 = vpop.f32.mrb[76].mxu0 }
 0x22b   : > { %v2905_v17 = vadd.f32 %v14462_v14, %v2873_v36  ;;  %v3287_v60 = vadd.f32 %v14488_v61, %v3255_v9  ;;  %v2768_v16 = vpop.f32.mrb[93].mxu1  ;;  %v3126_v21 = vpop.f32.mrb[77].mxu0  ;;  %v2875_v9 = vld [vmem:[#allocation4 + $0x60] sm:$0xff] }
 0x22c   : > { %v2903_v8 = vadd.f32 %v2871_v37, %v2768_v16  ;;  %v3285_v62 = vadd.f32 %v3253_v39, %v3126_v21  ;;  %v14463_v1 = vpop.f32.mrb[94].mxu1  ;;  %v14489_v30 = vpop.f32.mrb[78].mxu0  ;;  %v3259_v32 = vld [vmem:[#allocation4 + $0x30] sm:$0xff]  ;;  %v2878_v39 = vld [vmem:[#allocation4 + $0x78] sm:$0xff] }
 0x22d   : > { %2937 = vst.msk [vmem:[#allocation4 + $0x50] sm:$0xff] %vm880_vm1, %v2905_v17  ;;  %3319 = vst.msk [vmem:[#allocation4 + $0x10] sm:$0xff] %vm880_vm1, %v3287_v60  ;;  %v2906_v56 = vadd.f32 %v14463_v1, %v2874_v22  ;;  %v3288_v23 = vadd.f32 %v14489_v30, %v3256_v5  ;;  %v2771_v50 = vpop.f32.mrb[95].mxu1  ;;  %v3129_v12 = vpop.f32.mrb[79].mxu0  ;;  %v3257_v60 = vld [vmem:[#allocation4 + $0x20] sm:$0xff]  ;;  %v2876_v5 = vld [vmem:[#allocation4 + $0x68] sm:$0xff] }
 0x22e   : > { %2935 = vst.msk [vmem:[#allocation4 + $0x40] sm:$0xff] %vm880_vm1, %v2903_v8  ;;  %3317 = vst.msk [vmem:[#allocation4] sm:$0xff] %vm880_vm1, %v3285_v62  ;;  %v2904_v51 = vadd.f32 %v2872_v2, %v2771_v50  ;;  %v3286_v44 = vadd.f32 %v3254_v58, %v3129_v12  ;;  %v3260_v62 = vld [vmem:[#allocation4 + $0x38] sm:$0xff]  ;;  %v17632_v12 = vld [vmem:[%s20600_s3 + $0x20] sm:$0xff]  }
 0x22f   : > { %2938 = vst.msk [vmem:[#allocation4 + $0x58] sm:$0xff] %vm880_vm1, %v2906_v56  ;;  %3320 = vst.msk [vmem:[#allocation4 + $0x18] sm:$0xff] %vm880_vm1, %v3288_v23  ;;  %v3258_v23 = vld [vmem:[#allocation4 + $0x28] sm:$0xff]  ;;  %14626 = vmatprep.subr.bf16.mxu1 %v17632_v12 }
 0x230   : > { %2936 = vst.msk [vmem:[#allocation4 + $0x48] sm:$0xff] %vm880_vm1, %v2904_v51  ;;  %3318 = vst.msk [vmem:[#allocation4 + $0x8] sm:$0xff] %vm880_vm1, %v3286_v44  ;;  %v2881_v51 = vld [vmem:[#allocation4 + $0x90] sm:$0xff] }
 0x232   : > { %v14466_v0 = vpop.f32.mrb[96].mxu1  ;;  %v14492_v18 = vpop.f32.mrb[80].mxu0 }
 0x233   : > { %v2909_v14 = vadd.f32 %v14466_v0, %v2877_v40  ;;  %v3291_v36 = vadd.f32 %v14492_v18, %v3259_v32  ;;  %v2784_v61 = vpop.f32.mrb[97].mxu1  ;;  %v3142_v17 = vpop.f32.mrb[81].mxu0 }
 0x234   : > { %v2907_v16 = vadd.f32 %v2875_v9, %v2784_v61  ;;  %v3289_v37 = vadd.f32 %v3257_v60, %v3142_v17  ;;  %v14467_v21 = vpop.f32.mrb[98].mxu1  ;;  %v14493_v8 = vpop.f32.mrb[82].mxu0  ;;  %v3263_v0 = vld [vmem:[#allocation4 + $0x50] sm:$0xff] }
 0x235   : > { %2941 = vst.msk [vmem:[#allocation4 + $0x70] sm:$0xff] %vm880_vm1, %v2909_v14  ;;  %3323 = vst.msk [vmem:[#allocation4 + $0x30] sm:$0xff] %vm880_vm1, %v3291_v36  ;;  %v2910_v1 = vadd.f32 %v14467_v21, %v2878_v39  ;;  %v3292_v22 = vadd.f32 %v14493_v8, %v3260_v62  ;;  %v2787_v30 = vpop.f32.mrb[99].mxu1  ;;  %v3145_v56 = vpop.f32.mrb[83].mxu0  ;;  %v2879_v14 = vld [vmem:[#allocation4 + $0x80] sm:$0xff] }
 0x236   : > { %2939 = vst.msk [vmem:[#allocation4 + $0x60] sm:$0xff] %vm880_vm1, %v2907_v16  ;;  %3321 = vst.msk [vmem:[#allocation4 + $0x20] sm:$0xff] %vm880_vm1, %v3289_v37  ;;  %v2908_v50 = vadd.f32 %v2876_v5, %v2787_v30  ;;  %v3290_v2 = vadd.f32 %v3258_v23, %v3145_v56  ;;  %v3261_v61 = vld [vmem:[#allocation4 + $0x40] sm:$0xff]  ;;  %v2882_v16 = vld [vmem:[#allocation4 + $0x98] sm:$0xff] }
 0x237   : > { %2942 = vst.msk [vmem:[#allocation4 + $0x78] sm:$0xff] %vm880_vm1, %v2910_v1  ;;  %3324 = vst.msk [vmem:[#allocation4 + $0x38] sm:$0xff] %vm880_vm1, %v3292_v22  ;;  %v3264_v21 = vld [vmem:[#allocation4 + $0x58] sm:$0xff]  ;;  %v2880_v1 = vld [vmem:[#allocation4 + $0x88] sm:$0xff] }
 0x238   : > { %2940 = vst.msk [vmem:[#allocation4 + $0x68] sm:$0xff] %vm880_vm1, %v2908_v50  ;;  %3322 = vst.msk [vmem:[#allocation4 + $0x28] sm:$0xff] %vm880_vm1, %v3290_v2  ;;  %v3262_v30 = vld [vmem:[#allocation4 + $0x48] sm:$0xff]  ;;  %v2885_v50 = vld [vmem:[#allocation4 + $0xb0] sm:$0xff] }
 0x23a   : > { %v14470_v58 = vpop.f32.mrb[100].mxu1  ;;  %v14496_v44 = vpop.f32.mrb[84].mxu0 }
 0x23b   : > { %v2913_v40 = vadd.f32 %v14470_v58, %v2881_v51  ;;  %v3295_v18 = vadd.f32 %v14496_v44, %v3263_v0  ;;  %v2800_v32 = vpop.f32.mrb[101].mxu1  ;;  %v3158_v36 = vpop.f32.mrb[85].mxu0 }
 0x23c   : > { %v2911_v9 = vadd.f32 %v2879_v14, %v2800_v32  ;;  %v3293_v17 = vadd.f32 %v3261_v61, %v3158_v36  ;;  %v14471_v60 = vpop.f32.mrb[102].mxu1  ;;  %v14497_v37 = vpop.f32.mrb[86].mxu0  ;;  %v3267_v58 = vld [vmem:[#allocation4 + $0x70] sm:$0xff] }
 0x23d   : > { %2945 = vst.msk [vmem:[#allocation4 + $0x90] sm:$0xff] %vm880_vm1, %v2913_v40  ;;  %3327 = vst.msk [vmem:[#allocation4 + $0x50] sm:$0xff] %vm880_vm1, %v3295_v18  ;;  %v2914_v39 = vadd.f32 %v14471_v60, %v2882_v16  ;;  %v3296_v8 = vadd.f32 %v14497_v37, %v3264_v21  ;;  %v2803_v62 = vpop.f32.mrb[103].mxu1  ;;  %v3161_v22 = vpop.f32.mrb[87].mxu0  ;;  %v2883_v40 = vld [vmem:[#allocation4 + $0xa0] sm:$0xff] }
 0x23e   : > { %2943 = vst.msk [vmem:[#allocation4 + $0x80] sm:$0xff] %vm880_vm1, %v2911_v9  ;;  %3325 = vst.msk [vmem:[#allocation4 + $0x40] sm:$0xff] %vm880_vm1, %v3293_v17  ;;  %v2912_v5 = vadd.f32 %v2880_v1, %v2803_v62  ;;  %v3294_v56 = vadd.f32 %v3262_v30, %v3161_v22  ;;  %v3265_v32 = vld [vmem:[#allocation4 + $0x60] sm:$0xff]  ;;  %v2886_v9 = vld [vmem:[#allocation4 + $0xb8] sm:$0xff] }
 0x23f   : > { %2946 = vst.msk [vmem:[#allocation4 + $0x98] sm:$0xff] %vm880_vm1, %v2914_v39  ;;  %3328 = vst.msk [vmem:[#allocation4 + $0x58] sm:$0xff] %vm880_vm1, %v3296_v8  ;;  %v3268_v60 = vld [vmem:[#allocation4 + $0x78] sm:$0xff]  ;;  %v2884_v39 = vld [vmem:[#allocation4 + $0xa8] sm:$0xff] }
 0x240   : > { %2944 = vst.msk [vmem:[#allocation4 + $0x88] sm:$0xff] %vm880_vm1, %v2912_v5  ;;  %3326 = vst.msk [vmem:[#allocation4 + $0x48] sm:$0xff] %vm880_vm1, %v3294_v56  ;;  %v3266_v62 = vld [vmem:[#allocation4 + $0x68] sm:$0xff]  ;;  %v2889_v5 = vld [vmem:[#allocation4 + $0xd0] sm:$0xff] }
 0x242   : > { %v14474_v23 = vpop.f32.mrb[104].mxu1  ;;  %v14500_v2 = vpop.f32.mrb[88].mxu0 }
 0x243   : > { %v2917_v51 = vadd.f32 %v14474_v23, %v2885_v50  ;;  %v3299_v44 = vadd.f32 %v14500_v2, %v3267_v58  ;;  %v2816_v0 = vpop.f32.mrb[105].mxu1  ;;  %v3174_v18 = vpop.f32.mrb[89].mxu0 }
 0x244   : > { %v2915_v14 = vadd.f32 %v2883_v40, %v2816_v0  ;;  %v3297_v36 = vadd.f32 %v3265_v32, %v3174_v18  ;;  %v14475_v61 = vpop.f32.mrb[106].mxu1  ;;  %v14501_v17 = vpop.f32.mrb[90].mxu0  ;;  %v3271_v23 = vld [vmem:[#allocation4 + $0x90] sm:$0xff] }
 0x245   : > { %2949 = vst.msk [vmem:[#allocation4 + $0xb0] sm:$0xff] %vm880_vm1, %v2917_v51  ;;  %3331 = vst.msk [vmem:[#allocation4 + $0x70] sm:$0xff] %vm880_vm1, %v3299_v44  ;;  %v2918_v16 = vadd.f32 %v14475_v61, %v2886_v9  ;;  %v3300_v37 = vadd.f32 %v14501_v17, %v3268_v60  ;;  %v2819_v21 = vpop.f32.mrb[107].mxu1  ;;  %v3177_v8 = vpop.f32.mrb[91].mxu0  ;;  %v2887_v51 = vld [vmem:[#allocation4 + $0xc0] sm:$0xff] }
 0x246   : > { %2947 = vst.msk [vmem:[#allocation4 + $0xa0] sm:$0xff] %vm880_vm1, %v2915_v14  ;;  %3329 = vst.msk [vmem:[#allocation4 + $0x60] sm:$0xff] %vm880_vm1, %v3297_v36  ;;  %v2916_v1 = vadd.f32 %v2884_v39, %v2819_v21  ;;  %v3298_v22 = vadd.f32 %v3266_v62, %v3177_v8  ;;  %v3269_v0 = vld [vmem:[#allocation4 + $0x80] sm:$0xff]  ;;  %v2890_v14 = vld [vmem:[#allocation4 + $0xd8] sm:$0xff] }
 0x247   : > { %2950 = vst.msk [vmem:[#allocation4 + $0xb8] sm:$0xff] %vm880_vm1, %v2918_v16  ;;  %3332 = vst.msk [vmem:[#allocation4 + $0x78] sm:$0xff] %vm880_vm1, %v3300_v37  ;;  %v3272_v61 = vld [vmem:[#allocation4 + $0x98] sm:$0xff]  ;;  %v2888_v16 = vld [vmem:[#allocation4 + $0xc8] sm:$0xff] }
 0x248   : > { %2948 = vst.msk [vmem:[#allocation4 + $0xa8] sm:$0xff] %vm880_vm1, %v2916_v1  ;;  %3330 = vst.msk [vmem:[#allocation4 + $0x68] sm:$0xff] %vm880_vm1, %v3298_v22  ;;  %v3270_v21 = vld [vmem:[#allocation4 + $0x88] sm:$0xff]  ;;  %v2893_v1 = vld [vmem:[#allocation4 + $0xf0] sm:$0xff] }
 0x24a   : > { %v14478_v30 = vpop.f32.mrb[108].mxu1  ;;  %v14504_v56 = vpop.f32.mrb[92].mxu0 }
 0x24b   : > { %v2921_v50 = vadd.f32 %v14478_v30, %v2889_v5  ;;  %v3303_v2 = vadd.f32 %v14504_v56, %v3271_v23  ;;  %v2832_v58 = vpop.f32.mrb[109].mxu1  ;;  %v3190_v44 = vpop.f32.mrb[93].mxu0 }
 0x24c   : > { %v2919_v40 = vadd.f32 %v2887_v51, %v2832_v58  ;;  %v3301_v18 = vadd.f32 %v3269_v0, %v3190_v44  ;;  %v14479_v32 = vpop.f32.mrb[110].mxu1  ;;  %v14505_v36 = vpop.f32.mrb[94].mxu0  ;;  %v3275_v30 = vld [vmem:[#allocation4 + $0xb0] sm:$0xff] }
 0x24d   : > { %2953 = vst.msk [vmem:[#allocation4 + $0xd0] sm:$0xff] %vm880_vm1, %v2921_v50  ;;  %3335 = vst.msk [vmem:[#allocation4 + $0x90] sm:$0xff] %vm880_vm1, %v3303_v2  ;;  %v2922_v9 = vadd.f32 %v14479_v32, %v2890_v14  ;;  %v3304_v17 = vadd.f32 %v14505_v36, %v3272_v61  ;;  %v2835_v60 = vpop.f32.mrb[111].mxu1  ;;  %v3193_v37 = vpop.f32.mrb[95].mxu0  ;;  %v2891_v50 = vld [vmem:[#allocation4 + $0xe0] sm:$0xff] }
 0x24e   : > { %2951 = vst.msk [vmem:[#allocation4 + $0xc0] sm:$0xff] %vm880_vm1, %v2919_v40  ;;  %3333 = vst.msk [vmem:[#allocation4 + $0x80] sm:$0xff] %vm880_vm1, %v3301_v18  ;;  %v2920_v39 = vadd.f32 %v2888_v16, %v2835_v60  ;;  %v3302_v8 = vadd.f32 %v3270_v21, %v3193_v37  ;;  %v3273_v58 = vld [vmem:[#allocation4 + $0xa0] sm:$0xff]  ;;  %v2894_v40 = vld [vmem:[#allocation4 + $0xf8] sm:$0xff] }
 0x24f   : > { %2954 = vst.msk [vmem:[#allocation4 + $0xd8] sm:$0xff] %vm880_vm1, %v2922_v9  ;;  %3336 = vst.msk [vmem:[#allocation4 + $0x98] sm:$0xff] %vm880_vm1, %v3304_v17  ;;  %v3276_v32 = vld [vmem:[#allocation4 + $0xb8] sm:$0xff]  ;;  %v2892_v9 = vld [vmem:[#allocation4 + $0xe8] sm:$0xff] }
 0x250   : > { %2952 = vst.msk [vmem:[#allocation4 + $0xc8] sm:$0xff] %vm880_vm1, %v2920_v39  ;;  %3334 = vst.msk [vmem:[#allocation4 + $0x88] sm:$0xff] %vm880_vm1, %v3302_v8  ;;  %v3274_v60 = vld [vmem:[#allocation4 + $0xa8] sm:$0xff] }
 0x252   : > { %v14482_v62 = vpop.f32.mrb[112].mxu1  ;;  %v14508_v22 = vpop.f32.mrb[96].mxu0 }
 0x253   : > { %v2925_v5 = vadd.f32 %v14482_v62, %v2893_v1  ;;  %v3307_v56 = vadd.f32 %v14508_v22, %v3275_v30  ;;  %v2848_v23 = vpop.f32.mrb[113].mxu1  ;;  %v3206_v2 = vpop.f32.mrb[97].mxu0  ;;  %v3613_v62 = vld [vmem:[#allocation4 + $0x10] sm:$0xff] }
 0x254   : > { %v2923_v51 = vadd.f32 %v2891_v50, %v2848_v23  ;;  %v3305_v44 = vadd.f32 %v3273_v58, %v3206_v2  ;;  %v14483_v0 = vpop.f32.mrb[114].mxu1  ;;  %v14509_v18 = vpop.f32.mrb[98].mxu0  ;;  %v3279_v39 = vld [vmem:[#allocation4 + $0xd0] sm:$0xff]  ;;  %v3611_v23 = vld [vmem:[#allocation4] sm:$0xff] }
 0x255   : > { %2957 = vst.msk [vmem:[#allocation4 + $0xf0] sm:$0xff] %vm880_vm1, %v2925_v5  ;;  %3339 = vst.msk [vmem:[#allocation4 + $0xb0] sm:$0xff] %vm880_vm1, %v3307_v56  ;;  %v2926_v14 = vadd.f32 %v14483_v0, %v2894_v40  ;;  %v3308_v36 = vadd.f32 %v14509_v18, %v3276_v32  ;;  %v2851_v61 = vpop.f32.mrb[115].mxu1  ;;  %v3209_v17 = vpop.f32.mrb[99].mxu0  ;;  %v3277_v5 = vld [vmem:[#allocation4 + $0xc0] sm:$0xff]  ;;  %v3614_v0 = vld [vmem:[#allocation4 + $0x18] sm:$0xff] }
 0x256   : > { %2955 = vst.msk [vmem:[#allocation4 + $0xe0] sm:$0xff] %vm880_vm1, %v2923_v51  ;;  %3337 = vst.msk [vmem:[#allocation4 + $0xa0] sm:$0xff] %vm880_vm1, %v3305_v44  ;;  %v2924_v16 = vadd.f32 %v2892_v9, %v2851_v61  ;;  %v3306_v37 = vadd.f32 %v3274_v60, %v3209_v17  ;;  %v3280_v51 = vld [vmem:[#allocation4 + $0xd8] sm:$0xff]  ;;  %v3612_v61 = vld [vmem:[#allocation4 + $0x8] sm:$0xff] }
 0x257   : > { %2958 = vst.msk [vmem:[#allocation4 + $0xf8] sm:$0xff] %vm880_vm1, %v2926_v14  ;;  %3340 = vst.msk [vmem:[#allocation4 + $0xb8] sm:$0xff] %vm880_vm1, %v3308_v36  ;;  %v3278_v14 = vld [vmem:[#allocation4 + $0xc8] sm:$0xff] }
 0x258   : > { %2956 = vst.msk [vmem:[#allocation4 + $0xe8] sm:$0xff] %vm880_vm1, %v2924_v16  ;;  %3338 = vst.msk [vmem:[#allocation4 + $0xa8] sm:$0xff] %vm880_vm1, %v3306_v37 }
 0x25a   : > { %v14512_v21 = vpop.f32.mrb[100].mxu0  ;;  %v14522_v8 = vpop.f32.mrb[116].mxu1 }
 0x25b   : > { %v3311_v1 = vadd.f32 %v14512_v21, %v3279_v39  ;;  %v3645_v22 = vadd.f32 %v14522_v8, %v3613_v62  ;;  %v3222_v30 = vpop.f32.mrb[101].mxu0  ;;  %v3484_v56 = vpop.f32.mrb[117].mxu1  ;;  %v3617_v21 = vld [vmem:[#allocation4 + $0x30] sm:$0xff] }
 0x25c   : > { %v3309_v50 = vadd.f32 %v3277_v5, %v3222_v30  ;;  %v3643_v2 = vadd.f32 %v3611_v23, %v3484_v56  ;;  %v14513_v58 = vpop.f32.mrb[102].mxu0  ;;  %v14523_v44 = vpop.f32.mrb[118].mxu1  ;;  %v3283_v16 = vld [vmem:[#allocation4 + $0xf0] sm:$0xff]  ;;  %v3615_v30 = vld [vmem:[#allocation4 + $0x20] sm:$0xff] }
 0x25d   : > { %3343 = vst.msk [vmem:[#allocation4 + $0xd0] sm:$0xff] %vm880_vm1, %v3311_v1  ;;  %3677 = vst.msk [vmem:[#allocation4 + $0x10] sm:$0xff] %vm880_vm1, %v3645_v22  ;;  %v3312_v40 = vadd.f32 %v14513_v58, %v3280_v51  ;;  %v3646_v18 = vadd.f32 %v14523_v44, %v3614_v0  ;;  %v3225_v32 = vpop.f32.mrb[103].mxu0  ;;  %v3487_v36 = vpop.f32.mrb[119].mxu1  ;;  %v3281_v1 = vld [vmem:[#allocation4 + $0xe0] sm:$0xff]  ;;  %v3618_v58 = vld [vmem:[#allocation4 + $0x38] sm:$0xff] }
 0x25e   : > { %3341 = vst.msk [vmem:[#allocation4 + $0xc0] sm:$0xff] %vm880_vm1, %v3309_v50  ;;  %3675 = vst.msk [vmem:[#allocation4] sm:$0xff] %vm880_vm1, %v3643_v2  ;;  %v3310_v9 = vadd.f32 %v3278_v14, %v3225_v32  ;;  %v3644_v17 = vadd.f32 %v3612_v61, %v3487_v36  ;;  %v3284_v50 = vld [vmem:[#allocation4 + $0xf8] sm:$0xff]  ;;  %v3616_v32 = vld [vmem:[#allocation4 + $0x28] sm:$0xff] }
 0x25f   : > { %3344 = vst.msk [vmem:[#allocation4 + $0xd8] sm:$0xff] %vm880_vm1, %v3312_v40  ;;  %3678 = vst.msk [vmem:[#allocation4 + $0x18] sm:$0xff] %vm880_vm1, %v3646_v18  ;;  %v3282_v40 = vld [vmem:[#allocation4 + $0xe8] sm:$0xff] }
 0x260   : > { %3342 = vst.msk [vmem:[#allocation4 + $0xc8] sm:$0xff] %vm880_vm1, %v3310_v9  ;;  %3676 = vst.msk [vmem:[#allocation4 + $0x8] sm:$0xff] %vm880_vm1, %v3644_v17  ;;  %v3621_v9 = vld [vmem:[#allocation4 + $0x50] sm:$0xff] }
 0x262   : > { %v14516_v60 = vpop.f32.mrb[104].mxu0  ;;  %v14526_v37 = vpop.f32.mrb[120].mxu1 }
 0x263   : > { %v3315_v39 = vadd.f32 %v14516_v60, %v3283_v16  ;;  %v3649_v8 = vadd.f32 %v14526_v37, %v3617_v21  ;;  %v3238_v62 = vpop.f32.mrb[105].mxu0  ;;  %v3500_v22 = vpop.f32.mrb[121].mxu1 }
 0x264   : > { %v3313_v5 = vadd.f32 %v3281_v1, %v3238_v62  ;;  %v3647_v56 = vadd.f32 %v3615_v30, %v3500_v22  ;;  %v14517_v23 = vpop.f32.mrb[106].mxu0  ;;  %v14527_v2 = vpop.f32.mrb[122].mxu1  ;;  %v4003_v60 = vld [vmem:[#allocation4 + $0x10] sm:$0xff] }
 0x265   : > { %3347 = vst.msk [vmem:[#allocation4 + $0xf0] sm:$0xff] %vm880_vm1, %v3315_v39  ;;  %3681 = vst.msk [vmem:[#allocation4 + $0x30] sm:$0xff] %vm880_vm1, %v3649_v8  ;;  %v3316_v51 = vadd.f32 %v14517_v23, %v3284_v50  ;;  %v3650_v44 = vadd.f32 %v14527_v2, %v3618_v58  ;;  %v3241_v0 = vpop.f32.mrb[107].mxu0  ;;  %v3503_v18 = vpop.f32.mrb[123].mxu1  ;;  %v3619_v39 = vld [vmem:[#allocation4 + $0x40] sm:$0xff] }
 0x266   : > { %3345 = vst.msk [vmem:[#allocation4 + $0xe0] sm:$0xff] %vm880_vm1, %v3313_v5  ;;  %3679 = vst.msk [vmem:[#allocation4 + $0x20] sm:$0xff] %vm880_vm1, %v3647_v56  ;;  %v3314_v14 = vadd.f32 %v3282_v40, %v3241_v0  ;;  %v3648_v36 = vadd.f32 %v3616_v32, %v3503_v18  ;;  %v4001_v62 = vld [vmem:[#allocation4] sm:$0xff]  ;;  %v3622_v5 = vld [vmem:[#allocation4 + $0x58] sm:$0xff] }
 0x267   : > { %3348 = vst.msk [vmem:[#allocation4 + $0xf8] sm:$0xff] %vm880_vm1, %v3316_v51  ;;  %3682 = vst.msk [vmem:[#allocation4 + $0x38] sm:$0xff] %vm880_vm1, %v3650_v44  ;;  %v4004_v23 = vld [vmem:[#allocation4 + $0x18] sm:$0xff]  ;;  %v3620_v51 = vld [vmem:[#allocation4 + $0x48] sm:$0xff] }
 0x268   : > { %3346 = vst.msk [vmem:[#allocation4 + $0xe8] sm:$0xff] %vm880_vm1, %v3314_v14  ;;  %3680 = vst.msk [vmem:[#allocation4 + $0x28] sm:$0xff] %vm880_vm1, %v3648_v36  ;;  %v4002_v0 = vld [vmem:[#allocation4 + $0x8] sm:$0xff]  ;;  %v17696_v32 = vld [vmem:[%s20599_s2] ss:$0 sm:$0xff] }
 0x269   : > { %v3625_v36 = vld [vmem:[#allocation4 + $0x70] sm:$0xff] }
 0x26a   : > { %v14530_v61 = vpop.f32.mrb[124].mxu1  ;;  %v14556_v17 = vpop.f32.mrb[108].mxu0 }
 0x26b   : > { %v3653_v16 = vadd.f32 %v14530_v61, %v3621_v9  ;;  %v4035_v37 = vadd.f32 %v14556_v17, %v4003_v60  ;;  %v3516_v21 = vpop.f32.mrb[125].mxu1  ;;  %v3874_v8 = vpop.f32.mrb[109].mxu0 }
 0x26c   : > { %v3651_v1 = vadd.f32 %v3619_v39, %v3516_v21  ;;  %v4033_v22 = vadd.f32 %v4001_v62, %v3874_v8  ;;  %v14531_v30 = vpop.f32.mrb[126].mxu1  ;;  %v14557_v56 = vpop.f32.mrb[110].mxu0  ;;  %v4007_v9 = vld [vmem:[#allocation4 + $0x30] sm:$0xff] }
 0x26d   : > { %3685 = vst.msk [vmem:[#allocation4 + $0x50] sm:$0xff] %vm880_vm1, %v3653_v16  ;;  %4067 = vst.msk [vmem:[#allocation4 + $0x10] sm:$0xff] %vm880_vm1, %v4035_v37  ;;  %v3654_v50 = vadd.f32 %v14531_v30, %v3622_v5  ;;  %v4036_v2 = vadd.f32 %v14557_v56, %v4004_v23  ;;  %v3519_v58 = vpop.f32.mrb[127].mxu1  ;;  %v3877_v44 = vpop.f32.mrb[111].mxu0  ;;  %v3623_v37 = vld [vmem:[#allocation4 + $0x60] sm:$0xff]  ;;  %v3626_v30 = vld [vmem:[#allocation4 + $0x78] sm:$0xff] }
 0x26e   : > { %3683 = vst.msk [vmem:[#allocation4 + $0x40] sm:$0xff] %vm880_vm1, %v3651_v1  ;;  %4065 = vst.msk [vmem:[#allocation4] sm:$0xff] %vm880_vm1, %v4033_v22  ;;  %v3652_v40 = vadd.f32 %v3620_v51, %v3519_v58  ;;  %v4034_v18 = vadd.f32 %v4002_v0, %v3877_v44  ;;  %v4005_v39 = vld [vmem:[#allocation4 + $0x20] sm:$0xff]  ;;  %v4008_v56 = vld [vmem:[#allocation4 + $0x38] sm:$0xff] }
 0x26f   : > { %3686 = vst.msk [vmem:[#allocation4 + $0x58] sm:$0xff] %vm880_vm1, %v3654_v50  ;;  %4068 = vst.msk [vmem:[#allocation4 + $0x18] sm:$0xff] %vm880_vm1, %v4036_v2  ;;  %v3624_v44 = vld [vmem:[#allocation4 + $0x68] sm:$0xff] }
 0x270   : > { %3684 = vst.msk [vmem:[#allocation4 + $0x48] sm:$0xff] %vm880_vm1, %v3652_v40  ;;  %4066 = vst.msk [vmem:[#allocation4 + $0x8] sm:$0xff] %vm880_vm1, %v4034_v18  ;;  %v4006_v40 = vld [vmem:[#allocation4 + $0x28] sm:$0xff] }
 0x272   : > { %v14534_v14 = vpop.f32.mrb[128].mxu1  ;;  %v14560_v61 = vpop.f32.mrb[112].mxu0 }
 0x273   : > { %v3657_v17 = vadd.f32 %v14534_v14, %v3625_v36  ;;  %v4039_v60 = vadd.f32 %v14560_v61, %v4007_v9  ;;  %v3532_v16 = vpop.f32.mrb[129].mxu1  ;;  %v3890_v21 = vpop.f32.mrb[113].mxu0 }
 0x274   : > { %v4099_v8 = vld [vmem:[#allocation4 + $0x10] sm:$0xff]  ;;  %v3655_v62 = vadd.f32 %v3623_v37, %v3532_v16  ;;  %v4037_v1 = vadd.f32 %v4005_v39, %v3890_v21  ;;  %v14535_v22 = vpop.f32.mrb[130].mxu1  ;;  %v14561_v5 = vpop.f32.mrb[114].mxu0 }
 0x275   : > { %v4138_v23 = vadd.f32 %v17696_v32, %v4099_v8  ;;  %v4097_v50 = vld [vmem:[#allocation4] sm:$0xff]  ;;  %3689 = vst.msk [vmem:[#allocation4 + $0x70] sm:$0xff] %vm880_vm1, %v3657_v17  ;;  %4071 = vst.msk [vmem:[#allocation4 + $0x30] sm:$0xff] %vm880_vm1, %v4039_v60  ;;  %v3658_v2 = vadd.f32 %v14535_v22, %v3626_v30  ;;  %v4040_v58 = vadd.f32 %v14561_v5, %v4008_v56  ;;  %v3535_v51 = vpop.f32.mrb[131].mxu1  ;;  %v3893_v0 = vpop.f32.mrb[115].mxu0  ;;  %v4011_v22 = vld [vmem:[#allocation4 + $0x50] sm:$0xff] }
 0x276   : > { %v4136_v18 = vadd.f32 %v17696_v32, %v4097_v50  ;;  %v4100_v14 = vld [vmem:[#allocation4 + $0x18] sm:$0xff]  ;;  %3687 = vst.msk [vmem:[#allocation4 + $0x60] sm:$0xff] %vm880_vm1, %v3655_v62  ;;  %4069 = vst.msk [vmem:[#allocation4 + $0x20] sm:$0xff] %vm880_vm1, %v4037_v1  ;;  %v3656_v36 = vadd.f32 %v3624_v44, %v3535_v51  ;;  %v4038_v61 = vadd.f32 %v4006_v40, %v3893_v0  ;;  %v3629_v62 = vld [vmem:[#allocation4 + $0x90] sm:$0xff] }
 0x277   : > { %v4170_v9 = vmax.f32 %v4138_v23, 0.0  ;;  %v4139_v17 = vadd.f32 %v17696_v32, %v4100_v14  ;;  %v4098_v16 = vld [vmem:[#allocation4 + $0x8] sm:$0xff]  ;;  %3690 = vst.msk [vmem:[#allocation4 + $0x78] sm:$0xff] %vm880_vm1, %v3658_v2  ;;  %4072 = vst.msk [vmem:[#allocation4 + $0x38] sm:$0xff] %vm880_vm1, %v4040_v58  ;;  %v3627_v23 = vld [vmem:[#allocation4 + $0x80] sm:$0xff] }
 0x278   : > { %v4168_v60 = vmax.f32 %v4136_v18, 0.0  ;;  %v4137_v37 = vadd.f32 %v17696_v32, %v4098_v16  ;;  %3688 = vst.msk [vmem:[#allocation4 + $0x68] sm:$0xff] %vm880_vm1, %v3656_v36  ;;  %4070 = vst.msk [vmem:[#allocation4 + $0x28] sm:$0xff] %vm880_vm1, %v4038_v61  ;;  %v4009_v2 = vld [vmem:[#allocation4 + $0x40] sm:$0xff]  ;;  %v3630_v40 = vld [vmem:[#allocation4 + $0x98] sm:$0xff] }
 0x279   : > { %4208 = vst.msk [vmem:[#allocation2 + $0x28] sm:$0xff] %vm880_vm1, %v4170_v9  ;;  %v4171_v21 = vmax.f32 %v4139_v17, 0.0  ;;  %v4012_v14 = vld [vmem:[#allocation4 + $0x58] sm:$0xff] }
 0x27a   : > { %4206 = vst.msk [vmem:[#allocation2 + $0x18] sm:$0xff] %vm880_vm1, %v4168_v60  ;;  %v4169_v39 = vmax.f32 %v4137_v37, 0.0  ;;  %v14538_v8 = vpop.f32.mrb[132].mxu1  ;;  %v14564_v1 = vpop.f32.mrb[116].mxu0  ;;  %v3628_v60 = vld [vmem:[#allocation4 + $0x88] sm:$0xff] }
 0x27b   : > { %4209 = vst.msk [vmem:[#allocation2 + $0x30] sm:$0xff] %vm880_vm1, %v4171_v21  ;;  %v3661_v30 = vadd.f32 %v14538_v8, %v3629_v62  ;;  %v4043_v5 = vadd.f32 %v14564_v1, %v4011_v22  ;;  %v3548_v56 = vpop.f32.mrb[133].mxu1  ;;  %v3906_v50 = vpop.f32.mrb[117].mxu0  ;;  %v4010_v21 = vld [vmem:[#allocation4 + $0x48] sm:$0xff] }
 0x27c   : > { %4207 = vst.msk [vmem:[#allocation2 + $0x20] sm:$0xff] %vm880_vm1, %v4169_v39  ;;  %v4103_v58 = vld [vmem:[#allocation4 + $0x30] sm:$0xff]  ;;  %v3659_v51 = vadd.f32 %v3627_v23, %v3548_v56  ;;  %v4041_v44 = vadd.f32 %v4009_v2, %v3906_v50  ;;  %v14539_v0 = vpop.f32.mrb[134].mxu1  ;;  %v14565_v18 = vpop.f32.mrb[118].mxu0 }
 0x27d   : > { %v4142_v36 = vadd.f32 %v17696_v32, %v4103_v58  ;;  %v4101_v61 = vld [vmem:[#allocation4 + $0x20] sm:$0xff]  ;;  %3693 = vst.msk [vmem:[#allocation4 + $0x90] sm:$0xff] %vm880_vm1, %v3661_v30  ;;  %4075 = vst.msk [vmem:[#allocation4 + $0x50] sm:$0xff] %vm880_vm1, %v4043_v5  ;;  %v3662_v9 = vadd.f32 %v14539_v0, %v3630_v40  ;;  %v4044_v17 = vadd.f32 %v14565_v18, %v4012_v14  ;;  %v3551_v16 = vpop.f32.mrb[135].mxu1  ;;  %v3909_v37 = vpop.f32.mrb[119].mxu0  ;;  %v3633_v2 = vld [vmem:[#allocation4 + $0xb0] sm:$0xff] }
 0x27e   : > { %v4140_v39 = vadd.f32 %v17696_v32, %v4101_v61  ;;  %v4104_v8 = vld [vmem:[#allocation4 + $0x38] sm:$0xff]  ;;  %3691 = vst.msk [vmem:[#allocation4 + $0x80] sm:$0xff] %vm880_vm1, %v3659_v51  ;;  %4073 = vst.msk [vmem:[#allocation4 + $0x40] sm:$0xff] %vm880_vm1, %v4041_v44  ;;  %v3660_v62 = vadd.f32 %v3628_v60, %v3551_v16  ;;  %v4042_v1 = vadd.f32 %v4010_v21, %v3909_v37  ;;  %v4015_v40 = vld [vmem:[#allocation4 + $0x70] sm:$0xff] }
 0x27f   : > { %v4174_v22 = vmax.f32 %v4142_v36, 0.0  ;;  %v4143_v30 = vadd.f32 %v17696_v32, %v4104_v8  ;;  %v4102_v56 = vld [vmem:[#allocation4 + $0x28] sm:$0xff]  ;;  %3694 = vst.msk [vmem:[#allocation4 + $0x98] sm:$0xff] %vm880_vm1, %v3662_v9  ;;  %4076 = vst.msk [vmem:[#allocation4 + $0x58] sm:$0xff] %vm880_vm1, %v4044_v17  ;;  %v3631_v18 = vld [vmem:[#allocation4 + $0xa0] sm:$0xff] }
 0x280   : > { %v4172_v5 = vmax.f32 %v4140_v39, 0.0  ;;  %v4141_v23 = vadd.f32 %v17696_v32, %v4102_v56  ;;  %3692 = vst.msk [vmem:[#allocation4 + $0x88] sm:$0xff] %vm880_vm1, %v3660_v62  ;;  %4074 = vst.msk [vmem:[#allocation4 + $0x48] sm:$0xff] %vm880_vm1, %v4042_v1  ;;  %v4013_v16 = vld [vmem:[#allocation4 + $0x60] sm:$0xff]  ;;  %v21245_v37 = vld [vmem:[#allocation28_spill] sm:$0xff] }
 0x281   : > { %4212 = vst.msk [vmem:[#allocation2 + $0x48] sm:$0xff] %vm880_vm1, %v4174_v22  ;;  %v4175_v50 = vmax.f32 %v4143_v30, 0.0  ;;  %v17727_v58 = vld [vmem:[#allocation2 + $0x17] sm:$0xff]  ;;  %v4014_v28 = vld [vmem:[#allocation4 + $0x68] sm:$0xff] }
 0x282   : > { %4210 = vst.msk [vmem:[#allocation2 + $0x38] sm:$0xff] %vm880_vm1, %v4172_v5  ;;  %v4173_v51 = vmax.f32 %v4141_v23, 0.0  ;;  %v14542_v44 = vpop.f32.mrb[136].mxu1  ;;  %v14568_v0 = vpop.f32.mrb[120].mxu0  ;;  %v17730_v14 = vld [vmem:[#allocation2 + $0x2f] sm:$0xff]  ;;  %v4272_v21 = vmul.f32 %v17727_v58, %v21245_v37  ;;  %v21246_v8 = vld [vmem:[#allocation38_spill] sm:$0xff] }
 0x283   : > { %4213 = vst.msk [vmem:[#allocation2 + $0x50] sm:$0xff] %vm880_vm1, %v4175_v50  ;;  %v3665_v36 = vadd.f32 %v14542_v44, %v3633_v2  ;;  %v4047_v61 = vadd.f32 %v14568_v0, %v4015_v40  ;;  %v3564_v9 = vpop.f32.mrb[137].mxu1  ;;  %v3922_v17 = vpop.f32.mrb[121].mxu0  ;;  %v17733_v60 = vld [vmem:[#allocation2 + $0x1f] sm:$0xff]  ;;  %v17737_v39 = vld [vmem:[#allocation2 + $0x27] sm:$0xff]  ;;  %v4275_v62 = vmul.f32 %v17730_v14, %v21246_v8 }
 0x284   : > { %4211 = vst.msk [vmem:[#allocation2 + $0x40] sm:$0xff] %vm880_vm1, %v4173_v51  ;;  %v4107_v1 = vld [vmem:[#allocation4 + $0x50] sm:$0xff]  ;;  %v3663_v22 = vadd.f32 %v3631_v18, %v3564_v9  ;;  %v4045_v30 = vadd.f32 %v4013_v16, %v3922_v17  ;;  %v14543_v56 = vpop.f32.mrb[138].mxu1  ;;  %v3634_v5 = vld [vmem:[#allocation4 + $0xb8] sm:$0xff]  ;;  %v14569_v23 = vpop.f32.mrb[122].mxu0  ;;  %v21247_v2 = vld [vmem:[#allocation27_spill] sm:$0xff]  ;;  %v17794_v63 = vmul.f32 %v17733_v60, %v21240_v55 }
 0x285   : > { %v4016_v50 = vld [vmem:[#allocation4 + $0x78] sm:$0xff]  ;;  %v4273_v44 = vmul.f32 %v17733_v60, %v21247_v2  ;;  %v21248_v0 = vld [vmem:[#allocation39_spill] sm:$0xff]  ;;  %v4146_v13 = vadd.f32 %v17696_v32, %v4107_v1  ;;  %3697 = vst.msk [vmem:[#allocation4 + $0xb0] sm:$0xff] %vm880_vm1, %v3665_v36  ;;  %4079 = vst.msk [vmem:[#allocation4 + $0x70] sm:$0xff] %vm880_vm1, %v4047_v61  ;;  %v3666_v51 = vadd.f32 %v14543_v56, %v3634_v5  ;;  %v3567_v9 = vpop.f32.mrb[139].mxu1  ;;  %v3925_v16 = vpop.f32.mrb[123].mxu0 }
 0x286   : > { %v4274_v40 = vmul.f32 %v17737_v39, %v21248_v0  ;;  %v4105_v52 = vld [vmem:[#allocation4 + $0x40] sm:$0xff]  ;;  %v4048_v18 = vadd.f32 %v14569_v23, %v4016_v50  ;;  %v3632_v17 = vld [vmem:[#allocation4 + $0xa8] sm:$0xff]  ;;  %v4108_v4 = vld [vmem:[#allocation4 + $0x58] sm:$0xff]  ;;  %3695 = vst.msk [vmem:[#allocation4 + $0xa0] sm:$0xff] %vm880_vm1, %v3663_v22  ;;  %v4046_v1 = vadd.f32 %v4014_v28, %v3925_v16  ;;  %v17852_v55 = vmul.f32 %v17730_v14, %v21247_v2 }
 0x287   : > { %v4144_v59 = vadd.f32 %v17696_v32, %v4105_v52  ;;  %4077 = vst.msk [vmem:[#allocation4 + $0x60] sm:$0xff] %vm880_vm1, %v4045_v30  ;;  %v3664_v20 = vadd.f32 %v3632_v17, %v3567_v9  ;;  %v4303_v49 = vpack.c.bf16 %v4273_v44, %v4272_v21  ;;  %v15744_v36 = vld [vmem:[%s20600_s3 + $0x28] sm:$0xff]   ;;  %v4178_v61 = vmax.f32 %v4146_v13, 0.0  ;;  %3698 = vst.msk [vmem:[#allocation4 + $0xb8] sm:$0xff] %vm880_vm1, %v3666_v51  ;;  %v3635_v30 = vld [vmem:[#allocation4 + $0xc0] sm:$0xff] }
 0x288   : > { %v4147_v56 = vadd.f32 %v17696_v32, %v4108_v4  ;;  %v4106_v5 = vld [vmem:[#allocation4 + $0x48] sm:$0xff]  ;;  %4080 = vst.msk [vmem:[#allocation4 + $0x78] sm:$0xff] %vm880_vm1, %v4048_v18  ;;  %v4304_v52 = vpack.c.bf16 %v4275_v62, %v4274_v40  ;;  %4078 = vst.msk [vmem:[#allocation4 + $0x68] sm:$0xff] %vm880_vm1, %v4046_v1  ;;  %v3637_v4 = vld [vmem:[#allocation4 + $0xd0] sm:$0xff] }
 0x289   : > { %v4176_v23 = vmax.f32 %v4144_v59, 0.0  ;;  %v4145_v22 = vadd.f32 %v17696_v32, %v4106_v5  ;;  %3696 = vst.msk [vmem:[#allocation4 + $0xa8] sm:$0xff] %vm880_vm1, %v3664_v20  ;;  %14595 = vmatmul.mubr.msk.bf16.vlgmr.msra.gmra.mrb[148].mxu1 %vm880_vm1, %v4303_v49  ;;  %4216 = vst.msk [vmem:[#allocation2 + $0x68] sm:$0xff] %vm880_vm1, %v4178_v61  ;;  %v17764_v13 = vld [vmem:[#allocation2 + $0x37] sm:$0xff]  ;;  %v4017_v18 = vld [vmem:[#allocation4 + $0x80] sm:$0xff] }
 0x28a   : > { %v4179_v28 = vmax.f32 %v4147_v56, 0.0  ;;  %14598 = vmatprep.mubr.msk.bf16.mxu1 %vm880_vm1, %v4304_v52  ;;  %14627 = vmatpush3.bf16.msra.mxu1 %v17632_v12  ;;  %v17770_v59 = vld [vmem:[%s20600_s3 + $0x30] sm:$0xff]   ;;  %v14546_v21 = vpop.f32.mrb[140].mxu1  ;;  %v14572_v49 = vpop.f32.mrb[124].mxu0  ;;  %v21249_v17 = vld [vmem:[#allocation43_spill] sm:$0xff]  ;;  %v4018_v57 = vld [vmem:[#allocation4 + $0x88] sm:$0xff] }
 0x28b   : > { %4214 = vst.msk [vmem:[#allocation2 + $0x58] sm:$0xff] %vm880_vm1, %v4176_v23  ;;  %v4177_v20 = vmax.f32 %v4145_v22, 0.0  ;;  %v4019_v62 = vld [vmem:[#allocation4 + $0x90] sm:$0xff]  ;;  %14628 = vmatprep.subr.bf16.mxu1 %v15744_v36  ;;  %v3669_v44 = vadd.f32 %v14546_v21, %v3637_v4  ;;  %v3580_v12 = vpop.f32.mrb[141].mxu1  ;;  %v3938_v51 = vpop.f32.mrb[125].mxu0  ;;  %v17776_v9 = vld [vmem:[#allocation2 + $0x3f] sm:$0xff]  ;;  %v4276_v16 = vmul.f32 %v17764_v13, %v21249_v17 }
 0x28c   : > { %v17773_v50 = vld [vmem:[#allocation2 + $0x4f] sm:$0xff]  ;;  %4217 = vst.msk [vmem:[#allocation2 + $0x70] sm:$0xff] %vm880_vm1, %v4179_v28  ;;  %v4051_v40 = vadd.f32 %v14572_v49, %v4019_v62  ;;  %v17780_v1 = vld [vmem:[#allocation2 + $0x47] sm:$0xff]  ;;  %v3667_v5 = vadd.f32 %v3635_v30, %v3580_v12  ;;  %v4049_v52 = vadd.f32 %v4017_v18, %v3938_v51  ;;  %v14547_v23 = vpop.f32.mrb[142].mxu1  ;;  %v3638_v22 = vld [vmem:[#allocation4 + $0xd8] sm:$0xff]  ;;  %v14573_v28 = vpop.f32.mrb[126].mxu0 }
 0x28d   : > { %v4279_v61 = vmul.f32 %v17773_v50, %v21171_v26  ;;  %4215 = vst.msk [vmem:[#allocation2 + $0x60] sm:$0xff] %vm880_vm1, %v4177_v20  ;;  %v4111_v56 = vld [vmem:[#allocation4 + $0x70] sm:$0xff]  ;;  %v4020_v4 = vld [vmem:[#allocation4 + $0x98] sm:$0xff]  ;;  %v4278_v62 = vmul.f32 %v17780_v1, %v21170_v25  ;;  %3701 = vst.msk [vmem:[#allocation4 + $0xd0] sm:$0xff] %vm880_vm1, %v3669_v44  ;;  %v3670_v20 = vadd.f32 %v14547_v23, %v3638_v22  ;;  %v3583_v12 = vpop.f32.mrb[143].mxu1  ;;  %v3941_v18 = vpop.f32.mrb[127].mxu0 }
 0x28e   : > { %v21250_v21 = vld [vmem:[#allocation42_spill] sm:$0xff]  ;;  %v4150_v38 = vadd.f32 %v17696_v32, %v4111_v56  ;;  %v4109_v42 = vld [vmem:[#allocation4 + $0x60] sm:$0xff]  ;;  %4083 = vst.msk [vmem:[#allocation4 + $0x90] sm:$0xff] %vm880_vm1, %v4051_v40  ;;  %v4052_v30 = vadd.f32 %v14573_v28, %v4020_v4  ;;  %v3636_v51 = vld [vmem:[#allocation4 + $0xc8] sm:$0xff]  ;;  %14629 = vmatpush3.bf16.msra.mxu1 %v15744_v36  ;;  %v4050_v40 = vadd.f32 %v4018_v57, %v3941_v18 }
 0x28f   : > { %v4277_v49 = vmul.f32 %v17776_v9, %v21250_v21  ;;  %21251 = vst [vmem:[#allocation31_spill] sm:$0xff] %v17794_v63  ;;  %v4148_v7 = vadd.f32 %v17696_v32, %v4109_v42  ;;  %v4112_v45 = vld [vmem:[#allocation4 + $0x78] sm:$0xff]  ;;  %3699 = vst.msk [vmem:[#allocation4 + $0xc0] sm:$0xff] %vm880_vm1, %v3667_v5  ;;  %v3668_v44 = vadd.f32 %v3636_v51, %v3583_v12  ;;  %14630 = vmatprep.subr.bf16.mxu1 %v17770_v59  ;;  %v4110_v22 = vld [vmem:[#allocation4 + $0x68] sm:$0xff] }
 0x290   : > { %4081 = vst.msk [vmem:[#allocation4 + $0x80] sm:$0xff] %vm880_vm1, %v4049_v52  ;;  %v15746_v36 = vld [vmem:[%s20600_s3 + $0x38] sm:$0xff]   ;;  %v4182_v23 = vmax.f32 %v4150_v38, 0.0  ;;  %v4151_v60 = vadd.f32 %v17696_v32, %v4112_v45  ;;  %3702 = vst.msk [vmem:[#allocation4 + $0xd8] sm:$0xff] %vm880_vm1, %v3670_v20  ;;  %v4306_v42 = vpack.c.bf16 %v4279_v61, %v4278_v62  ;;  %v17808_v5 = vmul.f32 %v17727_v58, %v21239_v34  ;;  %v3641_v38 = vld [vmem:[#allocation4 + $0xf0] sm:$0xff] }
 0x291   : > { %v4305_v56 = vpack.c.bf16 %v4277_v49, %v4276_v16  ;;  %4084 = vst.msk [vmem:[#allocation4 + $0x98] sm:$0xff] %vm880_vm1, %v4052_v30  ;;  %v4180_v57 = vmax.f32 %v4148_v7, 0.0  ;;  %v4149_v16 = vadd.f32 %v17696_v32, %v4110_v22  ;;  %3700 = vst.msk [vmem:[#allocation4 + $0xc8] sm:$0xff] %vm880_vm1, %v3668_v44  ;;  %v3639_v61 = vld [vmem:[#allocation4 + $0xe0] sm:$0xff]  ;;  %v4023_v49 = vld [vmem:[#allocation4 + $0xb0] sm:$0xff] }
 0x292   : > { %21252 = vst [vmem:[#allocation82_spill] sm:$0xff] %v17808_v5  ;;  %4082 = vst.msk [vmem:[#allocation4 + $0x88] sm:$0xff] %vm880_vm1, %v4050_v40  ;;  %v4183_v45 = vmax.f32 %v4151_v60, 0.0  ;;  %v17816_v52 = vld [vmem:[#allocation2 + $0x57] sm:$0xff]  ;;  %14631 = vmatpush3.bf16.msra.mxu1 %v17770_v59  ;;  %v14550_v28 = vpop.f32.mrb[144].mxu1  ;;  %v14576_v4 = vpop.f32.mrb[128].mxu0  ;;  %v17831_v59 = vmul.f32 %v17737_v39, %v21245_v37 }
 0x293   : > { %14599 = vmatmul.mubr.msk.bf16.gmra.mrb[152].mxu1 %vm880_vm1, %v4305_v56  ;;  %4220 = vst.msk [vmem:[#allocation2 + $0x88] sm:$0xff] %vm880_vm1, %v4182_v23  ;;  %4218 = vst.msk [vmem:[#allocation2 + $0x78] sm:$0xff] %vm880_vm1, %v4180_v57  ;;  %v4181_v58 = vmax.f32 %v4149_v16, 0.0  ;;  %v17822_v62 = vld [vmem:[#allocation2 + $0x6f] sm:$0xff]  ;;  %14632 = vmatprep.subr.bf16.mxu1 %v15746_v36  ;;  %v17827_v20 = vld [vmem:[%s20600_s3 + $0x40] sm:$0xff]   ;;  %v3673_v30 = vadd.f32 %v14550_v28, %v3641_v38  ;;  %v4055_v12 = vadd.f32 %v14576_v4, %v4023_v49  ;;  %v3596_v51 = vpop.f32.mrb[145].mxu1 }
 0x294   : > { %14602 = vmatprep.mubr.msk.bf16.mxu1 %vm880_vm1, %v4306_v42  ;;  %21253 = vst [vmem:[#allocation53_spill] sm:$0xff] %v17831_v59  ;;  %4221 = vst.msk [vmem:[#allocation2 + $0x90] sm:$0xff] %vm880_vm1, %v4183_v45  ;;  %v3954_v18 = vpop.f32.mrb[129].mxu0  ;;  %v4021_v44 = vld [vmem:[#allocation4 + $0xa0] sm:$0xff]  ;;  %v4280_v56 = vmul.f32 %v17816_v52, %v21181_v47  ;;  %v4283_v60 = vmul.f32 %v17822_v62, %v21183_v53  ;;  %v3671_v22 = vadd.f32 %v3639_v61, %v3596_v51  ;;  %v14551_v57 = vpop.f32.mrb[146].mxu1  ;;  %v3642_v16 = vld [vmem:[#allocation4 + $0xf8] sm:$0xff] }
 0x295   : > { %v17834_v40 = vld [vmem:[#allocation2 + $0x5f] sm:$0xff]  ;;  %v17838_v23 = vld [vmem:[#allocation2 + $0x67] sm:$0xff]  ;;  %4219 = vst.msk [vmem:[#allocation2 + $0x80] sm:$0xff] %vm880_vm1, %v4181_v58  ;;  %v4115_v39 = vld [vmem:[#allocation4 + $0x90] sm:$0xff]  ;;  %v4053_v42 = vadd.f32 %v4021_v44, %v3954_v18  ;;  %v14577_v45 = vpop.f32.mrb[130].mxu0  ;;  %v3674_v58 = vadd.f32 %v14551_v57, %v3642_v16  ;;  %v3599_v51 = vpop.f32.mrb[147].mxu1 }
 0x296   : > { %v4024_v38 = vld [vmem:[#allocation4 + $0xb8] sm:$0xff]  ;;  %v4281_v28 = vmul.f32 %v17834_v40, %v21182_v3  ;;  %v4282_v4 = vmul.f32 %v17838_v23, %v21184_v46  ;;  %v4154_v49 = vadd.f32 %v17696_v32, %v4115_v39  ;;  %3705 = vst.msk [vmem:[#allocation4 + $0xf0] sm:$0xff] %vm880_vm1, %v3673_v30  ;;  %4087 = vst.msk [vmem:[#allocation4 + $0xb0] sm:$0xff] %vm880_vm1, %v4055_v12  ;;  %v3640_v18 = vld [vmem:[#allocation4 + $0xe8] sm:$0xff]  ;;  %v3957_v44 = vpop.f32.mrb[131].mxu0  ;;  %14633 = vmatpush3.bf16.msra.mxu1 %v15746_v36 }
 0x297   : > { %v4113_v7 = vld [vmem:[#allocation4 + $0x80] sm:$0xff]  ;;  %v4056_v61 = vadd.f32 %v14577_v45, %v4024_v38  ;;  %v4022_v37 = vld [vmem:[#allocation4 + $0xa8] sm:$0xff]  ;;  %21254 = vst [vmem:[#allocation52_spill] sm:$0xff] %v17852_v55  ;;  %3703 = vst.msk [vmem:[#allocation4 + $0xe0] sm:$0xff] %vm880_vm1, %v3671_v22  ;;  %v3672_v30 = vadd.f32 %v3640_v18, %v3599_v51  ;;  %14666 = vmatprep.subr.bf16.mxu1 %v17827_v20 }
 0x298   : > { %v4152_v34 = vadd.f32 %v17696_v32, %v4113_v7  ;;  %v4116_v5 = vld [vmem:[#allocation4 + $0x98] sm:$0xff]  ;;  %4085 = vst.msk [vmem:[#allocation4 + $0xa0] sm:$0xff] %vm880_vm1, %v4053_v42  ;;  %v4054_v12 = vadd.f32 %v4022_v37, %v3957_v44  ;;  %v4307_v39 = vpack.c.bf16 %v4281_v28, %v4280_v56  ;;  %v4186_v57 = vmax.f32 %v4154_v49, 0.0  ;;  %3706 = vst.msk [vmem:[#allocation4 + $0xf8] sm:$0xff] %vm880_vm1, %v3674_v58  ;;  %v4027_v22 = vld [vmem:[#allocation4 + $0xd0] sm:$0xff] }
 0x299   : > { %v4155_v16 = vadd.f32 %v17696_v32, %v4116_v5  ;;  %v4114_v36 = vld [vmem:[#allocation4 + $0x88] sm:$0xff]  ;;  %4088 = vst.msk [vmem:[#allocation4 + $0xb8] sm:$0xff] %vm880_vm1, %v4056_v61  ;;  %v4308_v14 = vpack.c.bf16 %v4283_v60, %v4282_v4  ;;  %3704 = vst.msk [vmem:[#allocation4 + $0xe8] sm:$0xff] %vm880_vm1, %v3672_v30  ;;  %v4025_v4 = vld [vmem:[#allocation4 + $0xc0] sm:$0xff] }
 0x29a   : > { %v4184_v7 = vmax.f32 %v4152_v34, 0.0  ;;  %v4153_v45 = vadd.f32 %v17696_v32, %v4114_v36  ;;  %4086 = vst.msk [vmem:[#allocation4 + $0xa8] sm:$0xff] %vm880_vm1, %v4054_v12  ;;  %4224 = vst.msk [vmem:[#allocation2 + $0xa8] sm:$0xff] %vm880_vm1, %v4186_v57  ;;  %v17867_v5 = vld [vmem:[#allocation2 + $0x77] sm:$0xff]  ;;  %v14580_v60 = vpop.f32.mrb[132].mxu0  ;;  %v21333_v55 = vld [vmem:[#allocation87_spill] sm:$0xff] }
 0x29b   : > { %14603 = vmatmul.mubr.msk.bf16.gmra.mrb[156].mxu1 %vm880_vm1, %v4307_v39  ;;  %v4187_v37 = vmax.f32 %v4155_v16, 0.0  ;;  %v17872_v42 = vld [vmem:[#allocation2 + $0x8f] sm:$0xff]  ;;  %v4059_v38 = vadd.f32 %v14580_v60, %v4027_v22  ;;  %v3970_v28 = vpop.f32.mrb[133].mxu0  ;;  %v4028_v30 = vld [vmem:[#allocation4 + $0xd8] sm:$0xff]  ;;  %v4284_v12 = vmul.f32 %v17867_v5, %v21193_v54 }
 0x29c   : > { %14606 = vmatprep.mubr.msk.bf16.mxu1 %vm880_vm1, %v4308_v14  ;;  %4222 = vst.msk [vmem:[#allocation2 + $0x98] sm:$0xff] %vm880_vm1, %v4184_v7  ;;  %v4185_v34 = vmax.f32 %v4153_v45, 0.0  ;;  %v17875_v49 = vld [vmem:[#allocation2 + $0x7f] sm:$0xff]  ;;  %v17877_v58 = vld [vmem:[#allocation2 + $0x87] sm:$0xff]  ;;  %v4287_v61 = vmul.f32 %v17872_v42, %v21192_v11  ;;  %v4057_v18 = vadd.f32 %v4025_v4, %v3970_v28  ;;  %v14581_v44 = vpop.f32.mrb[134].mxu0 }
 0x29d   : > { %4225 = vst.msk [vmem:[#allocation2 + $0xb0] sm:$0xff] %vm880_vm1, %v4187_v37  ;;  %v4119_v51 = vld [vmem:[#allocation4 + $0xb0] sm:$0xff]  ;;  %v4285_v39 = vmul.f32 %v17875_v49, %v21190_v19  ;;  %v4286_v57 = vmul.f32 %v17877_v58, %v21191_v29  ;;  %4091 = vst.msk [vmem:[#allocation4 + $0xd0] sm:$0xff] %vm880_vm1, %v4059_v38  ;;  %v4060_v14 = vadd.f32 %v14581_v44, %v4028_v30  ;;  %v3973_v7 = vpop.f32.mrb[135].mxu0  ;;  %v4026_v45 = vld [vmem:[#allocation4 + $0xc8] sm:$0xff] }
 0x29e   : > { %4223 = vst.msk [vmem:[#allocation2 + $0xa0] sm:$0xff] %vm880_vm1, %v4185_v34  ;;  %v4158_v16 = vadd.f32 %v17696_v32, %v4119_v51  ;;  %4089 = vst.msk [vmem:[#allocation4 + $0xc0] sm:$0xff] %vm880_vm1, %v4057_v18  ;;  %v4058_v60 = vadd.f32 %v4026_v45, %v3973_v7  ;;  %v17896_v38 = vmul.f32 %v17764_v13, %v21248_v0 }
 0x29f   : > { %v4117_v36 = vld [vmem:[#allocation4 + $0xa0] sm:$0xff]  ;;  %v4309_v22 = vpack.c.bf16 %v4285_v39, %v4284_v12  ;;  %v4310_v28 = vpack.c.bf16 %v4287_v61, %v4286_v57  ;;  %4092 = vst.msk [vmem:[#allocation4 + $0xd8] sm:$0xff] %vm880_vm1, %v4060_v14  ;;  %v17900_v51 = vmul.f32 %v17776_v9, %v21246_v8  ;;  %v17907_v61 = vmul.f32 %v17780_v1, %v21249_v17  ;;  %v4031_v1 = vld [vmem:[#allocation4 + $0xf0] sm:$0xff] }
 0x2a0   : > { %v4156_v37 = vadd.f32 %v17696_v32, %v4117_v36  ;;  %v4120_v34 = vld [vmem:[#allocation4 + $0xb8] sm:$0xff]  ;;  %v4190_v4 = vmax.f32 %v4158_v16, 0.0  ;;  %21255 = vst [vmem:[#allocation91_spill] sm:$0xff] %v17896_v38  ;;  %4090 = vst.msk [vmem:[#allocation4 + $0xc8] sm:$0xff] %vm880_vm1, %v4058_v60  ;;  %v17911_v30 = vmul.f32 %v17773_v50, %v21250_v21  ;;  %v4029_v36 = vld [vmem:[#allocation4 + $0xe0] sm:$0xff] }
 0x2a1   : > { %v4159_v56 = vadd.f32 %v17696_v32, %v4120_v34  ;;  %v4118_v2 = vld [vmem:[#allocation4 + $0xa8] sm:$0xff]  ;;  %21256 = vst [vmem:[#allocation57_spill] sm:$0xff] %v17900_v51  ;;  %21257 = vst [vmem:[#allocation56_spill] sm:$0xff] %v17907_v61 }
 0x2a2   : > { %v4188_v44 = vmax.f32 %v4156_v37, 0.0  ;;  %v4157_v18 = vadd.f32 %v17696_v32, %v4118_v2  ;;  %21258 = vst [vmem:[#allocation61_spill] sm:$0xff] %v17911_v30  ;;  %4228 = vst.msk [vmem:[#allocation2 + $0xc8] sm:$0xff] %vm880_vm1, %v4190_v4  ;;  %v14584_v39 = vpop.f32.mrb[136].mxu0 }
 0x2a3   : > { %14607 = vmatmul.mubr.msk.bf16.gmra.mrb[160].mxu1 %vm880_vm1, %v4309_v22  ;;  %v4191_v13 = vmax.f32 %v4159_v56, 0.0  ;;  %v17915_v9 = vld [vmem:[#allocation2 + $0x97] sm:$0xff]  ;;  %v4063_v56 = vadd.f32 %v14584_v39, %v4031_v1  ;;  %v3986_v16 = vpop.f32.mrb[137].mxu0  ;;  %v4030_v1 = vld [vmem:[#allocation4 + $0xe8] sm:$0xff] }
 0x2a4   : > { %14610 = vmatprep.mubr.msk.bf16.mxu1 %vm880_vm1, %v4310_v28  ;;  %4226 = vst.msk [vmem:[#allocation2 + $0xb8] sm:$0xff] %vm880_vm1, %v4188_v44  ;;  %v4189_v12 = vmax.f32 %v4157_v18, 0.0  ;;  %v17920_v57 = vld [vmem:[#allocation2 + $0xaf] sm:$0xff]  ;;  %v4061_v34 = vadd.f32 %v4029_v36, %v3986_v16  ;;  %v14585_v60 = vpop.f32.mrb[138].mxu0  ;;  %v4032_v22 = vld [vmem:[#allocation4 + $0xf8] sm:$0xff]  ;;  %v4288_v28 = vmul.f32 %v17915_v9, %v21198_v6 }
 0x2a5   : > { %4229 = vst.msk [vmem:[#allocation2 + $0xd0] sm:$0xff] %vm880_vm1, %v4191_v13  ;;  %v17925_v14 = vld [vmem:[#allocation2 + $0x9f] sm:$0xff]  ;;  %v17927_v7 = vld [vmem:[#allocation2 + $0xa7] sm:$0xff]  ;;  %v4291_v45 = vmul.f32 %v17920_v57, %v21201_v43  ;;  %v4123_v37 = vld [vmem:[#allocation4 + $0xd0] sm:$0xff]  ;;  %v4064_v39 = vadd.f32 %v14585_v60, %v4032_v22  ;;  %v17961_v22 = vmul.f32 %v17822_v62, %v21182_v3 }
 0x2a6   : > { %4227 = vst.msk [vmem:[#allocation2 + $0xc0] sm:$0xff] %vm880_vm1, %v4189_v12  ;;  %v4289_v4 = vmul.f32 %v17925_v14, %v21199_v24  ;;  %v4290_v44 = vmul.f32 %v17927_v7, %v21200_v35  ;;  %v4162_v18 = vadd.f32 %v17696_v32, %v4123_v37  ;;  %v4121_v13 = vld [vmem:[#allocation4 + $0xc0] sm:$0xff]  ;;  %4095 = vst.msk [vmem:[#allocation4 + $0xf0] sm:$0xff] %vm880_vm1, %v4063_v56  ;;  %v3989_v12 = vpop.f32.mrb[139].mxu0  ;;  %v4124_v36 = vld [vmem:[#allocation4 + $0xd8] sm:$0xff] }
 0x2a7   : > { %v4160_v16 = vadd.f32 %v17696_v32, %v4121_v13  ;;  %4093 = vst.msk [vmem:[#allocation4 + $0xe0] sm:$0xff] %vm880_vm1, %v4061_v34  ;;  %v4062_v50 = vadd.f32 %v4030_v1, %v3989_v12  ;;  %v4163_v8 = vadd.f32 %v17696_v32, %v4124_v36  ;;  %v4122_v0 = vld [vmem:[#allocation4 + $0xc8] sm:$0xff]  ;;  %4096 = vst.msk [vmem:[#allocation4 + $0xf8] sm:$0xff] %vm880_vm1, %v4064_v39 }
 0x2a8   : > { %v4311_v2 = vpack.c.bf16 %v4289_v4, %v4288_v28  ;;  %v4312_v17 = vpack.c.bf16 %v4291_v45, %v4290_v44  ;;  %v4194_v21 = vmax.f32 %v4162_v18, 0.0  ;;  %v17946_v56 = vmul.f32 %v17816_v52, %v21170_v25  ;;  %21262 = vst [vmem:[#allocation69_spill] sm:$0xff] %v17961_v22  ;;  %v18106_v3 = vld [vmem:[#allocation2 + $0x69] sm:$0xff]  ;;  %v21292_v25 = vld [vmem:[#allocation59_spill] sm:$0xff] }
 0x2a9   : > { %v17950_v37 = vmul.f32 %v17834_v40, %v21171_v26  ;;  %v4192_v60 = vmax.f32 %v4160_v16, 0.0  ;;  %v4161_v34 = vadd.f32 %v17696_v32, %v4122_v0  ;;  %4094 = vst.msk [vmem:[#allocation4 + $0xe8] sm:$0xff] %vm880_vm1, %v4062_v50  ;;  %v17957_v45 = vmul.f32 %v17838_v23, %v21181_v47  ;;  %v4594_v47 = vld [vmem:[#allocation2 + $0x20] sm:$0xff]  ;;  %v18108_v26 = vld [vmem:[#allocation2 + $0x71] sm:$0xff]  ;;  %v21326_v22 = vld [vmem:[#allocation84_spill] sm:$0xff] }
 0x2aa   : > { %21259 = vst [vmem:[#allocation60_spill] sm:$0xff] %v17946_v56  ;;  %4232 = vst.msk [vmem:[#allocation2 + $0xe8] sm:$0xff] %vm880_vm1, %v4194_v21  ;;  %v4195_v52 = vmax.f32 %v4163_v8, 0.0  ;;  %v17974_v8 = vmul.f32 %v17867_v5, %v21184_v46  ;;  %v18104_v46 = vld [vmem:[#allocation2 + $0x61] sm:$0xff] }
 0x2ab   : > { %21260 = vst [vmem:[#allocation65_spill] sm:$0xff] %v17950_v37  ;;  %14611 = vmatmul.mubr.msk.bf16.gmra.mrb[164].mxu1 %vm880_vm1, %v4311_v2  ;;  %21261 = vst [vmem:[#allocation64_spill] sm:$0xff] %v17957_v45  ;;  %v4260_v40 = vld [vmem:[#allocation2 + $0xb7] sm:$0xff]  ;;  %v4193_v2 = vmax.f32 %v4161_v34, 0.0  ;;  %v21328_v37 = vld [vmem:[#allocation83_spill] sm:$0xff] }
 0x2ac   : > { %14614 = vmatprep.mubr.msk.bf16.mxu1 %vm880_vm1, %v4312_v17  ;;  %4230 = vst.msk [vmem:[#allocation2 + $0xd8] sm:$0xff] %vm880_vm1, %v4192_v60  ;;  %v4263_v50 = vld [vmem:[#allocation2 + $0xcf] sm:$0xff]  ;;  %4233 = vst.msk [vmem:[#allocation2 + $0xf0] sm:$0xff] %vm880_vm1, %v4195_v52  ;;  %v17978_v17 = vmul.f32 %v17875_v49, %v21183_v53  ;;  %v4292_v44 = vmul.f32 %v4260_v40, %v21204_v27  ;;  %v17990_v60 = vmul.f32 %v17877_v58, %v21193_v54  ;;  %v18102_v53 = vld [vmem:[#allocation2 + $0x59] sm:$0xff] }
 0x2ad   : > { %v4261_v62 = vld [vmem:[#allocation2 + $0xbf] sm:$0xff]  ;;  %v4262_v28 = vld [vmem:[#allocation2 + $0xc7] sm:$0xff]  ;;  %v4295_v21 = vmul.f32 %v4263_v50, %v21207_v41  ;;  %21263 = vst [vmem:[#allocation68_spill] sm:$0xff] %v17974_v8  ;;  %4231 = vst.msk [vmem:[#allocation2 + $0xe0] sm:$0xff] %vm880_vm1, %v4193_v2  ;;  %v18005_v58 = vmul.f32 %v17925_v14, %v21192_v11 }
 0x2ae   : > { %21264 = vst [vmem:[#allocation26_spill] sm:$0xff] %v17978_v17  ;;  %v4127_v4 = vld [vmem:[#allocation4 + $0xf0] sm:$0xff]  ;;  %v4293_v18 = vmul.f32 %v4261_v62, %v21205_v15  ;;  %v4294_v13 = vmul.f32 %v4262_v28, %v21206_v10  ;;  %v4125_v12 = vld [vmem:[#allocation4 + $0xe0] sm:$0xff]  ;;  %v4128_v16 = vld [vmem:[#allocation4 + $0xf8] sm:$0xff]  ;;  %v18045_v0 = vmul.f32 %v4262_v28, %v21204_v27 }
 0x2af   : > { %v4166_v39 = vadd.f32 %v17696_v32, %v4127_v4  ;;  %v4164_v1 = vadd.f32 %v17696_v32, %v4125_v12  ;;  %21265 = vst [vmem:[#allocation25_spill] sm:$0xff] %v17990_v60  ;;  %v4167_v52 = vadd.f32 %v17696_v32, %v4128_v16  ;;  %v17995_v4 = vmul.f32 %v17872_v42, %v21190_v19  ;;  %v21271_v16 = vld [vmem:[#allocation32_spill] sm:$0xff]  ;;  %v18086_v27 = vld [vmem:[#allocation2 + $0x39] sm:$0xff] }
 0x2b0   : > { %v4313_v49 = vpack.c.bf16 %v4293_v18, %v4292_v44  ;;  %v4314_v36 = vpack.c.bf16 %v4295_v21, %v4294_v13  ;;  %v4126_v2 = vld [vmem:[#allocation4 + $0xe8] sm:$0xff]  ;;  %v18001_v21 = vmul.f32 %v17915_v9, %v21191_v29  ;;  %21268 = vst [vmem:[#allocation30_spill] sm:$0xff] %v18005_v58  ;;  %v18017_v9 = vmul.f32 %v17920_v57, %v21199_v24  ;;  %v21288_v24 = vld [vmem:[#allocation37_spill] sm:$0xff]  ;;  %v4593_v19 = vld [vmem:[#allocation2 + $0x18] sm:$0xff] }
 0x2b1   : > { %v4198_v34 = vmax.f32 %v4166_v39, 0.0  ;;  %21266 = vst [vmem:[#allocation73_spill] sm:$0xff] %v17995_v4  ;;  %v4196_v23 = vmax.f32 %v4164_v1, 0.0  ;;  %v4165_v5 = vadd.f32 %v17696_v32, %v4126_v2  ;;  %v4199_v44 = vmax.f32 %v4167_v52, 0.0  ;;  %v18038_v18 = vld [vmem:[#allocation2 + $0x21] sm:$0xff]  ;;  %21275 = vst [vmem:[#allocation40_spill] sm:$0xff] %v18045_v0 }
 0x2b2   : > { %21267 = vst [vmem:[#allocation72_spill] sm:$0xff] %v18001_v21  ;;  %v18013_v32 = vmul.f32 %v17927_v7, %v21198_v6  ;;  %21270 = vst [vmem:[#allocation77_spill] sm:$0xff] %v18017_v9  ;;  %v18033_v52 = vmul.f32 %v4260_v40, %v21200_v35  ;;  %v18036_v2 = vmul.f32 %v4261_v62, %v21201_v43  ;;  %v18040_v7 = vld [vmem:[#allocation2 + $0x29] sm:$0xff]  ;;  %v21304_v0 = vld [vmem:[#allocation67_spill] sm:$0xff] }
 0x2b3   : > { %14615 = vmatmul.mubr.msk.bf16.gmra.mrb[168].mxu1 %vm880_vm1, %v4313_v49  ;;  %4236 = vst.msk [vmem:[#allocation2 + $0x108] sm:$0xff] %vm880_vm1, %v4198_v34  ;;  %v4264_v42 = vld [vmem:[#allocation2 + $0xd7] sm:$0xff]  ;;  %4234 = vst.msk [vmem:[#allocation2 + $0xf8] sm:$0xff] %vm880_vm1, %v4196_v23  ;;  %v4197_v14 = vmax.f32 %v4165_v5, 0.0  ;;  %v4267_v13 = vld [vmem:[#allocation2 + $0xef] sm:$0xff]  ;;  %v18048_v6 = vmul.f32 %v4263_v50, %v21205_v15 }
 0x2b4   : > { %14618 = vmatprep.mubr.msk.bf16.mxu1 %vm880_vm1, %v4314_v36  ;;  %21269 = vst [vmem:[#allocation29_spill] sm:$0xff] %v18013_v32  ;;  %4237 = vst.msk [vmem:[#allocation2 + $0x110] sm:$0xff] %vm880_vm1, %v4199_v44  ;;  %v4265_v12 = vld [vmem:[#allocation2 + $0xdf] sm:$0xff]  ;;  %v4266_v1 = vld [vmem:[#allocation2 + $0xe7] sm:$0xff]  ;;  %v4299_v49 = vmul.f32 %v4267_v13, %v21271_v16  ;;  %v4296_v57 = vmul.f32 %v4264_v42, %v21208_v31  ;;  %v18053_v62 = vmul.f32 %v4264_v42, %v21206_v10 }
 0x2b5   : > { %4235 = vst.msk [vmem:[#allocation2 + $0x100] sm:$0xff] %vm880_vm1, %v4197_v14  ;;  %v4297_v23 = vmul.f32 %v4265_v12, %v21209_v48  ;;  %v21272_v5 = vld [vmem:[#allocation33_spill] sm:$0xff]  ;;  %v18030_v34 = vld [vmem:[#allocation2 + $0x19] sm:$0xff]  ;;  %21273 = vst [vmem:[#allocation76_spill] sm:$0xff] %v18033_v52  ;;  %v18062_v28 = vmul.f32 %v4266_v1, %v21208_v31  ;;  %v18065_v50 = vmul.f32 %v4267_v13, %v21209_v48 }
 0x2b6   : > { %v4298_v36 = vmul.f32 %v4266_v1, %v21272_v5  ;;  %21274 = vst [vmem:[#allocation41_spill] sm:$0xff] %v18036_v2  ;;  %v18042_v14 = vld [vmem:[#allocation2 + $0x31] sm:$0xff]  ;;  %21276 = vst [vmem:[#allocation81_spill] sm:$0xff] %v18048_v6  ;;  %v21284_v1 = vld [vmem:[#allocation55_spill] sm:$0xff]  ;;  %v18150_v6 = vmul.f32 %v18102_v53, %v21304_v0 }
 0x2b7   : > { %v4315_v44 = vpack.c.bf16 %v4297_v23, %v4296_v57  ;;  %21277 = vst [vmem:[#allocation80_spill] sm:$0xff] %v18053_v62  ;;  %21279 = vst [vmem:[#allocation44_spill] sm:$0xff] %v18062_v28  ;;  %v18069_v23 = vmul.f32 %v18030_v34, %v21213_v33  ;;  %v18080_v40 = vmul.f32 %v18040_v7, %v21284_v1  ;;  %v21286_v13 = vld [vmem:[#allocation54_spill] sm:$0xff]  ;;  %v4592_v48 = vld [vmem:[#allocation2 + $0x10] sm:$0xff] }
 0x2b8   : > { %v4316_v39 = vpack.c.bf16 %v4299_v49, %v4298_v36  ;;  %v18056_v49 = vmul.f32 %v4265_v12, %v21207_v41  ;;  %21280 = vst [vmem:[#allocation86_spill] sm:$0xff] %v18065_v50  ;;  %v4591_v12 = vld [vmem:[#allocation2 + $0x8] sm:$0xff]  ;;  %v18084_v31 = vmul.f32 %v18042_v14, %v21286_v13  ;;  %v18094_v15 = vld [vmem:[#allocation2 + $0x51] sm:$0xff]  ;;  %v18138_v50 = vpack.c.bf16 %v4594_v47, %v4593_v19  ;;  %v18194_v4 = vld [vmem:[#allocation2 + $0xd9] sm:$0xff] }
 0x2b9   : > { %21281 = vst [vmem:[#allocation85_spill] sm:$0xff] %v18069_v23  ;;  %21285 = vst [vmem:[#allocation89_spill] sm:$0xff] %v18080_v40  ;;  %v18092_v10 = vld [vmem:[#allocation2 + $0x41] sm:$0xff]  ;;  %v4623_v36 = vpack.c.bf16 %v4592_v48, %v4591_v12  ;;  %v18118_v40 = vmul.f32 %v18086_v27, %v21292_v25  ;;  %v18120_v23 = vld [vmem:[#allocation2 + $0x79] sm:$0xff] }
 0x2ba   : > { %21278 = vst [vmem:[#allocation45_spill] sm:$0xff] %v18056_v49  ;;  %v4268_v42 = vld [vmem:[#allocation2 + $0xf7] sm:$0xff]  ;;  %21287 = vst [vmem:[#allocation94_spill] sm:$0xff] %v18084_v31  ;;  %v21289_v11 = vld [vmem:[#allocation36_spill] sm:$0xff] }
 0x2bb   : > { %14619 = vmatmul.mubr.msk.bf16.gmra.mrb[172].mxu1 %vm880_vm1, %v4315_v44  ;;  %v21282_v44 = vld [vmem:[#allocation50_spill] sm:$0xff]  ;;  %v4300_v54 = vmul.f32 %v4268_v42, %v21288_v24  ;;  %v18111_v43 = vmul.f32 %v4268_v42, %v21272_v5  ;;  %21293 = vst [vmem:[#allocation103_spill] sm:$0xff] %v18118_v40  ;;  %v18122_v48 = vld [vmem:[#allocation2 + $0x81] sm:$0xff]  ;;  %v18124_v12 = vld [vmem:[#allocation2 + $0x89] sm:$0xff] }
 0x2bc   : > { %14622 = vmatprep.mubr.msk.bf16.mxu1 %vm880_vm1, %v4316_v39  ;;  %v18076_v57 = vmul.f32 %v18038_v18, %v21282_v44  ;;  %v18088_v39 = vld [vmem:[#allocation2 + $0x49] sm:$0xff]  ;;  %v4269_v41 = vld [vmem:[#allocation2 + $0xff] sm:$0xff]  ;;  %21294 = vst [vmem:[#allocation35_spill] sm:$0xff] %v18124_v12  ;;  %21301 = vst [vmem:[#allocation110_spill] sm:$0xff] %v18138_v50 }
 0x2bd   : > { %v4301_v29 = vmul.f32 %v4269_v41, %v21289_v11  ;;  %21290 = vst [vmem:[#allocation98_spill] sm:$0xff] %v18111_v43  ;;  %v18114_v35 = vmul.f32 %v4269_v41, %v21271_v16  ;;  %v21297_v42 = vld [vmem:[#allocation63_spill] sm:$0xff]  ;;  %v21299_v41 = vld [vmem:[#allocation62_spill] sm:$0xff]  ;;  %21305 = vst [vmem:[#allocation113_spill] sm:$0xff] %v18150_v6 }
 0x2be   : > { %21283 = vst [vmem:[#allocation90_spill] sm:$0xff] %v18076_v57  ;;  %v21295_v57 = vld [vmem:[#allocation58_spill] sm:$0xff]  ;;  %v18132_v24 = vmul.f32 %v18088_v39, %v21297_v42  ;;  %v18136_v28 = vmul.f32 %v18094_v15, %v21299_v41  ;;  %v18144_v62 = vld [vmem:[#allocation2 + $0xa1] sm:$0xff]  ;;  %v18153_v52 = vld [vmem:[#allocation2 + $0xa9] sm:$0xff] }
 0x2bf   : > { %21291 = vst [vmem:[#allocation97_spill] sm:$0xff] %v18114_v35  ;;  %v4317_v31 = vpack.c.bf16 %v4301_v29, %v4300_v54  ;;  %v18128_v11 = vmul.f32 %v18092_v10, %v21295_v57  ;;  %v18140_v29 = vld [vmem:[#allocation2 + $0x91] sm:$0xff]  ;;  %v18142_v54 = vld [vmem:[#allocation2 + $0x99] sm:$0xff]  ;;  %21303 = vst [vmem:[#allocation112_spill] sm:$0xff] %v18144_v62  ;;  %v18208_v61 = vmul.f32 %v18144_v62, %v21328_v37 }
 0x2c0   : > { %21298 = vst [vmem:[#allocation108_spill] sm:$0xff] %v18132_v24  ;;  %21300 = vst [vmem:[#allocation109_spill] sm:$0xff] %v18136_v28  ;;  %v18155_v2 = vld [vmem:[#allocation2 + $0xb1] sm:$0xff]  ;;  %v21310_v49 = vld [vmem:[#allocation71_spill] sm:$0xff]  ;;  %v18204_v56 = vmul.f32 %v18142_v54, %v21326_v22 }
 0x2c1   : > { %21296 = vst [vmem:[#allocation34_spill] sm:$0xff] %v18128_v11  ;;  %21302 = vst [vmem:[#allocation111_spill] sm:$0xff] %v18142_v54  ;;  %v21308_v32 = vld [vmem:[#allocation66_spill] sm:$0xff]  ;;  %v18167_v43 = vmul.f32 %v18106_v3, %v21310_v49  ;;  %v18172_v35 = vld [vmem:[#allocation2 + $0xc1] sm:$0xff]  ;;  %v18226_v63 = vmul.f32 %v18155_v2, %v21333_v55 }
 0x2c2   : > { %21306 = vst [vmem:[#allocation114_spill] sm:$0xff] %v18153_v52  ;;  %21307 = vst [vmem:[#allocation115_spill] sm:$0xff] %v18155_v2  ;;  %v18163_v9 = vmul.f32 %v18104_v46, %v21308_v32  ;;  %v21313_v21 = vld [vmem:[#allocation70_spill] sm:$0xff]  ;;  %v21315_v40 = vld [vmem:[#allocation75_spill] sm:$0xff] }
 0x2c3   : > { %14623 = vmatmul.mubr.msk.bf16.gmra.mrb[176].mxu1 %vm880_vm1, %v4317_v31  ;;  %21311 = vst [vmem:[#allocation117_spill] sm:$0xff] %v18167_v43  ;;  %v18170_v31 = vld [vmem:[#allocation2 + $0xb9] sm:$0xff]  ;;  %21312 = vst [vmem:[#allocation118_spill] sm:$0xff] %v18172_v35  ;;  %v18176_v47 = vmul.f32 %v18108_v26, %v21313_v21  ;;  %v18180_v19 = vmul.f32 %v18120_v23, %v21315_v40  ;;  %v18192_v60 = vld [vmem:[#allocation2 + $0xd1] sm:$0xff] }
 0x2c4   : > { %21309 = vst [vmem:[#allocation116_spill] sm:$0xff] %v18163_v9  ;;  %14634 = vmatprep.mubr.msk.bf16.mxu1 %vm880_vm1, %v4623_v36  ;;  %v21317_v24 = vld [vmem:[#allocation74_spill] sm:$0xff]  ;;  %v21319_v11 = vld [vmem:[#allocation79_spill] sm:$0xff]  ;;  %v18190_v36 = vld [vmem:[#allocation2 + $0xc9] sm:$0xff] }
 0x2c5   : > { %21314 = vst [vmem:[#allocation70_spill] sm:$0xff] %v18176_v47  ;;  %21316 = vst [vmem:[#allocation75_spill] sm:$0xff] %v18180_v19  ;;  %v18184_v28 = vmul.f32 %v18122_v48, %v21317_v24  ;;  %v18188_v58 = vmul.f32 %v18124_v12, %v21319_v11  ;;  %v21324_v17 = vld [vmem:[#allocation78_spill] sm:$0xff]  ;;  %v18210_v30 = vld [vmem:[#allocation2 + $0xe1] sm:$0xff] }
 0x2c6   : > { %21321 = vst [vmem:[#allocation120_spill] sm:$0xff] %v18190_v36  ;;  %21322 = vst [vmem:[#allocation121_spill] sm:$0xff] %v18192_v60  ;;  %v18200_v45 = vmul.f32 %v18140_v29, %v21324_v17  ;;  %v18212_v38 = vld [vmem:[#allocation2 + $0xe9] sm:$0xff]  ;;  %v18214_v51 = vld [vmem:[#allocation2 + $0xf1] sm:$0xff] }
 0x2c7   : > { %21318 = vst [vmem:[#allocation74_spill] sm:$0xff] %v18184_v28  ;;  %21320 = vst [vmem:[#allocation119_spill] sm:$0xff] %v18188_v58  ;;  %v21331_v9 = vld [vmem:[#allocation88_spill] sm:$0xff]  ;;  %v4596_v62 = vld [vmem:[#allocation2 + $0x30] sm:$0xff] }
 0x2c8   : > { %21323 = vst [vmem:[#allocation122_spill] sm:$0xff] %v18194_v4  ;;  %21325 = vst [vmem:[#allocation78_spill] sm:$0xff] %v18200_v45  ;;  %v18222_v59 = vmul.f32 %v18153_v52, %v21331_v9  ;;  %v18228_v54 = vld [vmem:[#allocation2 + $0xf9] sm:$0xff]  ;;  %v18230_v12 = vld [vmem:[#allocation2 + $0x101] sm:$0xff] }
 0x2c9   : > { %21327 = vst [vmem:[#allocation123_spill] sm:$0xff] %v18204_v56  ;;  %21329 = vst [vmem:[#allocation83_spill] sm:$0xff] %v18208_v61  ;;  %v21335_v6 = vld [vmem:[#allocation93_spill] sm:$0xff]  ;;  %v21337_v28 = vld [vmem:[#allocation92_spill] sm:$0xff] }
 0x2ca   : > { %21330 = vst [vmem:[#allocation124_spill] sm:$0xff] %v18212_v38  ;;  %21332 = vst [vmem:[#allocation88_spill] sm:$0xff] %v18222_v59  ;;  %v18238_v19 = vmul.f32 %v18170_v31, %v21335_v6  ;;  %v18242_v43 = vmul.f32 %v18172_v35, %v21337_v28  ;;  %v21339_v52 = vld [vmem:[#allocation96_spill] sm:$0xff]  ;;  %v21341_v55 = vld [vmem:[#allocation95_spill] sm:$0xff] }
 0x2cb   : > { %21334 = vst [vmem:[#allocation125_spill] sm:$0xff] %v18226_v63  ;;  %v18248_v2 = vmul.f32 %v18190_v36, %v21339_v52  ;;  %v18252_v22 = vmul.f32 %v18192_v60, %v21341_v55  ;;  %v21343_v8 = vld [vmem:[#allocation100_spill] sm:$0xff]  ;;  %v21345_v59 = vld [vmem:[#allocation99_spill] sm:$0xff]  ;;  %v21347_v45 = vld [vmem:[#allocation102_spill] sm:$0xff]  ;;  %14635 = vmatmul.mubr.msk.bf16.vlgmr.msra.gmra.mrb[148].mxu1 %vm880_vm1, %v18138_v50 }
 0x2cc   : > { %21336 = vst [vmem:[#allocation93_spill] sm:$0xff] %v18238_v19  ;;  %21338 = vst [vmem:[#allocation92_spill] sm:$0xff] %v18242_v43  ;;  %v18256_v56 = vmul.f32 %v18194_v4, %v21343_v8  ;;  %v4595_v61 = vld [vmem:[#allocation2 + $0x28] sm:$0xff]  ;;  %v18265_v63 = vmul.f32 %v18210_v30, %v21345_v59  ;;  %v18269_v36 = vmul.f32 %v18212_v38, %v21347_v45  ;;  %v21349_v60 = vld [vmem:[#allocation101_spill] sm:$0xff]  ;;  %14667 = vmatpush3.bf16.msra.mxu1 %v17827_v20 }
 0x2cd   : > { %21340 = vst [vmem:[#allocation96_spill] sm:$0xff] %v18248_v2  ;;  %21342 = vst [vmem:[#allocation126_spill] sm:$0xff] %v18252_v22  ;;  %v15748_v58 = vld [vmem:[%s20600_s3 + $0x48] sm:$0xff]   ;;  %v18273_v4 = vmul.f32 %v18214_v51, %v21349_v60  ;;  %v18275_v8 = vpack.c.bf16 %v4596_v62, %v4595_v61  ;;  %v21352_v55 = vld [vmem:[#allocation105_spill] sm:$0xff] }
 0x2ce   : > { %21344 = vst [vmem:[#allocation127_spill] sm:$0xff] %v18256_v56  ;;  %21346 = vst [vmem:[#allocation128_spill] sm:$0xff] %v18265_v63  ;;  %v18281_v47 = vmul.f32 %v18228_v54, %v21352_v55  ;;  %v21354_v19 = vld [vmem:[#allocation104_spill] sm:$0xff]  ;;  %14668 = vmatprep.subr.bf16.mxu1 %v15748_v58  ;;  %v15749_v35 = vld [vmem:[%s20600_s3 + $0x50] sm:$0xff]  }
 0x2cf   : > { %21348 = vst [vmem:[#allocation129_spill] sm:$0xff] %v18269_v36  ;;  %21350 = vst [vmem:[#allocation130_spill] sm:$0xff] %v18273_v4  ;;  %v18285_v43 = vmul.f32 %v18230_v12, %v21354_v19  ;;  %14638 = vmatprep.mubr.msk.bf16.mxu1 %vm880_vm1, %v18275_v8  ;;  %v4598_v2 = vld [vmem:[#allocation2 + $0x40] sm:$0xff]  ;;  %v4600_v22 = vld [vmem:[#allocation2 + $0x50] sm:$0xff] }
 0x2d0   : > { %21351 = vst [vmem:[#allocation131_spill] sm:$0xff] %v18275_v8  ;;  %21353 = vst [vmem:[#allocation132_spill] sm:$0xff] %v18281_v47  ;;  %v4597_v50 = vld [vmem:[#allocation2 + $0x38] sm:$0xff]  ;;  %14669 = vmatpush3.bf16.msra.mxu1 %v15748_v58  ;;  %v4599_v61 = vld [vmem:[#allocation2 + $0x48] sm:$0xff] }
 0x2d1   : > { %21355 = vst [vmem:[#allocation133_spill] sm:$0xff] %v18285_v43  ;;  %v18301_v38 = vpack.c.bf16 %v4598_v2, %v4597_v50  ;;  %14670 = vmatprep.subr.bf16.mxu1 %v15749_v35  ;;  %v15750_v20 = vld [vmem:[%s20600_s3 + $0x58] sm:$0xff]   ;;  %v18306_v36 = vpack.c.bf16 %v4600_v22, %v4599_v61  ;;  %v18310_v62 = vld [vmem:[#allocation2 + $0x107] sm:$0xff]  ;;  %v18314_v58 = vld [vmem:[#allocation2 + $0x10f] sm:$0xff] }
 0x2d2   : > { %v18319_v2 = vld [vmem:[%s20600_s3 + $0x60] sm:$0xff]   ;;  %v18323_v22 = vmul.f32 %v18310_v62, %v21272_v5  ;;  %v4604_v61 = vld [vmem:[#allocation2 + $0x70] sm:$0xff]  ;;  %v18327_v47 = vmul.f32 %v18314_v58, %v21271_v16  ;;  %v4601_v43 = vld [vmem:[#allocation2 + $0x58] sm:$0xff] }
 0x2d3   : > { %21356 = vst [vmem:[#allocation134_spill] sm:$0xff] %v18301_v38  ;;  %21357 = vst [vmem:[#allocation135_spill] sm:$0xff] %v18306_v36  ;;  %14639 = vmatmul.mubr.msk.bf16.gmra.mrb[152].mxu1 %vm880_vm1, %v18301_v38  ;;  %v4602_v50 = vld [vmem:[#allocation2 + $0x60] sm:$0xff]  ;;  %v4603_v4 = vld [vmem:[#allocation2 + $0x68] sm:$0xff] }
 0x2d4   : > { %14642 = vmatprep.mubr.msk.bf16.mxu1 %vm880_vm1, %v18306_v36  ;;  %14671 = vmatpush3.bf16.msra.mxu1 %v15749_v35  ;;  %21358 = vst [vmem:[#allocation136_spill] sm:$0xff] %v18323_v22  ;;  %21359 = vst [vmem:[#allocation137_spill] sm:$0xff] %v18327_v47  ;;  %v18329_v35 = vpack.c.bf16 %v4602_v50, %v4601_v43  ;;  %v18334_v63 = vpack.c.bf16 %v4604_v61, %v4603_v4  ;;  %v4606_v16 = vld [vmem:[#allocation2 + $0x80] sm:$0xff]  ;;  %v4608_v5 = vld [vmem:[#allocation2 + $0x90] sm:$0xff] }
 0x2d5   : > { %14672 = vmatprep.subr.bf16.mxu1 %v15750_v20  ;;  %v4605_v36 = vld [vmem:[#allocation2 + $0x78] sm:$0xff]  ;;  %v4607_v43 = vld [vmem:[#allocation2 + $0x88] sm:$0xff]  ;;  %v4610_v56 = vld [vmem:[#allocation2 + $0xa0] sm:$0xff] }
 0x2d6   : > { %21360 = vst [vmem:[#allocation138_spill] sm:$0xff] %v18329_v35  ;;  %21361 = vst [vmem:[#allocation139_spill] sm:$0xff] %v18334_v63  ;;  %v18342_v50 = vpack.c.bf16 %v4608_v5, %v4607_v43  ;;  %v18344_v38 = vld [vmem:[#allocation2 + $0x109] sm:$0xff]  ;;  %v18348_v4 = vld [vmem:[#allocation2 + $0x111] sm:$0xff] }
 0x2d7   : > { %21364 = vst [vmem:[#allocation142_spill] sm:$0xff] %v18344_v38  ;;  %21365 = vst [vmem:[#allocation143_spill] sm:$0xff] %v18348_v4  ;;  %v18354_v61 = vmul.f32 %v18344_v38, %v21352_v55  ;;  %v4612_v5 = vld [vmem:[#allocation2 + $0xb0] sm:$0xff]  ;;  %v4611_v47 = vld [vmem:[#allocation2 + $0xa8] sm:$0xff] }
 0x2d8   : > { %14673 = vmatpush3.bf16.msra.mxu1 %v15750_v20  ;;  %v18340_v20 = vpack.c.bf16 %v4606_v16, %v4605_v36  ;;  %21363 = vst [vmem:[#allocation141_spill] sm:$0xff] %v18342_v50  ;;  %v18358_v16 = vmul.f32 %v18348_v4, %v21354_v19  ;;  %v4609_v36 = vld [vmem:[#allocation2 + $0x98] sm:$0xff]  ;;  %v4614_v38 = vld [vmem:[#allocation2 + $0xc0] sm:$0xff]  ;;  %v4619_v43 = vld [vmem:[#allocation2 + $0xe8] sm:$0xff] }
 0x2d9   : > { %14706 = vmatprep.subr.bf16.mxu1 %v18319_v2  ;;  %21366 = vst [vmem:[#allocation144_spill] sm:$0xff] %v18354_v61  ;;  %v18362_v22 = vpack.c.bf16 %v4610_v56, %v4609_v36  ;;  %v4613_v4 = vld [vmem:[#allocation2 + $0xb8] sm:$0xff]  ;;  %v4618_v56 = vld [vmem:[#allocation2 + $0xe0] sm:$0xff] }
 0x2da   : > { %21362 = vst [vmem:[#allocation140_spill] sm:$0xff] %v18340_v20  ;;  %21367 = vst [vmem:[#allocation145_spill] sm:$0xff] %v18358_v16  ;;  %v4621_v16 = vld [vmem:[#allocation2 + $0xf8] sm:$0xff] }
 0x2db   : > { %14643 = vmatmul.mubr.msk.bf16.gmra.mrb[156].mxu1 %vm880_vm1, %v18329_v35  ;;  %v4615_v35 = vld [vmem:[#allocation2 + $0xc8] sm:$0xff] }
 0x2dc   : > { %14646 = vmatprep.mubr.msk.bf16.mxu1 %vm880_vm1, %v18334_v63  ;;  %v18370_v63 = vpack.c.bf16 %v4614_v38, %v4613_v4  ;;  %v4978_v38 = vld [vmem:[#allocation2 + $0x11] sm:$0xff] }
 0x2dd   : > { %v5010_v4 = vmul.f32 %v4978_v38, %v21282_v44  ;;  %v5013_v38 = vmul.f32 %v18040_v7, %v21292_v25  ;;  %v15753_v7 = vld [vmem:[%s20600_s3 + $0x70] sm:$0xff]  }
 0x2de   : > { %21368 = vst [vmem:[#allocation146_spill] sm:$0xff] %v18370_v63 }
 0x2e3   : > { %14647 = vmatmul.mubr.msk.bf16.gmra.mrb[160].mxu1 %vm880_vm1, %v18340_v20  ;;  %v18364_v20 = vpack.c.bf16 %v4612_v5, %v4611_v47  ;;  %v4620_v47 = vld [vmem:[#allocation2 + $0xf0] sm:$0xff]  ;;  %v4617_v5 = vld [vmem:[#allocation2 + $0xd8] sm:$0xff] }
 0x2e4   : > { %14650 = vmatprep.mubr.msk.bf16.mxu1 %vm880_vm1, %v18342_v50  ;;  %v4616_v50 = vld [vmem:[#allocation2 + $0xd0] sm:$0xff]  ;;  %v18378_v36 = vpack.c.bf16 %v4618_v56, %v4617_v5  ;;  %v18380_v61 = vpack.c.bf16 %v4620_v47, %v4619_v43  ;;  %v5011_v43 = vmul.f32 %v18030_v34, %v21284_v1  ;;  %v5012_v47 = vmul.f32 %v18038_v18, %v21286_v13 }
 0x2e5   : > { %v18372_v8 = vpack.c.bf16 %v4616_v50, %v4615_v35  ;;  %v4977_v35 = vld [vmem:[#allocation2 + $0x9] sm:$0xff]  ;;  %v4622_v50 = vld [vmem:[#allocation2 + $0x100] sm:$0xff]  ;;  %v5014_v5 = vmul.f32 %v18042_v14, %v21295_v57  ;;  %v5015_v18 = vmul.f32 %v18086_v27, %v21297_v42  ;;  %v5016_v34 = vmul.f32 %v18092_v10, %v21299_v41  ;;  %v15754_v27 = vld [vmem:[%s20600_s3 + $0x78] sm:$0xff]  }
 0x2e6   : > { %v5018_v14 = vmul.f32 %v18094_v15, %v21308_v32  ;;  %v5019_v10 = vmul.f32 %v18102_v53, %v21310_v49  ;;  %v5020_v15 = vmul.f32 %v18104_v46, %v21313_v21  ;;  %v5023_v53 = vmul.f32 %v18120_v23, %v21319_v11  ;;  %v21374_v23 = vld [vmem:[#allocation112_spill] sm:$0xff] }
 0x2e7   : > { %21369 = vst [vmem:[#allocation147_spill] sm:$0xff] %v18372_v8  ;;  %v5024_v46 = vmul.f32 %v18122_v48, %v21324_v17  ;;  %v21375_v48 = vld [vmem:[#allocation115_spill] sm:$0xff] }
 0x2eb   : > { %14651 = vmatmul.mubr.msk.bf16.gmra.mrb[164].mxu1 %vm880_vm1, %v18362_v22 }
 0x2ec   : > { %14654 = vmatprep.mubr.msk.bf16.mxu1 %vm880_vm1, %v18364_v20 }
 0x2f3   : > { %14655 = vmatmul.mubr.msk.bf16.gmra.mrb[168].mxu1 %vm880_vm1, %v18370_v63  ;;  %v18388_v63 = vpack.c.bf16 %v4622_v50, %v4621_v16  ;;  %v5042_v16 = vpack.c.bf16 %v5012_v47, %v5011_v43  ;;  %v5017_v50 = vmul.f32 %v18088_v39, %v21304_v0  ;;  %v15755_v39 = vld [vmem:[%s20600_s3 + $0x80] sm:$0xff]   ;;  %v5021_v43 = vmul.f32 %v18106_v3, %v21315_v40 }
 0x2f4   : > { %14658 = vmatprep.mubr.msk.bf16.mxu1 %vm880_vm1, %v18372_v8  ;;  %v5009_v8 = vmul.f32 %v4977_v35, %v21213_v33  ;;  %v5043_v35 = vpack.c.bf16 %v5014_v5, %v5013_v38  ;;  %v5046_v47 = vpack.c.bf16 %v5020_v15, %v5019_v10  ;;  %v21370_v38 = vld [vmem:[#allocation84_spill] sm:$0xff]  ;;  %v5031_v10 = vmul.f32 %v18170_v31, %v21339_v52  ;;  %v21377_v15 = vld [vmem:[#allocation95_spill] sm:$0xff] }
 0x2f5   : > { %v5036_v31 = vmul.f32 %v18210_v30, %v21349_v60  ;;  %v21386_v30 = vld [vmem:[#allocation31_spill] sm:$0xff] }
 0x2f6   : > { %v5041_v56 = vpack.c.bf16 %v5010_v4, %v5009_v8  ;;  %v15752_v8 = vld [vmem:[%s20600_s3 + $0x68] sm:$0xff]   ;;  %v5044_v4 = vpack.c.bf16 %v5016_v34, %v5015_v18  ;;  %v21372_v18 = vld [vmem:[#allocation111_spill] sm:$0xff] }
 0x2f7   : > { %v5027_v34 = vmul.f32 %v21372_v18, %v21331_v9  ;;  %v5038_v18 = vmul.f32 %v18214_v51, %v21354_v19  ;;  %v21387_v51 = vld [vmem:[#allocation82_spill] sm:$0xff]  ;;  %v21504_v19 = vld [vmem:[#allocation9_spill] sm:$0xff] }
 0x2fb   : > { %14659 = vmatmul.mubr.msk.bf16.gmra.mrb[172].mxu1 %vm880_vm1, %v18378_v36 }
 0x2fc   : > { %14662 = vmatprep.mubr.msk.bf16.mxu1 %vm880_vm1, %v18380_v61 }
 0x303   : > { %14663 = vmatmul.mubr.msk.bf16.gmra.mrb[176].mxu1 %vm880_vm1, %v18388_v63 }
 0x304   : > { %14674 = vmatprep.mubr.msk.bf16.mxu1 %vm880_vm1, %v5041_v56  ;;  %v5022_v56 = vmul.f32 %v18108_v26, %v21317_v24  ;;  %v5026_v26 = vmul.f32 %v18140_v29, %v21328_v37  ;;  %v21376_v29 = vld [vmem:[#allocation114_spill] sm:$0xff] }
 0x306   : > { %v5047_v5 = vpack.c.bf16 %v5022_v56, %v5021_v43  ;;  %v21378_v56 = vld [vmem:[#allocation118_spill] sm:$0xff] }
 0x307   : > { %v5032_v43 = vmul.f32 %v21378_v56, %v21377_v15  ;;  %v15756_v56 = vld [vmem:[%s20600_s3 + $0x88] sm:$0xff]  }
 0x30b   : > { %14675 = vmatmul.mubr.msk.bf16.vlgmr.msra.gmra.mrb[148].mxu1 %vm880_vm1, %v5042_v16  ;;  %v21371_v16 = vld [vmem:[#allocation35_spill] sm:$0xff] }
 0x30c   : > { %14678 = vmatprep.mubr.msk.bf16.mxu1 %vm880_vm1, %v5043_v35  ;;  %14707 = vmatpush3.bf16.msra.mxu1 %v18319_v2  ;;  %v5045_v2 = vpack.c.bf16 %v5018_v14, %v5017_v50  ;;  %v5025_v3 = vmul.f32 %v21371_v16, %v21370_v38  ;;  %v5030_v50 = vmul.f32 %v21375_v48, %v21337_v28 }
 0x30d   : > { %14708 = vmatprep.subr.bf16.mxu1 %v15752_v8  ;;  %v5052_v16 = vpack.c.bf16 %v5032_v43, %v5031_v10  ;;  %v21388_v10 = vpack.c.bf16 %v21386_v30, %v21387_v51  ;;  %v21389_v43 = vld [vmem:[#allocation52_spill] sm:$0xff]  ;;  %v21407_v30 = vld [vmem:[#allocation73_spill] sm:$0xff] }
 0x30e   : > { %v5049_v35 = vpack.c.bf16 %v5026_v26, %v5025_v3  ;;  %v21408_v51 = vld [vmem:[#allocation25_spill] sm:$0xff] }
 0x310   : > { %14709 = vmatpush3.bf16.msra.mxu1 %v15752_v8  ;;  %v5048_v8 = vpack.c.bf16 %v5024_v46, %v5023_v53  ;;  %v21380_v53 = vld [vmem:[#allocation100_spill] sm:$0xff] }
 0x311   : > { %14710 = vmatprep.subr.bf16.mxu1 %v15753_v7  ;;  %v21381_v46 = vld [vmem:[#allocation120_spill] sm:$0xff] }
 0x312   : > { %v5033_v26 = vmul.f32 %v21381_v46, %v21380_v53  ;;  %v21393_v46 = vld [vmem:[#allocation91_spill] sm:$0xff] }
 0x313   : > { %14679 = vmatmul.mubr.msk.bf16.gmra.mrb[152].mxu1 %vm880_vm1, %v5044_v4  ;;  %v5029_v4 = vmul.f32 %v21376_v29, %v21335_v6 }
 0x314   : > { %14682 = vmatprep.mubr.msk.bf16.mxu1 %vm880_vm1, %v5045_v2  ;;  %14711 = vmatpush3.bf16.msra.mxu1 %v15753_v7  ;;  %v21373_v7 = vld [vmem:[#allocation87_spill] sm:$0xff] }
 0x315   : > { %14712 = vmatprep.subr.bf16.mxu1 %v15754_v27  ;;  %v5028_v14 = vmul.f32 %v21374_v23, %v21373_v7  ;;  %v5051_v2 = vpack.c.bf16 %v5030_v50, %v5029_v4  ;;  %v21384_v50 = vld [vmem:[#allocation107_spill] sm:$0xff]  ;;  %v21385_v4 = vld [vmem:[#allocation106_spill] sm:$0xff] }
 0x316   : > { %v5039_v29 = vmul.f32 %v18228_v54, %v21384_v50  ;;  %v21392_v54 = vld [vmem:[#allocation57_spill] sm:$0xff] }
 0x318   : > { %14713 = vmatpush3.bf16.msra.mxu1 %v15754_v27  ;;  %v5050_v27 = vpack.c.bf16 %v5028_v14, %v5027_v34  ;;  %v21383_v34 = vld [vmem:[#allocation124_spill] sm:$0xff] }
 0x319   : > { %14746 = vmatprep.subr.bf16.mxu1 %v15755_v39  ;;  %v5037_v23 = vmul.f32 %v21383_v34, %v21352_v55 }
 0x31b   : > { %14683 = vmatmul.mubr.msk.bf16.gmra.mrb[156].mxu1 %vm880_vm1, %v5046_v47  ;;  %v21379_v47 = vld [vmem:[#allocation121_spill] sm:$0xff]  ;;  %v5055_v48 = vpack.c.bf16 %v5038_v18, %v5037_v23  ;;  %v21399_v18 = vld [vmem:[#allocation60_spill] sm:$0xff] }
 0x31c   : > { %14686 = vmatprep.mubr.msk.bf16.mxu1 %vm880_vm1, %v5047_v5  ;;  %v5034_v5 = vmul.f32 %v21379_v47, %v21345_v59  ;;  %v21390_v47 = vld [vmem:[#allocation53_spill] sm:$0xff] }
 0x31d   : > { %v21401_v23 = vld [vmem:[#allocation69_spill] sm:$0xff] }
 0x31e   : > { %v5053_v3 = vpack.c.bf16 %v5034_v5, %v5033_v26  ;;  %v21391_v5 = vpack.c.bf16 %v21389_v43, %v21390_v47  ;;  %v15757_v26 = vld [vmem:[%s20600_s3 + $0x90] sm:$0xff]   ;;  %v21411_v43 = vld [vmem:[#allocation72_spill] sm:$0xff] }
 0x323   : > { %14687 = vmatmul.mubr.msk.bf16.gmra.mrb[160].mxu1 %vm880_vm1, %v5048_v8  ;;  %v21382_v8 = vld [vmem:[#allocation122_spill] sm:$0xff] }
 0x324   : > { %14690 = vmatprep.mubr.msk.bf16.mxu1 %vm880_vm1, %v5049_v35  ;;  %v5035_v35 = vmul.f32 %v21382_v8, %v21347_v45  ;;  %v21396_v8 = vld [vmem:[#allocation56_spill] sm:$0xff] }
 0x326   : > { %v5054_v14 = vpack.c.bf16 %v5036_v31, %v5035_v35  ;;  %v21398_v31 = vld [vmem:[#allocation65_spill] sm:$0xff] }
 0x327   : > { %v21400_v34 = vpack.c.bf16 %v21398_v31, %v21399_v18  ;;  %v21422_v31 = vld [vmem:[#allocation45_spill] sm:$0xff]  ;;  %v21423_v18 = vld [vmem:[#allocation80_spill] sm:$0xff] }
 0x32b   : > { %14691 = vmatmul.mubr.msk.bf16.gmra.mrb[164].mxu1 %vm880_vm1, %v5050_v27  ;;  %v5040_v27 = vmul.f32 %v18230_v12, %v21385_v4  ;;  %v21394_v12 = vpack.c.bf16 %v21392_v54, %v21393_v46  ;;  %v21414_v54 = vld [vmem:[#allocation29_spill] sm:$0xff] }
 0x32c   : > { %14694 = vmatprep.mubr.msk.bf16.mxu1 %vm880_vm1, %v5051_v2 }
 0x32d   : > { %v5056_v2 = vpack.c.bf16 %v5040_v27, %v5039_v29  ;;  %v21404_v29 = vld [vmem:[#allocation26_spill] sm:$0xff]  ;;  %v21405_v27 = vld [vmem:[#allocation68_spill] sm:$0xff] }
 0x333   : > { %14695 = vmatmul.mubr.msk.bf16.gmra.mrb[168].mxu1 %vm880_vm1, %v5052_v16  ;;  %v15758_v16 = vld [vmem:[%s20600_s3 + $0x98] sm:$0xff]  }
 0x334   : > { %14698 = vmatprep.mubr.msk.bf16.mxu1 %vm880_vm1, %v5053_v3  ;;  %v21395_v3 = vld [vmem:[#allocation61_spill] sm:$0xff] }
 0x335   : > { %v21397_v35 = vpack.c.bf16 %v21395_v3, %v21396_v8  ;;  %v21419_v3 = vld [vmem:[#allocation81_spill] sm:$0xff]  ;;  %v21420_v8 = vld [vmem:[#allocation40_spill] sm:$0xff] }
 0x33b   : > { %14699 = vmatmul.mubr.msk.bf16.gmra.mrb[172].mxu1 %vm880_vm1, %v5054_v14  ;;  %v21402_v14 = vld [vmem:[#allocation64_spill] sm:$0xff] }
 0x33c   : > { %14702 = vmatprep.mubr.msk.bf16.mxu1 %vm880_vm1, %v5055_v48  ;;  %v21403_v48 = vpack.c.bf16 %v21401_v23, %v21402_v14  ;;  %v21425_v23 = vld [vmem:[#allocation86_spill] sm:$0xff]  ;;  %v21426_v14 = vld [vmem:[#allocation44_spill] sm:$0xff] }
 0x343   : > { %14703 = vmatmul.mubr.msk.bf16.gmra.mrb[176].mxu1 %vm880_vm1, %v5056_v2  ;;  %v21406_v2 = vpack.c.bf16 %v21404_v29, %v21405_v27  ;;  %v21428_v29 = vld [vmem:[#allocation97_spill] sm:$0xff]  ;;  %v21429_v27 = vld [vmem:[#allocation98_spill] sm:$0xff] }
 0x344   : > { %14714 = vmatprep.mubr.msk.bf16.mxu1 %vm880_vm1, %v21388_v10  ;;  %v21409_v10 = vpack.c.bf16 %v21407_v30, %v21408_v51  ;;  %v21431_v30 = vld [vmem:[#allocation37_spill] sm:$0xff] }
 0x345   : > { %v5457_v51 = vmul.f32 %v18310_v62, %v21431_v30  ;;  %v15761_v62 = vld [vmem:[%s20600_s3 + $0xb0] sm:$0xff]  }
 0x34b   : > { %14715 = vmatmul.mubr.msk.bf16.vlgmr.msra.gmra.mrb[148].mxu1 %vm880_vm1, %v21391_v5  ;;  %v21413_v5 = vld [vmem:[#allocation77_spill] sm:$0xff] }
 0x34c   : > { %14718 = vmatprep.mubr.msk.bf16.mxu1 %vm880_vm1, %v21394_v12  ;;  %14747 = vmatpush3.bf16.msra.mxu1 %v15755_v39  ;;  %v15759_v39 = vld [vmem:[%s20600_s3 + $0xa0] sm:$0xff]   ;;  %v21415_v46 = vpack.c.bf16 %v21413_v5, %v21414_v54  ;;  %v21416_v12 = vld [vmem:[#allocation41_spill] sm:$0xff]  ;;  %v15760_v5 = vld [vmem:[%s20600_s3 + $0xa8] sm:$0xff]  }
 0x34d   : > { %14748 = vmatprep.subr.bf16.mxu1 %v15756_v56  ;;  %v21434_v54 = vld [vmem:[#allocation131_spill] sm:$0xff] }
 0x350   : > { %14749 = vmatpush3.bf16.msra.mxu1 %v15756_v56  ;;  %v21410_v56 = vld [vmem:[#allocation30_spill] sm:$0xff] }
 0x351   : > { %14750 = vmatprep.subr.bf16.mxu1 %v15757_v26  ;;  %v21412_v47 = vpack.c.bf16 %v21410_v56, %v21411_v43 }
 0x353   : > { %14719 = vmatmul.mubr.msk.bf16.gmra.mrb[152].mxu1 %vm880_vm1, %v21397_v35  ;;  %v21421_v35 = vpack.c.bf16 %v21419_v3, %v21420_v8  ;;  %v21439_v3 = vld [vmem:[#allocation140_spill] sm:$0xff]  ;;  %v21440_v8 = vld [vmem:[#allocation141_spill] sm:$0xff] }
 0x354   : > { %14722 = vmatprep.mubr.msk.bf16.mxu1 %vm880_vm1, %v21400_v34  ;;  %14751 = vmatpush3.bf16.msra.mxu1 %v15757_v26  ;;  %v21417_v26 = vld [vmem:[#allocation76_spill] sm:$0xff]  ;;  %v21424_v34 = vpack.c.bf16 %v21422_v31, %v21423_v18  ;;  %v21442_v31 = vld [vmem:[#allocation147_spill] sm:$0xff]  ;;  %v5844_v18 = vld [vmem:[#allocation2 + $0x110] sm:$0xff] }
 0x355   : > { %14752 = vmatprep.subr.bf16.mxu1 %v15758_v16 }
 0x358   : > { %14753 = vmatpush3.bf16.msra.mxu1 %v15758_v16  ;;  %v21418_v16 = vpack.c.bf16 %v21416_v12, %v21417_v26  ;;  %v21436_v12 = vld [vmem:[#allocation135_spill] sm:$0xff]  ;;  %v21437_v26 = vld [vmem:[#allocation138_spill] sm:$0xff] }
 0x359   : > { %14786 = vmatprep.subr.bf16.mxu1 %v15759_v39 }
 0x35b   : > { %14723 = vmatmul.mubr.msk.bf16.gmra.mrb[156].mxu1 %vm880_vm1, %v21403_v48  ;;  %v21427_v48 = vpack.c.bf16 %v21425_v23, %v21426_v14  ;;  %v21444_v23 = vld [vmem:[#allocation85_spill] sm:$0xff] }
 0x35c   : > { %14726 = vmatprep.mubr.msk.bf16.mxu1 %vm880_vm1, %v21406_v2  ;;  %v21430_v2 = vpack.c.bf16 %v21428_v29, %v21429_v27  ;;  %v21450_v27 = vld [vmem:[#allocation103_spill] sm:$0xff] }
 0x363   : > { %14727 = vmatmul.mubr.msk.bf16.gmra.mrb[160].mxu1 %vm880_vm1, %v21409_v10  ;;  %v21432_v10 = vld [vmem:[#allocation36_spill] sm:$0xff] }
 0x364   : > { %14730 = vmatprep.mubr.msk.bf16.mxu1 %vm880_vm1, %v21412_v47  ;;  %v5458_v56 = vmul.f32 %v18314_v58, %v21432_v10  ;;  %v21433_v47 = vld [vmem:[#allocation110_spill] sm:$0xff] }
 0x365   : > { %v15762_v58 = vld [vmem:[%s20600_s3 + $0xb8] sm:$0xff]  }
 0x366   : > { %v5474_v43 = vpack.c.bf16 %v5458_v56, %v5457_v51  ;;  %v15765_v51 = vld [vmem:[%s20600_s3 + $0xd0] sm:$0xff]   ;;  %v15766_v56 = vld [vmem:[%s20600_s3 + $0xd8] sm:$0xff]  }
 0x36b   : > { %14731 = vmatmul.mubr.msk.bf16.gmra.mrb[164].mxu1 %vm880_vm1, %v21415_v46  ;;  %v21435_v46 = vld [vmem:[#allocation134_spill] sm:$0xff] }
 0x36c   : > { %14734 = vmatprep.mubr.msk.bf16.mxu1 %vm880_vm1, %v21418_v16  ;;  %v21438_v16 = vld [vmem:[#allocation139_spill] sm:$0xff] }
 0x373   : > { %14735 = vmatmul.mubr.msk.bf16.gmra.mrb[168].mxu1 %vm880_vm1, %v21421_v35  ;;  %v21441_v35 = vld [vmem:[#allocation146_spill] sm:$0xff] }
 0x374   : > { %14738 = vmatprep.mubr.msk.bf16.mxu1 %vm880_vm1, %v21424_v34 }
 0x37b   : > { %14739 = vmatmul.mubr.msk.bf16.gmra.mrb[172].mxu1 %vm880_vm1, %v21427_v48  ;;  %v21447_v48 = vld [vmem:[#allocation89_spill] sm:$0xff] }
 0x37c   : > { %14742 = vmatprep.mubr.msk.bf16.mxu1 %vm880_vm1, %v21430_v2 }
 0x383   : > { %14743 = vmatmul.mubr.msk.bf16.gmra.mrb[176].mxu1 %vm880_vm1, %v5474_v43  ;;  %v21452_v43 = vld [vmem:[#allocation109_spill] sm:$0xff] }
 0x384   : > { %14754 = vmatprep.mubr.msk.bf16.mxu1 %vm880_vm1, %v21433_v47  ;;  %v21453_v47 = vld [vmem:[#allocation108_spill] sm:$0xff] }
 0x38b   : > { %14755 = vmatmul.mubr.msk.bf16.vlgmr.msra.gmra.mrb[148].mxu1 %vm880_vm1, %v21434_v54  ;;  %v21455_v54 = vld [vmem:[#allocation116_spill] sm:$0xff] }
 0x38c   : > { %14758 = vmatprep.mubr.msk.bf16.mxu1 %vm880_vm1, %v21435_v46  ;;  %14787 = vmatpush3.bf16.msra.mxu1 %v15759_v39  ;;  %v15763_v39 = vld [vmem:[%s20600_s3 + $0xc0] sm:$0xff]   ;;  %v21456_v46 = vld [vmem:[#allocation113_spill] sm:$0xff] }
 0x38d   : > { %14788 = vmatprep.subr.bf16.mxu1 %v15760_v5 }
 0x390   : > { %14789 = vmatpush3.bf16.msra.mxu1 %v15760_v5  ;;  %v21454_v5 = vpack.c.bf16 %v21452_v43, %v21453_v47  ;;  %v21480_v43 = vld [vmem:[#allocation127_spill] sm:$0xff] }
 0x391   : > { %14790 = vmatprep.subr.bf16.mxu1 %v15761_v62 }
 0x393   : > { %14759 = vmatmul.mubr.msk.bf16.gmra.mrb[152].mxu1 %vm880_vm1, %v21436_v12  ;;  %v21458_v12 = vld [vmem:[#allocation70_spill] sm:$0xff] }
 0x394   : > { %14762 = vmatprep.mubr.msk.bf16.mxu1 %vm880_vm1, %v21437_v26  ;;  %14791 = vmatpush3.bf16.msra.mxu1 %v15761_v62  ;;  %v21457_v62 = vpack.c.bf16 %v21455_v54, %v21456_v46  ;;  %v21459_v26 = vld [vmem:[#allocation117_spill] sm:$0xff] }
 0x395   : > { %14792 = vmatprep.subr.bf16.mxu1 %v15762_v58  ;;  %v21483_v54 = vld [vmem:[#allocation129_spill] sm:$0xff] }
 0x398   : > { %14793 = vmatpush3.bf16.msra.mxu1 %v15762_v58  ;;  %v15767_v58 = vld [vmem:[%s20600_s3 + $0xe0] sm:$0xff]  }
 0x399   : > { %14826 = vmatprep.subr.bf16.mxu1 %v15763_v39 }
 0x39b   : > { %14763 = vmatmul.mubr.msk.bf16.gmra.mrb[156].mxu1 %vm880_vm1, %v21438_v16  ;;  %v21461_v16 = vld [vmem:[#allocation74_spill] sm:$0xff] }
 0x39c   : > { %14766 = vmatprep.mubr.msk.bf16.mxu1 %vm880_vm1, %v21439_v3  ;;  %v21462_v3 = vld [vmem:[#allocation75_spill] sm:$0xff] }
 0x3a3   : > { %14767 = vmatmul.mubr.msk.bf16.gmra.mrb[160].mxu1 %vm880_vm1, %v21440_v8  ;;  %v21463_v8 = vpack.c.bf16 %v21461_v16, %v21462_v3  ;;  %v21488_v3 = vld [vmem:[#allocation142_spill] sm:$0xff] }
 0x3a4   : > { %14770 = vmatprep.mubr.msk.bf16.mxu1 %vm880_vm1, %v18362_v22  ;;  %v5843_v22 = vld [vmem:[#allocation2 + $0x108] sm:$0xff] }
 0x3a5   : > { %v18600_v34 = vpack.c.bf16 %v5844_v18, %v5843_v22  ;;  %v21467_v22 = vld [vmem:[#allocation83_spill] sm:$0xff] }
 0x3ab   : > { %14771 = vmatmul.mubr.msk.bf16.gmra.mrb[164].mxu1 %vm880_vm1, %v18364_v20  ;;  %v21443_v20 = vld [vmem:[#allocation90_spill] sm:$0xff] }
 0x3ac   : > { %14774 = vmatprep.mubr.msk.bf16.mxu1 %vm880_vm1, %v21441_v35  ;;  %v21445_v14 = vpack.c.bf16 %v21443_v20, %v21444_v23  ;;  %v21464_v35 = vld [vmem:[#allocation78_spill] sm:$0xff]  ;;  %v21468_v20 = vld [vmem:[#allocation123_spill] sm:$0xff] }
 0x3ad   : > { %v21469_v23 = vpack.c.bf16 %v21467_v22, %v21468_v20  ;;  %v21491_v20 = vld [vmem:[#allocation23_spill] sm:$0xff] }
 0x3b3   : > { %14775 = vmatmul.mubr.msk.bf16.gmra.mrb[168].mxu1 %vm880_vm1, %v21442_v31  ;;  %v21465_v31 = vld [vmem:[#allocation119_spill] sm:$0xff] }
 0x3b4   : > { %14778 = vmatprep.mubr.msk.bf16.mxu1 %vm880_vm1, %v18378_v36  ;;  %v15764_v36 = vld [vmem:[%s20600_s3 + $0xc8] sm:$0xff]   ;;  %v21466_v18 = vpack.c.bf16 %v21464_v35, %v21465_v31  ;;  %v21489_v35 = vld [vmem:[#allocation143_spill] sm:$0xff] }
 0x3b5   : > { %v6262_v31 = vmul.f32 %v21489_v35, %v21385_v4 }
 0x3bb   : > { %14779 = vmatmul.mubr.msk.bf16.gmra.mrb[172].mxu1 %vm880_vm1, %v18380_v61  ;;  %v21446_v61 = vld [vmem:[#allocation94_spill] sm:$0xff] }
 0x3bc   : > { %14782 = vmatprep.mubr.msk.bf16.mxu1 %vm880_vm1, %v18388_v63  ;;  %v21448_v29 = vpack.c.bf16 %v21446_v61, %v21447_v48  ;;  %v21449_v63 = vld [vmem:[#allocation34_spill] sm:$0xff]  ;;  %v21473_v48 = vld [vmem:[#allocation92_spill] sm:$0xff] }
 0x3bd   : > { %v21451_v2 = vpack.c.bf16 %v21449_v63, %v21450_v27  ;;  %v21476_v27 = vld [vmem:[#allocation126_spill] sm:$0xff] }
 0x3c3   : > { %14783 = vmatmul.mubr.msk.bf16.gmra.mrb[176].mxu1 %vm880_vm1, %v18600_v34 }
 0x3c4   : > { %14794 = vmatprep.mubr.msk.bf16.mxu1 %vm880_vm1, %v21445_v14  ;;  %v21470_v14 = vld [vmem:[#allocation125_spill] sm:$0xff] }
 0x3cb   : > { %14795 = vmatmul.mubr.msk.bf16.vlgmr.msra.gmra.mrb[148].mxu1 %vm880_vm1, %v21448_v29  ;;  %v21474_v29 = vld [vmem:[#allocation93_spill] sm:$0xff] }
 0x3cc   : > { %14798 = vmatprep.mubr.msk.bf16.mxu1 %vm880_vm1, %v21451_v2  ;;  %14827 = vmatpush3.bf16.msra.mxu1 %v15763_v39  ;;  %v21460_v39 = vpack.c.bf16 %v21458_v12, %v21459_v26  ;;  %v21475_v63 = vpack.c.bf16 %v21473_v48, %v21474_v29  ;;  %v21477_v2 = vld [vmem:[#allocation96_spill] sm:$0xff]  ;;  %v21485_v26 = vld [vmem:[#allocation133_spill] sm:$0xff] }
 0x3cd   : > { %14828 = vmatprep.subr.bf16.mxu1 %v15764_v36  ;;  %v6618_v12 = vld [vmem:[#allocation2 + $0x2f] sm:$0xff]  ;;  %v6621_v48 = vld [vmem:[#allocation2 + $0x47] sm:$0xff] }
 0x3ce   : > { %v6622_v29 = vld [vmem:[#allocation2 + $0x4f] sm:$0xff] }
 0x3d0   : > { %14829 = vmatpush3.bf16.msra.mxu1 %v15764_v36  ;;  %v21471_v36 = vld [vmem:[#allocation88_spill] sm:$0xff] }
 0x3d1   : > { %14830 = vmatprep.subr.bf16.mxu1 %v15765_v51  ;;  %v21472_v61 = vpack.c.bf16 %v21470_v14, %v21471_v36 }
 0x3d3   : > { %14799 = vmatmul.mubr.msk.bf16.gmra.mrb[152].mxu1 %vm880_vm1, %v21454_v5  ;;  %v21482_v5 = vld [vmem:[#allocation130_spill] sm:$0xff] }
 0x3d4   : > { %14802 = vmatprep.mubr.msk.bf16.mxu1 %vm880_vm1, %v21457_v62  ;;  %14831 = vmatpush3.bf16.msra.mxu1 %v15765_v51  ;;  %v21478_v51 = vpack.c.bf16 %v21476_v27, %v21477_v2  ;;  %v21484_v46 = vpack.c.bf16 %v21482_v5, %v21483_v54  ;;  %v6617_v62 = vld [vmem:[#allocation2 + $0x27] sm:$0xff] }
 0x3d5   : > { %14832 = vmatprep.subr.bf16.mxu1 %v15766_v56  ;;  %v21492_v27 = vld [vmem:[#allocation27_spill] sm:$0xff]  ;;  %v21495_v5 = vld [vmem:[#allocation28_spill] sm:$0xff] }
 0x3d8   : > { %14833 = vmatpush3.bf16.msra.mxu1 %v15766_v56  ;;  %v21479_v56 = vld [vmem:[#allocation128_spill] sm:$0xff] }
 0x3d9   : > { %14866 = vmatprep.subr.bf16.mxu1 %v15767_v58  ;;  %v21481_v47 = vpack.c.bf16 %v21479_v56, %v21480_v43  ;;  %v21494_v43 = vld [vmem:[#allocation38_spill] sm:$0xff] }
 0x3db   : > { %14803 = vmatmul.mubr.msk.bf16.gmra.mrb[156].mxu1 %vm880_vm1, %v21460_v39  ;;  %v21486_v39 = vld [vmem:[#allocation132_spill] sm:$0xff] }
 0x3dc   : > { %14806 = vmatprep.mubr.msk.bf16.mxu1 %vm880_vm1, %v21463_v8  ;;  %v21487_v16 = vpack.c.bf16 %v21485_v26, %v21486_v39  ;;  %v6261_v8 = vmul.f32 %v21488_v3, %v21384_v50  ;;  %v6624_v26 = vld [vmem:[#allocation2 + $0x5f] sm:$0xff]  ;;  %v6625_v39 = vld [vmem:[#allocation2 + $0x67] sm:$0xff]  ;;  %v6623_v3 = vld [vmem:[#allocation2 + $0x57] sm:$0xff] }
 0x3de   : > { %v6278_v14 = vpack.c.bf16 %v6262_v31, %v6261_v8  ;;  %v21496_v8 = vld [vmem:[#allocation42_spill] sm:$0xff]  ;;  %v15769_v31 = vld [vmem:[%s20600_s3 + $0xf0] sm:$0xff]  }
 0x3df   : > { %v6656_v35 = vmul.f32 %v6624_v26, %v21496_v8  ;;  %v21501_v26 = vld [vmem:[#allocation8_spill] sm:$0xff] }
 0x3e3   : > { %14807 = vmatmul.mubr.msk.bf16.gmra.mrb[160].mxu1 %vm880_vm1, %v21466_v18  ;;  %v21490_v18 = vld [vmem:[#allocation24_spill] sm:$0xff] }
 0x3e4   : > { %14810 = vmatprep.mubr.msk.bf16.mxu1 %vm880_vm1, %v21469_v23  ;;  %v6649_v22 = vmul.f32 %v6617_v62, %v21490_v18  ;;  %v6650_v23 = vmul.f32 %v6618_v12, %v21491_v20  ;;  %v15768_v62 = vld [vmem:[%s20600_s3 + $0xe8] sm:$0xff]  }
 0x3e6   : > { %v6681_v36 = vpack.c.bf16 %v6650_v23, %v6649_v22  ;;  %v21497_v22 = vld [vmem:[#allocation47_spill] sm:$0xff] }
 0x3e7   : > { %v6657_v23 = vmul.f32 %v6625_v39, %v21497_v22  ;;  %v21509_v22 = vld [vmem:[#allocation16_spill] sm:$0xff] }
 0x3eb   : > { %14811 = vmatmul.mubr.msk.bf16.gmra.mrb[164].mxu1 %vm880_vm1, %v21472_v61  ;;  %v6620_v61 = vld [vmem:[#allocation2 + $0x3f] sm:$0xff] }
 0x3ec   : > { %14814 = vmatprep.mubr.msk.bf16.mxu1 %vm880_vm1, %v21475_v63  ;;  %v6619_v63 = vld [vmem:[#allocation2 + $0x37] sm:$0xff]  ;;  %v6652_v2 = vmul.f32 %v6620_v61, %v21492_v27  ;;  %v21499_v61 = vld [vmem:[#allocation43_spill] sm:$0xff] }
 0x3ed   : > { %v6651_v54 = vmul.f32 %v6619_v63, %v21495_v5 }
 0x3f3   : > { %14815 = vmatmul.mubr.msk.bf16.gmra.mrb[168].mxu1 %vm880_vm1, %v21478_v51  ;;  %v21493_v51 = vld [vmem:[#allocation39_spill] sm:$0xff] }
 0x3f4   : > { %14818 = vmatprep.mubr.msk.bf16.mxu1 %vm880_vm1, %v21481_v47  ;;  %v6653_v56 = vmul.f32 %v6621_v48, %v21493_v51  ;;  %v6654_v47 = vmul.f32 %v6622_v29, %v21494_v43  ;;  %v6655_v48 = vmul.f32 %v6623_v3, %v21499_v61 }
 0x3f6   : > { %v6683_v12 = vpack.c.bf16 %v6654_v47, %v6653_v56  ;;  %v6684_v29 = vpack.c.bf16 %v6656_v35, %v6655_v48  ;;  %v6629_v56 = vld [vmem:[#allocation2 + $0x87] sm:$0xff]  ;;  %v6630_v47 = vld [vmem:[#allocation2 + $0x8f] sm:$0xff] }
 0x3f7   : > { %v6661_v39 = vmul.f32 %v6629_v56, %v21501_v26  ;;  %v21503_v35 = vld [vmem:[#allocation49_spill] sm:$0xff]  ;;  %v21505_v56 = vld [vmem:[#allocation12_spill] sm:$0xff] }
 0x3fb   : > { %14819 = vmatmul.mubr.msk.bf16.gmra.mrb[172].mxu1 %vm880_vm1, %v21484_v46  ;;  %v6682_v46 = vpack.c.bf16 %v6652_v2, %v6651_v54  ;;  %v6628_v2 = vld [vmem:[#allocation2 + $0x7f] sm:$0xff]  ;;  %v6627_v54 = vld [vmem:[#allocation2 + $0x77] sm:$0xff] }
 0x3fc   : > { %14822 = vmatprep.mubr.msk.bf16.mxu1 %vm880_vm1, %v21487_v16  ;;  %v6626_v16 = vld [vmem:[#allocation2 + $0x6f] sm:$0xff] }
 0x403   : > { %14823 = vmatmul.mubr.msk.bf16.gmra.mrb[176].mxu1 %vm880_vm1, %v6278_v14  ;;  %v21498_v14 = vld [vmem:[#allocation46_spill] sm:$0xff] }
 0x404   : > { %14834 = vmatprep.mubr.msk.bf16.mxu1 %vm880_vm1, %v6681_v36  ;;  %v6658_v36 = vmul.f32 %v6626_v16, %v21498_v14  ;;  %v21502_v16 = vld [vmem:[#allocation10_spill] sm:$0xff] }
 0x405   : > { %v6662_v3 = vmul.f32 %v6630_v47, %v21502_v16  ;;  %v21506_v47 = vld [vmem:[#allocation11_spill] sm:$0xff] }
 0x406   : > { %v6685_v63 = vpack.c.bf16 %v6658_v36, %v6657_v23  ;;  %v6659_v23 = vmul.f32 %v6627_v54, %v21503_v35  ;;  %v21507_v54 = vld [vmem:[#allocation7_spill] sm:$0xff] }
 0x407   : > { %v6687_v48 = vpack.c.bf16 %v6662_v3, %v6661_v39  ;;  %v6636_v35 = vld [vmem:[#allocation2 + $0xbf] sm:$0xff]  ;;  %v6637_v39 = vld [vmem:[#allocation2 + $0xc7] sm:$0xff]  ;;  %v6638_v3 = vld [vmem:[#allocation2 + $0xcf] sm:$0xff] }
 0x40b   : > { %14835 = vmatmul.mubr.msk.bf16.vlgmr.msra.gmra.mrb[148].mxu1 %vm880_vm1, %v6682_v46  ;;  %v21500_v46 = vld [vmem:[#allocation48_spill] sm:$0xff] }
 0x40c   : > { %14838 = vmatprep.mubr.msk.bf16.mxu1 %vm880_vm1, %v6683_v12  ;;  %14867 = vmatpush3.bf16.msra.mxu1 %v15767_v58  ;;  %v15770_v58 = vld [vmem:[%s20600_s3 + $0xf8] sm:$0xff]   ;;  %v6660_v12 = vmul.f32 %v6628_v2, %v21500_v46 }
 0x40d   : > { %14868 = vmatprep.subr.bf16.mxu1 %v15768_v62  ;;  %v6631_v2 = vld [vmem:[#allocation2 + $0x97] sm:$0xff] }
 0x40e   : > { %v6686_v36 = vpack.c.bf16 %v6660_v12, %v6659_v23 }
 0x410   : > { %14869 = vmatpush3.bf16.msra.mxu1 %v15768_v62  ;;  %v18709_v62 = vld [vmem:[%s20600_s3 + $0x100] sm:$0xff]  }
 0x411   : > { %14870 = vmatprep.subr.bf16.mxu1 %v15769_v31 }
 0x413   : > { %14839 = vmatmul.mubr.msk.bf16.gmra.mrb[152].mxu1 %vm880_vm1, %v6684_v29  ;;  %v6633_v29 = vld [vmem:[#allocation2 + $0xa7] sm:$0xff] }
 0x414   : > { %14842 = vmatprep.mubr.msk.bf16.mxu1 %vm880_vm1, %v6685_v63  ;;  %14871 = vmatpush3.bf16.msra.mxu1 %v15769_v31  ;;  %v6632_v31 = vld [vmem:[#allocation2 + $0x9f] sm:$0xff]  ;;  %v6634_v63 = vld [vmem:[#allocation2 + $0xaf] sm:$0xff]  ;;  %v6665_v26 = vmul.f32 %v6633_v29, %v21505_v56 }
 0x415   : > { %14872 = vmatprep.subr.bf16.mxu1 %v15770_v58  ;;  %v6664_v55 = vmul.f32 %v6632_v31, %v21504_v19  ;;  %v6666_v16 = vmul.f32 %v6634_v63, %v21506_v47  ;;  %v6669_v31 = vmul.f32 %v6637_v39, %v21509_v22  ;;  %v21510_v19 = vld [vmem:[#allocation15_spill] sm:$0xff]  ;;  %v21511_v56 = vld [vmem:[#allocation14_spill] sm:$0xff] }
 0x416   : > { %v6670_v29 = vmul.f32 %v6638_v3, %v21510_v19  ;;  %v21515_v22 = vld [vmem:[#allocation18_spill] sm:$0xff] }
 0x417   : > { %v6689_v23 = vpack.c.bf16 %v6666_v16, %v6665_v26  ;;  %v6641_v26 = vld [vmem:[#allocation2 + $0xe7] sm:$0xff]  ;;  %v6642_v16 = vld [vmem:[#allocation2 + $0xef] sm:$0xff] }
 0x418   : > { %14873 = vmatpush3.bf16.msra.mxu1 %v15770_v58  ;;  %v6663_v58 = vmul.f32 %v6631_v2, %v21507_v54  ;;  %v6691_v2 = vpack.c.bf16 %v6670_v29, %v6669_v31  ;;  %v21513_v54 = vld [vmem:[#allocation20_spill] sm:$0xff]  ;;  %v21516_v31 = vld [vmem:[#allocation21_spill] sm:$0xff] }
 0x419   : > { %14906 = vmatprep.subr.bf16.mxu1 %v18709_v62 }
 0x41a   : > { %v6688_v12 = vpack.c.bf16 %v6664_v55, %v6663_v58  ;;  %v6640_v55 = vld [vmem:[#allocation2 + $0xdf] sm:$0xff]  ;;  %v6639_v58 = vld [vmem:[#allocation2 + $0xd7] sm:$0xff] }
 0x41b   : > { %14843 = vmatmul.mubr.msk.bf16.gmra.mrb[156].mxu1 %vm880_vm1, %v6686_v36  ;;  %v6635_v36 = vld [vmem:[#allocation2 + $0xb7] sm:$0xff]  ;;  %v6671_v3 = vmul.f32 %v6639_v58, %v21515_v22  ;;  %v6648_v58 = vld [vmem:[#allocation2 + $0x11f] sm:$0xff] }
 0x41c   : > { %14846 = vmatprep.mubr.msk.bf16.mxu1 %vm880_vm1, %v6687_v48  ;;  %v21508_v48 = vld [vmem:[#allocation13_spill] sm:$0xff]  ;;  %v6667_v63 = vmul.f32 %v6635_v36, %v21511_v56 }
 0x41d   : > { %v6668_v14 = vmul.f32 %v6636_v35, %v21508_v48  ;;  %v6673_v35 = vmul.f32 %v6641_v26, %v21513_v54  ;;  %v21514_v48 = vld [vmem:[#allocation19_spill] sm:$0xff]  ;;  %v21518_v26 = vld [vmem:[#allocation137_spill] sm:$0xff] }
 0x41e   : > { %v6674_v39 = vmul.f32 %v6642_v16, %v21514_v48  ;;  %v21519_v16 = vld [vmem:[#allocation136_spill] sm:$0xff] }
 0x41f   : > { %v6690_v47 = vpack.c.bf16 %v6668_v14, %v6667_v63  ;;  %v6644_v14 = vld [vmem:[#allocation2 + $0xff] sm:$0xff]  ;;  %v21520_v48 = vpack.c.bf16 %v21518_v26, %v21519_v16 }
 0x420   : > { %v6693_v36 = vpack.c.bf16 %v6674_v39, %v6673_v35  ;;  %v6676_v29 = vmul.f32 %v6644_v14, %v21516_v31  ;;  %v21517_v63 = vld [vmem:[#allocation22_spill] sm:$0xff]  ;;  %v7036_v35 = vld [vmem:[#allocation2 + $0x30] sm:$0xff]  ;;  %v7038_v14 = vld [vmem:[#allocation2 + $0x40] sm:$0xff] }
 0x421   : > { %v15799_v26 = vld [vmem:[%s20602_s5 + $0x100] ss:$8 sps:$4 sm:$0xff]   ;;  %v15801_v16 = vld [vmem:[%s20602_s5 + $0x104] ss:$8 sps:$4 sm:$0xff]  }
 0x422   : > { %9120 = vmatprep.subr.bf16.mxu0 %v15801_v16  ;;  %v7048_v16 = vld [vmem:[#allocation2 + $0x90] sm:$0xff] }
 0x423   : > { %14847 = vmatmul.mubr.msk.bf16.gmra.mrb[160].mxu1 %vm880_vm1, %v6688_v12  ;;  %v21512_v12 = vld [vmem:[#allocation17_spill] sm:$0xff]  ;;  %9121 = vmatpush1.bf16.msra.mxu0 %v15799_v26 }
 0x424   : > { %14850 = vmatprep.mubr.msk.bf16.mxu1 %vm880_vm1, %v6689_v23  ;;  %v6672_v23 = vmul.f32 %v6640_v55, %v21512_v12  ;;  %v6647_v55 = vld [vmem:[#allocation2 + $0x117] sm:$0xff] }
 0x425   : > { %v15808_v26 = vld [vmem:[%s20602_s5 + $0x130] ss:$8 sps:$4 sm:$0xff]  }
 0x426   : > { %v6692_v19 = vpack.c.bf16 %v6672_v23, %v6671_v3  ;;  %v6679_v23 = vmul.f32 %v6647_v55, %v21431_v30  ;;  %v7035_v3 = vld [vmem:[#allocation2 + $0x28] sm:$0xff] }
 0x42b   : > { %14851 = vmatmul.mubr.msk.bf16.gmra.mrb[164].mxu1 %vm880_vm1, %v6690_v47  ;;  %v6643_v47 = vld [vmem:[#allocation2 + $0xf7] sm:$0xff] }
 0x42c   : > { %14854 = vmatprep.mubr.msk.bf16.mxu1 %vm880_vm1, %v6691_v2  ;;  %v6675_v2 = vmul.f32 %v6643_v47, %v21517_v63  ;;  %v7037_v47 = vld [vmem:[#allocation2 + $0x38] sm:$0xff] }
 0x42e   : > { %v6694_v56 = vpack.c.bf16 %v6676_v29, %v6675_v2  ;;  %v7068_v29 = vpack.c.bf16 %v7038_v14, %v7037_v47  ;;  %v7039_v2 = vld [vmem:[#allocation2 + $0x48] sm:$0xff] }
 0x42f   : > { %v7043_v14 = vld [vmem:[#allocation2 + $0x68] sm:$0xff] }
 0x433   : > { %14855 = vmatmul.mubr.msk.bf16.gmra.mrb[168].mxu1 %vm880_vm1, %v6692_v19  ;;  %v6680_v19 = vmul.f32 %v6648_v58, %v21432_v10  ;;  %v15804_v58 = vld [vmem:[%s20602_s5 + $0x114] ss:$8 sps:$4 sm:$0xff]  }
 0x434   : > { %14858 = vmatprep.mubr.msk.bf16.mxu1 %vm880_vm1, %v6693_v36  ;;  %v7067_v36 = vpack.c.bf16 %v7036_v35, %v7035_v3  ;;  %v15802_v35 = vld [vmem:[%s20602_s5 + $0x110] ss:$8 sps:$4 sm:$0xff]   ;;  %9122 = vmatprep.subr.bf16.mxu0 %v15804_v58 }
 0x435   : > { %v6696_v39 = vpack.c.bf16 %v6680_v19, %v6679_v23  ;;  %v15773_v23 = vld [vmem:[%s20600_s3 + $0x110] sm:$0xff]   ;;  %v7042_v19 = vld [vmem:[#allocation2 + $0x60] sm:$0xff]  ;;  %v7041_v3 = vld [vmem:[#allocation2 + $0x58] sm:$0xff]  ;;  %9123 = vmatpush1.bf16.msra.mxu0 %v15802_v35 }
 0x436   : > { %v7045_v58 = vld [vmem:[#allocation2 + $0x78] sm:$0xff]  ;;  %v7047_v35 = vld [vmem:[#allocation2 + $0x88] sm:$0xff] }
 0x43b   : > { %14859 = vmatmul.mubr.msk.bf16.gmra.mrb[172].mxu1 %vm880_vm1, %v6694_v56  ;;  %v7040_v56 = vld [vmem:[#allocation2 + $0x50] sm:$0xff] }
 0x43c   : > { %14862 = vmatprep.mubr.msk.bf16.mxu1 %vm880_vm1, %v21520_v48  ;;  %v15772_v48 = vld [vmem:[%s20600_s3 + $0x108] sm:$0xff]   ;;  %v7069_v55 = vpack.c.bf16 %v7040_v56, %v7039_v2  ;;  %v15774_v56 = vld [vmem:[%s20600_s3 + $0x118] sm:$0xff]  }
 0x43d   : > { %v15810_v2 = vld [vmem:[%s20602_s5 + $0x134] ss:$8 sps:$4 sm:$0xff]  }
 0x443   : > { %14863 = vmatmul.mubr.msk.bf16.gmra.mrb[176].mxu1 %vm880_vm1, %v6696_v39  ;;  %v7044_v39 = vld [vmem:[#allocation2 + $0x70] sm:$0xff] }
 0x444   : > { %14874 = vmatprep.mubr.msk.bf16.mxu1 %vm880_vm1, %v7067_v36  ;;  %v7070_v36 = vpack.c.bf16 %v7042_v19, %v7041_v3  ;;  %v7071_v47 = vpack.c.bf16 %v7044_v39, %v7043_v14  ;;  %v7073_v39 = vpack.c.bf16 %v7048_v16, %v7047_v35  ;;  %v7049_v3 = vld [vmem:[#allocation2 + $0x98] sm:$0xff]  ;;  %v7051_v14 = vld [vmem:[#allocation2 + $0xa8] sm:$0xff]  ;;  %v7058_v16 = vld [vmem:[#allocation2 + $0xe0] sm:$0xff] }
 0x44b   : > { %14875 = vmatmul.mubr.msk.bf16.vlgmr.msra.gmra.mrb[148].mxu1 %vm880_vm1, %v7068_v29  ;;  %v15805_v29 = vld [vmem:[%s20602_s5 + $0x120] ss:$8 sps:$4 sm:$0xff]  }
 0x44c   : > { %14878 = vmatprep.mubr.msk.bf16.mxu1 %vm880_vm1, %v7069_v55  ;;  %14907 = vmatpush3.bf16.msra.mxu1 %v18709_v62  ;;  %v15807_v62 = vld [vmem:[%s20602_s5 + $0x124] ss:$8 sps:$4 sm:$0xff]  }
 0x44d   : > { %14908 = vmatprep.subr.bf16.mxu1 %v15772_v48  ;;  %9124 = vmatprep.subr.bf16.mxu0 %v15807_v62  ;;  %v7046_v55 = vld [vmem:[#allocation2 + $0x80] sm:$0xff]  ;;  %v7052_v62 = vld [vmem:[#allocation2 + $0xb0] sm:$0xff] }
 0x44e   : > { %9125 = vmatpush1.bf16.msra.mxu0 %v15805_v29  ;;  %v7072_v19 = vpack.c.bf16 %v7046_v55, %v7045_v58  ;;  %v7056_v29 = vld [vmem:[#allocation2 + $0xd0] sm:$0xff]  ;;  %v7055_v55 = vld [vmem:[#allocation2 + $0xc8] sm:$0xff] }
 0x44f   : > { %9126 = vmatprep.subr.bf16.mxu0 %v15810_v2  ;;  %v7053_v2 = vld [vmem:[#allocation2 + $0xb8] sm:$0xff]  ;;  %v7060_v58 = vld [vmem:[#allocation2 + $0xf0] sm:$0xff] }
 0x450   : > { %14909 = vmatpush3.bf16.msra.mxu1 %v15772_v48  ;;  %v15777_v48 = vld [vmem:[%s20602_s5 + $0x4] ss:$8 sps:$4 sm:$0xff]  }
 0x451   : > { %14910 = vmatprep.subr.bf16.mxu1 %v15773_v23 }
 0x452   : > { %9127 = vmatpush1.bf16.msra.mxu0 %v15808_v26  ;;  %v7077_v26 = vpack.c.bf16 %v7056_v29, %v7055_v55  ;;  %v7421_v29 = vld [vmem:[#allocation2 + $0x29] sm:$0xff] }
 0x453   : > { %14879 = vmatmul.mubr.msk.bf16.gmra.mrb[152].mxu1 %vm880_vm1, %v7070_v36  ;;  %v7453_v55 = vmul.f32 %v7421_v29, %v21213_v33  ;;  %v7428_v29 = vld [vmem:[#allocation2 + $0x61] sm:$0xff] }
 0x454   : > { %14882 = vmatprep.mubr.msk.bf16.mxu1 %vm880_vm1, %v7071_v47  ;;  %14911 = vmatpush3.bf16.msra.mxu1 %v15773_v23  ;;  %v7050_v23 = vld [vmem:[#allocation2 + $0xa0] sm:$0xff]  ;;  %v7075_v47 = vpack.c.bf16 %v7052_v62, %v7051_v14  ;;  %v7422_v14 = vld [vmem:[#allocation2 + $0x31] sm:$0xff] }
 0x455   : > { %14912 = vmatprep.subr.bf16.mxu1 %v15774_v56  ;;  %v7074_v36 = vpack.c.bf16 %v7050_v23, %v7049_v3  ;;  %v7062_v62 = vld [vmem:[#allocation2 + $0x100] sm:$0xff]  ;;  %v7061_v3 = vld [vmem:[#allocation2 + $0xf8] sm:$0xff] }
 0x458   : > { %14913 = vmatpush3.bf16.msra.mxu1 %v15774_v56  ;;  %v7054_v56 = vld [vmem:[#allocation2 + $0xc0] sm:$0xff] }
 0x459   : > { %8156 = vmatprep.subr.bf16.mxu1 %v15777_v48  ;;  %v7076_v48 = vpack.c.bf16 %v7054_v56, %v7053_v2  ;;  %v7066_v56 = vld [vmem:[#allocation2 + $0x120] sm:$0xff]  ;;  %v7454_v2 = vmul.f32 %v7422_v14, %v21282_v44  ;;  %v15780_v14 = vld [vmem:[%s20602_s5 + $0x14] ss:$8 sps:$4 sm:$0xff]  }
 0x45b   : > { %14883 = vmatmul.mubr.msk.bf16.gmra.mrb[156].mxu1 %vm880_vm1, %v7072_v19  ;;  %v7057_v19 = vld [vmem:[#allocation2 + $0xd8] sm:$0xff] }
 0x45c   : > { %14886 = vmatprep.mubr.msk.bf16.mxu1 %vm880_vm1, %v7073_v39  ;;  %v7078_v35 = vpack.c.bf16 %v7058_v16, %v7057_v19  ;;  %v7059_v39 = vld [vmem:[#allocation2 + $0xe8] sm:$0xff]  ;;  %v7423_v16 = vld [vmem:[#allocation2 + $0x39] sm:$0xff]  ;;  %v7426_v19 = vld [vmem:[#allocation2 + $0x51] sm:$0xff] }
 0x45d   : > { %v7079_v23 = vpack.c.bf16 %v7060_v58, %v7059_v39  ;;  %v7424_v58 = vld [vmem:[#allocation2 + $0x41] sm:$0xff]  ;;  %v7425_v39 = vld [vmem:[#allocation2 + $0x49] sm:$0xff] }
 0x463   : > { %14887 = vmatmul.mubr.msk.bf16.gmra.mrb[160].mxu1 %vm880_vm1, %v7074_v36  ;;  %v7080_v36 = vpack.c.bf16 %v7062_v62, %v7061_v3  ;;  %v7457_v62 = vmul.f32 %v7425_v39, %v21292_v25  ;;  %v15775_v3 = vld [vmem:[%s20602_s5] ss:$8 sps:$4 sm:$0xff]  }
 0x464   : > { %14890 = vmatprep.mubr.msk.bf16.mxu1 %vm880_vm1, %v7075_v47  ;;  %v7065_v47 = vld [vmem:[#allocation2 + $0x118] sm:$0xff] }
 0x46b   : > { %14891 = vmatmul.mubr.msk.bf16.gmra.mrb[164].mxu1 %vm880_vm1, %v7076_v48  ;;  %v7082_v48 = vpack.c.bf16 %v7066_v56, %v7065_v47  ;;  %v7427_v56 = vld [vmem:[#allocation2 + $0x59] sm:$0xff] }
 0x46c   : > { %14894 = vmatprep.mubr.msk.bf16.mxu1 %vm880_vm1, %v7077_v26  ;;  %v7485_v26 = vpack.c.bf16 %v7454_v2, %v7453_v55  ;;  %v7430_v2 = vld [vmem:[#allocation2 + $0x71] sm:$0xff]  ;;  %v7459_v55 = vmul.f32 %v7427_v56, %v21297_v42 }
 0x473   : > { %14895 = vmatmul.mubr.msk.bf16.gmra.mrb[168].mxu1 %vm880_vm1, %v7078_v35  ;;  %v7455_v35 = vmul.f32 %v7423_v16, %v21284_v1  ;;  %v7429_v16 = vld [vmem:[#allocation2 + $0x69] sm:$0xff] }
 0x474   : > { %14898 = vmatprep.mubr.msk.bf16.mxu1 %vm880_vm1, %v7079_v23  ;;  %v7458_v23 = vmul.f32 %v7426_v19, %v21295_v57  ;;  %v7462_v19 = vmul.f32 %v7430_v2, %v21308_v32  ;;  %v7433_v2 = vld [vmem:[#allocation2 + $0x89] sm:$0xff] }
 0x476   : > { %v7487_v47 = vpack.c.bf16 %v7458_v23, %v7457_v62  ;;  %v15786_v23 = vld [vmem:[%s20602_s5 + $0x34] ss:$8 sps:$4 sm:$0xff]  }
 0x47b   : > { %14899 = vmatmul.mubr.msk.bf16.gmra.mrb[172].mxu1 %vm880_vm1, %v7080_v36 }
 0x47c   : > { %14902 = vmatprep.mubr.msk.bf16.mxu1 %vm880_vm1, %v18600_v34  ;;  %v7456_v34 = vmul.f32 %v7424_v58, %v21286_v13  ;;  %v15783_v58 = vld [vmem:[%s20602_s5 + $0x24] ss:$8 sps:$4 sm:$0xff]  }
 0x47e   : > { %v7486_v36 = vpack.c.bf16 %v7456_v34, %v7455_v35  ;;  %v7461_v35 = vmul.f32 %v7429_v16, %v21304_v0  ;;  %v15781_v34 = vld [vmem:[%s20602_s5 + $0x20] ss:$8 sps:$4 sm:$0xff]  }
 0x47f   : > { %v15787_v16 = vld [vmem:[%s20602_s5 + $0x40] ss:$8 sps:$4 sm:$0xff]  }
 0x480   : > { %v7489_v62 = vpack.c.bf16 %v7462_v19, %v7461_v35  ;;  %v15792_v19 = vld [vmem:[%s20602_s5 + $0x54] ss:$8 sps:$4 sm:$0xff]  }
 0x483   : > { %14903 = vmatmul.mubr.msk.bf16.gmra.mrb[176].mxu1 %vm880_vm1, %v7082_v48  ;;  %v15778_v48 = vld [vmem:[%s20602_s5 + $0x10] ss:$8 sps:$4 sm:$0xff]  }
 0x484   : > { %14914 = vmatprep.mubr.msk.bf16.mxu1 %vm880_vm1, %v7485_v26  ;;  %v7460_v26 = vmul.f32 %v7428_v29, %v21299_v41 }
 0x486   : > { %v7488_v39 = vpack.c.bf16 %v7460_v26, %v7459_v55  ;;  %v7465_v26 = vmul.f32 %v7433_v2, %v21315_v40  ;;  %v15793_v2 = vld [vmem:[%s20602_s5 + $0x60] ss:$8 sps:$4 sm:$0xff]  }
 0x48b   : > { %14915 = vmatmul.mubr.msk.bf16.vlgmr.msra.gmra.mrb[148].mxu1 %vm880_vm1, %v7486_v36  ;;  %v7432_v36 = vld [vmem:[#allocation2 + $0x81] sm:$0xff] }
 0x48c   : > { %14918 = vmatprep.mubr.msk.bf16.mxu1 %vm880_vm1, %v7487_v47  ;;  %8157 = vmatpush1.bf16.msra.mxu1 %v15775_v3  ;;  %v7431_v3 = vld [vmem:[#allocation2 + $0x79] sm:$0xff]  ;;  %v7464_v29 = vmul.f32 %v7432_v36, %v21313_v21 }
 0x48d   : > { %8158 = vmatprep.subr.bf16.mxu1 %v15780_v14  ;;  %v7434_v14 = vld [vmem:[#allocation2 + $0x91] sm:$0xff]  ;;  %v7463_v56 = vmul.f32 %v7431_v3, %v21310_v49 }
 0x48e   : > { %v15784_v47 = vld [vmem:[%s20602_s5 + $0x30] ss:$8 sps:$4 sm:$0xff]   ;;  %v7466_v55 = vmul.f32 %v7434_v14, %v21317_v24 }
 0x48f   : > { %v7437_v14 = vld [vmem:[#allocation2 + $0xa9] sm:$0xff] }
 0x490   : > { %8159 = vmatpush1.bf16.msra.mxu1 %v15778_v48  ;;  %v15789_v48 = vld [vmem:[%s20602_s5 + $0x44] ss:$8 sps:$4 sm:$0xff]   ;;  %v7491_v35 = vpack.c.bf16 %v7466_v55, %v7465_v26  ;;  %v15798_v55 = vld [vmem:[%s20602_s5 + $0x74] ss:$8 sps:$4 sm:$0xff]  }
 0x491   : > { %8160 = vmatprep.subr.bf16.mxu1 %v15783_v58  ;;  %v7490_v58 = vpack.c.bf16 %v7464_v29, %v7463_v56  ;;  %v7469_v29 = vmul.f32 %v7437_v14, %v21370_v38 }
 0x493   : > { %14919 = vmatmul.mubr.msk.bf16.gmra.mrb[152].mxu1 %vm880_vm1, %v7488_v39  ;;  %v7436_v39 = vld [vmem:[#allocation2 + $0xa1] sm:$0xff] }
 0x494   : > { %14922 = vmatprep.mubr.msk.bf16.mxu1 %vm880_vm1, %v7489_v62  ;;  %8161 = vmatpush1.bf16.msra.mxu1 %v15781_v34  ;;  %v7435_v34 = vld [vmem:[#allocation2 + $0x99] sm:$0xff]  ;;  %v7468_v36 = vmul.f32 %v7436_v39, %v21324_v17 }
 0x495   : > { %8162 = vmatprep.subr.bf16.mxu1 %v15786_v23  ;;  %v7438_v23 = vld [vmem:[#allocation2 + $0xb1] sm:$0xff]  ;;  %v7467_v3 = vmul.f32 %v7435_v34, %v21319_v11 }
 0x496   : > { %v15790_v62 = vld [vmem:[%s20602_s5 + $0x50] ss:$8 sps:$4 sm:$0xff]   ;;  %v7470_v56 = vmul.f32 %v7438_v23, %v21328_v37 }
 0x497   : > { %v7441_v23 = vld [vmem:[#allocation2 + $0xc9] sm:$0xff] }
 0x498   : > { %8163 = vmatpush1.bf16.msra.mxu1 %v15784_v47  ;;  %v15795_v47 = vld [vmem:[%s20602_s5 + $0x64] ss:$8 sps:$4 sm:$0xff]   ;;  %v7493_v26 = vpack.c.bf16 %v7470_v56, %v7469_v29  ;;  %v7446_v29 = vld [vmem:[#allocation2 + $0xf1] sm:$0xff] }
 0x499   : > { %8164 = vmatprep.subr.bf16.mxu1 %v15789_v48  ;;  %v7492_v48 = vpack.c.bf16 %v7468_v36, %v7467_v3  ;;  %v7473_v3 = vmul.f32 %v7441_v23, %v21335_v6  ;;  %v7444_v56 = vld [vmem:[#allocation2 + $0xe1] sm:$0xff] }
 0x49b   : > { %14923 = vmatmul.mubr.msk.bf16.gmra.mrb[156].mxu1 %vm880_vm1, %v7490_v58  ;;  %v7440_v58 = vld [vmem:[#allocation2 + $0xc1] sm:$0xff] }
 0x49c   : > { %14926 = vmatprep.mubr.msk.bf16.mxu1 %vm880_vm1, %v7491_v35  ;;  %8165 = vmatpush1.bf16.msra.mxu1 %v15787_v16  ;;  %v7439_v16 = vld [vmem:[#allocation2 + $0xb9] sm:$0xff]  ;;  %v7472_v39 = vmul.f32 %v7440_v58, %v21373_v7 }
 0x49d   : > { %8166 = vmatprep.subr.bf16.mxu1 %v15792_v19  ;;  %v7442_v19 = vld [vmem:[#allocation2 + $0xd1] sm:$0xff]  ;;  %v7471_v34 = vmul.f32 %v7439_v16, %v21331_v9 }
 0x49e   : > { %v15796_v35 = vld [vmem:[%s20602_s5 + $0x70] ss:$8 sps:$4 sm:$0xff]  }
 0x49f   : > { %v7494_v36 = vpack.c.bf16 %v7472_v39, %v7471_v34  ;;  %v7448_v34 = vld [vmem:[#allocation2 + $0x101] sm:$0xff] }
 0x4a0   : > { %8167 = vmatpush1.bf16.msra.mxu1 %v15790_v62  ;;  %v7474_v62 = vmul.f32 %v7442_v19, %v21337_v28  ;;  %v7480_v23 = vmul.f32 %v7448_v34, %v21349_v60  ;;  %v15811_v34 = vld [vmem:[%s20602_s5 + $0x140] ss:$8 sps:$4 sm:$0xff]  }
 0x4a1   : > { %8168 = vmatprep.subr.bf16.mxu1 %v15795_v47  ;;  %v7443_v47 = vld [vmem:[#allocation2 + $0xd9] sm:$0xff] }
 0x4a2   : > { %v7495_v14 = vpack.c.bf16 %v7474_v62, %v7473_v3  ;;  %v7451_v3 = vld [vmem:[#allocation2 + $0x119] sm:$0xff] }
 0x4a3   : > { %14927 = vmatmul.mubr.msk.bf16.gmra.mrb[160].mxu1 %vm880_vm1, %v7492_v48  ;;  %v7476_v48 = vmul.f32 %v7444_v56, %v21377_v15 }
 0x4a4   : > { %14930 = vmatprep.mubr.msk.bf16.mxu1 %vm880_vm1, %v7493_v26  ;;  %8169 = vmatpush1.bf16.msra.mxu1 %v15793_v2  ;;  %v7475_v2 = vmul.f32 %v7443_v47, %v21339_v52  ;;  %v7445_v26 = vld [vmem:[#allocation2 + $0xe9] sm:$0xff] }
 0x4a5   : > { %8170 = vmatprep.subr.bf16.mxu1 %v15798_v55  ;;  %v7478_v55 = vmul.f32 %v7446_v29, %v21345_v59  ;;  %v7477_v16 = vmul.f32 %v7445_v26, %v21380_v53  ;;  %v21522_v47 = vld [vmem:[#allocation144_spill] sm:$0xff]  ;;  %v7483_v29 = vmul.f32 %v7451_v3, %v21384_v50  ;;  %v7980_v26 = vld [vmem:[#allocation3 + $0x7] sm:$0xff] }
 0x4a6   : > { %v7496_v58 = vpack.c.bf16 %v7476_v48, %v7475_v2  ;;  %v15817_v3 = vld [vmem:[%s20602_s5 + $0x160] ss:$8 sps:$4 sm:$0xff]  }
 0x4a7   : > { %v7497_v19 = vpack.c.bf16 %v7478_v55, %v7477_v16  ;;  %v7981_v55 = vld [vmem:[#allocation3 + $0xf] sm:$0xff]  ;;  %v21524_v16 = vmov 0  }
 0x4a8   : > { %8171 = vmatpush1.bf16.msra.mxu1 %v15796_v35  ;;  %v7447_v35 = vld [vmem:[#allocation2 + $0xf9] sm:$0xff] }
 0x4a9   : > { %v7479_v39 = vmul.f32 %v7447_v35, %v21347_v45 }
 0x4ab   : > { %14931 = vmatmul.mubr.msk.bf16.gmra.mrb[164].mxu1 %vm880_vm1, %v7494_v36  ;;  %v7498_v62 = vpack.c.bf16 %v7480_v23, %v7479_v39  ;;  %v7452_v36 = vld [vmem:[#allocation2 + $0x121] sm:$0xff]  ;;  %v15816_v23 = vld [vmem:[%s20602_s5 + $0x154] ss:$8 sps:$4 sm:$0xff]  }
 0x4ac   : > { %14934 = vmatprep.mubr.msk.bf16.mxu1 %vm880_vm1, %v7495_v14  ;;  %v21521_v14 = vld [vmem:[#allocation145_spill] sm:$0xff]  ;;  %v7484_v2 = vmul.f32 %v7452_v36, %v21385_v4  ;;  %v15813_v39 = vld [vmem:[%s20602_s5 + $0x144] ss:$8 sps:$4 sm:$0xff]   ;;  %v8943_v4 = vld [vmem:[#allocation3 + $0x9] sm:$0xff] }
 0x4ad   : > { %v21523_v56 = vpack.c.bf16 %v21521_v14, %v21522_v47  ;;  %9128 = vmatprep.subr.bf16.mxu0 %v15813_v39  ;;  %v15819_v36 = vld [vmem:[%s20602_s5 + $0x164] ss:$8 sps:$4 sm:$0xff]   ;;  %v15822_v14 = vld [vmem:[%s20602_s5 + $0x174] ss:$8 sps:$4 sm:$0xff]   ;;  %v15820_v47 = vld [vmem:[%s20602_s5 + $0x170] ss:$8 sps:$4 sm:$0xff]  }
 0x4ae   : > { %v7500_v48 = vpack.c.bf16 %v7484_v2, %v7483_v29  ;;  %9129 = vmatpush1.bf16.msra.mxu0 %v15811_v34  ;;  %v15829_v29 = vld [vmem:[%s20602_s5 + $0x80] ss:$8 sps:$4 sm:$0xff]   ;;  %v15831_v2 = vld [vmem:[%s20602_s5 + $0x84] ss:$8 sps:$4 sm:$0xff]  }
 0x4af   : > { %9130 = vmatprep.subr.bf16.mxu0 %v15816_v23  ;;  %8558 = vmatprep.subr.bf16.mxu1 %v15831_v2  ;;  %v15844_v34 = vld [vmem:[%s20602_s5 + $0xc0] ss:$8 sps:$4 sm:$0xff]   ;;  %v15846_v39 = vld [vmem:[%s20602_s5 + $0xc4] ss:$8 sps:$4 sm:$0xff]   ;;  %v15852_v23 = vld [vmem:[%s20602_s5 + $0xd4] ss:$8 sps:$4 sm:$0xff]  }
 0x4b3   : > { %14935 = vmatmul.mubr.msk.bf16.gmra.mrb[168].mxu1 %vm880_vm1, %v7496_v58  ;;  %v8012_v58 = vmul.f32 %v7980_v26, %v21490_v18  ;;  %v15832_v26 = vld [vmem:[%s20602_s5 + $0x90] ss:$8 sps:$4 sm:$0xff]  }
 0x4b4   : > { %14938 = vmatprep.mubr.msk.bf16.mxu1 %vm880_vm1, %v7497_v19  ;;  %v8013_v19 = vmul.f32 %v7981_v55, %v21491_v20  ;;  %v15835_v55 = vld [vmem:[%s20602_s5 + $0xa0] ss:$8 sps:$4 sm:$0xff]  }
 0x4b6   : > { %v8044_v35 = vpack.c.bf16 %v8013_v19, %v8012_v58  ;;  %v15837_v58 = vld [vmem:[%s20602_s5 + $0xa4] ss:$8 sps:$4 sm:$0xff]   ;;  %v15843_v19 = vld [vmem:[%s20602_s5 + $0xb4] ss:$8 sps:$4 sm:$0xff]  }
 0x4bb   : > { %14939 = vmatmul.mubr.msk.bf16.gmra.mrb[172].mxu1 %vm880_vm1, %v7498_v62  ;;  %v15814_v62 = vld [vmem:[%s20602_s5 + $0x150] ss:$8 sps:$4 sm:$0xff]  }
 0x4bc   : > { %14942 = vmatprep.mubr.msk.bf16.mxu1 %vm880_vm1, %v21523_v56  ;;  %9131 = vmatpush1.bf16.msra.mxu0 %v15814_v62  ;;  %v15825_v56 = vld [vmem:[%s20602_s5 + $0x184] ss:$8 sps:$4 sm:$0xff]   ;;  %v18960_v62 = vld [vmem:[%s20601_s4] ss:$0 sm:$0xff] }
 0x4bd   : > { %9132 = vmatprep.subr.bf16.mxu0 %v15819_v36 }
 0x4c0   : > { %9133 = vmatpush1.bf16.msra.mxu0 %v15817_v3  ;;  %v15850_v3 = vld [vmem:[%s20602_s5 + $0xd0] ss:$8 sps:$4 sm:$0xff]  }
 0x4c1   : > { %9134 = vmatprep.subr.bf16.mxu0 %v15822_v14 }
 0x4c3   : > { %14943 = vmatmul.mubr.msk.bf16.gmra.mrb[176].mxu1 %vm880_vm1, %v7500_v48  ;;  %v15834_v48 = vld [vmem:[%s20602_s5 + $0x94] ss:$8 sps:$4 sm:$0xff]  }
 0x4c4   : > { %8188 = vmatprep.mubr.bf16.mxu1 %v21524_v16  ;;  %9135 = vmatpush1.bf16.msra.mxu0 %v15820_v47 }
 0x4c5   : > { %9682 = vmatprep.subr.bf16.mxu0 %v15825_v56 }
 0x4cb   : > { %8189 = vmatmul.mubr.bf16.vlgmr.msra.gmra.mrb[180].mxu1 %v8044_v35  ;;  %v15841_v35 = vld [vmem:[%s20602_s5 + $0xb0] ss:$8 sps:$4 sm:$0xff]  }
 0x4cc   : > { %8198 = vmatprep.mubr.bf16.mxu1 %v21524_v16  ;;  %8559 = vmatpush1.bf16.msra.mxu1 %v15829_v29 }
 0x4cd   : > { %8560 = vmatprep.subr.bf16.mxu1 %v15834_v48 }
 0x4d0   : > { %8561 = vmatpush1.bf16.msra.mxu1 %v15832_v26 }
 0x4d1   : > { %8562 = vmatprep.subr.bf16.mxu1 %v15837_v58 }
 0x4d4   : > { %8563 = vmatpush1.bf16.msra.mxu1 %v15835_v55 }
 0x4d5   : > { %8564 = vmatprep.subr.bf16.mxu1 %v15843_v19  ;;  %v15856_v19 = vld [vmem:[%s20602_s5 + $0xe0] ss:$8 sps:$4 sm:$0xff]  }
 0x4d8   : > { %8565 = vmatpush1.bf16.msra.mxu1 %v15841_v35  ;;  %v15858_v35 = vld [vmem:[%s20602_s5 + $0xe4] ss:$8 sps:$4 sm:$0xff]  }
 0x4d9   : > { %8566 = vmatprep.subr.bf16.mxu1 %v15846_v39 }
 0x4dc   : > { %8567 = vmatpush1.bf16.msra.mxu1 %v15844_v34 }
 0x4dd   : > { %8568 = vmatprep.subr.bf16.mxu1 %v15852_v23  ;;  %v15864_v23 = vld [vmem:[%s20602_s5 + $0xf4] ss:$8 sps:$4 sm:$0xff]  }
 0x4e0   : > { %8569 = vmatpush1.bf16.msra.mxu1 %v15850_v3  ;;  %v15862_v3 = vld [vmem:[%s20602_s5 + $0xf0] ss:$8 sps:$4 sm:$0xff]  }
 0x4e1   : > { %8570 = vmatprep.subr.bf16.mxu1 %v15858_v35 }
 0x4e4   : > { %8571 = vmatpush1.bf16.msra.mxu1 %v15856_v19 }
 0x4e5   : > { %8572 = vmatprep.subr.bf16.mxu1 %v15864_v23 }
 0x4e8   : > { %8573 = vmatpush1.bf16.msra.mxu1 %v15862_v3  ;;  %v15823_v3 = vld [vmem:[%s20602_s5 + $0x180] ss:$8 sps:$4 sm:$0xff]  }
 0x55e   : > { %v14916_v36 = vpop.f32.mrb[148].mxu1 }
 0x55f   : > { %v7880_v14 = vadd.f32 %v14916_v36, %v18960_v62  ;;  %v7616_v47 = vpop.f32.mrb[149].mxu1 }
 0x560   : > { %v7878_v56 = vadd.f32 %v18960_v62, %v7616_v47  ;;  %v14917_v29 = vpop.f32.mrb[150].mxu1 }
 0x561   : > { %v7912_v2 = vmax.f32 %v7880_v14, 0.0  ;;  %v7881_v48 = vadd.f32 %v14917_v29, %v18960_v62  ;;  %v7619_v26 = vpop.f32.mrb[151].mxu1 }
 0x562   : > { %v7910_v55 = vmax.f32 %v7878_v56, 0.0  ;;  %v7879_v58 = vadd.f32 %v18960_v62, %v7619_v26 }
 0x563   : > { %7950 = vst [vmem:[#allocation3 + $0x28] sm:$0xff] %v7912_v2  ;;  %v7913_v34 = vmax.f32 %v7881_v48, 0.0 }
 0x564   : > { %7948 = vst [vmem:[#allocation3 + $0x18] sm:$0xff] %v7910_v55  ;;  %v7911_v39 = vmax.f32 %v7879_v58, 0.0 }
 0x565   : > { %7951 = vst [vmem:[#allocation3 + $0x30] sm:$0xff] %v7913_v34  ;;  %v18981_v36 = vpack.c.bf16 %v7913_v34, %v7912_v2 }
 0x566   : > { %7949 = vst [vmem:[#allocation3 + $0x20] sm:$0xff] %v7911_v39  ;;  %v14920_v14 = vpop.f32.mrb[152].mxu1  ;;  %v18983_v47 = vpack.c.bf16 %v7911_v39, %v7910_v55 }
 0x567   : > { %21525 = vst [vmem:[#allocation84_spill] sm:$0xff] %v18981_v36  ;;  %v7884_v56 = vadd.f32 %v14920_v14, %v18960_v62  ;;  %v7632_v29 = vpop.f32.mrb[153].mxu1  ;;  %v8975_v14 = vmul.f32 %v8943_v4, %v21213_v33 }
 0x568   : > { %21526 = vst [vmem:[#allocation35_spill] sm:$0xff] %v18983_v47  ;;  %v7882_v48 = vadd.f32 %v18960_v62, %v7632_v29  ;;  %v14921_v26 = vpop.f32.mrb[154].mxu1 }
 0x569   : > { %v7916_v58 = vmax.f32 %v7884_v56, 0.0  ;;  %v7885_v19 = vadd.f32 %v14921_v26, %v18960_v62  ;;  %v7635_v35 = vpop.f32.mrb[155].mxu1 }
 0x56a   : > { %v7914_v50 = vmax.f32 %v7882_v48, 0.0  ;;  %v7883_v2 = vadd.f32 %v18960_v62, %v7635_v35 }
 0x56b   : > { %7954 = vst [vmem:[#allocation3 + $0x48] sm:$0xff] %v7916_v58  ;;  %v7917_v34 = vmax.f32 %v7885_v19, 0.0  ;;  %v8944_v23 = vld [vmem:[#allocation3 + $0x11] sm:$0xff] }
 0x56c   : > { %v7982_v55 = vld [vmem:[#allocation3 + $0x17] sm:$0xff]  ;;  %7952 = vst [vmem:[#allocation3 + $0x38] sm:$0xff] %v7914_v50  ;;  %v7915_v39 = vmax.f32 %v7883_v2, 0.0  ;;  %v8976_v29 = vmul.f32 %v8944_v23, %v21282_v44  ;;  %v7985_v36 = vld [vmem:[#allocation3 + $0x2f] sm:$0xff] }
 0x56d   : > { %7955 = vst [vmem:[#allocation3 + $0x50] sm:$0xff] %v7917_v34  ;;  %v7983_v56 = vld [vmem:[#allocation3 + $0x1f] sm:$0xff]  ;;  %v18994_v48 = vpack.c.bf16 %v7917_v34, %v7916_v58  ;;  %v8014_v35 = vmul.f32 %v7982_v55, %v21495_v5  ;;  %v7984_v4 = vld [vmem:[#allocation3 + $0x27] sm:$0xff]  ;;  %v19002_v30 = vmul.f32 %v7985_v36, %v21492_v27 }
 0x56e   : > { %7953 = vst [vmem:[#allocation3 + $0x40] sm:$0xff] %v7915_v39  ;;  %v14924_v26 = vpop.f32.mrb[156].mxu1  ;;  %v9007_v19 = vpack.c.bf16 %v8976_v29, %v8975_v14  ;;  %v8015_v2 = vmul.f32 %v7983_v56, %v21492_v27  ;;  %v8945_v47 = vld [vmem:[#allocation3 + $0x19] sm:$0xff]  ;;  %v15828_v23 = vld [vmem:[%s20602_s5 + $0x194] ss:$8 sps:$4 sm:$0xff]   ;;  %v19009_v14 = vmul.f32 %v7983_v56, %v21491_v20  ;;  %v19012_v29 = vmul.f32 %v7984_v4, %v21495_v5 }
 0x56f   : > { %21527 = vst [vmem:[#allocation111_spill] sm:$0xff] %v18994_v48  ;;  %21528 = vst [vmem:[#allocation87_spill] sm:$0xff] %v19002_v30  ;;  %v7888_v10 = vadd.f32 %v14924_v26, %v18960_v62  ;;  %v7648_v58 = vpop.f32.mrb[157].mxu1  ;;  %v8946_v34 = vld [vmem:[#allocation3 + $0x21] sm:$0xff]  ;;  %v19006_v48 = vmul.f32 %v7982_v55, %v21490_v18  ;;  %v19015_v27 = vpack.c.bf16 %v7915_v39, %v7914_v50 }
 0x570   : > { %21530 = vst [vmem:[#allocation115_spill] sm:$0xff] %v19009_v14  ;;  %21531 = vst [vmem:[#allocation114_spill] sm:$0xff] %v19012_v29  ;;  %v7886_v60 = vadd.f32 %v18960_v62, %v7648_v58  ;;  %v14925_v45 = vpop.f32.mrb[158].mxu1  ;;  %9153 = vmatmul.mubr.bf16.vlgmr.msra.gmra.mrb[140].mxu0 %v9007_v19  ;;  %v8045_v59 = vpack.c.bf16 %v8015_v2, %v8014_v35  ;;  %v8977_v55 = vmul.f32 %v8945_v47, %v21284_v1  ;;  %v15826_v56 = vld [vmem:[%s20602_s5 + $0x190] ss:$8 sps:$4 sm:$0xff]  }
 0x571   : > { %21529 = vst [vmem:[#allocation112_spill] sm:$0xff] %v19006_v48  ;;  %21532 = vst [vmem:[#allocation118_spill] sm:$0xff] %v19015_v27  ;;  %v7920_v53 = vmax.f32 %v7888_v10, 0.0  ;;  %v7889_v26 = vadd.f32 %v14925_v45, %v18960_v62  ;;  %v7651_v15 = vpop.f32.mrb[159].mxu1  ;;  %9162 = vmatprep.mubr.bf16.mxu0 %v21524_v16  ;;  %9683 = vmatpush1.bf16.msra.mxu0 %v15823_v3  ;;  %v8978_v10 = vmul.f32 %v8946_v34, %v21286_v13  ;;  %v15840_v45 = vld [vmem:[%s20602_s5 + $0x1a4] ss:$8 sps:$4 sm:$0xff]  }
 0x572   : > { %v7918_v19 = vmax.f32 %v7886_v60, 0.0  ;;  %v7887_v50 = vadd.f32 %v18960_v62, %v7651_v15  ;;  %8199 = vmatmul.mubr.bf16.gmra.mrb[184].mxu1 %v8045_v59  ;;  %9684 = vmatprep.subr.bf16.mxu0 %v15828_v23  ;;  %v8016_v60 = vmul.f32 %v7984_v4, %v21493_v51  ;;  %v8017_v59 = vmul.f32 %v7985_v36, %v21494_v43  ;;  %v15838_v23 = vld [vmem:[%s20602_s5 + $0x1a0] ss:$8 sps:$4 sm:$0xff]   ;;  %v15849_v36 = vld [vmem:[%s20602_s5 + $0x1b4] ss:$8 sps:$4 sm:$0xff]  }
 0x573   : > { %7958 = vst [vmem:[#allocation3 + $0x68] sm:$0xff] %v7920_v53  ;;  %v7921_v39 = vmax.f32 %v7889_v26, 0.0  ;;  %8208 = vmatprep.mubr.bf16.mxu1 %v21524_v16  ;;  %v7986_v15 = vld [vmem:[#allocation3 + $0x37] sm:$0xff]  ;;  %v9008_v47 = vpack.c.bf16 %v8978_v10, %v8977_v55  ;;  %v15859_v14 = vld [vmem:[%s20602_s5 + $0x1d0] ss:$8 sps:$4 sm:$0xff]  }
 0x574   : > { %7956 = vst [vmem:[#allocation3 + $0x58] sm:$0xff] %v7918_v19  ;;  %v7919_v3 = vmax.f32 %v7887_v50, 0.0  ;;  %v19035_v35 = vld [vmem:[#allocation3 + $0x4f] sm:$0xff]  ;;  %v8046_v20 = vpack.c.bf16 %v8017_v59, %v8016_v60 }
 0x575   : > { %7959 = vst [vmem:[#allocation3 + $0x70] sm:$0xff] %v7921_v39  ;;  %v7987_v2 = vld [vmem:[#allocation3 + $0x3f] sm:$0xff]  ;;  %9685 = vmatpush1.bf16.msra.mxu0 %v15826_v56  ;;  %v19040_v34 = vpack.c.bf16 %v7921_v39, %v7920_v53  ;;  %v19042_v50 = vld [vmem:[#allocation3 + $0x47] sm:$0xff]  ;;  %v19049_v4 = vmul.f32 %v19035_v35, %v21496_v8  ;;  %v8948_v5 = vld [vmem:[#allocation3 + $0x31] sm:$0xff]  ;;  %v19053_v53 = vmul.f32 %v7986_v15, %v21493_v51 }
 0x576   : > { %7957 = vst [vmem:[#allocation3 + $0x60] sm:$0xff] %v7919_v3  ;;  %v14928_v26 = vpop.f32.mrb[160].mxu1  ;;  %9686 = vmatprep.subr.bf16.mxu0 %v15840_v45  ;;  %v19056_v55 = vmul.f32 %v7987_v2, %v21494_v43  ;;  %v19060_v10 = vmul.f32 %v19042_v50, %v21499_v61  ;;  %v19063_v18 = vpack.c.bf16 %v7919_v3, %v7918_v19  ;;  %v8947_v51 = vld [vmem:[#allocation3 + $0x29] sm:$0xff]  ;;  %v15855_v3 = vld [vmem:[%s20602_s5 + $0x1c4] ss:$8 sps:$4 sm:$0xff]  }
 0x577   : > { %21533 = vst [vmem:[#allocation121_spill] sm:$0xff] %v19040_v34  ;;  %21534 = vst [vmem:[#allocation120_spill] sm:$0xff] %v19049_v4  ;;  %v7892_v56 = vadd.f32 %v14928_v26, %v18960_v62  ;;  %v7664_v58 = vpop.f32.mrb[161].mxu1  ;;  %v15847_v43 = vld [vmem:[%s20602_s5 + $0x1b0] ss:$8 sps:$4 sm:$0xff]   ;;  %v8980_v19 = vmul.f32 %v8948_v5, %v21295_v57 }
 0x578   : > { %21535 = vst [vmem:[#allocation122_spill] sm:$0xff] %v19053_v53  ;;  %21536 = vst [vmem:[#allocation124_spill] sm:$0xff] %v19056_v55  ;;  %v7890_v45 = vadd.f32 %v18960_v62, %v7664_v58  ;;  %v14929_v39 = vpop.f32.mrb[162].mxu1  ;;  %9163 = vmatmul.mubr.bf16.gmra.mrb[144].mxu0 %v9008_v47  ;;  %v15861_v58 = vld [vmem:[%s20602_s5 + $0x1d4] ss:$8 sps:$4 sm:$0xff]  }
 0x579   : > { %21537 = vst [vmem:[#allocation31_spill] sm:$0xff] %v19060_v10  ;;  %21538 = vst [vmem:[#allocation82_spill] sm:$0xff] %v19063_v18  ;;  %v7924_v26 = vmax.f32 %v7892_v56, 0.0  ;;  %v7893_v34 = vadd.f32 %v14929_v39, %v18960_v62  ;;  %v7667_v27 = vpop.f32.mrb[163].mxu1  ;;  %9172 = vmatprep.mubr.bf16.mxu0 %v21524_v16  ;;  %9687 = vmatpush1.bf16.msra.mxu0 %v15838_v23  ;;  %v8979_v56 = vmul.f32 %v8947_v51, %v21292_v25  ;;  %v15868_v57 = vld [vmem:[%s20602_s5 + $0x1f0] ss:$8 sps:$4 sm:$0xff]  }
 0x57a   : > { %v7922_v29 = vmax.f32 %v7890_v45, 0.0  ;;  %v7891_v47 = vadd.f32 %v18960_v62, %v7667_v27  ;;  %8209 = vmatmul.mubr.bf16.gmra.mrb[188].mxu1 %v8046_v20  ;;  %9688 = vmatprep.subr.bf16.mxu0 %v15849_v36  ;;  %v8019_v20 = vmul.f32 %v7987_v2, %v21496_v8  ;;  %v8018_v51 = vmul.f32 %v7986_v15, %v21499_v61  ;;  %v8949_v2 = vld [vmem:[#allocation3 + $0x39] sm:$0xff]  ;;  %v8950_v8 = vld [vmem:[#allocation3 + $0x41] sm:$0xff] }
 0x57b   : > { %7962 = vst [vmem:[#allocation3 + $0x88] sm:$0xff] %v7924_v26  ;;  %v7925_v59 = vmax.f32 %v7893_v34, 0.0  ;;  %8218 = vmatprep.mubr.bf16.mxu1 %v21524_v16  ;;  %v19082_v27 = vld [vmem:[#allocation3 + $0x57] sm:$0xff]  ;;  %v21543_v15 = vld [vmem:[#allocation46_spill] sm:$0xff]  ;;  %v8981_v48 = vmul.f32 %v8949_v2, %v21297_v42 }
 0x57c   : > { %7960 = vst [vmem:[#allocation3 + $0x78] sm:$0xff] %v7922_v29  ;;  %v7923_v23 = vmax.f32 %v7891_v47, 0.0  ;;  %v19084_v5 = vld [vmem:[#allocation3 + $0x6f] sm:$0xff]  ;;  %v9009_v47 = vpack.c.bf16 %v8980_v19, %v8979_v56  ;;  %v8047_v4 = vpack.c.bf16 %v8019_v20, %v8018_v51  ;;  %v21549_v20 = vld [vmem:[#allocation9_spill] sm:$0xff] }
 0x57d   : > { %7963 = vst [vmem:[#allocation3 + $0x90] sm:$0xff] %v7925_v59  ;;  %v19086_v36 = vld [vmem:[#allocation3 + $0x5f] sm:$0xff]  ;;  %9689 = vmatpush1.bf16.msra.mxu0 %v15847_v43  ;;  %v15853_v34 = vld [vmem:[%s20602_s5 + $0x1c0] ss:$8 sps:$4 sm:$0xff]   ;;  %v19091_v45 = vpack.c.bf16 %v7925_v59, %v7924_v26  ;;  %v19094_v60 = vld [vmem:[#allocation3 + $0x67] sm:$0xff]  ;;  %v19101_v43 = vmul.f32 %v19084_v5, %v21500_v46 }
 0x57e   : > { %7961 = vst [vmem:[#allocation3 + $0x80] sm:$0xff] %v7923_v23  ;;  %v14932_v39 = vpop.f32.mrb[164].mxu1  ;;  %9690 = vmatprep.subr.bf16.mxu0 %v15855_v3  ;;  %v19110_v56 = vmul.f32 %v19086_v36, %v21543_v15  ;;  %v21545_v3 = vld [vmem:[#allocation49_spill] sm:$0xff]  ;;  %v8951_v42 = vld [vmem:[#allocation3 + $0x49] sm:$0xff] }
 0x57f   : > { %21539 = vst [vmem:[#allocation52_spill] sm:$0xff] %v19091_v45  ;;  %21540 = vst [vmem:[#allocation53_spill] sm:$0xff] %v19101_v43  ;;  %v7896_v26 = vadd.f32 %v14932_v39, %v18960_v62  ;;  %v7680_v59 = vpop.f32.mrb[165].mxu1  ;;  %v21541_v45 = vld [vmem:[#allocation47_spill] sm:$0xff]  ;;  %v19114_v61 = vmul.f32 %v19094_v60, %v21545_v3  ;;  %v19117_v39 = vpack.c.bf16 %v7923_v23, %v7922_v29 }
 0x580   : > { %v19106_v19 = vmul.f32 %v19082_v27, %v21541_v45  ;;  %21544 = vst [vmem:[#allocation91_spill] sm:$0xff] %v19110_v56  ;;  %v7894_v18 = vadd.f32 %v18960_v62, %v7680_v59  ;;  %v14933_v10 = vpop.f32.mrb[166].mxu1  ;;  %9173 = vmatmul.mubr.bf16.gmra.mrb[148].mxu0 %v9009_v47  ;;  %v8982_v23 = vmul.f32 %v8950_v8, %v21299_v41 }
 0x581   : > { %21546 = vst [vmem:[#allocation61_spill] sm:$0xff] %v19114_v61  ;;  %21547 = vst [vmem:[#allocation56_spill] sm:$0xff] %v19117_v39  ;;  %v7928_v53 = vmax.f32 %v7896_v26, 0.0  ;;  %v7897_v55 = vadd.f32 %v14933_v10, %v18960_v62  ;;  %v7683_v30 = vpop.f32.mrb[167].mxu1  ;;  %9182 = vmatprep.mubr.bf16.mxu0 %v21524_v16  ;;  %9691 = vmatpush1.bf16.msra.mxu0 %v15853_v34  ;;  %v15867_v10 = vld [vmem:[%s20602_s5 + $0x1e4] ss:$8 sps:$4 sm:$0xff]  }
 0x582   : > { %21542 = vst [vmem:[#allocation57_spill] sm:$0xff] %v19106_v19  ;;  %v7926_v47 = vmax.f32 %v7894_v18, 0.0  ;;  %v7895_v29 = vadd.f32 %v18960_v62, %v7683_v30  ;;  %8219 = vmatmul.mubr.bf16.gmra.mrb[192].mxu1 %v8047_v4  ;;  %9692 = vmatprep.subr.bf16.mxu0 %v15861_v58  ;;  %v8020_v30 = vmul.f32 %v19042_v50, %v21541_v45  ;;  %v8952_v45 = vld [vmem:[#allocation3 + $0x51] sm:$0xff] }
 0x583   : > { %7966 = vst [vmem:[#allocation3 + $0xa8] sm:$0xff] %v7928_v53  ;;  %v7929_v34 = vmax.f32 %v7897_v55, 0.0  ;;  %8228 = vmatprep.mubr.bf16.mxu1 %v21524_v16  ;;  %v8021_v18 = vmul.f32 %v19035_v35, %v21543_v15  ;;  %v19139_v8 = vld [vmem:[#allocation3 + $0x77] sm:$0xff]  ;;  %v9010_v50 = vpack.c.bf16 %v8982_v23, %v8981_v48  ;;  %v15870_v35 = vld [vmem:[%s20602_s5 + $0x1f4] ss:$8 sps:$4 sm:$0xff]  }
 0x584   : > { %7964 = vst [vmem:[#allocation3 + $0x98] sm:$0xff] %v7926_v47  ;;  %v7927_v51 = vmax.f32 %v7895_v29, 0.0  ;;  %v19141_v4 = vld [vmem:[#allocation3 + $0x8f] sm:$0xff] }
 0x585   : > { %7967 = vst [vmem:[#allocation3 + $0xb0] sm:$0xff] %v7929_v34  ;;  %v19143_v58 = vld [vmem:[#allocation3 + $0x7f] sm:$0xff]  ;;  %9693 = vmatpush1.bf16.msra.mxu0 %v15859_v14  ;;  %v15865_v55 = vld [vmem:[%s20602_s5 + $0x1e0] ss:$8 sps:$4 sm:$0xff]   ;;  %v19148_v2 = vpack.c.bf16 %v7929_v34, %v7928_v53  ;;  %v19150_v29 = vld [vmem:[#allocation3 + $0x87] sm:$0xff]  ;;  %v19157_v59 = vmul.f32 %v19141_v4, %v21549_v20  ;;  %v8048_v43 = vpack.c.bf16 %v8021_v18, %v8020_v30 }
 0x586   : > { %7965 = vst [vmem:[#allocation3 + $0xa0] sm:$0xff] %v7927_v51  ;;  %v14936_v26 = vpop.f32.mrb[168].mxu1  ;;  %9694 = vmatprep.subr.bf16.mxu0 %v15867_v10  ;;  %v21551_v53 = vld [vmem:[#allocation8_spill] sm:$0xff]  ;;  %v21553_v48 = vld [vmem:[#allocation10_spill] sm:$0xff]  ;;  %v21555_v10 = vld [vmem:[#allocation7_spill] sm:$0xff] }
 0x587   : > { %21548 = vst [vmem:[#allocation65_spill] sm:$0xff] %v19148_v2  ;;  %21550 = vst [vmem:[#allocation60_spill] sm:$0xff] %v19157_v59  ;;  %v7900_v14 = vadd.f32 %v14936_v26, %v18960_v62  ;;  %v7696_v15 = vpop.f32.mrb[169].mxu1  ;;  %v19162_v34 = vmul.f32 %v19139_v8, %v21551_v53  ;;  %v19166_v23 = vmul.f32 %v19143_v58, %v21553_v48 }
 0x588   : > { %v19170_v2 = vmul.f32 %v19150_v29, %v21555_v10  ;;  %v7898_v39 = vadd.f32 %v18960_v62, %v7696_v15  ;;  %v14937_v61 = vpop.f32.mrb[170].mxu1  ;;  %9183 = vmatmul.mubr.bf16.gmra.mrb[152].mxu0 %v9010_v50  ;;  %v19173_v26 = vpack.c.bf16 %v7927_v51, %v7926_v47  ;;  %v8984_v47 = vmul.f32 %v8952_v45, %v21308_v32 }
 0x589   : > { %21552 = vst [vmem:[#allocation69_spill] sm:$0xff] %v19162_v34  ;;  %21554 = vst [vmem:[#allocation64_spill] sm:$0xff] %v19166_v23  ;;  %v7932_v19 = vmax.f32 %v7900_v14, 0.0  ;;  %v7901_v56 = vadd.f32 %v14937_v61, %v18960_v62  ;;  %v7699_v41 = vpop.f32.mrb[171].mxu1  ;;  %9192 = vmatprep.mubr.bf16.mxu0 %v21524_v16  ;;  %9695 = vmatpush1.bf16.msra.mxu0 %v15865_v55  ;;  %v8983_v55 = vmul.f32 %v8951_v42, %v21304_v0  ;;  %v8953_v42 = vld [vmem:[#allocation3 + $0x59] sm:$0xff] }
 0x58a   : > { %21556 = vst [vmem:[#allocation26_spill] sm:$0xff] %v19170_v2  ;;  %21557 = vst [vmem:[#allocation68_spill] sm:$0xff] %v19173_v26  ;;  %v7930_v25 = vmax.f32 %v7898_v39, 0.0  ;;  %v7899_v30 = vadd.f32 %v18960_v62, %v7699_v41  ;;  %8229 = vmatmul.mubr.bf16.gmra.mrb[196].mxu1 %v8048_v43  ;;  %9696 = vmatprep.subr.bf16.mxu0 %v15870_v35  ;;  %v8023_v39 = vmul.f32 %v19086_v36, %v21500_v46  ;;  %v21559_v36 = vld [vmem:[#allocation13_spill] sm:$0xff] }
 0x58b   : > { %7970 = vst [vmem:[#allocation3 + $0xc8] sm:$0xff] %v7932_v19  ;;  %v7933_v51 = vmax.f32 %v7901_v56, 0.0  ;;  %8238 = vmatprep.mubr.bf16.mxu1 %v21524_v16  ;;  %v19190_v50 = vld [vmem:[#allocation3 + $0x97] sm:$0xff]  ;;  %v9011_v35 = vpack.c.bf16 %v8984_v47, %v8983_v55  ;;  %v8022_v14 = vmul.f32 %v19082_v27, %v21545_v3  ;;  %v8954_v26 = vld [vmem:[#allocation3 + $0x61] sm:$0xff]  ;;  %v8985_v32 = vmul.f32 %v8953_v42, %v21310_v49 }
 0x58c   : > { %7968 = vst [vmem:[#allocation3 + $0xb8] sm:$0xff] %v7930_v25  ;;  %v7931_v18 = vmax.f32 %v7899_v30, 0.0  ;;  %v19192_v41 = vld [vmem:[#allocation3 + $0xaf] sm:$0xff] }
 0x58d   : > { %7971 = vst [vmem:[#allocation3 + $0xd0] sm:$0xff] %v7933_v51  ;;  %v19194_v45 = vld [vmem:[#allocation3 + $0x9f] sm:$0xff]  ;;  %9697 = vmatpush1.bf16.msra.mxu0 %v15868_v57  ;;  %v19196_v43 = vpack.c.bf16 %v7933_v51, %v7932_v19  ;;  %v19200_v30 = vld [vmem:[#allocation3 + $0xa7] sm:$0xff]  ;;  %v19204_v61 = vmul.f32 %v19192_v41, %v21559_v36  ;;  %v21563_v51 = vld [vmem:[#allocation11_spill] sm:$0xff]  ;;  %v8049_v2 = vpack.c.bf16 %v8023_v39, %v8022_v14 }
 0x58e   : > { %7969 = vst [vmem:[#allocation3 + $0xc0] sm:$0xff] %v7931_v18  ;;  %v14940_v56 = vpop.f32.mrb[172].mxu1  ;;  %v21561_v57 = vld [vmem:[#allocation12_spill] sm:$0xff]  ;;  %v19213_v47 = vmul.f32 %v19194_v45, %v21563_v51  ;;  %v21565_v27 = vld [vmem:[#allocation14_spill] sm:$0xff]  ;;  %v8024_v39 = vmul.f32 %v19094_v60, %v21551_v53 }
 0x58f   : > { %21558 = vst [vmem:[#allocation73_spill] sm:$0xff] %v19196_v43  ;;  %21560 = vst [vmem:[#allocation25_spill] sm:$0xff] %v19204_v61  ;;  %v7904_v15 = vadd.f32 %v14940_v56, %v18960_v62  ;;  %v7712_v46 = vpop.f32.mrb[173].mxu1  ;;  %v19209_v19 = vmul.f32 %v19190_v50, %v21561_v57  ;;  %v19217_v55 = vmul.f32 %v19200_v30, %v21565_v27  ;;  %v8956_v42 = vld [vmem:[#allocation3 + $0x71] sm:$0xff]  ;;  %v8955_v61 = vld [vmem:[#allocation3 + $0x69] sm:$0xff] }
 0x590   : > { %21564 = vst [vmem:[#allocation72_spill] sm:$0xff] %v19213_v47  ;;  %v7902_v3 = vadd.f32 %v18960_v62, %v7712_v46  ;;  %v14941_v43 = vpop.f32.mrb[174].mxu1  ;;  %9193 = vmatmul.mubr.bf16.gmra.mrb[156].mxu0 %v9011_v35  ;;  %v19220_v56 = vpack.c.bf16 %v7931_v18, %v7930_v25  ;;  %v8986_v46 = vmul.f32 %v8954_v26, %v21313_v21  ;;  %v21570_v25 = vld [vmem:[#allocation16_spill] sm:$0xff] }
 0x591   : > { %21562 = vst [vmem:[#allocation30_spill] sm:$0xff] %v19209_v19  ;;  %21566 = vst [vmem:[#allocation77_spill] sm:$0xff] %v19217_v55  ;;  %v7936_v59 = vmax.f32 %v7904_v15, 0.0  ;;  %v7905_v34 = vadd.f32 %v14941_v43, %v18960_v62  ;;  %v7715_v23 = vpop.f32.mrb[175].mxu1  ;;  %9202 = vmatprep.mubr.bf16.mxu0 %v21524_v16 }
 0x592   : > { %21567 = vst [vmem:[#allocation29_spill] sm:$0xff] %v19220_v56  ;;  %v7934_v13 = vmax.f32 %v7902_v3, 0.0  ;;  %v7903_v1 = vadd.f32 %v18960_v62, %v7715_v23  ;;  %8239 = vmatmul.mubr.bf16.gmra.mrb[200].mxu1 %v8049_v2  ;;  %v8025_v3 = vmul.f32 %v19084_v5, %v21553_v48  ;;  %v9012_v35 = vpack.c.bf16 %v8986_v46, %v8985_v32  ;;  %v21571_v48 = vld [vmem:[#allocation15_spill] sm:$0xff] }
 0x593   : > { %7974 = vst [vmem:[#allocation3 + $0xe8] sm:$0xff] %v7936_v59  ;;  %v7937_v15 = vmax.f32 %v7905_v34, 0.0  ;;  %8248 = vmatprep.mubr.bf16.mxu1 %v21524_v16  ;;  %v19236_v43 = vld [vmem:[#allocation3 + $0xb7] sm:$0xff] }
 0x594   : > { %7972 = vst [vmem:[#allocation3 + $0xd8] sm:$0xff] %v7934_v13  ;;  %v7935_v18 = vmax.f32 %v7903_v1, 0.0  ;;  %v19238_v2 = vld [vmem:[#allocation3 + $0xcf] sm:$0xff]  ;;  %v19253_v0 = vmul.f32 %v19236_v43, %v21570_v25  ;;  %v8050_v53 = vpack.c.bf16 %v8025_v3, %v8024_v39  ;;  %v8987_v3 = vmul.f32 %v8955_v61, %v21315_v40 }
 0x595   : > { %7975 = vst [vmem:[#allocation3 + $0xf0] sm:$0xff] %v7937_v15  ;;  %v19240_v23 = vld [vmem:[#allocation3 + $0xbf] sm:$0xff]  ;;  %v19242_v26 = vpack.c.bf16 %v7937_v15, %v7936_v59  ;;  %v19244_v14 = vld [vmem:[#allocation3 + $0xc7] sm:$0xff]  ;;  %v19248_v1 = vmul.f32 %v19238_v2, %v21512_v12 }
 0x596   : > { %7973 = vst [vmem:[#allocation3 + $0xe0] sm:$0xff] %v7935_v18  ;;  %v14944_v34 = vpop.f32.mrb[176].mxu1  ;;  %21569 = vst [vmem:[#allocation76_spill] sm:$0xff] %v19244_v14  ;;  %v19257_v59 = vmul.f32 %v19240_v23, %v21571_v48  ;;  %v19261_v32 = vmul.f32 %v19244_v14, %v21515_v22 }
 0x597   : > { %21568 = vst [vmem:[#allocation41_spill] sm:$0xff] %v19242_v26  ;;  %v7908_v60 = vadd.f32 %v14944_v34, %v18960_v62  ;;  %v7728_v5 = vpop.f32.mrb[177].mxu1  ;;  %v19264_v34 = vpack.c.bf16 %v7935_v18, %v7934_v13  ;;  %v21575_v13 = vld [vmem:[#allocation33_spill] sm:$0xff] }
 0x598   : > { %v7906_v46 = vadd.f32 %v18960_v62, %v7728_v5  ;;  %v14945_v15 = vpop.f32.mrb[178].mxu1  ;;  %9203 = vmatmul.mubr.bf16.gmra.mrb[160].mxu0 %v9012_v35  ;;  %v8988_v5 = vmul.f32 %v8956_v42, %v21317_v24  ;;  %v8027_v35 = vmul.f32 %v19143_v58, %v21549_v20  ;;  %v8958_v58 = vld [vmem:[#allocation3 + $0x81] sm:$0xff] }
 0x599   : > { %v7940_v26 = vmax.f32 %v7908_v60, 0.0  ;;  %v7909_v56 = vadd.f32 %v14945_v15, %v18960_v62  ;;  %v7731_v55 = vpop.f32.mrb[179].mxu1  ;;  %9212 = vmatprep.mubr.bf16.mxu0 %v21524_v16 }
 0x59a   : > { %v7938_v47 = vmax.f32 %v7906_v46, 0.0  ;;  %v7907_v14 = vadd.f32 %v18960_v62, %v7731_v55  ;;  %8249 = vmatmul.mubr.bf16.gmra.mrb[204].mxu1 %v8050_v53  ;;  %v21572_v46 = vld [vmem:[#allocation19_spill] sm:$0xff] }
 0x59b   : > { %7978 = vst [vmem:[#allocation3 + $0x108] sm:$0xff] %v7940_v26  ;;  %v7941_v18 = vmax.f32 %v7909_v56, 0.0  ;;  %8258 = vmatprep.mubr.bf16.mxu1 %v21524_v16  ;;  %v19278_v60 = vld [vmem:[#allocation3 + $0xd7] sm:$0xff]  ;;  %v9013_v56 = vpack.c.bf16 %v8988_v5, %v8987_v3  ;;  %v8026_v26 = vmul.f32 %v19139_v8, %v21555_v10  ;;  %v8990_v10 = vmul.f32 %v8958_v58, %v21324_v17 }
 0x59c   : > { %7976 = vst [vmem:[#allocation3 + $0xf8] sm:$0xff] %v7938_v47  ;;  %v7939_v39 = vmax.f32 %v7907_v14, 0.0  ;;  %v19280_v62 = vld [vmem:[#allocation3 + $0xef] sm:$0xff]  ;;  %v8957_v14 = vld [vmem:[#allocation3 + $0x79] sm:$0xff]  ;;  %v19294_v42 = vmul.f32 %v19278_v60, %v21513_v54 }
 0x59d   : > { %7979 = vst [vmem:[#allocation3 + $0x110] sm:$0xff] %v7941_v18  ;;  %v19282_v53 = vld [vmem:[#allocation3 + $0xdf] sm:$0xff]  ;;  %v19286_v55 = vmul.f32 %v19280_v62, %v21516_v31  ;;  %v19290_v61 = vld [vmem:[#allocation3 + $0xe7] sm:$0xff]  ;;  %v8051_v8 = vpack.c.bf16 %v8027_v35, %v8026_v26  ;;  %v8989_v19 = vmul.f32 %v8957_v14, %v21319_v11  ;;  %v8960_v3 = vld [vmem:[#allocation3 + $0x91] sm:$0xff] }
 0x59e   : > { %7977 = vst [vmem:[#allocation3 + $0x100] sm:$0xff] %v7939_v39  ;;  %v19298_v15 = vmul.f32 %v19282_v53, %v21572_v46  ;;  %v19302_v18 = vmul.f32 %v19290_v61, %v21517_v63  ;;  %v19304_v5 = vpack.c.bf16 %v7939_v39, %v7938_v47  ;;  %v8028_v47 = vmul.f32 %v19150_v29, %v21561_v57  ;;  %v21577_v14 = vld [vmem:[#allocation32_spill] sm:$0xff]  ;;  %v8959_v29 = vld [vmem:[#allocation3 + $0x89] sm:$0xff] }
 0x59f   : > { %v8029_v39 = vmul.f32 %v19141_v4, %v21563_v51  ;;  %v9014_v26 = vpack.c.bf16 %v8990_v10, %v8989_v19  ;;  %v8992_v10 = vmul.f32 %v8960_v3, %v21328_v37  ;;  %v8991_v19 = vmul.f32 %v8959_v29, %v21370_v38  ;;  %v8964_v4 = vld [vmem:[#allocation3 + $0xb1] sm:$0xff] }
 0x5a0   : > { %21573 = vst [vmem:[#allocation81_spill] sm:$0xff] %v19302_v18  ;;  %21574 = vst [vmem:[#allocation40_spill] sm:$0xff] %v19304_v5  ;;  %9213 = vmatmul.mubr.bf16.gmra.mrb[164].mxu0 %v9013_v56  ;;  %v8031_v51 = vmul.f32 %v19194_v45, %v21559_v36  ;;  %v15873_v45 = vld [vmem:[%s20602_s5 + $0x204] ss:$8 sps:$4 sm:$0xff]  }
 0x5a1   : > { %9222 = vmatprep.mubr.bf16.mxu0 %v21524_v16  ;;  %v8052_v20 = vpack.c.bf16 %v8029_v39, %v8028_v47  ;;  %v9015_v57 = vpack.c.bf16 %v8992_v10, %v8991_v19  ;;  %v8030_v47 = vmul.f32 %v19190_v50, %v21565_v27  ;;  %v8961_v39 = vld [vmem:[#allocation3 + $0x99] sm:$0xff]  ;;  %v8032_v50 = vmul.f32 %v19200_v30, %v21570_v25  ;;  %v21594_v36 = vld [vmem:[#allocation95_spill] sm:$0xff] }
 0x5a2   : > { %8259 = vmatmul.mubr.bf16.gmra.mrb[208].mxu1 %v8051_v8  ;;  %10212 = vmatprep.subr.bf16.mxu0 %v15873_v45  ;;  %v8966_v45 = vld [vmem:[#allocation3 + $0xc1] sm:$0xff] }
 0x5a3   : > { %8268 = vmatprep.mubr.bf16.mxu1 %v21524_v16  ;;  %v19318_v35 = vld [vmem:[#allocation3 + $0xf7] sm:$0xff]  ;;  %v8053_v5 = vpack.c.bf16 %v8031_v51, %v8030_v47  ;;  %v8963_v51 = vld [vmem:[#allocation3 + $0xa9] sm:$0xff] }
 0x5a4   : > { %v19324_v8 = vmul.f32 %v19318_v35, %v21575_v13  ;;  %v19356_v10 = vld [vmem:[#allocation3 + $0x10f] sm:$0xff]  ;;  %v8965_v47 = vld [vmem:[#allocation3 + $0xb9] sm:$0xff]  ;;  %v8995_v30 = vmul.f32 %v8963_v51, %v21335_v6 }
 0x5a5   : > { %v19320_v56 = vld [vmem:[#allocation3 + $0xff] sm:$0xff]  ;;  %v19354_v29 = vld [vmem:[#allocation3 + $0x107] sm:$0xff]  ;;  %21580 = vst [vmem:[#allocation44_spill] sm:$0xff] %v19356_v10  ;;  %v19389_v51 = vmul.f32 %v19356_v10, %v21577_v14 }
 0x5a6   : > { %21576 = vst [vmem:[#allocation45_spill] sm:$0xff] %v19324_v8  ;;  %v19328_v58 = vmul.f32 %v19320_v56, %v21577_v14  ;;  %21579 = vst [vmem:[#allocation86_spill] sm:$0xff] %v19354_v29  ;;  %v19417_v10 = vld [vmem:[#allocation3 + $0x81] sm:$0xff]  ;;  %v21598_v8 = vld [vmem:[#allocation55_spill] sm:$0xff] }
 0x5a7   : > { %21588 = vst [vmem:[#allocation139_spill] sm:$0xff] %v19389_v51  ;;  %21597 = vst [vmem:[#allocation89_spill] sm:$0xff] %v19417_v10 }
 0x5a8   : > { %21578 = vst [vmem:[#allocation80_spill] sm:$0xff] %v19328_v58  ;;  %9223 = vmatmul.mubr.bf16.gmra.mrb[168].mxu0 %v9014_v26  ;;  %v8962_v26 = vld [vmem:[#allocation3 + $0xa1] sm:$0xff]  ;;  %v19436_v58 = vld [vmem:[#allocation3 + $0x99] sm:$0xff] }
 0x5a9   : > { %9232 = vmatprep.mubr.bf16.mxu0 %v21524_v16  ;;  %v8994_v3 = vmul.f32 %v8962_v26, %v21373_v7  ;;  %v19360_v26 = vld [vmem:[#allocation3 + $0x31] sm:$0xff]  ;;  %21603 = vst [vmem:[#allocation108_spill] sm:$0xff] %v19436_v58 }
 0x5aa   : > { %8269 = vmatmul.mubr.bf16.gmra.mrb[212].mxu1 %v8052_v20  ;;  %v8993_v20 = vmul.f32 %v8961_v39, %v21331_v9  ;;  %v19358_v39 = vld [vmem:[#allocation3 + $0x29] sm:$0xff]  ;;  %21582 = vst [vmem:[#allocation98_spill] sm:$0xff] %v19360_v26  ;;  %v19408_v25 = vmul.f32 %v19360_v26, %v21282_v44  ;;  %v19434_v44 = vld [vmem:[#allocation3 + $0x91] sm:$0xff] }
 0x5ab   : > { %8278 = vmatprep.mubr.bf16.mxu1 %v21524_v16  ;;  %21581 = vst [vmem:[#allocation97_spill] sm:$0xff] %v19358_v39 }
 0x5ac   : > { %v9016_v19 = vpack.c.bf16 %v8994_v3, %v8993_v20  ;;  %v19373_v20 = vmul.f32 %v19236_v43, %v21515_v22  ;;  %v19377_v3 = vmul.f32 %v19238_v2, %v21572_v46  ;;  %v19396_v2 = vld [vmem:[#allocation3 + $0x59] sm:$0xff]  ;;  %v19398_v46 = vld [vmem:[#allocation3 + $0x61] sm:$0xff]  ;;  %v19400_v22 = vld [vmem:[#allocation3 + $0x69] sm:$0xff]  ;;  %21593 = vst [vmem:[#allocation90_spill] sm:$0xff] %v19408_v25 }
 0x5ad   : > { %21589 = vst [vmem:[#allocation140_spill] sm:$0xff] %v19396_v2  ;;  %21590 = vst [vmem:[#allocation141_spill] sm:$0xff] %v19398_v46  ;;  %v21612_v25 = vld [vmem:[#allocation67_spill] sm:$0xff] }
 0x5ae   : > { %21591 = vst [vmem:[#allocation146_spill] sm:$0xff] %v19400_v22 }
 0x5b0   : > { %9233 = vmatmul.mubr.bf16.gmra.mrb[172].mxu0 %v9015_v57  ;;  %v8033_v57 = vmul.f32 %v19192_v41, %v21571_v48  ;;  %v19365_v41 = vmul.f32 %v19240_v23, %v21512_v12  ;;  %v19369_v48 = vld [vmem:[#allocation3 + $0x41] sm:$0xff]  ;;  %v19385_v23 = vmul.f32 %v19354_v29, %v21575_v13  ;;  %v19404_v12 = vmul.f32 %v19358_v39, %v21213_v33 }
 0x5b1   : > { %9242 = vmatprep.mubr.bf16.mxu0 %v21524_v16  ;;  %21584 = vst [vmem:[#allocation131_spill] sm:$0xff] %v19369_v48  ;;  %v21600_v33 = vld [vmem:[#allocation54_spill] sm:$0xff] }
 0x5b2   : > { %8279 = vmatmul.mubr.bf16.gmra.mrb[216].mxu1 %v8053_v5  ;;  %v19352_v5 = vmul.f32 %v8964_v4, %v21337_v28  ;;  %v8054_v27 = vpack.c.bf16 %v8033_v57, %v8032_v50  ;;  %v19367_v4 = vld [vmem:[#allocation3 + $0x39] sm:$0xff]  ;;  %v19379_v50 = vld [vmem:[#allocation3 + $0x49] sm:$0xff]  ;;  %v19381_v57 = vld [vmem:[#allocation3 + $0x51] sm:$0xff]  ;;  %21587 = vst [vmem:[#allocation138_spill] sm:$0xff] %v19385_v23  ;;  %v19427_v26 = vmul.f32 %v19369_v48, %v21600_v33 }
 0x5b3   : > { %8288 = vmatprep.mubr.bf16.mxu1 %v21524_v16  ;;  %21583 = vst [vmem:[#allocation110_spill] sm:$0xff] %v19367_v4  ;;  %21585 = vst [vmem:[#allocation134_spill] sm:$0xff] %v19379_v50  ;;  %v19423_v39 = vmul.f32 %v19367_v4, %v21598_v8  ;;  %v21604_v23 = vld [vmem:[#allocation59_spill] sm:$0xff]  ;;  %v21606_v48 = vld [vmem:[#allocation58_spill] sm:$0xff] }
 0x5b4   : > { %21586 = vst [vmem:[#allocation135_spill] sm:$0xff] %v19381_v57  ;;  %v9017_v43 = vpack.c.bf16 %v19352_v5, %v8995_v30  ;;  %21592 = vst [vmem:[#allocation147_spill] sm:$0xff] %v19404_v12  ;;  %v19411_v5 = vmul.f32 %v8966_v45, %v21594_v36  ;;  %v19415_v30 = vld [vmem:[#allocation3 + $0x79] sm:$0xff]  ;;  %v19432_v45 = vld [vmem:[#allocation3 + $0x89] sm:$0xff]  ;;  %v19442_v51 = vmul.f32 %v19379_v50, %v21604_v23 }
 0x5b5   : > { %21596 = vst [vmem:[#allocation94_spill] sm:$0xff] %v19415_v30  ;;  %21599 = vst [vmem:[#allocation34_spill] sm:$0xff] %v19423_v39  ;;  %v19446_v4 = vmul.f32 %v19381_v57, %v21606_v48  ;;  %v19448_v8 = vld [vmem:[#allocation3 + $0xa1] sm:$0xff]  ;;  %v21608_v33 = vld [vmem:[#allocation63_spill] sm:$0xff]  ;;  %v19464_v50 = vmul.f32 %v19400_v22, %v21612_v25  ;;  %v19484_v22 = vmul.f32 %v19417_v10, %v21313_v21 }
 0x5b6   : > { %21601 = vst [vmem:[#allocation103_spill] sm:$0xff] %v19427_v26  ;;  %21602 = vst [vmem:[#allocation109_spill] sm:$0xff] %v19432_v45  ;;  %v19456_v18 = vmul.f32 %v19396_v2, %v21608_v33  ;;  %v21610_v29 = vld [vmem:[#allocation62_spill] sm:$0xff]  ;;  %v19466_v57 = vld [vmem:[#allocation3 + $0xb1] sm:$0xff]  ;;  %v19504_v10 = vmul.f32 %v19436_v58, %v21319_v11 }
 0x5b7   : > { %21605 = vst [vmem:[#allocation116_spill] sm:$0xff] %v19442_v51  ;;  %21607 = vst [vmem:[#allocation113_spill] sm:$0xff] %v19446_v4  ;;  %v19460_v12 = vmul.f32 %v19398_v46, %v21610_v29  ;;  %v19468_v48 = vld [vmem:[#allocation3 + $0xb9] sm:$0xff]  ;;  %v19470_v23 = vld [vmem:[#allocation3 + $0xc1] sm:$0xff]  ;;  %v19480_v46 = vmul.f32 %v19415_v30, %v21310_v49  ;;  %v19496_v51 = vmul.f32 %v19432_v45, %v21315_v40 }
 0x5b8   : > { %9243 = vmatmul.mubr.bf16.gmra.mrb[176].mxu0 %v9016_v19  ;;  %v19394_v19 = vmul.f32 %v8965_v47, %v21339_v52  ;;  %v19413_v47 = vld [vmem:[#allocation3 + $0x71] sm:$0xff]  ;;  %21609 = vst [vmem:[#allocation70_spill] sm:$0xff] %v19456_v18  ;;  %21613 = vst [vmem:[#allocation74_spill] sm:$0xff] %v19464_v50  ;;  %v21616_v39 = vld [vmem:[#allocation66_spill] sm:$0xff]  ;;  %v19500_v4 = vmul.f32 %v19434_v44, %v21317_v24  ;;  %v19516_v18 = vmul.f32 %v19448_v8, %v21324_v17 }
 0x5b9   : > { %9252 = vmatprep.mubr.bf16.mxu0 %v21524_v16  ;;  %21595 = vst [vmem:[#allocation85_spill] sm:$0xff] %v19413_v47  ;;  %21611 = vst [vmem:[#allocation117_spill] sm:$0xff] %v19460_v12  ;;  %v19476_v26 = vmul.f32 %v19413_v47, %v21616_v39  ;;  %v19486_v2 = vld [vmem:[#allocation3 + $0xc9] sm:$0xff]  ;;  %v19488_v25 = vld [vmem:[#allocation3 + $0xd1] sm:$0xff] }
 0x5ba   : > { %8289 = vmatmul.mubr.bf16.gmra.mrb[220].mxu1 %v8054_v27  ;;  %v8055_v27 = vpack.c.bf16 %v19365_v41, %v19373_v20  ;;  %v19450_v41 = vld [vmem:[#allocation3 + $0xa9] sm:$0xff]  ;;  %21614 = vst [vmem:[#allocation75_spill] sm:$0xff] %v19468_v48  ;;  %21615 = vst [vmem:[#allocation78_spill] sm:$0xff] %v19470_v23  ;;  %v19490_v33 = vld [vmem:[#allocation3 + $0xd9] sm:$0xff]  ;;  %v19532_v20 = vmul.f32 %v19466_v57, %v21328_v37 }
 0x5bb   : > { %8298 = vmatprep.mubr.bf16.mxu1 %v21524_v16  ;;  %21617 = vst [vmem:[#allocation119_spill] sm:$0xff] %v19476_v26  ;;  %21618 = vst [vmem:[#allocation83_spill] sm:$0xff] %v19480_v46  ;;  %v19506_v30 = vld [vmem:[#allocation3 + $0xe1] sm:$0xff]  ;;  %v19508_v49 = vld [vmem:[#allocation3 + $0xe9] sm:$0xff]  ;;  %v19520_v12 = vmul.f32 %v19450_v41, %v21370_v38  ;;  %v19536_v46 = vmul.f32 %v19468_v48, %v21331_v9  ;;  %v19559_v26 = vmul.f32 %v19490_v33, %v21339_v52 }
 0x5bc   : > { %21619 = vst [vmem:[#allocation123_spill] sm:$0xff] %v19484_v22  ;;  %21620 = vst [vmem:[#allocation125_spill] sm:$0xff] %v19486_v2  ;;  %v19522_v58 = vld [vmem:[#allocation3 + $0xf1] sm:$0xff]  ;;  %v19524_v45 = vld [vmem:[#allocation3 + $0xf9] sm:$0xff]  ;;  %v19567_v47 = vmul.f32 %v19506_v30, %v21594_v36 }
 0x5bd   : > { %21621 = vst [vmem:[#allocation88_spill] sm:$0xff] %v19490_v33  ;;  %21622 = vst [vmem:[#allocation92_spill] sm:$0xff] %v19496_v51  ;;  %v19526_v11 = vld [vmem:[#allocation3 + $0x101] sm:$0xff]  ;;  %v19543_v22 = vld [vmem:[#allocation3 + $0x109] sm:$0xff]  ;;  %v19551_v51 = vmul.f32 %v19486_v2, %v21335_v6 }
 0x5be   : > { %21623 = vst [vmem:[#allocation93_spill] sm:$0xff] %v19500_v4  ;;  %21624 = vst [vmem:[#allocation126_spill] sm:$0xff] %v19504_v10  ;;  %v19545_v50 = vld [vmem:[#allocation3 + $0x111] sm:$0xff]  ;;  %v19555_v4 = vmul.f32 %v19488_v25, %v21337_v28 }
 0x5bf   : > { %21625 = vst [vmem:[#allocation96_spill] sm:$0xff] %v19506_v30  ;;  %21626 = vst [vmem:[#allocation128_spill] sm:$0xff] %v19508_v49  ;;  %v21639_v10 = vld [vmem:[#allocation100_spill] sm:$0xff]  ;;  %v21646_v30 = vld [vmem:[#allocation105_spill] sm:$0xff] }
 0x5c0   : > { %21627 = vst [vmem:[#allocation127_spill] sm:$0xff] %v19516_v18  ;;  %21628 = vst [vmem:[#allocation130_spill] sm:$0xff] %v19520_v12  ;;  %9253 = vmatmul.mubr.bf16.gmra.mrb[180].mxu0 %v9017_v43  ;;  %v19540_v43 = vmul.f32 %v19470_v23, %v21373_v7  ;;  %v19571_v18 = vmul.f32 %v19508_v49, %v21639_v10  ;;  %v21641_v23 = vld [vmem:[#allocation102_spill] sm:$0xff]  ;;  %v21645_v12 = vld [vmem:[#allocation76_spill] sm:$0xff]  ;;  %v19594_v33 = vmul.f32 %v19543_v22, %v21646_v30 }
 0x5c1   : > { %21629 = vst [vmem:[#allocation129_spill] sm:$0xff] %v19524_v45  ;;  %21630 = vst [vmem:[#allocation133_spill] sm:$0xff] %v19526_v11  ;;  %9262 = vmatprep.mubr.bf16.mxu0 %v21524_v16  ;;  %v19582_v48 = vmul.f32 %v19524_v45, %v21641_v23  ;;  %v8038_v49 = vmul.f32 %v19278_v60, %v21517_v63  ;;  %v8970_v45 = vld [vmem:[#allocation3 + $0xe1] sm:$0xff] }
 0x5c2   : > { %21631 = vst [vmem:[#allocation132_spill] sm:$0xff] %v19532_v20  ;;  %21632 = vst [vmem:[#allocation142_spill] sm:$0xff] %v19536_v46  ;;  %8299 = vmatmul.mubr.bf16.gmra.mrb[224].mxu1 %v8055_v27  ;;  %v21640_v27 = vld [vmem:[#allocation99_spill] sm:$0xff]  ;;  %v21643_v46 = vld [vmem:[#allocation101_spill] sm:$0xff]  ;;  %v8036_v20 = vmul.f32 %v21645_v12, %v21513_v54  ;;  %v9018_v12 = vpack.c.bf16 %v19411_v5, %v19394_v19  ;;  %v8039_v19 = vmul.f32 %v19282_v53, %v21516_v31 }
 0x5c3   : > { %21633 = vst [vmem:[#allocation143_spill] sm:$0xff] %v19540_v43  ;;  %21634 = vst [vmem:[#allocation21_spill] sm:$0xff] %v19545_v50  ;;  %8308 = vmatprep.mubr.bf16.mxu1 %v21524_v16  ;;  %v19578_v2 = vmul.f32 %v19522_v58, %v21640_v27  ;;  %v19586_v43 = vmul.f32 %v19526_v11, %v21643_v46  ;;  %v8967_v54 = vld [vmem:[#allocation3 + $0xc9] sm:$0xff]  ;;  %v8972_v53 = vld [vmem:[#allocation3 + $0xf1] sm:$0xff] }
 0x5c4   : > { %21635 = vst [vmem:[#allocation22_spill] sm:$0xff] %v19551_v51  ;;  %21636 = vst [vmem:[#allocation137_spill] sm:$0xff] %v19555_v4  ;;  %v21648_v51 = vld [vmem:[#allocation104_spill] sm:$0xff]  ;;  %v8999_v11 = vmul.f32 %v8967_v54, %v21639_v10  ;;  %v8040_v54 = vmul.f32 %v19290_v61, %v21575_v13 }
 0x5c5   : > { %21637 = vst [vmem:[#allocation136_spill] sm:$0xff] %v19559_v26  ;;  %21638 = vst [vmem:[#allocation145_spill] sm:$0xff] %v19567_v47  ;;  %v19598_v4 = vmul.f32 %v19545_v50, %v21648_v51  ;;  %v8968_v26 = vld [vmem:[#allocation3 + $0xd1] sm:$0xff]  ;;  %v8056_v47 = vpack.c.bf16 %v19377_v3, %v8036_v20  ;;  %v8057_v3 = vpack.c.bf16 %v8039_v19, %v8038_v49  ;;  %v8971_v49 = vld [vmem:[#allocation3 + $0xe9] sm:$0xff] }
 0x5c6   : > { %21642 = vst [vmem:[#allocation144_spill] sm:$0xff] %v19582_v48  ;;  %21644 = vst [vmem:[#allocation33_spill] sm:$0xff] %v19586_v43  ;;  %v9000_v50 = vmul.f32 %v8968_v26, %v21640_v27  ;;  %v9004_v20 = vmul.f32 %v8972_v53, %v21648_v51  ;;  %v21650_v19 = vld [vmem:[#allocation36_spill] sm:$0xff]  ;;  %v15994_v53 = vld [vmem:[#allocation3] sm:$0xff] }
 0x5c7   : > { %21647 = vst [vmem:[#allocation32_spill] sm:$0xff] %v19594_v33  ;;  %21649 = vst [vmem:[#allocation95_spill] sm:$0xff] %v19598_v4  ;;  %v8043_v13 = vmul.f32 %v19320_v56, %v21650_v19  ;;  %v8445_v56 = vpack.c.bf16 %v15994_v53, %v15994_v53  ;;  %v21661_v53 = vld [vmem:[#allocation84_spill] sm:$0xff]  ;;  %v21733_v4 = vld [vmem:[#allocation50_spill] sm:$0xff] }
 0x5c8   : > { %9263 = vmatmul.mubr.bf16.gmra.mrb[184].mxu0 %v9018_v12  ;;  %v9019_v5 = vpack.c.bf16 %v9000_v50, %v8999_v11  ;;  %v8969_v12 = vld [vmem:[#allocation3 + $0xd9] sm:$0xff]  ;;  %v8041_v11 = vmul.f32 %v19280_v62, %v21577_v14 }
 0x5c9   : > { %9272 = vmatprep.mubr.bf16.mxu0 %v21524_v16  ;;  %v9001_v26 = vmul.f32 %v8969_v12, %v21641_v23  ;;  %v8973_v14 = vld [vmem:[#allocation3 + $0xf9] sm:$0xff]  ;;  %v8974_v12 = vld [vmem:[#allocation3 + $0x101] sm:$0xff] }
 0x5ca   : > { %8309 = vmatmul.mubr.bf16.gmra.mrb[228].mxu1 %v8056_v47  ;;  %v9002_v47 = vmul.f32 %v8970_v45, %v21643_v46  ;;  %v8058_v50 = vpack.c.bf16 %v8041_v11, %v8040_v54  ;;  %v9003_v45 = vmul.f32 %v8971_v49, %v21646_v30  ;;  %v21653_v54 = vld [vmem:[#allocation106_spill] sm:$0xff]  ;;  %v21654_v49 = vld [vmem:[#allocation115_spill] sm:$0xff] }
 0x5cb   : > { %8318 = vmatprep.mubr.bf16.mxu1 %v21524_v16  ;;  %v9006_v11 = vmul.f32 %v8974_v12, %v21653_v54  ;;  %v15882_v12 = vld [vmem:[%s20602_s5 + $0x234] ss:$8 sps:$4 sm:$0xff]  }
 0x5cc   : > { %v9020_v60 = vpack.c.bf16 %v9002_v47, %v9001_v26  ;;  %v9021_v61 = vpack.c.bf16 %v9004_v20, %v9003_v45  ;;  %v21652_v26 = vld [vmem:[#allocation107_spill] sm:$0xff]  ;;  %v21655_v20 = vld [vmem:[#allocation112_spill] sm:$0xff] }
 0x5cd   : > { %v9005_v47 = vmul.f32 %v8973_v14, %v21652_v26  ;;  %v21656_v45 = vpack.c.bf16 %v21654_v49, %v21655_v20  ;;  %v15877_v14 = vld [vmem:[%s20602_s5 + $0x220] ss:$8 sps:$4 sm:$0xff]   ;;  %v21663_v20 = vld [vmem:[#allocation122_spill] sm:$0xff] }
 0x5ce   : > { %v21662_v49 = vld [vmem:[#allocation124_spill] sm:$0xff] }
 0x5d0   : > { %9273 = vmatmul.mubr.bf16.gmra.mrb[188].mxu0 %v9019_v5  ;;  %v21651_v5 = vld [vmem:[#allocation37_spill] sm:$0xff] }
 0x5d1   : > { %9282 = vmatprep.mubr.bf16.mxu0 %v21524_v16  ;;  %v8042_v62 = vmul.f32 %v19318_v35, %v21651_v5  ;;  %v15871_v35 = vld [vmem:[%s20602_s5 + $0x200] ss:$8 sps:$4 sm:$0xff]  }
 0x5d2   : > { %8319 = vmatmul.mubr.bf16.gmra.mrb[232].mxu1 %v8057_v3 }
 0x5d3   : > { %8328 = vmatprep.mubr.bf16.mxu1 %v21524_v16  ;;  %v8059_v3 = vpack.c.bf16 %v8043_v13, %v8042_v62  ;;  %v15874_v13 = vld [vmem:[%s20602_s5 + $0x210] ss:$8 sps:$4 sm:$0xff]   ;;  %v15879_v62 = vld [vmem:[%s20602_s5 + $0x224] ss:$8 sps:$4 sm:$0xff]  }
 0x5d8   : > { %9283 = vmatmul.mubr.bf16.gmra.mrb[192].mxu0 %v9020_v60  ;;  %v9022_v60 = vpack.c.bf16 %v9006_v11, %v9005_v47  ;;  %v21659_v47 = vld [vmem:[#allocation114_spill] sm:$0xff] }
 0x5d9   : > { %9292 = vmatprep.mubr.bf16.mxu0 %v21524_v16 }
 0x5da   : > { %8329 = vmatmul.mubr.bf16.gmra.mrb[236].mxu1 %v8058_v50  ;;  %v15876_v50 = vld [vmem:[%s20602_s5 + $0x214] ss:$8 sps:$4 sm:$0xff]  }
 0x5db   : > { %8338 = vmatprep.mubr.bf16.mxu1 %v21524_v16 }
 0x5e0   : > { %9293 = vmatmul.mubr.bf16.gmra.mrb[196].mxu0 %v9021_v61  ;;  %v21657_v61 = vld [vmem:[#allocation35_spill] sm:$0xff] }
 0x5e1   : > { %9302 = vmatprep.mubr.bf16.mxu0 %v21524_v16 }
 0x5e2   : > { %8339 = vmatmul.mubr.bf16.gmra.mrb[240].mxu1 %v8059_v3  ;;  %v21658_v3 = vld [vmem:[#allocation87_spill] sm:$0xff] }
 0x5e3   : > { %8590 = vmatprep.mubr.bf16.mxu1 %v21524_v16  ;;  %v21660_v11 = vpack.c.bf16 %v21658_v3, %v21659_v47  ;;  %v21666_v3 = vld [vmem:[#allocation120_spill] sm:$0xff]  ;;  %v21667_v47 = vld [vmem:[#allocation31_spill] sm:$0xff] }
 0x5e8   : > { %9303 = vmatmul.mubr.bf16.gmra.mrb[200].mxu0 %v9022_v60  ;;  %v15880_v60 = vld [vmem:[%s20602_s5 + $0x230] ss:$8 sps:$4 sm:$0xff]  }
 0x5e9   : > { %9714 = vmatprep.mubr.bf16.mxu0 %v21524_v16 }
 0x5ea   : > { %8591 = vmatmul.mubr.bf16.vlgmr.msra.gmra.mrb[180].mxu1 %v8445_v56  ;;  %v15885_v56 = vld [vmem:[%s20602_s5 + $0x244] ss:$8 sps:$4 sm:$0xff]  }
 0x5eb   : > { %8600 = vmatprep.mubr.bf16.mxu1 %v21524_v16 }
 0x5f0   : > { %9715 = vmatmul.mubr.bf16.vlgmr.msra.gmra.mrb[140].mxu0 %v21656_v45  ;;  %v21664_v45 = vpack.c.bf16 %v21662_v49, %v21663_v20  ;;  %v21673_v49 = vld [vmem:[#allocation82_spill] sm:$0xff]  ;;  %v21674_v20 = vld [vmem:[#allocation53_spill] sm:$0xff] }
 0x5f1   : > { %9724 = vmatprep.mubr.bf16.mxu0 %v21524_v16  ;;  %10213 = vmatpush1.bf16.msra.mxu0 %v15871_v35  ;;  %v15883_v35 = vld [vmem:[%s20602_s5 + $0x240] ss:$8 sps:$4 sm:$0xff]  }
 0x5f2   : > { %8601 = vmatmul.mubr.bf16.gmra.mrb[184].mxu1 %v21657_v61  ;;  %10214 = vmatprep.subr.bf16.mxu0 %v15876_v50  ;;  %v15888_v50 = vld [vmem:[%s20602_s5 + $0x254] ss:$8 sps:$4 sm:$0xff]  }
 0x5f3   : > { %8610 = vmatprep.mubr.bf16.mxu1 %v21524_v16  ;;  %v21665_v61 = vld [vmem:[#allocation118_spill] sm:$0xff] }
 0x5f5   : > { %10215 = vmatpush1.bf16.msra.mxu0 %v15874_v13  ;;  %v15886_v13 = vld [vmem:[%s20602_s5 + $0x250] ss:$8 sps:$4 sm:$0xff]  }
 0x5f6   : > { %10216 = vmatprep.subr.bf16.mxu0 %v15879_v62  ;;  %v15891_v62 = vld [vmem:[%s20602_s5 + $0x264] ss:$8 sps:$4 sm:$0xff]  }
 0x5f8   : > { %9725 = vmatmul.mubr.bf16.gmra.mrb[144].mxu0 %v21660_v11  ;;  %v21668_v11 = vpack.c.bf16 %v21666_v3, %v21667_v47  ;;  %v21681_v3 = vld [vmem:[#allocation56_spill] sm:$0xff] }
 0x5f9   : > { %9734 = vmatprep.mubr.bf16.mxu0 %v21524_v16  ;;  %10217 = vmatpush1.bf16.msra.mxu0 %v15877_v14  ;;  %v15889_v14 = vld [vmem:[%s20602_s5 + $0x260] ss:$8 sps:$4 sm:$0xff]  }
 0x5fa   : > { %8611 = vmatmul.mubr.bf16.gmra.mrb[188].mxu1 %v21661_v53  ;;  %10218 = vmatprep.subr.bf16.mxu0 %v15882_v12  ;;  %v15894_v12 = vld [vmem:[%s20602_s5 + $0x274] ss:$8 sps:$4 sm:$0xff]   ;;  %v21669_v53 = vld [vmem:[#allocation111_spill] sm:$0xff]  ;;  %v21682_v47 = vld [vmem:[#allocation60_spill] sm:$0xff] }
 0x5fb   : > { %8620 = vmatprep.mubr.bf16.mxu1 %v21524_v16 }
 0x5fd   : > { %10219 = vmatpush1.bf16.msra.mxu0 %v15880_v60  ;;  %v15892_v60 = vld [vmem:[%s20602_s5 + $0x270] ss:$8 sps:$4 sm:$0xff]  }
 0x5fe   : > { %10220 = vmatprep.subr.bf16.mxu0 %v15885_v56  ;;  %v21670_v56 = vld [vmem:[#allocation91_spill] sm:$0xff] }
 0x600   : > { %9735 = vmatmul.mubr.bf16.gmra.mrb[148].mxu0 %v21664_v45  ;;  %v21675_v45 = vld [vmem:[#allocation61_spill] sm:$0xff] }
 0x601   : > { %9744 = vmatprep.mubr.bf16.mxu0 %v21524_v16  ;;  %10221 = vmatpush1.bf16.msra.mxu0 %v15883_v35  ;;  %v21671_v35 = vld [vmem:[#allocation57_spill] sm:$0xff] }
 0x602   : > { %8621 = vmatmul.mubr.bf16.gmra.mrb[192].mxu1 %v21665_v61  ;;  %10222 = vmatprep.subr.bf16.mxu0 %v15888_v50  ;;  %v21672_v50 = vpack.c.bf16 %v21670_v56, %v21671_v35  ;;  %v21677_v61 = vld [vmem:[#allocation121_spill] sm:$0xff]  ;;  %v21686_v56 = vld [vmem:[#allocation72_spill] sm:$0xff]  ;;  %v21687_v35 = vld [vmem:[#allocation30_spill] sm:$0xff] }
 0x603   : > { %8630 = vmatprep.mubr.bf16.mxu1 %v21524_v16 }
 0x605   : > { %10223 = vmatpush1.bf16.msra.mxu0 %v15886_v13  ;;  %v21676_v13 = vpack.c.bf16 %v21674_v20, %v21675_v45  ;;  %v21689_v20 = vld [vmem:[#allocation68_spill] sm:$0xff]  ;;  %v21690_v45 = vld [vmem:[#allocation25_spill] sm:$0xff] }
 0x606   : > { %10224 = vmatprep.subr.bf16.mxu0 %v15891_v62  ;;  %v21678_v62 = vld [vmem:[#allocation64_spill] sm:$0xff] }
 0x608   : > { %9745 = vmatmul.mubr.bf16.gmra.mrb[152].mxu0 %v21668_v11  ;;  %v21683_v11 = vld [vmem:[#allocation26_spill] sm:$0xff] }
 0x609   : > { %9754 = vmatprep.mubr.bf16.mxu0 %v21524_v16  ;;  %10225 = vmatpush1.bf16.msra.mxu0 %v15889_v14  ;;  %v21679_v14 = vld [vmem:[#allocation69_spill] sm:$0xff] }
 0x60a   : > { %8631 = vmatmul.mubr.bf16.gmra.mrb[196].mxu1 %v21669_v53  ;;  %10226 = vmatprep.subr.bf16.mxu0 %v15894_v12  ;;  %v21680_v12 = vpack.c.bf16 %v21678_v62, %v21679_v14  ;;  %v21685_v53 = vld [vmem:[#allocation52_spill] sm:$0xff]  ;;  %v21693_v62 = vld [vmem:[#allocation65_spill] sm:$0xff]  ;;  %v21694_v14 = vpack.c.bf16 %v19257_v59, %v19253_v0  ;;  %v21698_v0 = vpack.c.bf16 %v19298_v15, %v19294_v42 }
 0x60b   : > { %8640 = vmatprep.mubr.bf16.mxu1 %v21524_v16  ;;  %v21699_v59 = vld [vmem:[#allocation81_spill] sm:$0xff]  ;;  %v21705_v15 = vld [vmem:[#allocation40_spill] sm:$0xff] }
 0x60d   : > { %10227 = vmatpush1.bf16.msra.mxu0 %v15892_v60  ;;  %v21684_v60 = vpack.c.bf16 %v21682_v47, %v21683_v11  ;;  %v21697_v47 = vld [vmem:[#allocation73_spill] sm:$0xff]  ;;  %v21702_v11 = vld [vmem:[#allocation80_spill] sm:$0xff] }
 0x610   : > { %9755 = vmatmul.mubr.bf16.gmra.mrb[156].mxu0 %v21672_v50  ;;  %v21688_v50 = vpack.c.bf16 %v21686_v56, %v21687_v35 }
 0x611   : > { %9764 = vmatprep.mubr.bf16.mxu0 %v21524_v16 }
 0x612   : > { %8641 = vmatmul.mubr.bf16.gmra.mrb[200].mxu1 %v21673_v49  ;;  %v15897_v49 = vld [vmem:[%s20602_s5 + $0x284] ss:$8 sps:$4 sm:$0xff]  }
 0x613   : > { %8650 = vmatprep.mubr.bf16.mxu1 %v21524_v16  ;;  %10774 = vmatprep.subr.bf16.mxu0 %v15897_v49  ;;  %v10067_v49 = vld [vmem:[#allocation3 + $0x18] sm:$0xff] }
 0x618   : > { %9765 = vmatmul.mubr.bf16.gmra.mrb[160].mxu0 %v21676_v13  ;;  %v21691_v13 = vld [vmem:[#allocation77_spill] sm:$0xff] }
 0x619   : > { %9774 = vmatprep.mubr.bf16.mxu0 %v21524_v16 }
 0x61a   : > { %8651 = vmatmul.mubr.bf16.gmra.mrb[204].mxu1 %v21677_v61  ;;  %v21692_v61 = vpack.c.bf16 %v21690_v45, %v21691_v13  ;;  %v15900_v13 = vld [vmem:[%s20602_s5 + $0x294] ss:$8 sps:$4 sm:$0xff]  }
 0x61b   : > { %8660 = vmatprep.mubr.bf16.mxu1 %v21524_v16 }
 0x620   : > { %9775 = vmatmul.mubr.bf16.gmra.mrb[164].mxu0 %v21680_v12  ;;  %v21695_v12 = vld [vmem:[#allocation29_spill] sm:$0xff] }
 0x621   : > { %9784 = vmatprep.mubr.bf16.mxu0 %v21524_v16 }
 0x622   : > { %8661 = vmatmul.mubr.bf16.gmra.mrb[208].mxu1 %v21681_v3  ;;  %v21696_v3 = vpack.c.bf16 %v19248_v1, %v19261_v32  ;;  %v21700_v1 = vpack.c.bf16 %v19286_v55, %v21699_v59  ;;  %v21701_v32 = vld [vmem:[#allocation41_spill] sm:$0xff]  ;;  %v21707_v55 = vld [vmem:[#allocation44_spill] sm:$0xff] }
 0x623   : > { %8670 = vmatprep.mubr.bf16.mxu1 %v21524_v16  ;;  %v9568_v56 = vmul.f32 %v21707_v55, %v21650_v19  ;;  %v15904_v59 = vld [vmem:[%s20602_s5 + $0x2b0] ss:$8 sps:$4 sm:$0xff]   ;;  %v10074_v55 = vld [vmem:[#allocation3 + $0x50] sm:$0xff] }
 0x628   : > { %9785 = vmatmul.mubr.bf16.gmra.mrb[168].mxu0 %v21684_v60  ;;  %v21703_v60 = vld [vmem:[#allocation45_spill] sm:$0xff] }
 0x629   : > { %9794 = vmatprep.mubr.bf16.mxu0 %v21524_v16  ;;  %v21704_v42 = vpack.c.bf16 %v21702_v11, %v21703_v60  ;;  %v10071_v11 = vld [vmem:[#allocation3 + $0x38] sm:$0xff] }
 0x62a   : > { %8671 = vmatmul.mubr.bf16.gmra.mrb[212].mxu1 %v21685_v53  ;;  %v15907_v60 = vld [vmem:[%s20602_s5 + $0x2c0] ss:$8 sps:$4 sm:$0xff]  }
 0x62b   : > { %8680 = vmatprep.mubr.bf16.mxu1 %v21524_v16 }
 0x630   : > { %9795 = vmatmul.mubr.bf16.gmra.mrb[172].mxu0 %v21688_v50  ;;  %v10068_v50 = vld [vmem:[#allocation3 + $0x20] sm:$0xff] }
 0x631   : > { %9804 = vmatprep.mubr.bf16.mxu0 %v21524_v16  ;;  %v10099_v45 = vpack.c.bf16 %v10068_v50, %v10067_v49  ;;  %v15918_v49 = vld [vmem:[%s20602_s5 + $0x2f4] ss:$8 sps:$4 sm:$0xff]  }
 0x632   : > { %8681 = vmatmul.mubr.bf16.gmra.mrb[216].mxu1 %v21689_v20  ;;  %v15895_v20 = vld [vmem:[%s20602_s5 + $0x280] ss:$8 sps:$4 sm:$0xff]  }
 0x633   : > { %8690 = vmatprep.mubr.bf16.mxu1 %v21524_v16 }
 0x638   : > { %9805 = vmatmul.mubr.bf16.gmra.mrb[176].mxu0 %v21692_v61  ;;  %v15898_v61 = vld [vmem:[%s20602_s5 + $0x290] ss:$8 sps:$4 sm:$0xff]  }
 0x639   : > { %9814 = vmatprep.mubr.bf16.mxu0 %v21524_v16 }
 0x63a   : > { %8691 = vmatmul.mubr.bf16.gmra.mrb[220].mxu1 %v21693_v62  ;;  %v15903_v62 = vld [vmem:[%s20602_s5 + $0x2a4] ss:$8 sps:$4 sm:$0xff]  }
 0x63b   : > { %8700 = vmatprep.mubr.bf16.mxu1 %v21524_v16 }
 0x640   : > { %9815 = vmatmul.mubr.bf16.gmra.mrb[180].mxu0 %v21694_v14  ;;  %v10070_v14 = vld [vmem:[#allocation3 + $0x30] sm:$0xff] }
 0x641   : > { %9824 = vmatprep.mubr.bf16.mxu0 %v21524_v16 }
 0x642   : > { %8701 = vmatmul.mubr.bf16.gmra.mrb[224].mxu1 %v21695_v12  ;;  %v10069_v12 = vld [vmem:[#allocation3 + $0x28] sm:$0xff] }
 0x643   : > { %8710 = vmatprep.mubr.bf16.mxu1 %v21524_v16 }
 0x648   : > { %9825 = vmatmul.mubr.bf16.gmra.mrb[184].mxu0 %v21696_v3  ;;  %v15901_v3 = vld [vmem:[%s20602_s5 + $0x2a0] ss:$8 sps:$4 sm:$0xff]  }
 0x649   : > { %9834 = vmatprep.mubr.bf16.mxu0 %v21524_v16 }
 0x64a   : > { %8711 = vmatmul.mubr.bf16.gmra.mrb[228].mxu1 %v21697_v47  ;;  %v19797_v47 = vpack.c.bf16 %v10070_v14, %v10069_v12  ;;  %v10077_v14 = vld [vmem:[#allocation3 + $0x68] sm:$0xff] }
 0x64b   : > { %8720 = vmatprep.mubr.bf16.mxu1 %v21524_v16 }
 0x650   : > { %9835 = vmatmul.mubr.bf16.gmra.mrb[188].mxu0 %v21698_v0  ;;  %v15906_v0 = vld [vmem:[%s20602_s5 + $0x2b4] ss:$8 sps:$4 sm:$0xff]  }
 0x651   : > { %9844 = vmatprep.mubr.bf16.mxu0 %v21524_v16 }
 0x652   : > { %8721 = vmatmul.mubr.bf16.gmra.mrb[232].mxu1 %v19264_v34  ;;  %v21706_v34 = vld [vmem:[#allocation86_spill] sm:$0xff] }
 0x653   : > { %8730 = vmatprep.mubr.bf16.mxu1 %v21524_v16  ;;  %v9567_v53 = vmul.f32 %v21706_v34, %v21651_v5  ;;  %v15910_v34 = vld [vmem:[%s20602_s5 + $0x2d0] ss:$8 sps:$4 sm:$0xff]  }
 0x655   : > { %v9584_v35 = vpack.c.bf16 %v9568_v56, %v9567_v53  ;;  %v15915_v53 = vld [vmem:[%s20602_s5 + $0x2e4] ss:$8 sps:$4 sm:$0xff]   ;;  %v10073_v56 = vld [vmem:[#allocation3 + $0x48] sm:$0xff] }
 0x656   : > { %v19829_v50 = vpack.c.bf16 %v10074_v55, %v10073_v56  ;;  %v10086_v55 = vld [vmem:[#allocation3 + $0xb0] sm:$0xff]  ;;  %v10085_v56 = vld [vmem:[#allocation3 + $0xa8] sm:$0xff] }
 0x658   : > { %9845 = vmatmul.mubr.bf16.gmra.mrb[192].mxu0 %v21700_v1  ;;  %v15909_v1 = vld [vmem:[%s20602_s5 + $0x2c4] ss:$8 sps:$4 sm:$0xff]  }
 0x659   : > { %9854 = vmatprep.mubr.bf16.mxu0 %v21524_v16 }
 0x65a   : > { %8731 = vmatmul.mubr.bf16.gmra.mrb[236].mxu1 %v21701_v32  ;;  %v10072_v32 = vld [vmem:[#allocation3 + $0x40] sm:$0xff] }
 0x65b   : > { %8740 = vmatprep.mubr.bf16.mxu1 %v21524_v16 }
 0x660   : > { %9855 = vmatmul.mubr.bf16.gmra.mrb[196].mxu0 %v21704_v42  ;;  %v19813_v42 = vpack.c.bf16 %v10072_v32, %v10071_v11  ;;  %v10081_v32 = vld [vmem:[#allocation3 + $0x88] sm:$0xff] }
 0x661   : > { %9864 = vmatprep.mubr.bf16.mxu0 %v21524_v16 }
 0x662   : > { %8741 = vmatmul.mubr.bf16.gmra.mrb[240].mxu1 %v21705_v15  ;;  %v15912_v15 = vld [vmem:[%s20602_s5 + $0x2d4] ss:$8 sps:$4 sm:$0xff]  }
 0x668   : > { %9865 = vmatmul.mubr.bf16.gmra.mrb[200].mxu0 %v9584_v35  ;;  %v15913_v35 = vld [vmem:[%s20602_s5 + $0x2e0] ss:$8 sps:$4 sm:$0xff]  }
 0x669   : > { %10244 = vmatprep.mubr.bf16.mxu0 %v21524_v16 }
 0x670   : > { %10245 = vmatmul.mubr.bf16.vlgmr.msra.gmra.mrb[140].mxu0 %v10099_v45  ;;  %v10076_v45 = vld [vmem:[#allocation3 + $0x60] sm:$0xff] }
 0x671   : > { %10254 = vmatprep.mubr.bf16.mxu0 %v21524_v16  ;;  %10775 = vmatpush1.bf16.msra.mxu0 %v15895_v20  ;;  %v15916_v20 = vld [vmem:[%s20602_s5 + $0x2f0] ss:$8 sps:$4 sm:$0xff]  }
 0x672   : > { %10776 = vmatprep.subr.bf16.mxu0 %v15900_v13  ;;  %v10075_v13 = vld [vmem:[#allocation3 + $0x58] sm:$0xff] }
 0x675   : > { %10777 = vmatpush1.bf16.msra.mxu0 %v15898_v61  ;;  %v19839_v61 = vpack.c.bf16 %v10076_v45, %v10075_v13  ;;  %v10087_v45 = vld [vmem:[#allocation3 + $0xb8] sm:$0xff] }
 0x676   : > { %10778 = vmatprep.subr.bf16.mxu0 %v15903_v62  ;;  %v10078_v62 = vld [vmem:[#allocation3 + $0x70] sm:$0xff] }
 0x677   : > { %v19843_v12 = vpack.c.bf16 %v10078_v62, %v10077_v14 }
 0x678   : > { %10255 = vmatmul.mubr.bf16.gmra.mrb[144].mxu0 %v19797_v47 }
 0x679   : > { %10264 = vmatprep.mubr.bf16.mxu0 %v21524_v16  ;;  %10779 = vmatpush1.bf16.msra.mxu0 %v15901_v3  ;;  %v10080_v3 = vld [vmem:[#allocation3 + $0x80] sm:$0xff] }
 0x67a   : > { %10780 = vmatprep.subr.bf16.mxu0 %v15906_v0  ;;  %v10079_v0 = vld [vmem:[#allocation3 + $0x78] sm:$0xff] }
 0x67d   : > { %10781 = vmatpush1.bf16.msra.mxu0 %v15904_v59  ;;  %v19847_v59 = vpack.c.bf16 %v10080_v3, %v10079_v0  ;;  %v10090_v0 = vld [vmem:[#allocation3 + $0xd0] sm:$0xff] }
 0x67e   : > { %10782 = vmatprep.subr.bf16.mxu0 %v15909_v1  ;;  %v10082_v1 = vld [vmem:[#allocation3 + $0x90] sm:$0xff] }
 0x67f   : > { %v19851_v11 = vpack.c.bf16 %v10082_v1, %v10081_v32  ;;  %v10089_v32 = vld [vmem:[#allocation3 + $0xc8] sm:$0xff] }
 0x680   : > { %10265 = vmatmul.mubr.bf16.gmra.mrb[148].mxu0 %v19813_v42 }
 0x681   : > { %10274 = vmatprep.mubr.bf16.mxu0 %v21524_v16  ;;  %10783 = vmatpush1.bf16.msra.mxu0 %v15907_v60  ;;  %v10084_v60 = vld [vmem:[#allocation3 + $0xa0] sm:$0xff] }
 0x682   : > { %10784 = vmatprep.subr.bf16.mxu0 %v15912_v15  ;;  %v10083_v15 = vld [vmem:[#allocation3 + $0x98] sm:$0xff] }
 0x685   : > { %10785 = vmatpush1.bf16.msra.mxu0 %v15910_v34  ;;  %v19855_v34 = vpack.c.bf16 %v10084_v60, %v10083_v15  ;;  %v19882_v15 = vpack.c.bf16 %v10090_v0, %v10089_v32  ;;  %v10094_v32 = vld [vmem:[#allocation3 + $0xf0] sm:$0xff] }
 0x686   : > { %10786 = vmatprep.subr.bf16.mxu0 %v15915_v53  ;;  %v15921_v53 = vld [vmem:[%s20602_s5 + $0x304] ss:$8 sps:$4 sm:$0xff]  }
 0x688   : > { %10275 = vmatmul.mubr.bf16.gmra.mrb[152].mxu0 %v19829_v50 }
 0x689   : > { %10284 = vmatprep.mubr.bf16.mxu0 %v21524_v16  ;;  %10787 = vmatpush1.bf16.msra.mxu0 %v15913_v35  ;;  %v19862_v35 = vpack.c.bf16 %v10086_v55, %v10085_v56  ;;  %v10092_v56 = vld [vmem:[#allocation3 + $0xe0] sm:$0xff] }
 0x68a   : > { %10788 = vmatprep.subr.bf16.mxu0 %v15918_v49  ;;  %v10088_v49 = vld [vmem:[#allocation3 + $0xc0] sm:$0xff] }
 0x68b   : > { %v19870_v62 = vpack.c.bf16 %v10088_v49, %v10087_v45  ;;  %v10091_v45 = vld [vmem:[#allocation3 + $0xd8] sm:$0xff] }
 0x68d   : > { %10789 = vmatpush1.bf16.msra.mxu0 %v15916_v20 }
 0x68e   : > { %11336 = vmatprep.subr.bf16.mxu0 %v15921_v53 }
 0x690   : > { %10285 = vmatmul.mubr.bf16.gmra.mrb[156].mxu0 %v19839_v61 }
 0x691   : > { %10294 = vmatprep.mubr.bf16.mxu0 %v21524_v16 }
 0x698   : > { %10295 = vmatmul.mubr.bf16.gmra.mrb[160].mxu0 %v19843_v12 }
 0x699   : > { %10304 = vmatprep.mubr.bf16.mxu0 %v21524_v16 }
 0x6a0   : > { %10305 = vmatmul.mubr.bf16.gmra.mrb[164].mxu0 %v19847_v59 }
 0x6a1   : > { %10314 = vmatprep.mubr.bf16.mxu0 %v21524_v16 }
 0x6a8   : > { %10315 = vmatmul.mubr.bf16.gmra.mrb[168].mxu0 %v19851_v11 }
 0x6a9   : > { %10324 = vmatprep.mubr.bf16.mxu0 %v21524_v16 }
 0x6b0   : > { %10325 = vmatmul.mubr.bf16.gmra.mrb[172].mxu0 %v19855_v34 }
 0x6b1   : > { %10334 = vmatprep.mubr.bf16.mxu0 %v21524_v16 }
 0x6b8   : > { %10335 = vmatmul.mubr.bf16.gmra.mrb[176].mxu0 %v19862_v35 }
 0x6b9   : > { %10344 = vmatprep.mubr.bf16.mxu0 %v21524_v16 }
 0x6bd   : > { %v19866_v20 = vpop.f32.mrb[180].mxu1 }
 0x6be   : > { %21708 = vst [vmem:[#allocation62_spill] sm:$0xff] %v19866_v20  ;;  %v19868_v13 = vpop.f32.mrb[181].mxu1 }
 0x6bf   : > { %21709 = vst [vmem:[#allocation66_spill] sm:$0xff] %v19868_v13  ;;  %v19872_v14 = vpop.f32.mrb[182].mxu1 }
 0x6c0   : > { %21710 = vst [vmem:[#allocation100_spill] sm:$0xff] %v19872_v14  ;;  %v19874_v3 = vpop.f32.mrb[183].mxu1  ;;  %10345 = vmatmul.mubr.bf16.gmra.mrb[180].mxu0 %v19870_v62 }
 0x6c1   : > { %21711 = vst [vmem:[#allocation99_spill] sm:$0xff] %v19874_v3  ;;  %10354 = vmatprep.mubr.bf16.mxu0 %v21524_v16 }
 0x6c5   : > { %v19878_v1 = vpop.f32.mrb[184].mxu1 }
 0x6c6   : > { %21712 = vst [vmem:[#allocation102_spill] sm:$0xff] %v19878_v1  ;;  %v19880_v60 = vpop.f32.mrb[185].mxu1  ;;  %v19894_v1 = vpack.c.bf16 %v10092_v56, %v10091_v45  ;;  %v10096_v45 = vld [vmem:[#allocation3 + $0x100] sm:$0xff] }
 0x6c7   : > { %21713 = vst [vmem:[#allocation101_spill] sm:$0xff] %v19880_v60  ;;  %v19884_v53 = vpop.f32.mrb[186].mxu1 }
 0x6c8   : > { %21714 = vst [vmem:[#allocation76_spill] sm:$0xff] %v19884_v53  ;;  %v19886_v55 = vpop.f32.mrb[187].mxu1  ;;  %10355 = vmatmul.mubr.bf16.gmra.mrb[184].mxu0 %v19882_v15  ;;  %v10093_v53 = vld [vmem:[#allocation3 + $0xe8] sm:$0xff] }
 0x6c9   : > { %21715 = vst [vmem:[#allocation105_spill] sm:$0xff] %v19886_v55  ;;  %10364 = vmatprep.mubr.bf16.mxu0 %v21524_v16 }
 0x6cd   : > { %v19890_v49 = vpop.f32.mrb[188].mxu1 }
 0x6ce   : > { %21716 = vst [vmem:[#allocation104_spill] sm:$0xff] %v19890_v49  ;;  %v19892_v3 = vpop.f32.mrb[189].mxu1  ;;  %v19906_v49 = vpack.c.bf16 %v10094_v32, %v10093_v53  ;;  %v10098_v32 = vld [vmem:[#allocation3 + $0x110] sm:$0xff] }
 0x6cf   : > { %21717 = vst [vmem:[#allocation36_spill] sm:$0xff] %v19892_v3  ;;  %v19896_v14 = vpop.f32.mrb[190].mxu1 }
 0x6d0   : > { %21718 = vst [vmem:[#allocation37_spill] sm:$0xff] %v19896_v14  ;;  %v19898_v0 = vpop.f32.mrb[191].mxu1  ;;  %10365 = vmatmul.mubr.bf16.gmra.mrb[188].mxu0 %v19894_v1  ;;  %v10095_v14 = vld [vmem:[#allocation3 + $0xf8] sm:$0xff] }
 0x6d1   : > { %21719 = vst [vmem:[#allocation107_spill] sm:$0xff] %v19898_v0  ;;  %10374 = vmatprep.mubr.bf16.mxu0 %v21524_v16 }
 0x6d5   : > { %v19902_v55 = vpop.f32.mrb[192].mxu1 }
 0x6d6   : > { %21720 = vst [vmem:[#allocation106_spill] sm:$0xff] %v19902_v55  ;;  %v19904_v60 = vpop.f32.mrb[193].mxu1  ;;  %v19918_v55 = vpack.c.bf16 %v10096_v45, %v10095_v14  ;;  %v10597_v14 = vld [vmem:[#allocation3 + $0x19] sm:$0xff]  ;;  %v10598_v45 = vld [vmem:[#allocation3 + $0x21] sm:$0xff] }
 0x6d7   : > { %21721 = vst [vmem:[#allocation115_spill] sm:$0xff] %v19904_v60  ;;  %v19908_v13 = vpop.f32.mrb[194].mxu1  ;;  %v10630_v48 = vmul.f32 %v10598_v45, %v21733_v4  ;;  %v15922_v4 = vld [vmem:[%s20602_s5 + $0x310] ss:$8 sps:$4 sm:$0xff]  }
 0x6d8   : > { %21722 = vst [vmem:[#allocation112_spill] sm:$0xff] %v19908_v13  ;;  %v19910_v56 = vpop.f32.mrb[195].mxu1  ;;  %10375 = vmatmul.mubr.bf16.gmra.mrb[192].mxu0 %v19906_v49  ;;  %v10097_v13 = vld [vmem:[#allocation3 + $0x108] sm:$0xff] }
 0x6d9   : > { %21723 = vst [vmem:[#allocation35_spill] sm:$0xff] %v19910_v56  ;;  %10384 = vmatprep.mubr.bf16.mxu0 %v21524_v16 }
 0x6dd   : > { %v19914_v0 = vpop.f32.mrb[196].mxu1 }
 0x6de   : > { %21724 = vst [vmem:[#allocation87_spill] sm:$0xff] %v19914_v0  ;;  %v19916_v3 = vpop.f32.mrb[197].mxu1  ;;  %v19930_v0 = vpack.c.bf16 %v10098_v32, %v10097_v13  ;;  %v15919_v13 = vld [vmem:[%s20602_s5 + $0x300] ss:$8 sps:$4 sm:$0xff]  }
 0x6df   : > { %21725 = vst [vmem:[#allocation114_spill] sm:$0xff] %v19916_v3  ;;  %v19920_v20 = vpop.f32.mrb[198].mxu1 }
 0x6e0   : > { %21726 = vst [vmem:[#allocation84_spill] sm:$0xff] %v19920_v20  ;;  %v19922_v53 = vpop.f32.mrb[199].mxu1  ;;  %10385 = vmatmul.mubr.bf16.gmra.mrb[196].mxu0 %v19918_v55 }
 0x6e1   : > { %21727 = vst [vmem:[#allocation124_spill] sm:$0xff] %v19922_v53  ;;  %10394 = vmatprep.mubr.bf16.mxu0 %v21524_v16  ;;  %v21732_v53 = vld [vmem:[#allocation51_spill] sm:$0xff] }
 0x6e2   : > { %v10629_v20 = vmul.f32 %v10597_v14, %v21732_v53  ;;  %v21738_v53 = vld [vmem:[#allocation54_spill] sm:$0xff] }
 0x6e3   : > { %v21739_v14 = vld [vmem:[#allocation98_spill] sm:$0xff] }
 0x6e4   : > { %v10632_v45 = vmul.f32 %v21739_v14, %v21738_v53 }
 0x6e5   : > { %v19926_v56 = vpop.f32.mrb[200].mxu1 }
 0x6e6   : > { %21728 = vst [vmem:[#allocation122_spill] sm:$0xff] %v19926_v56  ;;  %v19928_v60 = vpop.f32.mrb[201].mxu1 }
 0x6e7   : > { %21729 = vst [vmem:[#allocation118_spill] sm:$0xff] %v19928_v60  ;;  %v19932_v33 = vpop.f32.mrb[202].mxu1 }
 0x6e8   : > { %21730 = vst [vmem:[#allocation120_spill] sm:$0xff] %v19932_v33  ;;  %v19934_v3 = vpop.f32.mrb[203].mxu1  ;;  %10395 = vmatmul.mubr.bf16.gmra.mrb[200].mxu0 %v19930_v0  ;;  %v10661_v33 = vpack.c.bf16 %v10630_v48, %v10629_v20  ;;  %v15927_v48 = vld [vmem:[%s20602_s5 + $0x324] ss:$8 sps:$4 sm:$0xff]  }
 0x6e9   : > { %21731 = vst [vmem:[#allocation31_spill] sm:$0xff] %v19934_v3  ;;  %10806 = vmatprep.mubr.bf16.mxu0 %v21524_v16  ;;  %v15924_v3 = vld [vmem:[%s20602_s5 + $0x314] ss:$8 sps:$4 sm:$0xff]   ;;  %v21740_v20 = vld [vmem:[#allocation55_spill] sm:$0xff] }
 0x6ed   : > { %v19940_v56 = vpop.f32.mrb[204].mxu1 }
 0x6ee   : > { %21734 = vst [vmem:[#allocation111_spill] sm:$0xff] %v19940_v56  ;;  %v19945_v32 = vpop.f32.mrb[205].mxu1 }
 0x6ef   : > { %21735 = vst [vmem:[#allocation91_spill] sm:$0xff] %v19945_v32  ;;  %v19950_v60 = vpop.f32.mrb[206].mxu1 }
 0x6f0   : > { %21736 = vst [vmem:[#allocation57_spill] sm:$0xff] %v19950_v60  ;;  %v19952_v43 = vpop.f32.mrb[207].mxu1  ;;  %10807 = vmatmul.mubr.bf16.vlgmr.msra.gmra.mrb[140].mxu0 %v10661_v33  ;;  %v21741_v60 = vld [vmem:[#allocation97_spill] sm:$0xff]  ;;  %v15925_v33 = vld [vmem:[%s20602_s5 + $0x320] ss:$8 sps:$4 sm:$0xff]  }
 0x6f1   : > { %21737 = vst [vmem:[#allocation82_spill] sm:$0xff] %v19952_v43  ;;  %10816 = vmatprep.mubr.bf16.mxu0 %v21524_v16  ;;  %11337 = vmatpush1.bf16.msra.mxu0 %v15919_v13  ;;  %v10631_v32 = vmul.f32 %v21741_v60, %v21740_v20  ;;  %v15928_v60 = vld [vmem:[%s20602_s5 + $0x330] ss:$8 sps:$4 sm:$0xff]  }
 0x6f2   : > { %11338 = vmatprep.subr.bf16.mxu0 %v15924_v3  ;;  %v15930_v3 = vld [vmem:[%s20602_s5 + $0x334] ss:$8 sps:$4 sm:$0xff]  }
 0x6f3   : > { %v10662_v56 = vpack.c.bf16 %v10632_v45, %v10631_v32  ;;  %v21747_v20 = vld [vmem:[#allocation110_spill] sm:$0xff] }
 0x6f4   : > { %v21748_v45 = vld [vmem:[#allocation58_spill] sm:$0xff] }
 0x6f5   : > { %v19965_v43 = vpop.f32.mrb[208].mxu1  ;;  %11339 = vmatpush1.bf16.msra.mxu0 %v15922_v4  ;;  %v21746_v4 = vld [vmem:[#allocation59_spill] sm:$0xff] }
 0x6f6   : > { %21742 = vst [vmem:[#allocation53_spill] sm:$0xff] %v19965_v43  ;;  %v19970_v13 = vpop.f32.mrb[209].mxu1  ;;  %11340 = vmatprep.subr.bf16.mxu0 %v15927_v48  ;;  %v10633_v32 = vmul.f32 %v21747_v20, %v21746_v4  ;;  %v21749_v48 = vld [vmem:[#allocation131_spill] sm:$0xff]  ;;  %v15936_v4 = vld [vmem:[%s20602_s5 + $0x354] ss:$8 sps:$4 sm:$0xff]  }
 0x6f7   : > { %21743 = vst [vmem:[#allocation61_spill] sm:$0xff] %v19970_v13  ;;  %v19975_v53 = vpop.f32.mrb[210].mxu1  ;;  %v10634_v13 = vmul.f32 %v21749_v48, %v21748_v45  ;;  %v21754_v45 = vld [vmem:[#allocation135_spill] sm:$0xff]  ;;  %v21756_v48 = vld [vmem:[#allocation134_spill] sm:$0xff] }
 0x6f8   : > { %21744 = vst [vmem:[#allocation121_spill] sm:$0xff] %v19975_v53  ;;  %v19977_v14 = vpop.f32.mrb[211].mxu1  ;;  %10817 = vmatmul.mubr.bf16.gmra.mrb[144].mxu0 %v10662_v56  ;;  %v15933_v53 = vld [vmem:[%s20602_s5 + $0x344] ss:$8 sps:$4 sm:$0xff]   ;;  %v15931_v56 = vld [vmem:[%s20602_s5 + $0x340] ss:$8 sps:$4 sm:$0xff]  }
 0x6f9   : > { %21745 = vst [vmem:[#allocation64_spill] sm:$0xff] %v19977_v14  ;;  %10826 = vmatprep.mubr.bf16.mxu0 %v21524_v16  ;;  %11341 = vmatpush1.bf16.msra.mxu0 %v15925_v33  ;;  %v10663_v43 = vpack.c.bf16 %v10634_v13, %v10633_v32  ;;  %v10636_v13 = vmul.f32 %v21754_v45, %v21610_v29  ;;  %v21755_v32 = vld [vmem:[#allocation63_spill] sm:$0xff]  ;;  %v15942_v29 = vld [vmem:[%s20602_s5 + $0x374] ss:$8 sps:$4 sm:$0xff]  }
 0x6fa   : > { %11342 = vmatprep.subr.bf16.mxu0 %v15930_v3 }
 0x6fd   : > { %v19990_v14 = vpop.f32.mrb[212].mxu1  ;;  %11343 = vmatpush1.bf16.msra.mxu0 %v15928_v60  ;;  %v15934_v60 = vld [vmem:[%s20602_s5 + $0x350] ss:$8 sps:$4 sm:$0xff]  }
 0x6fe   : > { %21750 = vst [vmem:[#allocation69_spill] sm:$0xff] %v19990_v14  ;;  %v19995_v33 = vpop.f32.mrb[213].mxu1  ;;  %11344 = vmatprep.subr.bf16.mxu0 %v15933_v53  ;;  %v15939_v53 = vld [vmem:[%s20602_s5 + $0x364] ss:$8 sps:$4 sm:$0xff]   ;;  %v21768_v14 = vld [vmem:[#allocation146_spill] sm:$0xff] }
 0x6ff   : > { %21751 = vst [vmem:[#allocation56_spill] sm:$0xff] %v19995_v33  ;;  %v20000_v3 = vpop.f32.mrb[214].mxu1 }
 0x700   : > { %21752 = vst [vmem:[#allocation60_spill] sm:$0xff] %v20000_v3  ;;  %v20002_v20 = vpop.f32.mrb[215].mxu1  ;;  %10827 = vmatmul.mubr.bf16.gmra.mrb[148].mxu0 %v10663_v43  ;;  %v10635_v3 = vmul.f32 %v21756_v48, %v21755_v32  ;;  %v15937_v43 = vld [vmem:[%s20602_s5 + $0x360] ss:$8 sps:$4 sm:$0xff]  }
 0x701   : > { %21753 = vst [vmem:[#allocation26_spill] sm:$0xff] %v20002_v20  ;;  %10836 = vmatprep.mubr.bf16.mxu0 %v21524_v16  ;;  %11345 = vmatpush1.bf16.msra.mxu0 %v15931_v56  ;;  %v21761_v32 = vld [vmem:[#allocation67_spill] sm:$0xff]  ;;  %v21762_v48 = vld [vmem:[#allocation140_spill] sm:$0xff] }
 0x702   : > { %11346 = vmatprep.subr.bf16.mxu0 %v15936_v4  ;;  %v10664_v33 = vpack.c.bf16 %v10636_v13, %v10635_v3  ;;  %v10637_v3 = vmul.f32 %v21762_v48, %v21761_v32  ;;  %v21763_v13 = vld [vmem:[#allocation141_spill] sm:$0xff]  ;;  %v21767_v48 = vld [vmem:[#allocation71_spill] sm:$0xff] }
 0x705   : > { %v20015_v20 = vpop.f32.mrb[216].mxu1  ;;  %11347 = vmatpush1.bf16.msra.mxu0 %v15934_v60  ;;  %v15940_v60 = vld [vmem:[%s20602_s5 + $0x370] ss:$8 sps:$4 sm:$0xff]  }
 0x706   : > { %21757 = vst [vmem:[#allocation52_spill] sm:$0xff] %v20015_v20  ;;  %v20020_v56 = vpop.f32.mrb[217].mxu1  ;;  %11348 = vmatprep.subr.bf16.mxu0 %v15939_v53  ;;  %v10638_v53 = vmul.f32 %v21763_v13, %v21616_v39  ;;  %v21766_v20 = vld [vmem:[#allocation85_spill] sm:$0xff]  ;;  %v10639_v39 = vmul.f32 %v21768_v14, %v21767_v48 }
 0x707   : > { %21758 = vst [vmem:[#allocation72_spill] sm:$0xff] %v20020_v56  ;;  %v20025_v4 = vpop.f32.mrb[218].mxu1  ;;  %v10640_v32 = vmul.f32 %v21766_v20, %v21313_v21  ;;  %v21772_v21 = vld [vmem:[#allocation89_spill] sm:$0xff] }
 0x708   : > { %21759 = vst [vmem:[#allocation30_spill] sm:$0xff] %v20025_v4  ;;  %v20027_v45 = vpop.f32.mrb[219].mxu1  ;;  %10837 = vmatmul.mubr.bf16.gmra.mrb[152].mxu0 %v10664_v33  ;;  %v10665_v33 = vpack.c.bf16 %v10638_v53, %v10637_v3  ;;  %v21771_v53 = vld [vmem:[#allocation94_spill] sm:$0xff]  ;;  %v10642_v20 = vmul.f32 %v21772_v21, %v21317_v24 }
 0x709   : > { %21760 = vst [vmem:[#allocation68_spill] sm:$0xff] %v20027_v45  ;;  %10846 = vmatprep.mubr.bf16.mxu0 %v21524_v16  ;;  %11349 = vmatpush1.bf16.msra.mxu0 %v15937_v43 }
 0x70a   : > { %11350 = vmatprep.subr.bf16.mxu0 %v15942_v29 }
 0x70d   : > { %v20037_v56 = vpop.f32.mrb[220].mxu1  ;;  %11351 = vmatpush1.bf16.msra.mxu0 %v15940_v60  ;;  %v10666_v60 = vpack.c.bf16 %v10640_v32, %v10639_v39  ;;  %v10644_v39 = vmul.f32 %v19434_v44, %v21324_v17  ;;  %v10646_v17 = vmul.f32 %v19448_v8, %v21328_v37  ;;  %v10647_v37 = vmul.f32 %v19450_v41, %v21331_v9  ;;  %v21781_v41 = vld [vmem:[#allocation125_spill] sm:$0xff] }
 0x70e   : > { %v20039_v4 = vpop.f32.mrb[221].mxu1  ;;  %v10652_v9 = vmul.f32 %v19488_v25, %v21594_v36  ;;  %v10656_v36 = vmul.f32 %v19522_v58, %v21643_v46  ;;  %v21784_v25 = vld [vmem:[#allocation128_spill] sm:$0xff]  ;;  %v10659_v46 = vmul.f32 %v19543_v22, %v21652_v26  ;;  %v21787_v58 = vld [vmem:[#allocation21_spill] sm:$0xff] }
 0x70f   : > { %21764 = vst [vmem:[#allocation25_spill] sm:$0xff] %v20039_v4  ;;  %v20041_v45 = vpop.f32.mrb[222].mxu1  ;;  %v15948_v22 = vld [vmem:[%s20602_s5 + $0x394] ss:$8 sps:$4 sm:$0xff]  }
 0x710   : > { %v20043_v43 = vpop.f32.mrb[223].mxu1  ;;  %10847 = vmatmul.mubr.bf16.gmra.mrb[156].mxu0 %v10665_v33  ;;  %v10641_v33 = vmul.f32 %v21771_v53, %v21315_v40  ;;  %v21775_v40 = vld [vmem:[#allocation109_spill] sm:$0xff] }
 0x711   : > { %21765 = vst [vmem:[#allocation77_spill] sm:$0xff] %v20043_v43  ;;  %10856 = vmatprep.mubr.bf16.mxu0 %v21524_v16 }
 0x712   : > { %v10667_v48 = vpack.c.bf16 %v10642_v20, %v10641_v33  ;;  %v21777_v20 = vld [vmem:[#allocation108_spill] sm:$0xff] }
 0x715   : > { %v20050_v29 = vpop.f32.mrb[224].mxu1 }
 0x716   : > { %v20052_v13 = vpop.f32.mrb[225].mxu1 }
 0x717   : > { %21769 = vst [vmem:[#allocation65_spill] sm:$0xff] %v20052_v13  ;;  %v20054_v4 = vpop.f32.mrb[226].mxu1 }
 0x718   : > { %v20056_v3 = vpop.f32.mrb[227].mxu1  ;;  %10857 = vmatmul.mubr.bf16.gmra.mrb[160].mxu0 %v10666_v60  ;;  %v21774_v60 = vld [vmem:[#allocation79_spill] sm:$0xff] }
 0x719   : > { %21770 = vst [vmem:[#allocation29_spill] sm:$0xff] %v20056_v3  ;;  %10866 = vmatprep.mubr.bf16.mxu0 %v21524_v16  ;;  %v10643_v53 = vmul.f32 %v21775_v40, %v21774_v60 }
 0x71b   : > { %v10668_v21 = vpack.c.bf16 %v10644_v39, %v10643_v53  ;;  %v15945_v53 = vld [vmem:[%s20602_s5 + $0x384] ss:$8 sps:$4 sm:$0xff]  }
 0x71c   : > { %11866 = vmatprep.subr.bf16.mxu0 %v15945_v53 }
 0x71d   : > { %v20063_v43 = vpop.f32.mrb[228].mxu1 }
 0x71e   : > { %v20065_v14 = vpop.f32.mrb[229].mxu1 }
 0x71f   : > { %21773 = vst [vmem:[#allocation73_spill] sm:$0xff] %v20065_v14  ;;  %v20067_v13 = vpop.f32.mrb[230].mxu1 }
 0x720   : > { %v20069_v32 = vpop.f32.mrb[231].mxu1  ;;  %10867 = vmatmul.mubr.bf16.gmra.mrb[164].mxu0 %v10667_v48  ;;  %v10645_v48 = vmul.f32 %v21777_v20, %v21370_v38  ;;  %v10648_v38 = vmul.f32 %v19466_v57, %v21373_v7  ;;  %v21780_v7 = vld [vmem:[#allocation78_spill] sm:$0xff] }
 0x721   : > { %10876 = vmatprep.mubr.bf16.mxu0 %v21524_v16  ;;  %v10650_v57 = vmul.f32 %v21780_v7, %v21337_v28 }
 0x722   : > { %v10669_v40 = vpack.c.bf16 %v10646_v17, %v10645_v48  ;;  %v10670_v20 = vpack.c.bf16 %v10648_v38, %v10647_v37  ;;  %v10651_v38 = vmul.f32 %v21781_v41, %v21339_v52  ;;  %v10655_v52 = vmul.f32 %v21784_v25, %v21641_v23  ;;  %v15946_v25 = vld [vmem:[%s20602_s5 + $0x390] ss:$8 sps:$4 sm:$0xff]  }
 0x723   : > { %v10660_v23 = vmul.f32 %v21787_v58, %v21653_v54  ;;  %v11163_v58 = vld [vmem:[#allocation3 + $0x47] sm:$0xff] }
 0x724   : > { %v10672_v37 = vpack.c.bf16 %v10652_v9, %v10651_v38  ;;  %v10674_v7 = vpack.c.bf16 %v10656_v36, %v10655_v52  ;;  %v11159_v38 = vld [vmem:[#allocation3 + $0x27] sm:$0xff]  ;;  %v11161_v36 = vld [vmem:[#allocation3 + $0x37] sm:$0xff] }
 0x725   : > { %v20076_v3 = vpop.f32.mrb[232].mxu1  ;;  %v10676_v41 = vpack.c.bf16 %v10660_v23, %v10659_v46  ;;  %v21790_v52 = vld [vmem:[#allocation27_spill] sm:$0xff]  ;;  %v15954_v46 = vld [vmem:[%s20602_s5 + $0x3b4] ss:$8 sps:$4 sm:$0xff]  }
 0x726   : > { %v20078_v24 = vpop.f32.mrb[233].mxu1  ;;  %v11164_v23 = vld [vmem:[#allocation3 + $0x4f] sm:$0xff] }
 0x727   : > { %21776 = vst [vmem:[#allocation81_spill] sm:$0xff] %v20078_v24  ;;  %v20080_v14 = vpop.f32.mrb[234].mxu1 }
 0x728   : > { %v20082_v33 = vpop.f32.mrb[235].mxu1  ;;  %10877 = vmatmul.mubr.bf16.gmra.mrb[168].mxu0 %v10668_v21 }
 0x729   : > { %10886 = vmatprep.mubr.bf16.mxu0 %v21524_v16 }
 0x72d   : > { %v20089_v44 = vpop.f32.mrb[236].mxu1 }
 0x72e   : > { %v20091_v60 = vpop.f32.mrb[237].mxu1 }
 0x72f   : > { %v20093_v24 = vpop.f32.mrb[238].mxu1 }
 0x730   : > { %v20095_v39 = vpop.f32.mrb[239].mxu1  ;;  %10887 = vmatmul.mubr.bf16.gmra.mrb[172].mxu0 %v10669_v40  ;;  %v21779_v40 = vld [vmem:[#allocation75_spill] sm:$0xff] }
 0x731   : > { %21778 = vst [vmem:[#allocation41_spill] sm:$0xff] %v20095_v39  ;;  %10896 = vmatprep.mubr.bf16.mxu0 %v21524_v16  ;;  %v10649_v39 = vmul.f32 %v21779_v40, %v21335_v6  ;;  %v21783_v40 = vld [vmem:[#allocation96_spill] sm:$0xff] }
 0x732   : > { %v10654_v28 = vmul.f32 %v21783_v40, %v21640_v27  ;;  %v15943_v40 = vld [vmem:[%s20602_s5 + $0x380] ss:$8 sps:$4 sm:$0xff]  }
 0x733   : > { %v10671_v53 = vpack.c.bf16 %v10650_v57, %v10649_v39  ;;  %v21785_v57 = vld [vmem:[#allocation129_spill] sm:$0xff] }
 0x735   : > { %v20105_v8 = vpop.f32.mrb[240].mxu1 }
 0x736   : > { %v20107_v21 = vpop.f32.mrb[241].mxu1 }
 0x737   : > { %v20109_v48 = vpop.f32.mrb[242].mxu1 }
 0x738   : > { %v20111_v17 = vpop.f32.mrb[243].mxu1  ;;  %10897 = vmatmul.mubr.bf16.gmra.mrb[176].mxu0 %v10670_v20  ;;  %v21782_v20 = vld [vmem:[#allocation88_spill] sm:$0xff] }
 0x739   : > { %10906 = vmatprep.mubr.bf16.mxu0 %v21524_v16  ;;  %v10653_v6 = vmul.f32 %v21782_v20, %v21639_v10  ;;  %v10657_v10 = vmul.f32 %v21785_v57, %v21646_v30  ;;  %v21788_v30 = vld [vmem:[#allocation24_spill] sm:$0xff] }
 0x73a   : > { %v11191_v20 = vmul.f32 %v11159_v38, %v21788_v30  ;;  %v15951_v57 = vld [vmem:[%s20602_s5 + $0x3a4] ss:$8 sps:$4 sm:$0xff]   ;;  %v21793_v30 = vld [vmem:[#allocation38_spill] sm:$0xff] }
 0x73b   : > { %v10673_v39 = vpack.c.bf16 %v10654_v28, %v10653_v6  ;;  %v21789_v6 = vld [vmem:[#allocation23_spill] sm:$0xff] }
 0x73c   : > { %v21792_v38 = vld [vmem:[#allocation39_spill] sm:$0xff] }
 0x740   : > { %10907 = vmatmul.mubr.bf16.gmra.mrb[180].mxu0 %v10671_v53  ;;  %v21786_v53 = vld [vmem:[#allocation133_spill] sm:$0xff] }
 0x741   : > { %10916 = vmatprep.mubr.bf16.mxu0 %v21524_v16  ;;  %v10658_v27 = vmul.f32 %v21786_v53, %v21648_v51 }
 0x743   : > { %v10675_v9 = vpack.c.bf16 %v10658_v27, %v10657_v10  ;;  %v21791_v10 = vld [vmem:[#allocation28_spill] sm:$0xff] }
 0x744   : > { %v11193_v53 = vmul.f32 %v11161_v36, %v21791_v10  ;;  %v15949_v27 = vld [vmem:[%s20602_s5 + $0x3a0] ss:$8 sps:$4 sm:$0xff]   ;;  %v15958_v36 = vld [vmem:[%s20602_s5 + $0x3d0] ss:$8 sps:$4 sm:$0xff]  }
 0x748   : > { %10917 = vmatmul.mubr.bf16.gmra.mrb[184].mxu0 %v10672_v37  ;;  %v11160_v37 = vld [vmem:[#allocation3 + $0x2f] sm:$0xff] }
 0x749   : > { %10926 = vmatprep.mubr.bf16.mxu0 %v21524_v16  ;;  %v11192_v51 = vmul.f32 %v11160_v37, %v21789_v6  ;;  %v11195_v37 = vmul.f32 %v11163_v58, %v21792_v38  ;;  %v15957_v6 = vld [vmem:[%s20602_s5 + $0x3c4] ss:$8 sps:$4 sm:$0xff]  }
 0x74a   : > { %v11168_v58 = vld [vmem:[#allocation3 + $0x6f] sm:$0xff] }
 0x74b   : > { %v11223_v28 = vpack.c.bf16 %v11192_v51, %v11191_v20  ;;  %v11196_v20 = vmul.f32 %v11164_v23, %v21793_v30  ;;  %v15955_v51 = vld [vmem:[%s20602_s5 + $0x3c0] ss:$8 sps:$4 sm:$0xff]   ;;  %v15964_v23 = vld [vmem:[%s20602_s5 + $0x3f0] ss:$8 sps:$4 sm:$0xff]  }
 0x750   : > { %10927 = vmatmul.mubr.bf16.gmra.mrb[188].mxu0 %v10673_v39  ;;  %v11162_v39 = vld [vmem:[#allocation3 + $0x3f] sm:$0xff] }
 0x751   : > { %10936 = vmatprep.mubr.bf16.mxu0 %v21524_v16 }
 0x758   : > { %10937 = vmatmul.mubr.bf16.gmra.mrb[192].mxu0 %v10674_v7  ;;  %v11194_v7 = vmul.f32 %v11162_v39, %v21790_v52  ;;  %v11165_v39 = vld [vmem:[#allocation3 + $0x57] sm:$0xff] }
 0x759   : > { %10946 = vmatprep.mubr.bf16.mxu0 %v21524_v16 }
 0x760   : > { %10947 = vmatmul.mubr.bf16.gmra.mrb[196].mxu0 %v10675_v9  ;;  %v11224_v9 = vpack.c.bf16 %v11194_v7, %v11193_v53  ;;  %v15963_v7 = vld [vmem:[%s20602_s5 + $0x3e4] ss:$8 sps:$4 sm:$0xff]   ;;  %v15961_v53 = vld [vmem:[%s20602_s5 + $0x3e0] ss:$8 sps:$4 sm:$0xff]  }
 0x761   : > { %10956 = vmatprep.mubr.bf16.mxu0 %v21524_v16 }
 0x768   : > { %10957 = vmatmul.mubr.bf16.gmra.mrb[200].mxu0 %v10676_v41  ;;  %v15952_v41 = vld [vmem:[%s20602_s5 + $0x3b0] ss:$8 sps:$4 sm:$0xff]  }
 0x769   : > { %11368 = vmatprep.mubr.bf16.mxu0 %v21524_v16 }
 0x770   : > { %11369 = vmatmul.mubr.bf16.vlgmr.msra.gmra.mrb[140].mxu0 %v11223_v28  ;;  %v15960_v28 = vld [vmem:[%s20602_s5 + $0x3d4] ss:$8 sps:$4 sm:$0xff]  }
 0x771   : > { %11378 = vmatprep.mubr.bf16.mxu0 %v21524_v16  ;;  %11867 = vmatpush1.bf16.msra.mxu0 %v15943_v40  ;;  %v11225_v40 = vpack.c.bf16 %v11196_v20, %v11195_v37  ;;  %v21797_v37 = vld [vmem:[#allocation46_spill] sm:$0xff] }
 0x772   : > { %11868 = vmatprep.subr.bf16.mxu0 %v15948_v22  ;;  %v11166_v22 = vld [vmem:[#allocation3 + $0x5f] sm:$0xff]  ;;  %v11200_v30 = vmul.f32 %v11168_v58, %v21797_v37 }
 0x773   : > { %v21802_v58 = vld [vmem:[#allocation9_spill] sm:$0xff] }
 0x775   : > { %11869 = vmatpush1.bf16.msra.mxu0 %v15946_v25  ;;  %v21794_v25 = vld [vmem:[#allocation42_spill] sm:$0xff] }
 0x776   : > { %11870 = vmatprep.subr.bf16.mxu0 %v15951_v57  ;;  %v11198_v52 = vmul.f32 %v11166_v22, %v21794_v25  ;;  %v21795_v57 = vld [vmem:[#allocation43_spill] sm:$0xff]  ;;  %v21799_v22 = vld [vmem:[#allocation49_spill] sm:$0xff] }
 0x777   : > { %v11197_v10 = vmul.f32 %v11165_v39, %v21795_v57  ;;  %v11171_v25 = vld [vmem:[#allocation3 + $0x87] sm:$0xff] }
 0x778   : > { %11379 = vmatmul.mubr.bf16.gmra.mrb[144].mxu0 %v11224_v9  ;;  %v15966_v9 = vld [vmem:[%s20602_s5 + $0x3f4] ss:$8 sps:$4 sm:$0xff]  }
 0x779   : > { %11388 = vmatprep.mubr.bf16.mxu0 %v21524_v16  ;;  %11871 = vmatpush1.bf16.msra.mxu0 %v15949_v27  ;;  %v11226_v27 = vpack.c.bf16 %v11198_v52, %v11197_v10  ;;  %v11172_v52 = vld [vmem:[#allocation3 + $0x8f] sm:$0xff] }
 0x77a   : > { %11872 = vmatprep.subr.bf16.mxu0 %v15954_v46  ;;  %v11167_v46 = vld [vmem:[#allocation3 + $0x67] sm:$0xff] }
 0x77b   : > { %v21801_v10 = vld [vmem:[#allocation10_spill] sm:$0xff] }
 0x77d   : > { %11873 = vmatpush1.bf16.msra.mxu0 %v15952_v41  ;;  %v21796_v41 = vld [vmem:[#allocation47_spill] sm:$0xff] }
 0x77e   : > { %11874 = vmatprep.subr.bf16.mxu0 %v15957_v6  ;;  %v11199_v38 = vmul.f32 %v11167_v46, %v21796_v41  ;;  %v11170_v6 = vld [vmem:[#allocation3 + $0x7f] sm:$0xff]  ;;  %v11173_v46 = vld [vmem:[#allocation3 + $0x97] sm:$0xff] }
 0x77f   : > { %v21803_v41 = vld [vmem:[#allocation7_spill] sm:$0xff] }
 0x780   : > { %11389 = vmatmul.mubr.bf16.gmra.mrb[148].mxu0 %v11225_v40  ;;  %v11227_v20 = vpack.c.bf16 %v11200_v30, %v11199_v38  ;;  %v21798_v40 = vld [vmem:[#allocation48_spill] sm:$0xff]  ;;  %v11205_v38 = vmul.f32 %v11173_v46, %v21803_v41  ;;  %v11175_v30 = vld [vmem:[#allocation3 + $0xa7] sm:$0xff] }
 0x781   : > { %11398 = vmatprep.mubr.bf16.mxu0 %v21524_v16  ;;  %11875 = vmatpush1.bf16.msra.mxu0 %v15955_v51  ;;  %v11169_v51 = vld [vmem:[#allocation3 + $0x77] sm:$0xff] }
 0x782   : > { %11876 = vmatprep.subr.bf16.mxu0 %v15960_v28  ;;  %v11202_v28 = vmul.f32 %v11170_v6, %v21798_v40  ;;  %v11201_v39 = vmul.f32 %v11169_v51, %v21799_v22  ;;  %v21804_v6 = vld [vmem:[#allocation12_spill] sm:$0xff]  ;;  %v21805_v40 = vld [vmem:[#allocation11_spill] sm:$0xff] }
 0x783   : > { %v11207_v51 = vmul.f32 %v11175_v30, %v21804_v6  ;;  %v21808_v46 = vld [vmem:[#allocation16_spill] sm:$0xff] }
 0x784   : > { %v11181_v30 = vld [vmem:[#allocation3 + $0xd7] sm:$0xff] }
 0x785   : > { %11877 = vmatpush1.bf16.msra.mxu0 %v15958_v36  ;;  %v11228_v36 = vpack.c.bf16 %v11202_v28, %v11201_v39  ;;  %v11178_v39 = vld [vmem:[#allocation3 + $0xbf] sm:$0xff] }
 0x786   : > { %11878 = vmatprep.subr.bf16.mxu0 %v15963_v7  ;;  %v21800_v7 = vld [vmem:[#allocation8_spill] sm:$0xff] }
 0x787   : > { %v11203_v57 = vmul.f32 %v11171_v25, %v21800_v7  ;;  %v11177_v25 = vld [vmem:[#allocation3 + $0xb7] sm:$0xff] }
 0x788   : > { %11399 = vmatmul.mubr.bf16.gmra.mrb[152].mxu0 %v11226_v27 }
 0x789   : > { %11408 = vmatprep.mubr.bf16.mxu0 %v21524_v16  ;;  %11879 = vmatpush1.bf16.msra.mxu0 %v15961_v53  ;;  %v11204_v53 = vmul.f32 %v11172_v52, %v21801_v10  ;;  %v21806_v52 = vld [vmem:[#allocation13_spill] sm:$0xff] }
 0x78a   : > { %11880 = vmatprep.subr.bf16.mxu0 %v15966_v9  ;;  %v11174_v9 = vld [vmem:[#allocation3 + $0x9f] sm:$0xff]  ;;  %v11210_v7 = vmul.f32 %v11178_v39, %v21806_v52  ;;  %v11184_v39 = vld [vmem:[#allocation3 + $0xef] sm:$0xff] }
 0x78b   : > { %v11229_v27 = vpack.c.bf16 %v11204_v53, %v11203_v57  ;;  %v21807_v57 = vld [vmem:[#allocation14_spill] sm:$0xff]  ;;  %v21813_v52 = vld [vmem:[#allocation19_spill] sm:$0xff] }
 0x78c   : > { %v11209_v10 = vmul.f32 %v11177_v25, %v21807_v57 }
 0x78d   : > { %11881 = vmatpush1.bf16.msra.mxu0 %v15964_v23  ;;  %v11206_v23 = vmul.f32 %v11174_v9, %v21802_v58  ;;  %v11180_v9 = vld [vmem:[#allocation3 + $0xcf] sm:$0xff] }
 0x78e   : > { %v11232_v53 = vpack.c.bf16 %v11210_v7, %v11209_v10  ;;  %v11216_v7 = vmul.f32 %v11184_v39, %v21813_v52  ;;  %v11186_v10 = vld [vmem:[#allocation3 + $0xff] sm:$0xff] }
 0x78f   : > { %v11230_v37 = vpack.c.bf16 %v11206_v23, %v11205_v38  ;;  %v21809_v23 = vld [vmem:[#allocation15_spill] sm:$0xff]  ;;  %v15982_v39 = vld [vmem:[%s20602_s5 + $0x450] ss:$8 sps:$4 sm:$0xff]  }
 0x790   : > { %11409 = vmatmul.mubr.bf16.gmra.mrb[156].mxu0 %v11227_v20  ;;  %v11176_v20 = vld [vmem:[#allocation3 + $0xaf] sm:$0xff]  ;;  %v11212_v41 = vmul.f32 %v11180_v9, %v21809_v23  ;;  %v15988_v52 = vld [vmem:[%s20602_s5 + $0x470] ss:$8 sps:$4 sm:$0xff]  }
 0x791   : > { %11418 = vmatprep.mubr.bf16.mxu0 %v21524_v16  ;;  %v11208_v28 = vmul.f32 %v11176_v20, %v21805_v40  ;;  %v21810_v20 = vld [vmem:[#allocation17_spill] sm:$0xff]  ;;  %v21814_v23 = vld [vmem:[#allocation139_spill] sm:$0xff] }
 0x793   : > { %v11231_v22 = vpack.c.bf16 %v11208_v28, %v11207_v51  ;;  %v21811_v51 = vld [vmem:[#allocation18_spill] sm:$0xff] }
 0x794   : > { %v11213_v40 = vmul.f32 %v11181_v30, %v21811_v51  ;;  %v15973_v51 = vld [vmem:[%s20602_s5 + $0x420] ss:$8 sps:$4 sm:$0xff]  }
 0x798   : > { %11419 = vmatmul.mubr.bf16.gmra.mrb[160].mxu0 %v11228_v36  ;;  %v15969_v36 = vld [vmem:[%s20602_s5 + $0x404] ss:$8 sps:$4 sm:$0xff]  }
 0x799   : > { %11428 = vmatprep.mubr.bf16.mxu0 %v21524_v16  ;;  %12428 = vmatprep.subr.bf16.mxu0 %v15969_v36  ;;  %v21812_v36 = vld [vmem:[#allocation20_spill] sm:$0xff] }
 0x7a0   : > { %11429 = vmatmul.mubr.bf16.gmra.mrb[164].mxu0 %v11229_v27  ;;  %v11179_v27 = vld [vmem:[#allocation3 + $0xc7] sm:$0xff] }
 0x7a1   : > { %11438 = vmatprep.mubr.bf16.mxu0 %v21524_v16  ;;  %v11211_v58 = vmul.f32 %v11179_v27, %v21808_v46  ;;  %v11218_v27 = vmul.f32 %v11186_v10, %v21516_v31  ;;  %v15967_v31 = vld [vmem:[%s20602_s5 + $0x400] ss:$8 sps:$4 sm:$0xff]  }
 0x7a2   : > { %v21829_v10 = vld [vmem:[#allocation119_spill] sm:$0xff] }
 0x7a3   : > { %v11233_v38 = vpack.c.bf16 %v11212_v41, %v11211_v58  ;;  %v11189_v58 = vld [vmem:[#allocation3 + $0x117] sm:$0xff]  ;;  %v21815_v41 = vld [vmem:[#allocation138_spill] sm:$0xff] }
 0x7a4   : > { %v11221_v30 = vmul.f32 %v11189_v58, %v21651_v5  ;;  %v15975_v5 = vld [vmem:[%s20602_s5 + $0x424] ss:$8 sps:$4 sm:$0xff]  }
 0x7a8   : > { %11439 = vmatmul.mubr.bf16.gmra.mrb[168].mxu0 %v11230_v37  ;;  %v11182_v37 = vld [vmem:[#allocation3 + $0xdf] sm:$0xff] }
 0x7a9   : > { %11448 = vmatprep.mubr.bf16.mxu0 %v21524_v16  ;;  %v11214_v6 = vmul.f32 %v11182_v37, %v21810_v20  ;;  %v11190_v37 = vld [vmem:[#allocation3 + $0x11f] sm:$0xff] }
 0x7aa   : > { %v11222_v20 = vmul.f32 %v11190_v37, %v21650_v19  ;;  %v15970_v19 = vld [vmem:[%s20602_s5 + $0x410] ss:$8 sps:$4 sm:$0xff]   ;;  %v21838_v37 = vld [vmem:[#allocation127_spill] sm:$0xff] }
 0x7ab   : > { %v11234_v28 = vpack.c.bf16 %v11214_v6, %v11213_v40  ;;  %v15976_v40 = vld [vmem:[%s20602_s5 + $0x430] ss:$8 sps:$4 sm:$0xff]  }
 0x7ac   : > { %v11238_v6 = vpack.c.bf16 %v11222_v20, %v11221_v30  ;;  %v21839_v30 = vld [vmem:[#allocation126_spill] sm:$0xff] }
 0x7ad   : > { %v21840_v20 = vpack.c.bf16 %v21838_v37, %v21839_v30 }
 0x7b0   : > { %11449 = vmatmul.mubr.bf16.gmra.mrb[172].mxu0 %v11231_v22  ;;  %v11183_v22 = vld [vmem:[#allocation3 + $0xe7] sm:$0xff] }
 0x7b1   : > { %11458 = vmatprep.mubr.bf16.mxu0 %v21524_v16  ;;  %v11215_v25 = vmul.f32 %v11183_v22, %v21812_v36  ;;  %v15979_v22 = vld [vmem:[%s20602_s5 + $0x440] ss:$8 sps:$4 sm:$0xff]   ;;  %v15987_v36 = vld [vmem:[%s20602_s5 + $0x464] ss:$8 sps:$4 sm:$0xff]  }
 0x7b3   : > { %v11235_v57 = vpack.c.bf16 %v11216_v7, %v11215_v25  ;;  %v15985_v25 = vld [vmem:[%s20602_s5 + $0x460] ss:$8 sps:$4 sm:$0xff]   ;;  %v21827_v7 = vld [vmem:[#allocation70_spill] sm:$0xff] }
 0x7b8   : > { %11459 = vmatmul.mubr.bf16.gmra.mrb[176].mxu0 %v11232_v53  ;;  %v11185_v53 = vld [vmem:[#allocation3 + $0xf7] sm:$0xff] }
 0x7b9   : > { %11468 = vmatprep.mubr.bf16.mxu0 %v21524_v16  ;;  %v11217_v9 = vmul.f32 %v11185_v53, %v21517_v63  ;;  %v15972_v63 = vld [vmem:[%s20602_s5 + $0x414] ss:$8 sps:$4 sm:$0xff]  }
 0x7ba   : > { %v21830_v53 = vld [vmem:[#allocation74_spill] sm:$0xff] }
 0x7bb   : > { %v11236_v46 = vpack.c.bf16 %v11218_v27, %v11217_v9  ;;  %v21831_v27 = vpack.c.bf16 %v21829_v10, %v21830_v53  ;;  %v21832_v9 = vld [vmem:[#allocation123_spill] sm:$0xff] }
 0x7c0   : > { %11469 = vmatmul.mubr.bf16.gmra.mrb[180].mxu0 %v11233_v38  ;;  %v21816_v38 = vpack.c.bf16 %v21814_v23, %v21815_v41  ;;  %v21835_v23 = vld [vmem:[#allocation93_spill] sm:$0xff]  ;;  %v21836_v41 = vld [vmem:[#allocation92_spill] sm:$0xff] }
 0x7c1   : > { %11478 = vmatprep.mubr.bf16.mxu0 %v21524_v16 }
 0x7c8   : > { %11479 = vmatmul.mubr.bf16.gmra.mrb[184].mxu0 %v11234_v28  ;;  %v15981_v28 = vld [vmem:[%s20602_s5 + $0x444] ss:$8 sps:$4 sm:$0xff]  }
 0x7c9   : > { %11488 = vmatprep.mubr.bf16.mxu0 %v21524_v16 }
 0x7d0   : > { %11489 = vmatmul.mubr.bf16.gmra.mrb[188].mxu0 %v11235_v57 }
 0x7d1   : > { %11498 = vmatprep.mubr.bf16.mxu0 %v21524_v16 }
 0x7d8   : > { %11499 = vmatmul.mubr.bf16.gmra.mrb[192].mxu0 %v11236_v46  ;;  %v21833_v46 = vld [vmem:[#allocation83_spill] sm:$0xff] }
 0x7d9   : > { %11508 = vmatprep.mubr.bf16.mxu0 %v21524_v16  ;;  %v21834_v58 = vpack.c.bf16 %v21832_v9, %v21833_v46  ;;  %v21863_v9 = vld [vmem:[#allocation99_spill] sm:$0xff] }
 0x7e0   : > { %11509 = vmatmul.mubr.bf16.gmra.mrb[196].mxu0 %v21816_v38  ;;  %v21837_v38 = vpack.c.bf16 %v21835_v23, %v21836_v41  ;;  %v20399_v23 = vld [vmem:[%s20604_s7 + $0x4] ss:$8 sps:$4 sm:$0xff]  }
 0x7e1   : > { %11518 = vmatprep.mubr.bf16.mxu0 %v21524_v16  ;;  %12976 = vmatprep.mubr.bf16.mxu1 %v20399_v23 }
 0x7e8   : > { %11519 = vmatmul.mubr.bf16.gmra.mrb[200].mxu0 %v11238_v6  ;;  %v21841_v6 = vld [vmem:[#allocation132_spill] sm:$0xff] }
 0x7e9   : > { %11898 = vmatprep.mubr.bf16.mxu0 %v21524_v16 }
 0x7f0   : > { %11899 = vmatmul.mubr.bf16.vlgmr.msra.gmra.mrb[140].mxu0 %v19797_v47  ;;  %v15978_v47 = vld [vmem:[%s20602_s5 + $0x434] ss:$8 sps:$4 sm:$0xff]  }
 0x7f1   : > { %11908 = vmatprep.mubr.bf16.mxu0 %v21524_v16  ;;  %12429 = vmatpush1.bf16.msra.mxu0 %v15967_v31  ;;  %v21842_v31 = vld [vmem:[#allocation130_spill] sm:$0xff] }
 0x7f2   : > { %12430 = vmatprep.subr.bf16.mxu0 %v15972_v63  ;;  %v21843_v63 = vpack.c.bf16 %v21841_v6, %v21842_v31 }
 0x7f5   : > { %12431 = vmatpush1.bf16.msra.mxu0 %v15970_v19  ;;  %v21844_v19 = vld [vmem:[#allocation143_spill] sm:$0xff] }
 0x7f6   : > { %12432 = vmatprep.subr.bf16.mxu0 %v15975_v5  ;;  %v21845_v5 = vld [vmem:[#allocation142_spill] sm:$0xff] }
 0x7f8   : > { %11909 = vmatmul.mubr.bf16.gmra.mrb[144].mxu0 %v19813_v42  ;;  %v15984_v42 = vld [vmem:[%s20602_s5 + $0x454] ss:$8 sps:$4 sm:$0xff]  }
 0x7f9   : > { %11918 = vmatprep.mubr.bf16.mxu0 %v21524_v16  ;;  %12433 = vmatpush1.bf16.msra.mxu0 %v15973_v51  ;;  %v21846_v51 = vpack.c.bf16 %v21844_v19, %v21845_v5 }
 0x7fa   : > { %12434 = vmatprep.subr.bf16.mxu0 %v15978_v47  ;;  %v21847_v47 = vld [vmem:[#allocation137_spill] sm:$0xff] }
 0x7fd   : > { %12435 = vmatpush1.bf16.msra.mxu0 %v15976_v40  ;;  %v21848_v40 = vld [vmem:[#allocation22_spill] sm:$0xff] }
 0x7fe   : > { %12436 = vmatprep.subr.bf16.mxu0 %v15981_v28  ;;  %v21849_v28 = vpack.c.bf16 %v21847_v47, %v21848_v40  ;;  %v21865_v47 = vld [vmem:[#allocation101_spill] sm:$0xff] }
 0x800   : > { %11919 = vmatmul.mubr.bf16.gmra.mrb[148].mxu0 %v19829_v50  ;;  %v15990_v50 = vld [vmem:[%s20602_s5 + $0x474] ss:$8 sps:$4 sm:$0xff]  }
 0x801   : > { %11928 = vmatprep.mubr.bf16.mxu0 %v21524_v16  ;;  %12437 = vmatpush1.bf16.msra.mxu0 %v15979_v22  ;;  %v21850_v22 = vld [vmem:[#allocation145_spill] sm:$0xff] }
 0x802   : > { %12438 = vmatprep.subr.bf16.mxu0 %v15984_v42  ;;  %v21851_v42 = vld [vmem:[#allocation136_spill] sm:$0xff] }
 0x805   : > { %12439 = vmatpush1.bf16.msra.mxu0 %v15982_v39  ;;  %v21852_v39 = vpack.c.bf16 %v21850_v22, %v21851_v42  ;;  %v21866_v42 = vld [vmem:[#allocation76_spill] sm:$0xff] }
 0x806   : > { %12440 = vmatprep.subr.bf16.mxu0 %v15987_v36  ;;  %v21853_v36 = vpack.c.bf16 %v19578_v2, %v19571_v18 }
 0x808   : > { %11929 = vmatmul.mubr.bf16.gmra.mrb[152].mxu0 %v19839_v61  ;;  %v15995_v61 = vld [vmem:[#allocation3] sm:$0xff] }
 0x809   : > { %11938 = vmatprep.mubr.bf16.mxu0 %v21524_v16  ;;  %12441 = vmatpush1.bf16.msra.mxu0 %v15985_v25  ;;  %v21854_v25 = vld [vmem:[#allocation33_spill] sm:$0xff] }
 0x80a   : > { %12442 = vmatprep.subr.bf16.mxu0 %v15990_v50  ;;  %v21855_v50 = vld [vmem:[#allocation144_spill] sm:$0xff] }
 0x80d   : > { %12443 = vmatpush1.bf16.msra.mxu0 %v15988_v52  ;;  %v21856_v52 = vpack.c.bf16 %v21854_v25, %v21855_v50  ;;  %v21867_v50 = vld [vmem:[#allocation105_spill] sm:$0xff] }
 0x810   : > { %11939 = vmatmul.mubr.bf16.gmra.mrb[156].mxu0 %v19843_v12  ;;  %v11768_v12 = vpack.c.bf16 %v15995_v61, %v15995_v61  ;;  %v12281_v61 = vld [vmem:[#allocation3 + $0x119] sm:$0xff] }
 0x811   : > { %11948 = vmatprep.mubr.bf16.mxu0 %v21524_v16 }
 0x818   : > { %11949 = vmatmul.mubr.bf16.gmra.mrb[160].mxu0 %v19847_v59  ;;  %v21817_v59 = vld [vmem:[#allocation90_spill] sm:$0xff] }
 0x819   : > { %11958 = vmatprep.mubr.bf16.mxu0 %v21524_v16 }
 0x820   : > { %11959 = vmatmul.mubr.bf16.gmra.mrb[164].mxu0 %v19851_v11  ;;  %v21818_v11 = vld [vmem:[#allocation147_spill] sm:$0xff] }
 0x821   : > { %11968 = vmatprep.mubr.bf16.mxu0 %v21524_v16 }
 0x828   : > { %11969 = vmatmul.mubr.bf16.gmra.mrb[168].mxu0 %v19855_v34  ;;  %v21819_v34 = vpack.c.bf16 %v21817_v59, %v21818_v11  ;;  %v21857_v59 = vld [vmem:[#allocation95_spill] sm:$0xff]  ;;  %v21858_v11 = vld [vmem:[#allocation32_spill] sm:$0xff] }
 0x829   : > { %11978 = vmatprep.mubr.bf16.mxu0 %v21524_v16 }
 0x830   : > { %11979 = vmatmul.mubr.bf16.gmra.mrb[172].mxu0 %v19862_v35  ;;  %v21820_v35 = vld [vmem:[#allocation103_spill] sm:$0xff] }
 0x831   : > { %11988 = vmatprep.mubr.bf16.mxu0 %v21524_v16 }
 0x838   : > { %11989 = vmatmul.mubr.bf16.gmra.mrb[176].mxu0 %v19870_v62  ;;  %v21821_v62 = vld [vmem:[#allocation34_spill] sm:$0xff] }
 0x839   : > { %11998 = vmatprep.mubr.bf16.mxu0 %v21524_v16 }
 0x840   : > { %11999 = vmatmul.mubr.bf16.gmra.mrb[180].mxu0 %v19882_v15  ;;  %v21823_v15 = vld [vmem:[#allocation113_spill] sm:$0xff] }
 0x841   : > { %12008 = vmatprep.mubr.bf16.mxu0 %v21524_v16 }
 0x848   : > { %12009 = vmatmul.mubr.bf16.gmra.mrb[184].mxu0 %v19894_v1  ;;  %v21822_v1 = vpack.c.bf16 %v21820_v35, %v21821_v62  ;;  %v12313_v35 = vmul.f32 %v12281_v61, %v21652_v26 }
 0x849   : > { %12018 = vmatprep.mubr.bf16.mxu0 %v21524_v16 }
 0x850   : > { %12019 = vmatmul.mubr.bf16.gmra.mrb[188].mxu0 %v19906_v49 }
 0x851   : > { %12028 = vmatprep.mubr.bf16.mxu0 %v21524_v16 }
 0x858   : > { %12029 = vmatmul.mubr.bf16.gmra.mrb[192].mxu0 %v19918_v55  ;;  %v21824_v55 = vld [vmem:[#allocation116_spill] sm:$0xff] }
 0x859   : > { %12038 = vmatprep.mubr.bf16.mxu0 %v21524_v16  ;;  %v21825_v49 = vpack.c.bf16 %v21823_v15, %v21824_v55  ;;  %v21860_v15 = vld [vmem:[#allocation62_spill] sm:$0xff] }
 0x860   : > { %12039 = vmatmul.mubr.bf16.gmra.mrb[196].mxu0 %v19930_v0  ;;  %v21826_v0 = vld [vmem:[#allocation117_spill] sm:$0xff] }
 0x861   : > { %12048 = vmatprep.mubr.bf16.mxu0 %v21524_v16  ;;  %v21828_v57 = vpack.c.bf16 %v21826_v0, %v21827_v7  ;;  %v20388_v0 = vld [vmem:[%s20603_s6 + $0x1] ss:$0 sm:$0xff] }
 0x868   : > { %12049 = vmatmul.mubr.bf16.gmra.mrb[200].mxu0 %v11768_v12  ;;  %v12282_v12 = vld [vmem:[#allocation3 + $0x121] sm:$0xff] }
 0x869   : > { %12460 = vmatprep.mubr.bf16.mxu0 %v21524_v16  ;;  %v12314_v18 = vmul.f32 %v12282_v12, %v21653_v54 }
 0x86b   : > { %v12330_v2 = vpack.c.bf16 %v12314_v18, %v12313_v35 }
 0x870   : > { %12461 = vmatmul.mubr.bf16.vlgmr.msra.gmra.mrb[140].mxu0 %v21819_v34  ;;  %v21859_v34 = vpack.c.bf16 %v21857_v59, %v21858_v11 }
 0x871   : > { %12470 = vmatprep.mubr.bf16.mxu0 %v21524_v16 }
 0x878   : > { %12471 = vmatmul.mubr.bf16.gmra.mrb[144].mxu0 %v21822_v1  ;;  %v20382_v1 = vld [vmem:[%s20603_s6] ss:$0 sm:$0xff] }
 0x879   : > { %12480 = vmatprep.mubr.bf16.mxu0 %v21524_v16 }
 0x880   : > { %12481 = vmatmul.mubr.bf16.gmra.mrb[148].mxu0 %v21825_v49 }
 0x881   : > { %12490 = vmatprep.mubr.bf16.mxu0 %v21524_v16 }
 0x888   : > { %12491 = vmatmul.mubr.bf16.gmra.mrb[152].mxu0 %v21828_v57  ;;  %v21862_v57 = vld [vmem:[#allocation100_spill] sm:$0xff] }
 0x889   : > { %12500 = vmatprep.mubr.bf16.mxu0 %v21524_v16 }
 0x890   : > { %12501 = vmatmul.mubr.bf16.gmra.mrb[156].mxu0 %v21831_v27 }
 0x891   : > { %12510 = vmatprep.mubr.bf16.mxu0 %v21524_v16 }
 0x898   : > { %12511 = vmatmul.mubr.bf16.gmra.mrb[160].mxu0 %v21834_v58 }
 0x899   : > { %12520 = vmatprep.mubr.bf16.mxu0 %v21524_v16 }
 0x8a0   : > { %12521 = vmatmul.mubr.bf16.gmra.mrb[164].mxu0 %v21837_v38 }
 0x8a1   : > { %12530 = vmatprep.mubr.bf16.mxu0 %v21524_v16 }
 0x8a8   : > { %12531 = vmatmul.mubr.bf16.gmra.mrb[168].mxu0 %v21840_v20 }
 0x8a9   : > { %12540 = vmatprep.mubr.bf16.mxu0 %v21524_v16 }
 0x8b0   : > { %12541 = vmatmul.mubr.bf16.gmra.mrb[172].mxu0 %v21843_v63  ;;  %v21864_v63 = vld [vmem:[#allocation102_spill] sm:$0xff] }
 0x8b1   : > { %12550 = vmatprep.mubr.bf16.mxu0 %v21524_v16 }
 0x8b8   : > { %12551 = vmatmul.mubr.bf16.gmra.mrb[176].mxu0 %v21846_v51 }
 0x8b9   : > { %12560 = vmatprep.mubr.bf16.mxu0 %v21524_v16 }
 0x8c0   : > { %12561 = vmatmul.mubr.bf16.gmra.mrb[180].mxu0 %v21849_v28 }
 0x8c1   : > { %12570 = vmatprep.mubr.bf16.mxu0 %v21524_v16 }
 0x8c8   : > { %12571 = vmatmul.mubr.bf16.gmra.mrb[184].mxu0 %v21852_v39 }
 0x8c9   : > { %12580 = vmatprep.mubr.bf16.mxu0 %v21524_v16 }
 0x8d0   : > { %12581 = vmatmul.mubr.bf16.gmra.mrb[188].mxu0 %v21853_v36 }
 0x8d1   : > { %12590 = vmatprep.mubr.bf16.mxu0 %v21524_v16 }
 0x8d8   : > { %12591 = vmatmul.mubr.bf16.gmra.mrb[192].mxu0 %v21856_v52 }
 0x8d9   : > { %12600 = vmatprep.mubr.bf16.mxu0 %v21524_v16 }
 0x8e0   : > { %12601 = vmatmul.mubr.bf16.gmra.mrb[196].mxu0 %v21859_v34 }
 0x8e1   : > { %12610 = vmatprep.mubr.bf16.mxu0 %v21524_v16  ;;  %v21861_v16 = vld [vmem:[#allocation66_spill] sm:$0xff] }
 0x8e8   : > { %12611 = vmatmul.mubr.bf16.gmra.mrb[200].mxu0 %v12330_v2 }
 0x943   : > { %v12462_v62 = vpop.f32.mrb[140].mxu0 }
 0x944   : > { %v14948_v55 = vadd.f32 %v12462_v62, %v21860_v15  ;;  %v12464_v49 = vpop.f32.mrb[141].mxu0  ;;  %v21868_v62 = vld [vmem:[#allocation104_spill] sm:$0xff] }
 0x945   : > { %v14949_v26 = vadd.f32 %v12464_v49, %v21861_v16  ;;  %v12466_v7 = vpop.f32.mrb[142].mxu0  ;;  %v21869_v16 = vld [vmem:[#allocation36_spill] sm:$0xff] }
 0x946   : > { %v12852_v54 = vadd.f32 %v14948_v55, %v20382_v1  ;;  %v14950_v10 = vadd.f32 %v12466_v7, %v21862_v57  ;;  %v12468_v53 = vpop.f32.mrb[143].mxu0  ;;  %v21870_v57 = vld [vmem:[#allocation37_spill] sm:$0xff] }
 0x947   : > { %v13026_v27 = vadd.f32 %v14949_v26, %v20388_v0  ;;  %v14951_v46 = vadd.f32 %v12468_v53, %v21863_v9  ;;  %v21871_v9 = vld [vmem:[#allocation107_spill] sm:$0xff] }
 0x948   : > { %v12853_v58 = vadd.f32 %v14950_v10, %v20382_v1  ;;  %v12884_v38 = vmax.f32 %v12852_v54, 0.0 }
 0x949   : > { %v13027_v41 = vadd.f32 %v14951_v46, %v20388_v0  ;;  %v13058_v30 = vmax.f32 %v13026_v27, 0.0 }
 0x94a   : > { %v12885_v37 = vmax.f32 %v12853_v58, 0.0 }
 0x94b   : > { %v13059_v20 = vmax.f32 %v13027_v41, 0.0  ;;  %v12472_v6 = vpop.f32.mrb[144].mxu0 }
 0x94c   : > { %v20403_v31 = vpack.c.bf16 %v12885_v37, %v12884_v38  ;;  %v14952_v19 = vadd.f32 %v12472_v6, %v21864_v63  ;;  %v12474_v5 = vpop.f32.mrb[145].mxu0 }
 0x94d   : > { %v20406_v51 = vpack.c.bf16 %v13059_v20, %v13058_v30  ;;  %v14953_v40 = vadd.f32 %v12474_v5, %v21865_v47  ;;  %v12476_v28 = vpop.f32.mrb[146].mxu0 }
 0x94e   : > { %v12854_v22 = vadd.f32 %v14952_v19, %v20382_v1  ;;  %v14954_v39 = vadd.f32 %v12476_v28, %v21866_v42  ;;  %v12478_v36 = vpop.f32.mrb[147].mxu0  ;;  %v21872_v19 = vld [vmem:[#allocation106_spill] sm:$0xff]  ;;  %v21873_v28 = vld [vmem:[#allocation115_spill] sm:$0xff] }
 0x94f   : > { %v13028_v25 = vadd.f32 %v14953_v40, %v20388_v0  ;;  %v14955_v52 = vadd.f32 %v12478_v36, %v21867_v50  ;;  %v21874_v36 = vld [vmem:[#allocation112_spill] sm:$0xff] }
 0x950   : > { %v12855_v61 = vadd.f32 %v14954_v39, %v20382_v1  ;;  %v12886_v59 = vmax.f32 %v12854_v22, 0.0 }
 0x951   : > { %v13029_v12 = vadd.f32 %v14955_v52, %v20388_v0  ;;  %v13060_v34 = vmax.f32 %v13028_v25, 0.0 }
 0x952   : > { %v12887_v11 = vmax.f32 %v12855_v61, 0.0  ;;  %v21875_v61 = vld [vmem:[#allocation35_spill] sm:$0xff] }
 0x953   : > { %v13061_v35 = vmax.f32 %v13029_v12, 0.0  ;;  %v12482_v18 = vpop.f32.mrb[148].mxu0 }
 0x954   : > { %v20415_v2 = vpack.c.bf16 %v12887_v11, %v12886_v59  ;;  %v14956_v15 = vadd.f32 %v12482_v18, %v21868_v62  ;;  %v12484_v55 = vpop.f32.mrb[149].mxu0 }
 0x955   : > { %v20418_v49 = vpack.c.bf16 %v13061_v35, %v13060_v34  ;;  %v14957_v26 = vadd.f32 %v12484_v55, %v21869_v16  ;;  %v12486_v7 = vpop.f32.mrb[150].mxu0  ;;  %v21876_v16 = vld [vmem:[#allocation87_spill] sm:$0xff] }
 0x956   : > { %v12856_v54 = vadd.f32 %v14956_v15, %v20382_v1  ;;  %v14958_v10 = vadd.f32 %v12486_v7, %v21870_v57  ;;  %v12488_v53 = vpop.f32.mrb[151].mxu0  ;;  %v21877_v57 = vld [vmem:[#allocation114_spill] sm:$0xff] }
 0x957   : > { %v13030_v27 = vadd.f32 %v14957_v26, %v20388_v0  ;;  %v14959_v46 = vadd.f32 %v12488_v53, %v21871_v9  ;;  %v21878_v9 = vld [vmem:[#allocation84_spill] sm:$0xff] }
 0x958   : > { %v12857_v58 = vadd.f32 %v14958_v10, %v20382_v1  ;;  %v12888_v38 = vmax.f32 %v12856_v54, 0.0 }
 0x959   : > { %v13031_v41 = vadd.f32 %v14959_v46, %v20388_v0  ;;  %v13062_v30 = vmax.f32 %v13030_v27, 0.0 }
 0x95a   : > { %v12889_v37 = vmax.f32 %v12857_v58, 0.0 }
 0x95b   : > { %v13063_v20 = vmax.f32 %v13031_v41, 0.0  ;;  %v12492_v6 = vpop.f32.mrb[152].mxu0 }
 0x95c   : > { %v20427_v63 = vpack.c.bf16 %v12889_v37, %v12888_v38  ;;  %v14960_v5 = vadd.f32 %v12492_v6, %v21872_v19  ;;  %v12494_v47 = vpop.f32.mrb[153].mxu0  ;;  %v21879_v38 = vld [vmem:[#allocation124_spill] sm:$0xff] }
 0x95d   : > { %v20430_v40 = vpack.c.bf16 %v13063_v20, %v13062_v30  ;;  %v14961_v22 = vadd.f32 %v12494_v47, %v21873_v28  ;;  %v12496_v42 = vpop.f32.mrb[154].mxu0 }
 0x95e   : > { %v12858_v39 = vadd.f32 %v14960_v5, %v20382_v1  ;;  %v14962_v25 = vadd.f32 %v12496_v42, %v21874_v36  ;;  %v12498_v50 = vpop.f32.mrb[155].mxu0  ;;  %v21880_v42 = vld [vmem:[#allocation122_spill] sm:$0xff] }
 0x95f   : > { %v13032_v52 = vadd.f32 %v14961_v22, %v20388_v0  ;;  %v14963_v12 = vadd.f32 %v12498_v50, %v21875_v61  ;;  %v21881_v50 = vld [vmem:[#allocation118_spill] sm:$0xff] }
 0x960   : > { %v12859_v59 = vadd.f32 %v14962_v25, %v20382_v1  ;;  %v12890_v34 = vmax.f32 %v12858_v39, 0.0 }
 0x961   : > { %v13033_v11 = vadd.f32 %v14963_v12, %v20388_v0  ;;  %v13064_v18 = vmax.f32 %v13032_v52, 0.0 }
 0x962   : > { %v12891_v35 = vmax.f32 %v12859_v59, 0.0  ;;  %v21882_v59 = vld [vmem:[#allocation120_spill] sm:$0xff] }
 0x963   : > { %v13065_v62 = vmax.f32 %v13033_v11, 0.0  ;;  %v12502_v15 = vpop.f32.mrb[156].mxu0 }
 0x964   : > { %v20439_v55 = vpack.c.bf16 %v12891_v35, %v12890_v34  ;;  %v14964_v26 = vadd.f32 %v12502_v15, %v21876_v16  ;;  %v12504_v7 = vpop.f32.mrb[157].mxu0 }
 0x965   : > { %v20442_v54 = vpack.c.bf16 %v13065_v62, %v13064_v18  ;;  %v14965_v10 = vadd.f32 %v12504_v7, %v21877_v57  ;;  %v12506_v53 = vpop.f32.mrb[158].mxu0  ;;  %v21883_v18 = vld [vmem:[#allocation31_spill] sm:$0xff] }
 0x966   : > { %v12860_v27 = vadd.f32 %v14964_v26, %v20382_v1  ;;  %v14966_v46 = vadd.f32 %v12506_v53, %v21878_v9  ;;  %v12508_v58 = vpop.f32.mrb[159].mxu0  ;;  %v21884_v9 = vld [vmem:[#allocation111_spill] sm:$0xff] }
 0x967   : > { %v13034_v41 = vadd.f32 %v14965_v10, %v20388_v0  ;;  %v14967_v37 = vadd.f32 %v12508_v58, %v21879_v38  ;;  %v21885_v38 = vld [vmem:[#allocation91_spill] sm:$0xff] }
 0x968   : > { %v12861_v30 = vadd.f32 %v14966_v46, %v20382_v1  ;;  %v12892_v6 = vmax.f32 %v12860_v27, 0.0 }
 0x969   : > { %v13035_v20 = vadd.f32 %v14967_v37, %v20388_v0  ;;  %v13066_v5 = vmax.f32 %v13034_v41, 0.0 }
 0x96a   : > { %v12893_v19 = vmax.f32 %v12861_v30, 0.0 }
 0x96b   : > { %v13067_v47 = vmax.f32 %v13035_v20, 0.0  ;;  %v12512_v28 = vpop.f32.mrb[160].mxu0 }
 0x96c   : > { %v20451_v22 = vpack.c.bf16 %v12893_v19, %v12892_v6  ;;  %v14968_v39 = vadd.f32 %v12512_v28, %v21880_v42  ;;  %v12514_v36 = vpop.f32.mrb[161].mxu0  ;;  %v21886_v6 = vld [vmem:[#allocation57_spill] sm:$0xff]  ;;  %v21887_v28 = vld [vmem:[#allocation82_spill] sm:$0xff] }
 0x96d   : > { %v20454_v25 = vpack.c.bf16 %v13067_v47, %v13066_v5  ;;  %v14969_v52 = vadd.f32 %v12514_v36, %v21881_v50  ;;  %v12516_v61 = vpop.f32.mrb[162].mxu0 }
 0x96e   : > { %v12862_v12 = vadd.f32 %v14968_v39, %v20382_v1  ;;  %v14970_v11 = vadd.f32 %v12516_v61, %v21882_v59  ;;  %v12518_v34 = vpop.f32.mrb[163].mxu0 }
 0x96f   : > { %v13036_v35 = vadd.f32 %v14969_v52, %v20388_v0  ;;  %v14971_v62 = vadd.f32 %v12518_v34, %v21883_v18  ;;  %v21888_v34 = vld [vmem:[#allocation53_spill] sm:$0xff] }
 0x970   : > { %v12863_v15 = vadd.f32 %v14970_v11, %v20382_v1  ;;  %v12894_v26 = vmax.f32 %v12862_v12, 0.0 }
 0x971   : > { %v13037_v16 = vadd.f32 %v14971_v62, %v20388_v0  ;;  %v13068_v57 = vmax.f32 %v13036_v35, 0.0 }
 0x972   : > { %v12895_v7 = vmax.f32 %v12863_v15, 0.0  ;;  %v21889_v15 = vld [vmem:[#allocation61_spill] sm:$0xff] }
 0x973   : > { %v13069_v10 = vmax.f32 %v13037_v16, 0.0  ;;  %v12522_v53 = vpop.f32.mrb[164].mxu0 }
 0x974   : > { %v20463_v27 = vpack.c.bf16 %v12895_v7, %v12894_v26  ;;  %v14972_v46 = vadd.f32 %v12522_v53, %v21884_v9  ;;  %v12524_v58 = vpop.f32.mrb[165].mxu0 }
 0x975   : > { %v20466_v41 = vpack.c.bf16 %v13069_v10, %v13068_v57  ;;  %v14973_v37 = vadd.f32 %v12524_v58, %v21885_v38  ;;  %v12526_v30 = vpop.f32.mrb[166].mxu0  ;;  %v21890_v57 = vld [vmem:[#allocation121_spill] sm:$0xff] }
 0x976   : > { %v12864_v20 = vadd.f32 %v14972_v46, %v20382_v1  ;;  %v14974_v19 = vadd.f32 %v12526_v30, %v21886_v6  ;;  %v12528_v5 = vpop.f32.mrb[167].mxu0  ;;  %v21891_v46 = vld [vmem:[#allocation64_spill] sm:$0xff] }
 0x977   : > { %v13038_v47 = vadd.f32 %v14973_v37, %v20388_v0  ;;  %v14975_v42 = vadd.f32 %v12528_v5, %v21887_v28  ;;  %v21892_v28 = vld [vmem:[#allocation69_spill] sm:$0xff] }
 0x978   : > { %v12865_v39 = vadd.f32 %v14974_v19, %v20382_v1  ;;  %v12896_v50 = vmax.f32 %v12864_v20, 0.0 }
 0x979   : > { %v13039_v36 = vadd.f32 %v14975_v42, %v20388_v0  ;;  %v13070_v61 = vmax.f32 %v13038_v47, 0.0 }
 0x97a   : > { %v12897_v52 = vmax.f32 %v12865_v39, 0.0 }
 0x97b   : > { %v13071_v12 = vmax.f32 %v13039_v36, 0.0  ;;  %v12532_v59 = vpop.f32.mrb[168].mxu0 }
 0x97c   : > { %v20475_v11 = vpack.c.bf16 %v12897_v52, %v12896_v50  ;;  %v14976_v35 = vadd.f32 %v12532_v59, %v21888_v34  ;;  %v12534_v18 = vpop.f32.mrb[169].mxu0  ;;  %v21893_v50 = vld [vmem:[#allocation56_spill] sm:$0xff] }
 0x97d   : > { %v20478_v62 = vpack.c.bf16 %v13071_v12, %v13070_v61  ;;  %v14977_v16 = vadd.f32 %v12534_v18, %v21889_v15  ;;  %v12536_v26 = vpop.f32.mrb[170].mxu0  ;;  %v21894_v59 = vld [vmem:[#allocation60_spill] sm:$0xff]  ;;  %v21895_v15 = vld [vmem:[#allocation26_spill] sm:$0xff] }
 0x97e   : > { %v12866_v7 = vadd.f32 %v14976_v35, %v20382_v1  ;;  %v14978_v10 = vadd.f32 %v12536_v26, %v21890_v57  ;;  %v12538_v53 = vpop.f32.mrb[171].mxu0 }
 0x97f   : > { %v13040_v9 = vadd.f32 %v14977_v16, %v20388_v0  ;;  %v14979_v58 = vadd.f32 %v12538_v53, %v21891_v46 }
 0x980   : > { %v12867_v38 = vadd.f32 %v14978_v10, %v20382_v1  ;;  %v12898_v30 = vmax.f32 %v12866_v7, 0.0 }
 0x981   : > { %v13041_v37 = vadd.f32 %v14979_v58, %v20388_v0  ;;  %v13072_v6 = vmax.f32 %v13040_v9, 0.0  ;;  %v21896_v58 = vld [vmem:[#allocation52_spill] sm:$0xff] }
 0x982   : > { %v12899_v20 = vmax.f32 %v12867_v38, 0.0 }
 0x983   : > { %v13073_v19 = vmax.f32 %v13041_v37, 0.0  ;;  %v12542_v5 = vpop.f32.mrb[172].mxu0 }
 0x984   : > { %v20487_v47 = vpack.c.bf16 %v12899_v20, %v12898_v30  ;;  %v14980_v42 = vadd.f32 %v12542_v5, %v21892_v28  ;;  %v12544_v39 = vpop.f32.mrb[173].mxu0  ;;  %v21897_v20 = vld [vmem:[#allocation72_spill] sm:$0xff] }
 0x985   : > { %v20490_v36 = vpack.c.bf16 %v13073_v19, %v13072_v6  ;;  %v14981_v52 = vadd.f32 %v12544_v39, %v21893_v50  ;;  %v12546_v61 = vpop.f32.mrb[174].mxu0 }
 0x986   : > { %v12868_v12 = vadd.f32 %v14980_v42, %v20382_v1  ;;  %v14982_v34 = vadd.f32 %v12546_v61, %v21894_v59  ;;  %v12548_v35 = vpop.f32.mrb[175].mxu0  ;;  %v21898_v42 = vld [vmem:[#allocation30_spill] sm:$0xff]  ;;  %v21899_v61 = vld [vmem:[#allocation68_spill] sm:$0xff] }
 0x987   : > { %v13042_v18 = vadd.f32 %v14981_v52, %v20388_v0  ;;  %v14983_v16 = vadd.f32 %v12548_v35, %v21895_v15 }
 0x988   : > { %v12869_v26 = vadd.f32 %v14982_v34, %v20382_v1  ;;  %v12900_v57 = vmax.f32 %v12868_v12, 0.0 }
 0x989   : > { %v13043_v7 = vadd.f32 %v14983_v16, %v20388_v0  ;;  %v13074_v53 = vmax.f32 %v13042_v18, 0.0 }
 0x98a   : > { %v12901_v10 = vmax.f32 %v12869_v26, 0.0 }
 0x98b   : > { %v13075_v9 = vmax.f32 %v13043_v7, 0.0  ;;  %v12552_v46 = vpop.f32.mrb[176].mxu0 }
 0x98c   : > { %v14984_v38 = vadd.f32 %v12552_v46, %v21896_v58  ;;  %v12554_v37 = vpop.f32.mrb[177].mxu0  ;;  %v12926_v30 = vpack.c.bf16 %v12901_v10, %v12900_v57 }
 0x98d   : > { %v14985_v6 = vadd.f32 %v12554_v37, %v21897_v20  ;;  %v12556_v19 = vpop.f32.mrb[178].mxu0  ;;  %v20501_v5 = vpack.c.bf16 %v13075_v9, %v13074_v53  ;;  %v21900_v53 = vld [vmem:[#allocation25_spill] sm:$0xff] }
 0x98e   : > { %v12870_v28 = vadd.f32 %v14984_v38, %v20382_v1  ;;  %v14986_v39 = vadd.f32 %v12556_v19, %v21898_v42  ;;  %v12558_v50 = vpop.f32.mrb[179].mxu0  ;;  %14236 = vmatprep.subr.bf16.mxu1 %v12926_v30  ;;  %v21901_v20 = vld [vmem:[#allocation77_spill] sm:$0xff] }
 0x98f   : > { %v13044_v52 = vadd.f32 %v14985_v6, %v20388_v0  ;;  %v14987_v12 = vadd.f32 %v12558_v50, %v21899_v61  ;;  %14237 = vmatpush3.bf16.msra.mxu1 %v20403_v31 }
 0x990   : > { %v12871_v59 = vadd.f32 %v14986_v39, %v20382_v1  ;;  %v12902_v35 = vmax.f32 %v12870_v28, 0.0 }
 0x991   : > { %v13045_v34 = vadd.f32 %v14987_v12, %v20388_v0  ;;  %v13076_v15 = vmax.f32 %v13044_v52, 0.0 }
 0x992   : > { %v12903_v18 = vmax.f32 %v12871_v59, 0.0  ;;  %v21902_v59 = vld [vmem:[#allocation65_spill] sm:$0xff] }
 0x993   : > { %v13077_v16 = vmax.f32 %v13045_v34, 0.0  ;;  %v12562_v26 = vpop.f32.mrb[180].mxu0 }
 0x994   : > { %v14988_v7 = vadd.f32 %v12562_v26, %v20037_v56  ;;  %v12564_v57 = vpop.f32.mrb[181].mxu0  ;;  %v12927_v10 = vpack.c.bf16 %v12903_v18, %v12902_v35 }
 0x995   : > { %v14989_v9 = vadd.f32 %v12564_v57, %v21900_v53  ;;  %v12566_v46 = vpop.f32.mrb[182].mxu0  ;;  %v20512_v58 = vpack.c.bf16 %v13077_v16, %v13076_v15 }
 0x996   : > { %v12872_v31 = vadd.f32 %v14988_v7, %v20382_v1  ;;  %v14990_v38 = vadd.f32 %v12566_v46, %v20041_v45  ;;  %v12568_v37 = vpop.f32.mrb[183].mxu0  ;;  %14238 = vmatprep.subr.bf16.mxu1 %v12927_v10  ;;  %v21903_v7 = vld [vmem:[#allocation29_spill] sm:$0xff] }
 0x997   : > { %v13046_v30 = vadd.f32 %v14989_v9, %v20388_v0  ;;  %v14991_v6 = vadd.f32 %v12568_v37, %v21901_v20  ;;  %14239 = vmatpush3.bf16.msra.mxu1 %v20415_v2  ;;  %v21904_v20 = vld [vmem:[#allocation73_spill] sm:$0xff] }
 0x998   : > { %v12873_v56 = vadd.f32 %v14990_v38, %v20382_v1  ;;  %v12904_v28 = vmax.f32 %v12872_v31, 0.0 }
 0x999   : > { %v13047_v19 = vadd.f32 %v14991_v6, %v20388_v0  ;;  %v13078_v39 = vmax.f32 %v13046_v30, 0.0 }
 0x99a   : > { %v12905_v42 = vmax.f32 %v12873_v56, 0.0 }
 0x99b   : > { %v13079_v50 = vmax.f32 %v13047_v19, 0.0  ;;  %v12572_v52 = vpop.f32.mrb[184].mxu0 }
 0x99c   : > { %v14992_v61 = vadd.f32 %v12572_v52, %v20050_v29  ;;  %v12574_v45 = vpop.f32.mrb[185].mxu0  ;;  %v12928_v12 = vpack.c.bf16 %v12905_v42, %v12904_v28 }
 0x99d   : > { %v14993_v34 = vadd.f32 %v12574_v45, %v21902_v59  ;;  %v12576_v35 = vpop.f32.mrb[186].mxu0  ;;  %v20523_v18 = vpack.c.bf16 %v13079_v50, %v13078_v39 }
 0x99e   : > { %v12874_v2 = vadd.f32 %v14992_v61, %v20382_v1  ;;  %v14994_v15 = vadd.f32 %v12576_v35, %v20054_v4  ;;  %v12578_v16 = vpop.f32.mrb[187].mxu0  ;;  %14240 = vmatprep.subr.bf16.mxu1 %v12928_v12 }
 0x99f   : > { %v13048_v26 = vadd.f32 %v14993_v34, %v20388_v0  ;;  %v14995_v57 = vadd.f32 %v12578_v16, %v21903_v7  ;;  %14241 = vmatpush3.bf16.msra.mxu1 %v20427_v63 }
 0x9a0   : > { %v12875_v29 = vadd.f32 %v14994_v15, %v20382_v1  ;;  %v12906_v53 = vmax.f32 %v12874_v2, 0.0  ;;  %v21905_v15 = vld [vmem:[#allocation81_spill] sm:$0xff] }
 0x9a1   : > { %v13049_v10 = vadd.f32 %v14995_v57, %v20388_v0  ;;  %v13080_v46 = vmax.f32 %v13048_v26, 0.0 }
 0x9a2   : > { %v12907_v9 = vmax.f32 %v12875_v29, 0.0 }
 0x9a3   : > { %v13081_v31 = vmax.f32 %v13049_v10, 0.0  ;;  %v12582_v38 = vpop.f32.mrb[188].mxu0 }
 0x9a4   : > { %v14996_v37 = vadd.f32 %v12582_v38, %v20063_v43  ;;  %v12584_v4 = vpop.f32.mrb[189].mxu0  ;;  %v12929_v30 = vpack.c.bf16 %v12907_v9, %v12906_v53 }
 0x9a5   : > { %v14997_v6 = vadd.f32 %v12584_v4, %v21904_v20  ;;  %v12586_v56 = vpop.f32.mrb[190].mxu0  ;;  %v20534_v19 = vpack.c.bf16 %v13081_v31, %v13080_v46 }
 0x9a6   : > { %v12876_v63 = vadd.f32 %v14996_v37, %v20382_v1  ;;  %v14998_v28 = vadd.f32 %v12586_v56, %v20067_v13  ;;  %v12588_v42 = vpop.f32.mrb[191].mxu0  ;;  %14242 = vmatprep.subr.bf16.mxu1 %v12929_v30 }
 0x9a7   : > { %v13050_v39 = vadd.f32 %v14997_v6, %v20388_v0  ;;  %v14999_v50 = vadd.f32 %v12588_v42, %v20069_v32  ;;  %14243 = vmatpush3.bf16.msra.mxu1 %v20439_v55  ;;  %v21906_v42 = vld [vmem:[#allocation41_spill] sm:$0xff] }
 0x9a8   : > { %v12877_v43 = vadd.f32 %v14998_v28, %v20382_v1  ;;  %v12908_v61 = vmax.f32 %v12876_v63, 0.0 }
 0x9a9   : > { %v13051_v52 = vadd.f32 %v14999_v50, %v20388_v0  ;;  %v13082_v12 = vmax.f32 %v13050_v39, 0.0 }
 0x9aa   : > { %v12909_v45 = vmax.f32 %v12877_v43, 0.0 }
 0x9ab   : > { %v13083_v59 = vmax.f32 %v13051_v52, 0.0  ;;  %v12592_v34 = vpop.f32.mrb[192].mxu0 }
 0x9ac   : > { %v15000_v35 = vadd.f32 %v12592_v34, %v20076_v3  ;;  %v12594_v13 = vpop.f32.mrb[193].mxu0  ;;  %v12930_v2 = vpack.c.bf16 %v12909_v45, %v12908_v61 }
 0x9ad   : > { %v15001_v16 = vadd.f32 %v12594_v13, %v21905_v15  ;;  %v12596_v26 = vpop.f32.mrb[194].mxu0  ;;  %v20545_v7 = vpack.c.bf16 %v13083_v59, %v13082_v12 }
 0x9ae   : > { %v12878_v32 = vadd.f32 %v15000_v35, %v20382_v1  ;;  %v15002_v55 = vadd.f32 %v12596_v26, %v20080_v14  ;;  %v12598_v57 = vpop.f32.mrb[195].mxu0  ;;  %14244 = vmatprep.subr.bf16.mxu1 %v12930_v2 }
 0x9af   : > { %v13052_v29 = vadd.f32 %v15001_v16, %v20388_v0  ;;  %v15003_v10 = vadd.f32 %v12598_v57, %v20082_v33  ;;  %14245 = vmatpush3.bf16.msra.mxu1 %v20451_v22 }
 0x9b0   : > { %v12879_v3 = vadd.f32 %v15002_v55, %v20382_v1  ;;  %v12910_v9 = vmax.f32 %v12878_v32, 0.0 }
 0x9b1   : > { %v13053_v53 = vadd.f32 %v15003_v10, %v20388_v0  ;;  %v13084_v31 = vmax.f32 %v13052_v29, 0.0 }
 0x9b2   : > { %v12911_v46 = vmax.f32 %v12879_v3, 0.0 }
 0x9b3   : > { %v13085_v38 = vmax.f32 %v13053_v53, 0.0  ;;  %v12602_v37 = vpop.f32.mrb[196].mxu0 }
 0x9b4   : > { %v15004_v4 = vadd.f32 %v12602_v37, %v20089_v44  ;;  %v12604_v14 = vpop.f32.mrb[197].mxu0  ;;  %v12931_v30 = vpack.c.bf16 %v12911_v46, %v12910_v9 }
 0x9b5   : > { %v15005_v20 = vadd.f32 %v12604_v14, %v20091_v60  ;;  %v12606_v6 = vpop.f32.mrb[198].mxu0  ;;  %v13105_v56 = vpack.c.bf16 %v13085_v38, %v13084_v31 }
 0x9b6   : > { %v12880_v33 = vadd.f32 %v15004_v4, %v20382_v1  ;;  %v15006_v22 = vadd.f32 %v12606_v6, %v20093_v24  ;;  %v12608_v63 = vpop.f32.mrb[199].mxu0  ;;  %14246 = vmatprep.subr.bf16.mxu1 %v12931_v30 }
 0x9b7   : > { %v13054_v28 = vadd.f32 %v15005_v20, %v20388_v0  ;;  %v15007_v39 = vadd.f32 %v12608_v63, %v21906_v42  ;;  %14247 = vmatpush3.bf16.msra.mxu1 %v20463_v27 }
 0x9b8   : > { %v12881_v44 = vadd.f32 %v15006_v22, %v20382_v1  ;;  %v12912_v43 = vmax.f32 %v12880_v33, 0.0 }
 0x9b9   : > { %v13055_v50 = vadd.f32 %v15007_v39, %v20388_v0  ;;  %v13086_v52 = vmax.f32 %v13054_v28, 0.0 }
 0x9ba   : > { %v12913_v60 = vmax.f32 %v12881_v44, 0.0 }
 0x9bb   : > { %v13087_v61 = vmax.f32 %v13055_v50, 0.0  ;;  %v12612_v45 = vpop.f32.mrb[200].mxu0 }
 0x9bc   : > { %v15008_v12 = vadd.f32 %v12612_v45, %v20105_v8  ;;  %v12614_v24 = vpop.f32.mrb[201].mxu0  ;;  %v12932_v59 = vpack.c.bf16 %v12913_v60, %v12912_v43 }
 0x9bd   : > { %v15009_v34 = vadd.f32 %v12614_v24, %v20107_v21  ;;  %v12616_v35 = vpop.f32.mrb[202].mxu0  ;;  %v13106_v13 = vpack.c.bf16 %v13087_v61, %v13086_v52 }
 0x9be   : > { %v12882_v2 = vadd.f32 %v15008_v12, %v20382_v1  ;;  %v15010_v27 = vadd.f32 %v12616_v35, %v20109_v48  ;;  %v12618_v15 = vpop.f32.mrb[203].mxu0  ;;  %14248 = vmatprep.subr.bf16.mxu1 %v12932_v59  ;;  %v15991_v48 = vld [vmem:[%s20604_s7] ss:$8 sps:$4 sm:$0xff]  }
 0x9bf   : > { %v13056_v16 = vadd.f32 %v15009_v34, %v20388_v0  ;;  %v15011_v26 = vadd.f32 %v12618_v15, %v20111_v17  ;;  %14249 = vmatpush3.bf16.msra.mxu1 %v20475_v11 }
 0x9c0   : > { %v12883_v8 = vadd.f32 %v15010_v27, %v20382_v1  ;;  %v12914_v55 = vmax.f32 %v12882_v2, 0.0 }
 0x9c1   : > { %v13057_v32 = vadd.f32 %v15011_v26, %v20388_v0  ;;  %v13088_v57 = vmax.f32 %v13056_v16, 0.0 }
 0x9c2   : > { %v12915_v21 = vmax.f32 %v12883_v8, 0.0 }
 0x9c3   : > { %v13089_v29 = vmax.f32 %v13057_v32, 0.0 }
 0x9c4   : > { %v12933_v10 = vpack.c.bf16 %v12915_v21, %v12914_v55 }
 0x9c5   : > { %v13107_v3 = vpack.c.bf16 %v13089_v29, %v13088_v57 }
 0x9c6   : > { %14250 = vmatprep.subr.bf16.mxu1 %v12933_v10 }
 0x9c7   : > { %14251 = vmatpush3.bf16.msra.mxu1 %v20487_v47 }
 0x9c8   : > { %14258 = vmatprep.subr.bf16.mxu1 %v20501_v5 }
 0x9ca   : > { %12977 = vmatmul.mubr.bf16.vlgmr.msra.gmra.mrb[244].mxu1 %v15991_v48 }
 0x9cb   : > { %14259 = vmatpush3.bf16.msra.mxu1 %v20406_v51  ;;  %13150 = vmatprep.mubr.bf16.mxu1 %v20399_v23 }
 0x9cc   : > { %14260 = vmatprep.subr.bf16.mxu1 %v20512_v58 }
 0x9cf   : > { %14261 = vmatpush3.bf16.msra.mxu1 %v20418_v49 }
 0x9d0   : > { %14262 = vmatprep.subr.bf16.mxu1 %v20523_v18 }
 0x9d3   : > { %14263 = vmatpush3.bf16.msra.mxu1 %v20430_v40 }
 0x9d4   : > { %14264 = vmatprep.subr.bf16.mxu1 %v20534_v19 }
 0x9d7   : > { %14265 = vmatpush3.bf16.msra.mxu1 %v20442_v54 }
 0x9d8   : > { %14266 = vmatprep.subr.bf16.mxu1 %v20545_v7 }
 0x9db   : > { %14267 = vmatpush3.bf16.msra.mxu1 %v20454_v25 }
 0x9dc   : > { %14268 = vmatprep.subr.bf16.mxu1 %v13105_v56 }
 0x9df   : > { %14269 = vmatpush3.bf16.msra.mxu1 %v20466_v41 }
 0x9e0   : > { %14270 = vmatprep.subr.bf16.mxu1 %v13106_v13 }
 0x9e3   : > { %14271 = vmatpush3.bf16.msra.mxu1 %v20478_v62 }
 0x9e4   : > { %14272 = vmatprep.subr.bf16.mxu1 %v13107_v3 }
 0x9e7   : > { %14273 = vmatpush3.bf16.msra.mxu1 %v20490_v36 }
 0x9ea   : > { %13151 = vmatmul.mubr.bf16.vlgmr.msra.gmra.mrb[248].mxu1 %v15991_v48 }
 0xa9d   : > { %v14252_v17 = vpop.f32.mrb[244].mxu1 }
 0xa9e   : > { %v14253_v1 = vpop.f32.mrb[245].mxu1 }
 0xa9f   : > { %v14254_v0 = vadd.f32 %v14253_v1, %v14252_v17  ;;  %v14255_v23 = vpop.f32.mrb[246].mxu1 }
 0xaa0   : > { %v14256_v51 = vpop.f32.mrb[247].mxu1 }
 0xaa1   : > { %12985 = vst [vmem:[%s359_s18] sm:$0xff] %v14254_v0  ;;  %v14257_v49 = vadd.f32 %v14256_v51, %v14255_v23 }
 0xaa3   : > { %12986 = vst [vmem:[%s359_s18 + $0x10] sm:$0xff] %v14257_v49 }
 0xabd   : > { %v14274_v40 = vpop.f32.mrb[248].mxu1 }
 0xabe   : > { %v14275_v54 = vpop.f32.mrb[249].mxu1 }
 0xabf   : > { %v14276_v25 = vadd.f32 %v14275_v54, %v14274_v40  ;;  %v14277_v41 = vpop.f32.mrb[250].mxu1 }
 0xac0   : > { %v14278_v11 = vpop.f32.mrb[251].mxu1 }
 0xac1   : > { %13159 = vst [vmem:[%s359_s18 + $0x8] sm:$0xff] %v14276_v25  ;;  %v14279_v62 = vadd.f32 %v14278_v11, %v14277_v41 }
 0xac3   : > { %13160 = vst [vmem:[%s359_s18 + $0x18] sm:$0xff] %v14279_v62 }
 0xac4 PF: > { %s20_s13 = sadd.s32 1, %s16002_s13  }
 0xac5   : > { %p17_p4 = scmp.ge.s32.totalorder %s20_s13, 4  }
 0xac7   :  { %19 = sbr.rel (!%p17_p4) target bundleno = 1 (0x1), region = 114 }

</bundles_post_ra>
